<compile_context>
chip_gen: v5e
topology: v5e:2x2
jax: 0.10.0
libtpu: 0.0.40
codegen_flags: <defaults>
</compile_context>

<pallas_src>
import numpy as np
import jax
import jax.numpy as jnp
from jax import lax
from jax.experimental import pallas as pl
from jax.experimental.pallas import tpu as pltpu


# ----------------------------------------------------------------------------
# Bilinear interpolation matrix (PyTorch F.interpolate, mode='bilinear',
# align_corners=False, antialias=False) as a dense (out, in) matrix (numpy).
# ----------------------------------------------------------------------------
def bilinear_matrix(out_size, in_size):
    scale = in_size / out_size
    i = np.arange(out_size, dtype=np.float64)
    src = (i + 0.5) * scale - 0.5
    src = np.maximum(src, 0.0)                 # PyTorch clamps negative src to 0
    i0 = np.floor(src).astype(np.int64)
    frac = src - i0
    i0 = np.clip(i0, 0, in_size - 1)
    i1 = np.clip(i0 + 1, 0, in_size - 1)
    M = np.zeros((out_size, in_size), dtype=np.float32)
    M[np.arange(out_size), i0] += (1.0 - frac).astype(np.float32)
    M[np.arange(out_size), i1] += frac.astype(np.float32)
    return M


# ----------------------------------------------------------------------------
# Fused decoder kernel (one batch element per grid step).
# ----------------------------------------------------------------------------
def _make_decoder_kernel(Cx, Cs, Hin, Win, Hs, Ws, Hout, Wout, Cout, K):
    pad = K // 2
    Hp, Wp = Hout + 2 * pad, Wout + 2 * pad
    Ct = Cx + Cs
    HW = Hout * Wout

    def _resize_to_padded(x, wh_pad, wwt_pad, C, Hi, Wi):
        # x: (C, Hi, Wi) -> (C, Hp, Wp); conv halo zeros come from the zero
        # border rows/cols baked into wh_pad / wwt_pad.
        # Width resize: one big matmul (C*Hi rows), lane dim = Wp.
        a = jnp.dot(x.reshape(C * Hi, Wi), wwt_pad,
                    preferred_element_type=jnp.float32).reshape(C, Hi, Wp)
        # Height resize: batched over channels (C small), no transposes needed.
        wh_b = jnp.broadcast_to(wh_pad, (C, Hp, Hi))
        return lax.dot_general(
            wh_b, a,
            dimension_numbers=(((2,), (1,)), ((0,), (0,))),
            preferred_element_type=jnp.float32)                  # (C, Hp, Wp)

    def kernel(x_ref, s_ref, whx_ref, wwtx_ref, whs_ref, wwts_ref,
               w2d_ref, b_ref, o_ref):
        # Resize (already zero-padded for the conv halo).
        x_pad = _resize_to_padded(x_ref[0], whx_ref[...], wwtx_ref[...],
                                  Cx, Hin, Win)
        s_pad = _resize_to_padded(s_ref[0], whs_ref[...], wwts_ref[...],
                                  Cs, Hs, Ws)
        feat = jnp.concatenate([x_pad, s_pad], axis=0)           # (Ct, Hp, Wp)

        # im2col: taps ordered (ky, kx, cin) to match the w2d reshape.
        cols = []
        for dy in range(K):
            for dx in range(K):
                cols.append(
                    feat[:, dy:dy + Hout, dx:dx + Wout].reshape(Ct, HW))
        col = jnp.concatenate(cols, axis=0)                      # (K*K*Ct, HW)

        # One MXU matmul: (Cout, K*K*Ct) @ (K*K*Ct, HW) -> (Cout, HW).
        acc = jnp.dot(w2d_ref[...], col,
                      preferred_element_type=jnp.float32)
        o_ref[0] = acc + b_ref[...]                              # bias (Cout,1)

    return kernel


# ----------------------------------------------------------------------------
# Decoder module (matches the PyTorch forward semantics).
# ----------------------------------------------------------------------------
class DecoderPallas:
    def __init__(self, skip_channels, in_channels, out_channels,
                 kernel_size=3, scale=2, key=jax.random.PRNGKey(0)):
        total_in = in_channels + skip_channels
        self.out_channels = out_channels
        self.kernel_size = kernel_size
        self.scale = scale
        # Deterministic init mimicking torch.nn.Conv2d default
        # (uniform +/- 1/sqrt(fan_in)); weight layout OIHW like torch.
        k1, k2 = jax.random.split(key)
        fan_in = total_in * kernel_size * kernel_size
        bound = 1.0 / np.sqrt(fan_in)
        self.weight = jax.random.uniform(
            k1, (out_channels, total_in, kernel_size, kernel_size),
            jnp.float32, -bound, bound)
        self.bias = jax.random.uniform(k2, (out_channels,), jnp.float32,
                                       -bound, bound)
        # Precompute single-matmul conv form, contraction order (ky, kx, cin).
        self.w2d = jnp.transpose(self.weight, (0, 2, 3, 1)).reshape(
            out_channels, kernel_size * kernel_size * total_in)
        self.bias2 = self.bias.reshape(out_channels, 1)

    def __call__(self, x, skip):
        N, Cx, Hin, Win = x.shape
        Ns, Cs, Hs, Ws = skip.shape
        assert Ns == N
        K = self.kernel_size
        pad = K // 2
        Hout, Wout = Hin * self.scale, Win * self.scale
        Hp, Wp = Hout + 2 * pad, Wout + 2 * pad
        Cout = self.out_channels
        Ct = Cx + Cs
        HW = Hout * Wout

        # Interpolation matrices with the conv's zero halo folded in:
        #   rows/cols 0 and -1 of the padded output are all-zero.
        whx = jnp.asarray(np.pad(bilinear_matrix(Hout, Hin), ((pad, pad), (0, 0))))
        wwtx = jnp.asarray(np.pad(bilinear_matrix(Wout, Win), ((pad, pad), (0, 0))).T)
        whs = jnp.asarray(np.pad(bilinear_matrix(Hout, Hs), ((pad, pad), (0, 0))))
        wwts = jnp.asarray(np.pad(bilinear_matrix(Wout, Ws), ((pad, pad), (0, 0))).T)

        kernel = _make_decoder_kernel(Cx, Cs, Hin, Win, Hs, Ws,
                                      Hout, Wout, Cout, K)
        out_flat = pl.pallas_call(
            kernel,
            out_shape=jax.ShapeDtypeStruct((N, Cout, HW), jnp.float32),
            grid_spec=pltpu.PrefetchScalarGridSpec(
                num_scalar_prefetch=0,
                grid=(N,),
                in_specs=[
                    pl.BlockSpec((1, Cx, Hin, Win), lambda n: (n, 0, 0, 0)),
                    pl.BlockSpec((1, Cs, Hs, Ws), lambda n: (n, 0, 0, 0)),
                    pl.BlockSpec((Hp, Hin), lambda n: (0, 0)),
                    pl.BlockSpec((Win, Wp), lambda n: (0, 0)),
                    pl.BlockSpec((Hp, Hs), lambda n: (0, 0)),
                    pl.BlockSpec((Ws, Wp), lambda n: (0, 0)),
                    pl.BlockSpec((Cout, K * K * Ct), lambda n: (0, 0)),
                    pl.BlockSpec((Cout, 1), lambda n: (0, 0)),
                ],
                out_specs=pl.BlockSpec((1, Cout, HW), lambda n: (n, 0, 0)),
            ),
            compiler_params=pltpu.CompilerParams(
                dimension_semantics=("parallel",)),
        )(x, skip, whx, wwtx, whs, wwts, self.w2d, self.bias2)
        # Contiguous reshape back to NCHW (no data movement).
        return out_flat.reshape(N, Cout, Hout, Wout)


# ----------------------------------------------------------------------------
# Pure-JAX reference (same interpolation matrices, lax.conv) for validation.
# ----------------------------------------------------------------------------
def decoder_reference(dec, x, skip):
    Hout, Wout = x.shape[2] * dec.scale, x.shape[3] * dec.scale

    def ref_resize(t, hw):
        wh = jnp.asarray(bilinear_matrix(hw[0], t.shape[2]))
        ww = jnp.asarray(bilinear_matrix(hw[1], t.shape[3]))
        return jnp.einsum('oh,nchw,pw->ncop', wh, t, ww)

    feat = jnp.concatenate([ref_resize(x, (Hout, Wout)),
                            ref_resize(skip, (Hout, Wout))], axis=1)
    out = lax.conv_general_dilated(
        feat, dec.weight, window_strides=(1, 1), padding='SAME',
        dimension_numbers=('NCHW', 'OIHW', 'NCHW'),
        preferred_element_type=jnp.float32)
    return out + dec.bias.reshape(1, -1, 1, 1)


if __name__ == "__main__":
    key = jax.random.PRNGKey(0)
    kx, ks, kp = jax.random.split(key, 3)

    # batch=2, in_channels=4, skip_channels=4, out_channels=8,
    # x spatial 16x16 (upsampled to 32x32), skip spatial 20x20 (resized to 32x32).
    x = jax.random.normal(kx, (2, 4, 16, 16), jnp.float32)
    skip = jax.random.normal(ks, (2, 4, 20, 20), jnp.float32)

    dec = DecoderPallas(skip_channels=4, in_channels=4, out_channels=8,
                        kernel_size=3, scale=2, key=kp)

    out = jax.block_until_ready(dec(x, skip))
    assert out.shape == (2, 8, 32, 32), out.shape

    ref = jax.block_until_ready(decoder_reference(dec, x, skip))
    np.testing.assert_allclose(np.asarray(out), np.asarray(ref),
                               rtol=2e-3, atol=2e-3)

    print("KERNEL_OK")
</pallas_src>

<mosaic_0001>
module attributes {stable_mosaic.version = 11 : i64} {
  func.func @kernel(%arg0: i32, %arg1: memref<1x4x16x16xf32, #tpu.memory_space<vmem>>, %arg2: memref<1x4x20x20xf32, #tpu.memory_space<vmem>>, %arg3: memref<34x16xf32, #tpu.memory_space<vmem>>, %arg4: memref<16x34xf32, #tpu.memory_space<vmem>>, %arg5: memref<34x20xf32, #tpu.memory_space<vmem>>, %arg6: memref<20x34xf32, #tpu.memory_space<vmem>>, %arg7: memref<8x72xf32, #tpu.memory_space<vmem>>, %arg8: memref<8x1xf32, #tpu.memory_space<vmem>>, %arg9: memref<1x8x1024xf32, #tpu.memory_space<vmem>>) attributes {dimension_semantics = [#tpu.dimension_semantics<parallel>], iteration_bounds = array<i64: 2>, scalar_prefetch = 0 : i64, scratch_operands = 0 : i64, tpu.core_type = #tpu.core_type<tc>, window_params = [{transform_indices = @transform_0, window_bounds = array<i64: 1, 4, 16, 16>}, {transform_indices = @transform_1, window_bounds = array<i64: 1, 4, 20, 20>}, {pipeline_mode = #tpu.pipeline_mode<synchronous>, transform_indices = @transform_2, window_bounds = array<i64: 34, 16>}, {pipeline_mode = #tpu.pipeline_mode<synchronous>, transform_indices = @transform_3, window_bounds = array<i64: 16, 34>}, {pipeline_mode = #tpu.pipeline_mode<synchronous>, transform_indices = @transform_4, window_bounds = array<i64: 34, 20>}, {pipeline_mode = #tpu.pipeline_mode<synchronous>, transform_indices = @transform_5, window_bounds = array<i64: 20, 34>}, {pipeline_mode = #tpu.pipeline_mode<synchronous>, transform_indices = @transform_6, window_bounds = array<i64: 8, 72>}, {pipeline_mode = #tpu.pipeline_mode<synchronous>, transform_indices = @transform_7, window_bounds = array<i64: 8, 1>}, {transform_indices = @transform_8, window_bounds = array<i64: 1, 8, 1024>}]} {
    %c0 = arith.constant 0 : index
    %c0_0 = arith.constant 0 : index
    %c0_1 = arith.constant 0 : index
    %c0_2 = arith.constant 0 : index
    %0 = vector.load %arg1[%c0, %c0_0, %c0_1, %c0_2] : memref<1x4x16x16xf32, #tpu.memory_space<vmem>>, vector<1x4x16x16xf32>
    %1 = vector.shape_cast %0 : vector<1x4x16x16xf32> to vector<4x16x16xf32>
    %c0_3 = arith.constant 0 : index
    %c0_4 = arith.constant 0 : index
    %2 = vector.load %arg3[%c0_3, %c0_4] : memref<34x16xf32, #tpu.memory_space<vmem>>, vector<34x16xf32>
    %c0_5 = arith.constant 0 : index
    %c0_6 = arith.constant 0 : index
    %3 = vector.load %arg4[%c0_5, %c0_6] : memref<16x34xf32, #tpu.memory_space<vmem>>, vector<16x34xf32>
    %4 = vector.shape_cast %1 : vector<4x16x16xf32> to vector<64x16xf32>
    %cst = arith.constant dense<0.000000e+00> : vector<64x34xf32>
    %5 = tpu.matmul %4, %3, %cst {dimension_numbers = #tpu.dot_dimension_numbers<[1], [0], [0], [1], [0, 0, 1, 1], [], []>} : vector<64x16xf32>, vector<16x34xf32>, vector<64x34xf32> -> vector<64x34xf32>
    %6 = vector.shape_cast %5 : vector<64x34xf32> to vector<4x16x34xf32>
    %7 = vector.shape_cast %2 : vector<34x16xf32> to vector<1x34x16xf32>
    %8 = vector.broadcast %7 : vector<1x34x16xf32> to vector<4x34x16xf32>
    %cst_7 = arith.constant dense<0.000000e+00> : vector<4x34x34xf32>
    %9 = tpu.matmul %8, %6, %cst_7 {dimension_numbers = #tpu.dot_dimension_numbers<[2], [1], [1], [2], [0, 0, 0, 1, 1, 2], [0], [0]>} : vector<4x34x16xf32>, vector<4x16x34xf32>, vector<4x34x34xf32> -> vector<4x34x34xf32>
    %c0_8 = arith.constant 0 : index
    %c0_9 = arith.constant 0 : index
    %c0_10 = arith.constant 0 : index
    %c0_11 = arith.constant 0 : index
    %10 = vector.load %arg2[%c0_8, %c0_9, %c0_10, %c0_11] : memref<1x4x20x20xf32, #tpu.memory_space<vmem>>, vector<1x4x20x20xf32>
    %11 = vector.shape_cast %10 : vector<1x4x20x20xf32> to vector<4x20x20xf32>
    %c0_12 = arith.constant 0 : index
    %c0_13 = arith.constant 0 : index
    %12 = vector.load %arg5[%c0_12, %c0_13] : memref<34x20xf32, #tpu.memory_space<vmem>>, vector<34x20xf32>
    %c0_14 = arith.constant 0 : index
    %c0_15 = arith.constant 0 : index
    %13 = vector.load %arg6[%c0_14, %c0_15] : memref<20x34xf32, #tpu.memory_space<vmem>>, vector<20x34xf32>
    %14 = vector.shape_cast %11 : vector<4x20x20xf32> to vector<80x20xf32>
    %cst_16 = arith.constant dense<0.000000e+00> : vector<80x34xf32>
    %15 = tpu.matmul %14, %13, %cst_16 {dimension_numbers = #tpu.dot_dimension_numbers<[1], [0], [0], [1], [0, 0, 1, 1], [], []>} : vector<80x20xf32>, vector<20x34xf32>, vector<80x34xf32> -> vector<80x34xf32>
    %16 = vector.shape_cast %15 : vector<80x34xf32> to vector<4x20x34xf32>
    %17 = vector.shape_cast %12 : vector<34x20xf32> to vector<1x34x20xf32>
    %18 = vector.broadcast %17 : vector<1x34x20xf32> to vector<4x34x20xf32>
    %cst_17 = arith.constant dense<0.000000e+00> : vector<4x34x34xf32>
    %19 = tpu.matmul %18, %16, %cst_17 {dimension_numbers = #tpu.dot_dimension_numbers<[2], [1], [1], [2], [0, 0, 0, 1, 1, 2], [0], [0]>} : vector<4x34x20xf32>, vector<4x20x34xf32>, vector<4x34x34xf32> -> vector<4x34x34xf32>
    %20 = tpu.concatenate %9, %19 in 0 : vector<4x34x34xf32>, vector<4x34x34xf32> -> vector<8x34x34xf32>
    %21 = vector.extract_strided_slice %20 {offsets = [0, 0, 0], sizes = [8, 32, 32], strides = [1, 1, 1]} : vector<8x34x34xf32> to vector<8x32x32xf32>
    %22 = vector.shape_cast %21 : vector<8x32x32xf32> to vector<8x1024xf32>
    %23 = vector.extract_strided_slice %20 {offsets = [0, 0, 1], sizes = [8, 32, 32], strides = [1, 1, 1]} : vector<8x34x34xf32> to vector<8x32x32xf32>
    %24 = vector.shape_cast %23 : vector<8x32x32xf32> to vector<8x1024xf32>
    %25 = vector.extract_strided_slice %20 {offsets = [0, 0, 2], sizes = [8, 32, 32], strides = [1, 1, 1]} : vector<8x34x34xf32> to vector<8x32x32xf32>
    %26 = vector.shape_cast %25 : vector<8x32x32xf32> to vector<8x1024xf32>
    %27 = vector.extract_strided_slice %20 {offsets = [0, 1, 0], sizes = [8, 32, 32], strides = [1, 1, 1]} : vector<8x34x34xf32> to vector<8x32x32xf32>
    %28 = vector.shape_cast %27 : vector<8x32x32xf32> to vector<8x1024xf32>
    %29 = vector.extract_strided_slice %20 {offsets = [0, 1, 1], sizes = [8, 32, 32], strides = [1, 1, 1]} : vector<8x34x34xf32> to vector<8x32x32xf32>
    %30 = vector.shape_cast %29 : vector<8x32x32xf32> to vector<8x1024xf32>
    %31 = vector.extract_strided_slice %20 {offsets = [0, 1, 2], sizes = [8, 32, 32], strides = [1, 1, 1]} : vector<8x34x34xf32> to vector<8x32x32xf32>
    %32 = vector.shape_cast %31 : vector<8x32x32xf32> to vector<8x1024xf32>
    %33 = vector.extract_strided_slice %20 {offsets = [0, 2, 0], sizes = [8, 32, 32], strides = [1, 1, 1]} : vector<8x34x34xf32> to vector<8x32x32xf32>
    %34 = vector.shape_cast %33 : vector<8x32x32xf32> to vector<8x1024xf32>
    %35 = vector.extract_strided_slice %20 {offsets = [0, 2, 1], sizes = [8, 32, 32], strides = [1, 1, 1]} : vector<8x34x34xf32> to vector<8x32x32xf32>
    %36 = vector.shape_cast %35 : vector<8x32x32xf32> to vector<8x1024xf32>
    %37 = vector.extract_strided_slice %20 {offsets = [0, 2, 2], sizes = [8, 32, 32], strides = [1, 1, 1]} : vector<8x34x34xf32> to vector<8x32x32xf32>
    %38 = vector.shape_cast %37 : vector<8x32x32xf32> to vector<8x1024xf32>
    %39 = tpu.concatenate %22, %24, %26, %28, %30, %32, %34, %36, %38 in 0 : vector<8x1024xf32>, vector<8x1024xf32>, vector<8x1024xf32>, vector<8x1024xf32>, vector<8x1024xf32>, vector<8x1024xf32>, vector<8x1024xf32>, vector<8x1024xf32>, vector<8x1024xf32> -> vector<72x1024xf32>
    %c0_18 = arith.constant 0 : index
    %c0_19 = arith.constant 0 : index
    %40 = vector.load %arg7[%c0_18, %c0_19] : memref<8x72xf32, #tpu.memory_space<vmem>>, vector<8x72xf32>
    %cst_20 = arith.constant dense<0.000000e+00> : vector<8x1024xf32>
    %41 = tpu.matmul %40, %39, %cst_20 {dimension_numbers = #tpu.dot_dimension_numbers<[1], [0], [0], [1], [0, 0, 1, 1], [], []>} : vector<8x72xf32>, vector<72x1024xf32>, vector<8x1024xf32> -> vector<8x1024xf32>
    %c0_21 = arith.constant 0 : index
    %c0_22 = arith.constant 0 : index
    %42 = vector.load %arg8[%c0_21, %c0_22] : memref<8x1xf32, #tpu.memory_space<vmem>>, vector<8x1xf32>
    %43 = vector.broadcast %42 : vector<8x1xf32> to vector<8x1024xf32>
    %44 = arith.addf %41, %43 : vector<8x1024xf32>
    %c0_23 = arith.constant 0 : index
    %c0_24 = arith.constant 0 : index
    %c0_25 = arith.constant 0 : index
    %45 = vector.load %arg9[%c0_23, %c0_24, %c0_25] : memref<1x8x1024xf32, #tpu.memory_space<vmem>>, vector<1x8x1024xf32>
    %46 = vector.shape_cast %45 : vector<1x8x1024xf32> to vector<8x1024xf32>
    %47 = vector.shape_cast %44 : vector<8x1024xf32> to vector<1x8x1024xf32>
    tpu.vector_store %arg9[%c0_23, %c0_24, %c0_25], %47 {strides = array<i32>} : memref<1x8x1024xf32, #tpu.memory_space<vmem>>, vector<1x8x1024xf32>,
    return
  }
  func.func @transform_0(%arg0: i32) -> (i32, i32, i32, i32) {
    %c0_i32 = arith.constant 0 : i32
    %c0_i32_0 = arith.constant 0 : i32
    %c0_i32_1 = arith.constant 0 : i32
    %c0_i32_2 = arith.constant 0 : i32
    return %arg0, %c0_i32, %c0_i32_0, %c0_i32_1 : i32, i32, i32, i32
  }
  func.func @transform_1(%arg0: i32) -> (i32, i32, i32, i32) {
    %c0_i32 = arith.constant 0 : i32
    %c0_i32_0 = arith.constant 0 : i32
    %c0_i32_1 = arith.constant 0 : i32
    %c0_i32_2 = arith.constant 0 : i32
    return %arg0, %c0_i32, %c0_i32_0, %c0_i32_1 : i32, i32, i32, i32
  }
  func.func @transform_2(%arg0: i32) -> (i32, i32) {
    %c0_i32 = arith.constant 0 : i32
    %c0_i32_0 = arith.constant 0 : i32
    %c0_i32_1 = arith.constant 0 : i32
    return %c0_i32, %c0_i32_0 : i32, i32
  }
  func.func @transform_3(%arg0: i32) -> (i32, i32) {
    %c0_i32 = arith.constant 0 : i32
    %c0_i32_0 = arith.constant 0 : i32
    %c0_i32_1 = arith.constant 0 : i32
    return %c0_i32, %c0_i32_0 : i32, i32
  }
  func.func @transform_4(%arg0: i32) -> (i32, i32) {
    %c0_i32 = arith.constant 0 : i32
    %c0_i32_0 = arith.constant 0 : i32
    %c0_i32_1 = arith.constant 0 : i32
    return %c0_i32, %c0_i32_0 : i32, i32
  }
  func.func @transform_5(%arg0: i32) -> (i32, i32) {
    %c0_i32 = arith.constant 0 : i32
    %c0_i32_0 = arith.constant 0 : i32
    %c0_i32_1 = arith.constant 0 : i32
    return %c0_i32, %c0_i32_0 : i32, i32
  }
  func.func @transform_6(%arg0: i32) -> (i32, i32) {
    %c0_i32 = arith.constant 0 : i32
    %c0_i32_0 = arith.constant 0 : i32
    %c0_i32_1 = arith.constant 0 : i32
    return %c0_i32, %c0_i32_0 : i32, i32
  }
  func.func @transform_7(%arg0: i32) -> (i32, i32) {
    %c0_i32 = arith.constant 0 : i32
    %c0_i32_0 = arith.constant 0 : i32
    %c0_i32_1 = arith.constant 0 : i32
    return %c0_i32, %c0_i32_0 : i32, i32
  }
  func.func @transform_8(%arg0: i32) -> (i32, i32, i32) {
    %c0_i32 = arith.constant 0 : i32
    %c0_i32_0 = arith.constant 0 : i32
    %c0_i32_1 = arith.constant 0 : i32
    return %arg0, %c0_i32, %c0_i32_0 : i32, i32, i32
  }
}

</mosaic_0001>

<bundles_post_ra>
// kernel: tpu_custom_call.1
= control target key start
LH: loop header
LB: loop body
LE: loop exit
PB: predicated region body
PF: predicated region fallthrough
CT: control target
= control target key end

     0   :  { %13 = vsyncpa [#allocation3], 0  ;;  %s15938_s0 = inlined_call_operand.vmem [shape: f32[2,4,16,16], index: 0, kind: input, shape index: {}]   ;;  %s15939_s1 = inlined_call_operand.vmem [shape: f32[2,4,20,20], index: 1, kind: input, shape index: {}]   ;;  %s15940_s2 = inlined_call_operand.vmem [shape: f32[34,16], index: 2, kind: input, shape index: {}]   ;;  %s15941_s3 = inlined_call_operand.vmem [shape: f32[16,34], index: 3, kind: input, shape index: {}]   ;;  %s15942_s4 = inlined_call_operand.vmem [shape: f32[34,20], index: 4, kind: input, shape index: {}]   ;;  %s15943_s5 = inlined_call_operand.vmem [shape: f32[20,34], index: 5, kind: input, shape index: {}]   ;;  %s15944_s6 = inlined_call_operand.vmem [shape: f32[8,72], index: 6, kind: input, shape index: {}]   ;;  %s15945_s7 = inlined_call_operand.vmem [shape: f32[8,1], index: 7, kind: input, shape index: {}]   ;;  %s15946_s8 = inlined_call_operand.hbm [shape: f32[2,8,1024], index: 8, kind: output, shape index: {}]  }
   0x1   :  { %15 = vsyncpa [#allocation3 + $0x1], 0  ;;  %s8405_s27 = smov 0   ;;  %s8407_s28 = smov 0  }
   0x2   :  { %s8409_s29 = smov 0   ;;  %s8411_s30 = smov 0  }
   0x3 LB: > { %s8426_s9 = sadd.s32 4294967295, %s8350_s30   ;;  %s7133_s10 = sadd.s32 4294967294, %s8350_s30   ;;  %s8350_s30 = sphi %s8411_s30, %s18118_s30   ;;  %s8346_s29 = sphi %s8409_s29, %s18117_s29   ;;  %s8342_s28 = sphi %s8407_s28, %s18116_s28   ;;  %s8338_s27 = sphi %s8405_s27, %s18115_s27  }
   0x4   : > { %s8430_s11 = sadd.s32 1, %s8350_s30   ;;  %s206_s12 = sadd.s32 1, %s8346_s29 }
   0x5   : > { %s203_s13 = ssub.s32 %s8350_s30, %s8430_s11  ;;  %p216_p0 = scmp.ne.s32.totalorder %s8346_s29, %s8342_s28 }
   0x6   : > { %p204_p1 = scmp.eq.s32.totalorder %s203_s13, 0  ;;  %p217_p2 = scmp.eq.s32.totalorder %s8426_s9, 1 }
   0x7   : > { %p222_p3 = scmp.ne.s32.totalorder %s8342_s28, %s8338_s27  ;;  %p223_p4 = scmp.eq.s32.totalorder %s7133_s10, 1 }
   0x8   : > { %s8441_s14 = scalar_select %p204_p1, %s8346_s29, %s206_s12  }
   0x9   : > { %p8443_p5 = por %p217_p2, %p216_p0  ;;  %p8447_p6 = por %p223_p4, %p222_p3 }
   0xa   : > { %p7136_p7 = scmp.ge.s32.totalorder %s8350_s30, 1  ;;  %p275_p8 = scmp.lt.s32.totalorder %s8350_s30, 3 }
   0xc   : > { %p276_p9 = pnand %p7136_p7, %p275_p8 }
   0xe   : > { %279 = sbr.rel (%p276_p9) target bundleno = 1403 (0x57b), region = 52 }
  0x13   : > { %v338_v0 = vld [vmem:[%s15941_s3 + $0x8] sm:$0xff]  ;;  %v337_v1 = vld [vmem:[%s15941_s3] sm:$0xff]  ;;  %p314_p10 = scmp.lt.s32.totalorder %s8426_s9, 1  ;;  %vm339_vm0 = vcmask 130048   ;;  %v8493_v20 = vld [vmem:[%s15940_s2 + $0x10] sm:$0xff]  ;;  %vm646_vm1 = vcmask 1043456  }
  0x14   : > { %378 = vmatpush.msra.mxu0 %v338_v0  ;;  %v332_v16 = vld [vmem:[%s15940_s2] sm:$0xff]  ;;  %v8486_v18 = vld [vmem:[%s15940_s2 + $0x8] sm:$0xff]  ;;  %v567_v21 = vld [vmem:[%s15943_s5 + $0x10] sm:$0xf]  ;;  %vm625_vm2 = vcmask 162816   ;;  %vm4865_vm3 = vcmask 1045504  }
  0x15   : > { %s315_s21 = scalar_select %p314_p10, %s8426_s9, 1  ;;  %v566_v22 = vld [vmem:[%s15943_s5 + $0x8] sm:$0xff]  ;;  %v565_v23 = vld [vmem:[%s15943_s5] sm:$0xff]  ;;  %v335_v26 = vld [vmem:[%s15940_s2 + $0x18] sm:$0xff]  ;;  %vm2864_vm4 = vcmask 1046528   ;;  %vm925_vm5 = vcmask 1047556  }
  0x16   : > { %379 = vmatpush.msra.mxu0 %v337_v1  ;;  %v336_v31 = vld [vmem:[%s15940_s2 + $0x20] sm:$0x3]  ;;  %s8356_s20 = smov 96   ;;  %vm1469_vm6 = vcmask 261120   ;;  %vm1471_vm7 = vcmask 523264   ;;  %vm1473_vm8 = vcmask 785408  }
  0x17   : > { %s7217_s22 = sshll.u32 %s315_s21, 6  ;;  %s7219_s23 = smul.u32 96, %s315_s21  ;;  %vm6873_vm9 = vcmask 588800  }
  0x18   : > { %s318_s26 = scalar_lea.vmem %s15938_s0, %s7217_s22  ;;  %s8353_s21 = smov 127  }
  0x19   : > { %s8467_s13 = scalar_lea.vmem %s15939_s1, %s7219_s23  ;;  %v324_v2 = vld [vmem:[%s318_s26] sm:$0xff]  ;;  %v325_v7 = vld [vmem:[%s318_s26 + $0x8] sm:$0xff]  ;;  %v326_v8 = vld [vmem:[%s318_s26 + $0x10] sm:$0xff]  ;;  %s8357_s22 = smov 32  }
  0x1a   : > { %7141 = vmatmul.msk.f32.vlgmr.msra.gmra.mxu0 %vm339_vm0, %v324_v2  ;;  %v548_v3 = vld [vmem:[%s8467_s13] sm:$0xff]  ;;  %v549_v4 = vld [vmem:[%s8467_s13 + $0x8] sm:$0xff]  ;;  %v327_v9 = vld [vmem:[%s318_s26 + $0x18] sm:$0xff]  ;;  %s8358_s23 = smov 64   ;;  %s7218_s17 = sshll.u32 %s8426_s9, 6 }
  0x1b   : > { %v580_v5 = vrot.slane %v548_v3, 4  ;;  %v581_v6 = vrot.slane %v549_v4, 4  ;;  %588 = vst [vmem:[#allocation1] ss:$2 sm:$0xff] %v548_v3  ;;  %v328_v10 = vld [vmem:[%s318_s26 + $0x20] sm:$0xff]  ;;  %v329_v11 = vld [vmem:[%s318_s26 + $0x28] sm:$0xff] }
  0x1c   : > { %592 = vst [vmem:[#allocation1 + $0x10] ss:$2 sm:$0xff] %v549_v4  ;;  %v330_v12 = vld [vmem:[%s318_s26 + $0x30] sm:$0xff]  ;;  %v331_v13 = vld [vmem:[%s318_s26 + $0x38] sm:$0xff]  ;;  %v553_v25 = vld [vmem:[%s8467_s13 + $0x28] sm:$0xf] }
  0x1d   : > { %590 = vst [vmem:[#allocation1 + $0x1] ss:$2 sm:$0xff] %v580_v5  ;;  %v554_v28 = vld [vmem:[%s8467_s13 + $0x30] sm:$0xff]  ;;  %v551_v34 = vld [vmem:[%s8467_s13 + $0x18] sm:$0xff]  ;;  %v552_v37 = vld [vmem:[%s8467_s13 + $0x20] sm:$0xff]  ;;  %s311_s26 = sand.u32 1, %s8342_s28  }
  0x1e   : > { %594 = vst [vmem:[#allocation1 + $0x11] ss:$2 sm:$0xff] %v581_v6  ;;  %v584_v30 = vrot.slane %v554_v28, 4  ;;  %v550_v33 = vld [vmem:[%s8467_s13 + $0x10] sm:$0xf]  ;;  %v582_v36 = vrot.slane %v551_v34, 4 }
  0x1f   : > { %596 = vst [vmem:[#allocation1 + $0x20] ss:$2 sm:$0xff] %v550_v33  ;;  %v555_v38 = vld [vmem:[%s8467_s13 + $0x38] sm:$0xff]  ;;  %v583_v42 = vrot.slane %v552_v37, 4  ;;  %v556_v43 = vld [vmem:[%s8467_s13 + $0x40] sm:$0xf] }
  0x20   : > { %598 = vst [vmem:[#allocation1 + $0x21] ss:$2 sm:$0xff] %v551_v34  ;;  %v585_v39 = vrot.slane %v555_v38, 4  ;;  %v557_v44 = vld [vmem:[%s8467_s13 + $0x48] sm:$0xff]  ;;  %v558_v48 = vld [vmem:[%s8467_s13 + $0x50] sm:$0xff]  ;;  %s7137_s10 = sshll.u32 %s311_s26, 6 }
  0x21   : > { %600 = vst [vmem:[#allocation1 + $0x30] ss:$2 sm:$0xff] %v582_v36  ;;  %v586_v46 = vrot.slane %v557_v44, 4  ;;  %v587_v49 = vrot.slane %v558_v48, 4  ;;  %v559_v51 = vld [vmem:[%s8467_s13 + $0x58] sm:$0xf] }
  0x22   : > { %7142 = vmatmul.msk.f32.gmra.mxu0 %vm339_vm0, %v325_v7  ;;  %602 = vst [vmem:[#allocation1 + $0x31] ss:$2 sm:$0xff] %v552_v37  ;;  %s8352_s13 = smov 126   ;;  %s313_s12 = scalar_lea.vmem [#allocation2], %s7137_s10 }
  0x23   : > { %s7046_s9 = scalar_lea.sflag [#allocation3], %s311_s26  ;;  %s8308_s10 = scalar_lea.hbm %s15946_s8, 128 }
  0x24   : > { %v603_v27 = vld.sshfl [vmem:[#allocation1] sm:$0xff pattern:$0x75316420] }
  0x25   : > { %608 = vst [vmem:[#allocation1 + $0x1] ss:$2 sm:$0xff] %v553_v25  ;;  %v604_v32 = vld.sshfl [vmem:[#allocation1 + $0x10] sm:$0xff pattern:$0x75316420] }
  0x26   : > { %609 = vst [vmem:[#allocation1 + $0x10] ss:$2 sm:$0xff] %v554_v28 }
  0x27   : > { %610 = vst [vmem:[#allocation1 + $0x11] ss:$2 sm:$0xff] %v584_v30  ;;  %v605_v40 = vld.sshfl [vmem:[#allocation1 + $0x20] sm:$0xff pattern:$0x75316420] }
  0x28   : > { %611 = vst [vmem:[#allocation1 + $0x20] ss:$2 sm:$0xff] %v555_v38 }
  0x29   : > { %612 = vst [vmem:[#allocation1 + $0x21] ss:$2 sm:$0xff] %v585_v39  ;;  %v606_v45 = vld.sshfl [vmem:[#allocation1 + $0x30] sm:$0xff pattern:$0x75316420] }
  0x2a   : > { %7143 = vmatmul.msk.f32.gmra.mxu0 %vm339_vm0, %v326_v8  ;;  %607 = vst [vmem:[#allocation1] ss:$2 sm:$0xff] %v583_v42 }
  0x2b   : > { %613 = vst [vmem:[#allocation1 + $0x30] ss:$2 sm:$0xff] %v556_v43 }
  0x2c   : > { %614 = vst [vmem:[#allocation1 + $0x31] ss:$2 sm:$0xff] %v557_v44 }
  0x2e   : > { %v616_v50 = vld.sshfl [vmem:[#allocation1 + $0x10] sm:$0xff pattern:$0x75316420] }
  0x2f   : > { %621 = vst [vmem:[#allocation1 + $0x10] ss:$2 sm:$0xff] %v587_v49 }
  0x30   : > { %622 = vst [vmem:[#allocation1 + $0x11] ss:$2 sm:$0xff] %v559_v51  ;;  %v617_v52 = vld.sshfl [vmem:[#allocation1 + $0x20] sm:$0xff pattern:$0x75316420] }
  0x31   : > { %v615_v47 = vld.sshfl [vmem:[#allocation1] sm:$0xff pattern:$0x75316420] }
  0x32   : > { %7144 = vmatmul.msk.f32.gmra.mxu0 %vm339_vm0, %v327_v9  ;;  %619 = vst [vmem:[#allocation1] ss:$2 sm:$0xff] %v586_v46 }
  0x33   : > { %620 = vst [vmem:[#allocation1 + $0x1] ss:$2 sm:$0xff] %v558_v48  ;;  %v618_v53 = vld.sshfl [vmem:[#allocation1 + $0x30] sm:$0xff pattern:$0x75316420] }
  0x37   : > { %v624_v56 = vld.sshfl [vmem:[#allocation1 + $0x10] sm:$0xff pattern:$0x75316420] }
  0x3a   : > { %7145 = vmatmul.msk.f32.gmra.mxu0 %vm339_vm0, %v328_v10  ;;  %v623_v54 = vld.sshfl [vmem:[#allocation1] sm:$0xff pattern:$0x75316420] }
  0x42   : > { %7146 = vmatmul.msk.f32.gmra.mxu0 %vm339_vm0, %v329_v11 }
  0x4a   : > { %7147 = vmatmul.msk.f32.gmra.mxu0 %vm339_vm0, %v330_v12 }
  0x52   : > { %7148 = vmatmul.msk.f32.gmra.mxu0 %vm339_vm0, %v331_v13 }
  0x97   : > { %v381_v14 = vpop.f32.mrf.mxu0 }
  0x9f   : > { %v384_v15 = vpop.f32.mrf.mxu0 }
  0xa0   : > { %434 = vmatpush.msra.mxu1 %v384_v15 }
  0xa2   : > { %435 = vmatpush.msra.mxu1 %v381_v14 }
  0xa3   : > { %7149 = vmatmul.msk.f32.vlgmr.msra.gmra.mxu1 %vm339_vm0, %v332_v16 }
  0xa7   : > { %v387_v17 = vpop.f32.mrf.mxu0 }
  0xab   : > { %7150 = vmatmul.msk.f32.gmra.mxu1 %vm339_vm0, %v8486_v18 }
  0xaf   : > { %v390_v19 = vpop.f32.mrf.mxu0 }
  0xb0   : > { %466 = vmatpush.msra.mxu2 %v390_v19 }
  0xb2   : > { %467 = vmatpush.msra.mxu2 %v387_v17 }
  0xb3   : > { %7151 = vmatmul.msk.f32.gmra.mxu1 %vm339_vm0, %v8493_v20  ;;  %7154 = vmatmul.msk.f32.vlgmr.msra.gmra.mxu2 %vm339_vm0, %v332_v16 }
  0xb4   : > { %7169 = vmatpush.msk.msrb.mxu2 %vm646_vm1, %v567_v21 }
  0xb6   : > { %664 = vmatpush.msrb.mxu2 %v566_v22 }
  0xb7   : > { %v393_v24 = vpop.f32.mrf.mxu0 }
  0xb8   : > { %665 = vmatpush.msrb.mxu2 %v565_v23 }
  0xbb   : > { %7152 = vmatmul.msk.f32.gmra.mxu1 %vm339_vm0, %v335_v26  ;;  %7155 = vmatmul.msk.f32.gmra.mxu2 %vm339_vm0, %v8486_v18 }
  0xbf   : > { %v396_v29 = vpop.f32.mrf.mxu0 }
  0xc0   : > { %498 = vmatpush.msra.mxu3 %v396_v29 }
  0xc2   : > { %499 = vmatpush.msra.mxu3 %v393_v24 }
  0xc3   : > { %7153 = vmatmul.msk.f32.gmra.mxu1 %vm339_vm0, %v336_v31  ;;  %7156 = vmatmul.msk.f32.gmra.mxu2 %vm339_vm0, %v8493_v20 }
  0xc4   : > { %7159 = vmatmul.msk.f32.vlgmr.msra.gmra.mxu3 %vm339_vm0, %v332_v16 }
  0xc7   : > { %v399_v35 = vpop.f32.mrf.mxu0 }
  0xcb   : > { %7157 = vmatmul.msk.f32.gmra.mxu2 %vm339_vm0, %v335_v26 }
  0xcc   : > { %7160 = vmatmul.msk.f32.gmra.mxu3 %vm339_vm0, %v8486_v18 }
  0xcf   : > { %v402_v41 = vpop.f32.mrf.mxu0 }
  0xd0   : > { %530 = vmatpush.msrb.mxu1 %v402_v41 }
  0xd2   : > { %531 = vmatpush.msrb.mxu1 %v399_v35 }
  0xd3   : > { %7158 = vmatmul.msk.f32.gmra.mxu2 %vm339_vm0, %v336_v31  ;;  %7164 = vmatmul.msk.f32.vlgmr.msrb.gmra.mxu1 %vm339_vm0, %v332_v16 }
  0xd4   : > { %7161 = vmatmul.msk.f32.gmra.mxu3 %vm339_vm0, %v8493_v20 }
  0xdb   : > { %7165 = vmatmul.msk.f32.gmra.mxu1 %vm339_vm0, %v8486_v18  ;;  %7170 = vmatmul.msk.f32.vlgmr.msrb.gmra.mxu2 %vm625_vm2, %v603_v27 }
  0xdc   : > { %7162 = vmatmul.msk.f32.gmra.mxu3 %vm339_vm0, %v335_v26 }
  0xe3   : > { %7166 = vmatmul.msk.f32.gmra.mxu1 %vm339_vm0, %v8493_v20  ;;  %7171 = vmatmul.msk.f32.gmra.mxu2 %vm625_vm2, %v604_v32 }
  0xe4   : > { %7163 = vmatmul.msk.f32.gmra.mxu3 %vm339_vm0, %v336_v31 }
  0xeb   : > { %7167 = vmatmul.msk.f32.gmra.mxu1 %vm339_vm0, %v335_v26  ;;  %7172 = vmatmul.msk.f32.gmra.mxu2 %vm625_vm2, %v605_v40 }
  0xf3   : > { %7168 = vmatmul.msk.f32.gmra.mxu1 %vm339_vm0, %v336_v31  ;;  %7173 = vmatmul.msk.f32.gmra.mxu2 %vm625_vm2, %v606_v45 }
  0xfb   : > { %7174 = vmatmul.msk.f32.gmra.mxu2 %vm625_vm2, %v615_v47 }
 0x103   : > { %7175 = vmatmul.msk.f32.gmra.mxu2 %vm625_vm2, %v616_v50 }
 0x10b   : > { %7176 = vmatmul.msk.f32.gmra.mxu2 %vm625_vm2, %v617_v52 }
 0x113   : > { %7177 = vmatmul.msk.f32.gmra.mxu2 %vm625_vm2, %v618_v53 }
 0x11b   : > { %7178 = vmatmul.msk.f32.gmra.mxu2 %vm625_vm2, %v623_v54 }
 0x120   : > { %v437_v55 = vpop.f32.mrf.mxu1 }
 0x121   : > { %v4866_v59 = vrot.slane %v437_v55, 2  ;;  %v2865_v61 = vrot.slane %v437_v55, 1  ;;  %v927_v20 = vrot.slane %v437_v55, 4 }
 0x123   : > { %7179 = vmatmul.msk.f32.gmra.mxu2 %vm625_vm2, %v624_v56 }
 0x128   : > { %v8556_v57 = vpop.f32.mrf.mxu1 }
 0x129   : > { %v7272_v58 = vpack.i.bf16 %v8556_v57, %v437_v55  ;;  %v4867_v60 = vrot.slane %v8556_v57, 2  ;;  %v2866_v62 = vrot.slane %v8556_v57, 1  ;;  %v1039_v37 = vrot.slane %v8556_v57, 4 }
 0x12b   : > { %7273 = vrot.lane.b32.xlu1 %v7272_v58, %s8352_s13  ;;  %7268 = vrot.lane.b32.xlu0 %v7272_v58, %s8353_s21  ;;  %v8567_v1 = vsel %vm4865_vm3, %v4866_v59, %v4867_v60  ;;  %v8570_v2 = vsel %vm2864_vm4, %v2865_v61, %v2866_v62 }
 0x12c   : > { %v2971_v43 = vrot.slane %v8570_v2, 4  ;;  %v4972_v56 = vrot.slane %v8567_v1, 4 }
 0x130   : > { %v8563_v63 = vpop.f32.mrf.mxu1 }
 0x131   : > { %v4869_v0 = vrot.slane %v8563_v63, 2  ;;  %v2868_v3 = vrot.slane %v8563_v63, 1  ;;  %v1151_v61 = vrot.slane %v8563_v63, 4 }
 0x133   : > { %v8574_v4 = vsel %vm4865_vm3, %v4867_v60, %v4869_v0  ;;  %v8577_v5 = vsel %vm2864_vm4, %v2866_v62, %v2868_v3 }
 0x134   : > { %v7287_v6 = vpack.i.bf16 %v8574_v4, %v8567_v1  ;;  %v7277_v7 = vpack.i.bf16 %v8577_v5, %v8570_v2 }
 0x136   : > { %7288 = vrot.lane.b32.xlu1 %v7287_v6, %s8353_s21  ;;  %7278 = vrot.lane.b32.xlu2 %v7277_v7, %s8353_s21  ;;  %v8585_v8 = vpop.f32.mrf.mxu2 }
 0x137   : > { %7283 = vrot.lane.b32.xlu0 %v7277_v7, %s8352_s13  ;;  %v2874_v31 = vrot.slane %v8585_v8, 1  ;;  %v4875_v38 = vrot.slane %v8585_v8, 2  ;;  %v939_v44 = vrot.slane %v8585_v8, 4 }
 0x138   : > { %v8588_v9 = vpop.f32.mrf.mxu1 }
 0x139   : > { %v7297_v10 = vpack.i.bf16 %v8588_v9, %v8563_v63  ;;  %v2870_v11 = vrot.slane %v8588_v9, 1  ;;  %v4871_v18 = vrot.slane %v8588_v9, 2 }
 0x13b   : > { %v8601_v16 = vsel %vm2864_vm4, %v2868_v3, %v2870_v11  ;;  %v8619_v27 = vsel %vm4865_vm3, %v4869_v0, %v4871_v18 }
 0x13c   : > { %16505 = vst [vmem:[#allocation5_spill] sm:$0xff] %v8601_v16 }
 0x13e   : > { %7298 = vrot.lane.b32.xlu2 %v7297_v10, %s8352_s13  ;;  %7293 = vrot.lane.b32.xlu1 %v7297_v10, %s8353_s21  ;;  %v8595_v12 = vpop.f32.mrf.mxu2 }
 0x13f   : > { %v7307_v13 = vpack.i.bf16 %v8595_v12, %v8585_v8  ;;  %v2875_v23 = vrot.slane %v8595_v12, 1  ;;  %v4876_v33 = vrot.slane %v8595_v12, 2 }
 0x140   : > { %v449_v14 = vpop.f32.mrf.mxu1 }
 0x141   : > { %v2872_v15 = vrot.slane %v449_v14, 1  ;;  %7308 = vrot.lane.b32.xlu0 %v7307_v13, %s8352_s13  ;;  %v4873_v19 = vrot.slane %v449_v14, 2  ;;  %v8639_v36 = vsel %vm2864_vm4, %v2874_v31, %v2875_v23  ;;  %v8655_v42 = vsel %vm4865_vm3, %v4875_v38, %v4876_v33 }
 0x143   : > { %v8604_v17 = vsel %vm2864_vm4, %v2870_v11, %v2872_v15  ;;  %v8615_v24 = vsel %vm4865_vm3, %v4871_v18, %v4873_v19 }
 0x144   : > { %v7317_v21 = vpack.i.bf16 %v8604_v17, %v8601_v16  ;;  %v7322_v35 = vpack.i.bf16 %v8615_v24, %v8619_v27 }
 0x146   : > { %7318 = vrot.lane.b32.xlu1 %v7317_v21, %s8352_s13  ;;  %7303 = vrot.lane.b32.xlu2 %v7307_v13, %s8353_s21  ;;  %v8611_v22 = vpop.f32.mrf.mxu2 }
 0x147   : > { %v2877_v25 = vrot.slane %v8611_v22, 1  ;;  %v501_v26 = vpop.f32.mrf.mxu3  ;;  %v15949_v28 = vrot.slane %v8611_v22, 2 }
 0x148   : > { %v924_v29 = vrot.slane %v501_v26, 4  ;;  %v8623_v30 = vsel %vm925_vm5, %v501_v26, %v927_v20  ;;  %v2883_v47 = vrot.slane %v501_v26, 1  ;;  %v4884_v52 = vrot.slane %v501_v26, 2 }
 0x149   : > { %7313 = vrot.lane.b32.xlu0 %v7317_v21, %s8353_s21  ;;  %v8630_v32 = vsel %vm2864_vm4, %v2875_v23, %v2877_v25  ;;  %v8648_v40 = vsel %vm4865_vm3, %v4876_v33, %v15949_v28  ;;  %v1263_v33 = vrot.slane %v8588_v9, 4 }
 0x14a   : > { %v8634_v34 = vsel %vm925_vm5, %v924_v29, %v437_v55  ;;  %v7327_v39 = vpack.i.bf16 %v8630_v32, %v8639_v36  ;;  %v7337_v45 = vpack.i.bf16 %v8648_v40, %v8655_v42 }
 0x14e   : > { %7323 = vrot.lane.b32.xlu2 %v7322_v35, %s8353_s21  ;;  %7328 = vrot.lane.b32.xlu1 %v7327_v39, %s8353_s21  ;;  %v8652_v41 = vpop.f32.mrf.mxu2 }
 0x14f   : > { %v504_v46 = vpop.f32.mrf.mxu3  ;;  %v7342_v10 = vpack.i.bf16 %v8652_v41, %v8611_v22 }
 0x150   : > { %v8661_v48 = vpop.f32.mrf.mxu1  ;;  %v1037_v49 = vrot.slane %v504_v46, 4  ;;  %v8664_v50 = vsel %vm925_vm5, %v504_v46, %v1039_v37  ;;  %v2884_v51 = vrot.slane %v504_v46, 1  ;;  %v4885_v55 = vrot.slane %v504_v46, 2 }
 0x151   : > { %v937_v53 = vrot.slane %v8661_v48, 4  ;;  %v8669_v54 = vsel %vm925_vm5, %v8661_v48, %v939_v44  ;;  %7338 = vrot.lane.b32.xlu0 %v7337_v45, %s8353_s21  ;;  %v7347_v59 = vpack.i.bf16 %v504_v46, %v501_v26  ;;  %v1163_v45 = vrot.slane %v8611_v22, 4 }
 0x152   : > { %v8675_v58 = vsel %vm925_vm5, %v1037_v49, %v8556_v57  ;;  %v2885_v62 = vsel %vm2864_vm4, %v2883_v47, %v2884_v51  ;;  %v8687_v6 = vsel %vm4865_vm3, %v4884_v52, %v4885_v55  ;;  %v2879_v46 = vrot.slane %v8652_v41, 1 }
 0x153   : > { %v8679_v60 = vsel %vm925_vm5, %v937_v53, %v8585_v8  ;;  %v2969_v0 = vrot.slane %v2885_v62, 4  ;;  %v8684_v3 = vsel %vm925_vm5, %v2885_v62, %v2971_v43  ;;  %16506 = vst [vmem:[#allocation6_spill] sm:$0xff] %v8687_v6  ;;  %v8695_v7 = vsel %vm925_vm5, %v8687_v6, %v4972_v56 }
 0x154   : > { %v1051_v8 = vrot.slane %v8595_v12, 4  ;;  %v4970_v31 = vrot.slane %v8687_v6, 4 }
 0x155   : > { %v8704_v13 = vsel %vm925_vm5, %v2969_v0, %v8570_v2  ;;  %v3083_v2 = vrot.slane %v8577_v5, 4 }
 0x156   : > { %7333 = vrot.lane.b32.xlu2 %v7327_v39, %s8352_s13  ;;  %v8690_v57 = vpop.f32.mrf.mxu2  ;;  %7348 = vrot.lane.b32.xlu1 %v7347_v59, %s8353_s21 }
 0x157   : > { %v8700_v11 = vpop.f32.mrf.mxu3  ;;  %v2881_v35 = vrot.slane %v8690_v57, 1 }
 0x158   : > { %v8706_v14 = vpop.f32.mrf.mxu1  ;;  %v1149_v15 = vrot.slane %v8700_v11, 4  ;;  %v8711_v18 = vsel %vm925_vm5, %v8700_v11, %v1151_v61  ;;  %v15947_v21 = vrot.slane %v8700_v11, 1  ;;  %v15948_v23 = vrot.slane %v8700_v11, 2 }
 0x159   : > { %v1049_v19 = vrot.slane %v8706_v14, 4  ;;  %v8716_v20 = vsel %vm925_vm5, %v8706_v14, %v1051_v8  ;;  %7343 = vrot.lane.b32.xlu0 %v7342_v10, %s8353_s21  ;;  %v7362_v37 = vpack.i.bf16 %v8706_v14, %v8661_v48  ;;  %v8770_v61 = vsel %vm2864_vm4, %v2879_v46, %v2881_v35 }
 0x15a   : > { %v8728_v29 = vsel %vm925_vm5, %v1149_v15, %v8563_v63  ;;  %v2887_v38 = vsel %vm2864_vm4, %v2884_v51, %v15947_v21  ;;  %v8747_v44 = vsel %vm4865_vm3, %v4885_v55, %v15948_v23  ;;  %v8755_v51 = vsel %vm925_vm5, %v4970_v31, %v8567_v1 }
 0x15b   : > { %v8724_v26 = vsel %vm925_vm5, %v1049_v19, %v8595_v12  ;;  %v5084_v12 = vrot.slane %v8574_v4, 4  ;;  %v3081_v63 = vrot.slane %v2887_v38, 4  ;;  %v8742_v43 = vsel %vm925_vm5, %v2887_v38, %v3083_v2 }
 0x15c   : > { %v8789_v2 = vsel %vm2864_vm4, %v2877_v25, %v2879_v46  ;;  %v4882_v35 = vrot.slane %v8690_v57, 2  ;;  %v5196_v46 = vrot.slane %v8619_v27, 4  ;;  %v4880_v57 = vrot.slane %v8652_v41, 2 }
 0x15d   : > { %v8766_v56 = vsel %vm925_vm5, %v3081_v63, %v8577_v5  ;;  %v3307_v63 = vrot.slane %v8604_v17, 4 }
 0x15e   : > { %v667_v39 = vpop.f32.mrf.mxu2  ;;  %7358 = vrot.lane.b32.xlu2 %v7347_v59, %s8352_s13  ;;  %7353 = vrot.lane.b32.xlu1 %v7342_v10, %s8352_s13  ;;  %v5082_v59 = vrot.slane %v8747_v44, 4  ;;  %v8354_v10 = vmov 1983009808   ;;  %v8817_v23 = vsel %vm4865_vm3, %v4880_v57, %v4882_v35 }
 0x15f   : > { %v707_v47 = vrot.slane %v667_v39, 4  ;;  %717 = vst [vmem:[#allocation1] ss:$2 sm:$0xff] %v667_v39  ;;  %v8751_v49 = vpop.f32.mrf.mxu3  ;;  %v930_v15 = vunpack.c.l.s4 %v8354_v10  ;;  %v7377_v39 = vpack.i.bf16 %v2887_v38, %v2885_v62 }
 0x160   : > { %v8757_v52 = vpop.f32.mrf.mxu1  ;;  %v1261_v53 = vrot.slane %v8751_v49, 4  ;;  %v8762_v55 = vsel %vm925_vm5, %v8751_v49, %v1263_v33  ;;  %v8793_v31 = vsel %vm925_vm5, %v5082_v59, %v8574_v4  ;;  %v8797_v33 = vsel %vm925_vm5, %v8747_v44, %v5084_v12 }
 0x161   : > { %16507 = vst [vmem:[#allocation7_spill] sm:$0xff] %v8762_v55  ;;  %v1161_v0 = vrot.slane %v8757_v52, 4  ;;  %v8775_v8 = vsel %vm925_vm5, %v8757_v52, %v1163_v45  ;;  %7363 = vrot.lane.b32.xlu0 %v7362_v37, %s8353_s21  ;;  %v5308_v45 = vrot.slane %v8615_v24, 4  ;;  %v8804_v25 = vunpack.c.0.s8 %v930_v15 }
 0x162   : > { %719 = vst [vmem:[#allocation1 + $0x1] ss:$2 sm:$0xff] %v707_v47  ;;  %v8780_v5 = vsel %vm925_vm5, %v1261_v53, %v8588_v9  ;;  %v7372_v9 = vpack.i.bf16 %v8770_v61, %v8789_v2  ;;  %v1275_v12 = vrot.slane %v8652_v41, 4  ;;  %v4893_v53 = vrot.slane %v8661_v48, 2 }
 0x163   : > { %16508 = vst [vmem:[#allocation8_spill] sm:$0xff] %v8780_v5  ;;  %v8784_v19 = vsel %vm925_vm5, %v1161_v0, %v8611_v22  ;;  %v4889_v15 = vrot.slane %v8751_v49, 2  ;;  %v7397_v0 = vpack.i.bf16 %v8747_v44, %v8687_v6  ;;  %v16510_v16 = vrot.slane %v8751_v49, 1 }
 0x164   : > { %v2892_v5 = vrot.slane %v8661_v48, 1  ;;  %v3319_v48 = vrot.slane %v8770_v61, 4 }
 0x166   : > { %v670_v47 = vpop.f32.mrf.mxu2  ;;  %7373 = vrot.lane.b32.xlu2 %v7372_v9, %s8353_s21  ;;  %7368 = vrot.lane.b32.xlu1 %v7362_v37, %s8352_s13 }
 0x167   : > { %v708_v62 = vrot.slane %v670_v47, 4  ;;  %721 = vst [vmem:[#allocation1 + $0x10] ss:$2 sm:$0xff] %v670_v47  ;;  %v513_v38 = vpop.f32.mrf.mxu3 }
 0x168   : > { %v8812_v59 = vpop.f32.mrf.mxu1  ;;  %v2890_v10 = vrot.slane %v513_v38, 1  ;;  %v4891_v21 = vrot.slane %v513_v38, 2 }
 0x169   : > { %723 = vst [vmem:[#allocation1 + $0x11] ss:$2 sm:$0xff] %v708_v62  ;;  %v1273_v28 = vrot.slane %v8812_v59, 4  ;;  %v8823_v47 = vsel %vm925_vm5, %v8812_v59, %v1275_v12  ;;  %7378 = vrot.lane.b32.xlu0 %v7377_v39, %s8353_s21  ;;  %v726_v6 = vld.sshfl [vmem:[#allocation1] sm:$0xff pattern:$0x75316420] }
 0x16a   : > { %16509 = vst [vmem:[#allocation9_spill] sm:$0xff] %v8823_v47  ;;  %v8831_v38 = vsel %vm2864_vm4, %v16510_v16, %v2890_v10  ;;  %v8834_v35 = vsel %vm4865_vm3, %v4889_v15, %v4891_v21  ;;  %v2893_v16 = vrot.slane %v8706_v14, 1  ;;  %v5320_v10 = vrot.slane %v8817_v23, 4 }
 0x16b   : > { %v8838_v62 = vsel %vm925_vm5, %v1273_v28, %v8652_v41  ;;  %v3305_v12 = vrot.slane %v8831_v38, 4  ;;  %v8843_v37 = vsel %vm925_vm5, %v8831_v38, %v3307_v63  ;;  %v5306_v47 = vrot.slane %v8834_v35, 4 }
 0x16c   : > { %16511 = vst [vmem:[#allocation10_spill] sm:$0xff] %v8838_v62  ;;  %v8851_v21 = vsel %vm925_vm5, %v8834_v35, %v5308_v45  ;;  %v2983_v28 = vrot.slane %v8639_v36, 4  ;;  %v3095_v41 = vrot.slane %v8630_v32, 4  ;;  %v16516_v45 = vrot.slane %v8611_v22, 2 }
 0x16d   : > { %16512 = vst [vmem:[#allocation11_spill] sm:$0xff] %v8843_v37  ;;  %v8857_v63 = vsel %vm925_vm5, %v3305_v12, %v8604_v17  ;;  %v8861_v37 = vsel %vm925_vm5, %v5306_v47, %v8615_v24  ;;  %v16518_v17 = vrot.slane %v8700_v11, 2  ;;  %v2897_v22 = vrot.slane %v8812_v59, 1 }
 0x16e   : > { %16513 = vst [vmem:[#allocation12_spill] sm:$0xff] %v8851_v21  ;;  %v673_v62 = vpop.f32.mrf.mxu2  ;;  %7398 = vrot.lane.b32.xlu2 %v7397_v0, %s8353_s21  ;;  %7388 = vrot.lane.b32.xlu1 %v7377_v39, %s8352_s13  ;;  %v8870_v21 = vsel %vm4865_vm3, %v16516_v45, %v4880_v57 }
 0x16f   : > { %16514 = vst [vmem:[#allocation13_spill] sm:$0xff] %v8857_v63  ;;  %v8875_v12 = vsel %vm4865_vm3, %v16518_v17, %v4889_v15  ;;  %v709_v47 = vrot.slane %v673_v62, 4  ;;  %v8889_v15 = vsel %vm2864_vm4, %v2892_v5, %v2893_v16  ;;  %v7392_v5 = vpack.i.bf16 %v8817_v23, %v8870_v21 }
 0x170   : > { %16515 = vst [vmem:[#allocation14_spill] sm:$0xff] %v8861_v37  ;;  %v16519_v37 = vrot.slane %v8706_v14, 2  ;;  %v5194_v0 = vrot.slane %v8875_v12, 4  ;;  %v545_v39 = vpop.f32.mrf.mxu1  ;;  %v8886_v57 = vsel %vm925_vm5, %v8875_v12, %v5196_v46 }
 0x171   : > { %16517 = vst [vmem:[#allocation15_spill] sm:$0xff] %v8870_v21  ;;  %v4900_v17 = vrot.slane %v545_v39, 2  ;;  %7383 = vrot.lane.b32.xlu0 %v7372_v9, %s8352_s13 }
 0x172   : > { %725 = vst [vmem:[#allocation1 + $0x20] ss:$2 sm:$0xff] %v673_v62  ;;  %v8880_v63 = vsel %vm4865_vm3, %v4893_v53, %v16519_v37  ;;  %v16521_v62 = vrot.slane %v8757_v52, 1  ;;  %v2899_v53 = vrot.slane %v545_v39, 1  ;;  %v15953_v37 = vrot.slane %v8812_v59, 2 }
 0x173   : > { %16520 = vst [vmem:[#allocation16_spill] sm:$0xff] %v8886_v57  ;;  %v8900_v55 = vsel %vm925_vm5, %v5194_v0, %v8619_v27  ;;  %v7412_v46 = vpack.i.bf16 %v8880_v63, %v8655_v42 }
 0x174   : > { %v8894_v45 = vsel %vm2864_vm4, %v2893_v16, %v16521_v62  ;;  %780 = vst [vmem:[#allocation1] ss:$2 sm:$0xff] %v709_v47  ;;  %v2981_v16 = vrot.slane %v8889_v15, 4  ;;  %v8909_v62 = vsel %vm925_vm5, %v8889_v15, %v2983_v28  ;;  %v8912_v39 = vsel %vm2864_vm4, %v2897_v22, %v2899_v53 }
 0x175   : > { %16522 = vst [vmem:[#allocation17_spill] sm:$0xff] %v8900_v55  ;;  %v8917_v9 = vsel %vm4865_vm3, %v15953_v37, %v4900_v17  ;;  %v3093_v47 = vrot.slane %v8894_v45, 4  ;;  %v8922_v0 = vsel %vm925_vm5, %v8894_v45, %v3095_v41  ;;  %v3317_v55 = vrot.slane %v8912_v39, 4 }
 0x176   : > { %v8927_v28 = vsel %vm925_vm5, %v8912_v39, %v3319_v48  ;;  %v5318_v53 = vrot.slane %v8917_v9, 4  ;;  %v8932_v57 = vsel %vm925_vm5, %v8917_v9, %v5320_v10  ;;  %v7402_v17 = vpack.i.bf16 %v8747_v44, %v8574_v4  ;;  %7393 = vrot.lane.b32.xlu1 %v7392_v5, %s8353_s21  ;;  %7413 = vrot.lane.b32.xlu2 %v7412_v46, %s8352_s13 }
 0x177   : > { %16523 = vst [vmem:[#allocation18_spill] sm:$0xff] %v8927_v28  ;;  %v8938_v37 = vsel %vm925_vm5, %v2981_v16, %v8639_v36  ;;  %v8942_v41 = vsel %vm925_vm5, %v3317_v55, %v8770_v61  ;;  %v676_v28 = vpop.f32.mrf.mxu2  ;;  %v936_v4 = vperm.slane %v8623_v30, %v8804_v25  ;;  %v727_v36 = vld.sshfl [vmem:[#allocation1 + $0x10] sm:$0xff pattern:$0x75316420]  ;;  %v8955_v44 = vsel %vm925_vm5, %v3093_v47, %v8630_v32  ;;  %v8961_v55 = vld [vmem:[%s15942_s4] sm:$0xff] }
 0x178   : > { %16524 = vst [vmem:[#allocation19_spill] sm:$0xff] %v8932_v57  ;;  %v8946_v48 = vsel %vm925_vm5, %v5318_v53, %v8817_v23  ;;  %v710_v57 = vrot.slane %v676_v28, 4  ;;  %v948_v61 = vperm.slane %v8669_v54, %v8804_v25  ;;  %v7417_v30 = vpack.i.bf16 %v8751_v49, %v8700_v11 }
 0x179   : > { %16525 = vst [vmem:[#allocation20_spill] sm:$0xff] %v8946_v48  ;;  %v728_v10 = vld.sshfl [vmem:[#allocation1 + $0x20] sm:$0xff pattern:$0x75316420]  ;;  %7403 = vrot.lane.b32.xlu0 %v7402_v17, %s8352_s13  ;;  %v3207_v5 = vrot.slane %v8789_v2, 4  ;;  %v16526_v32 = vrot.slane %v8757_v52, 1  ;;  %v932_v46 = vperm.slane %v8634_v34, %v8804_v25  ;;  %v1048_v47 = vperm.slane %v8664_v50, %v8804_v25 }
 0x17a   : > { %782 = vst [vmem:[#allocation1 + $0x1] ss:$2 sm:$0xff] %v676_v28  ;;  %7180 = vmatpush.msk.msrb.mxu3 %vm646_vm1, %v728_v10  ;;  %v987_v16 = vrot.slane %v936_v4, 4  ;;  %v7407_v54 = vpack.i.bf16 %v8817_v23, %v8567_v1  ;;  %v985_v34 = vrot.slane %v948_v61, 4  ;;  %v1044_v23 = vperm.slane %v8675_v58, %v8804_v25 }
 0x17b   : > { %784 = vst [vmem:[#allocation1 + $0x10] ss:$2 sm:$0xff] %v710_v57  ;;  %v8971_v57 = vsel %vm2864_vm4, %v16526_v32, %v2897_v22  ;;  %v944_v22 = vperm.slane %v8679_v60, %v8804_v25  ;;  %v1060_v17 = vperm.slane %v8716_v20, %v8804_v25  ;;  %v1099_v10 = vrot.slane %v1048_v47, 4  ;;  %v9002_v60 = vld [vmem:[%s15942_s4 + $0x8] sm:$0xff] }
 0x17c   : > { %762 = vmatpush.msrb.mxu3 %v727_v36  ;;  %v8984_v28 = vsel %vm925_vm5, %v8971_v57, %v3207_v5  ;;  %v975_v36 = vrot.slane %v932_v46, 4  ;;  %v9005_v5 = vsel %vm925_vm5, %v948_v61, %v987_v16  ;;  %v7427_v58 = vpack.i.bf16 %v8875_v12, %v8619_v27 }
 0x17d   : > { %v7432_v20 = vpack.i.bf16 %v8894_v45, %v8889_v15  ;;  %v9012_v32 = vsel %vm925_vm5, %v985_v34, %v936_v4  ;;  %v1056_v61 = vperm.slane %v8724_v26, %v8804_v25  ;;  %v1097_v16 = vrot.slane %v1060_v17, 4 }
 0x17e   : > { %763 = vmatpush.msrb.mxu3 %v726_v6  ;;  %v3205_v6 = vrot.slane %v8971_v57, 4  ;;  %7408 = vrot.lane.b32.xlu1 %v7407_v54, %s8352_s13  ;;  %v4896_v27 = vrot.slane %v8757_v52, 2  ;;  %v9026_v15 = vsel %vm925_vm5, %v1060_v17, %v1099_v10  ;;  %v16527_v17 = vrot.slane %v8706_v14, 2 }
 0x17f   : > { %7181 = vmatmul.msk.f32.vlgmr.msrb.gmra.mxu3 %vm625_vm2, %v8961_v55  ;;  %v679_v53 = vpop.f32.mrf.mxu2  ;;  %7418 = vrot.lane.b32.xlu2 %v7417_v30, %s8353_s21  ;;  %v2980_v14 = vperm.slane %v8684_v3, %v8804_v25 }
 0x180   : > { %v711_v50 = vrot.slane %v679_v53, 4  ;;  %786 = vst [vmem:[#allocation1 + $0x11] ss:$2 sm:$0xff] %v679_v53  ;;  %v8992_v1 = vsel %vm925_vm5, %v3205_v6, %v8789_v2  ;;  %v973_v2 = vrot.slane %v944_v22, 4  ;;  %v1087_v6 = vrot.slane %v1044_v23, 4 }
 0x181   : > { %7423 = vrot.lane.b32.xlu0 %v7417_v30, %s8352_s13  ;;  %v9015_v30 = vsel %vm925_vm5, %v944_v22, %v975_v36  ;;  %v789_v4 = vld.sshfl [vmem:[#allocation1] sm:$0xff pattern:$0x75316420]  ;;  %v1085_v22 = vrot.slane %v1056_v61, 4  ;;  %v9034_v53 = vsel %vm925_vm5, %v1097_v16, %v1048_v47  ;;  %v9048_v10 = vsel %vm4865_vm3, %v16527_v17, %v4896_v27 }
 0x182   : > { %788 = vst [vmem:[#allocation1 + $0x20] ss:$2 sm:$0xff] %v711_v50  ;;  %v9018_v54 = vsel %vm925_vm5, %v973_v2, %v932_v46  ;;  %v9031_v26 = vsel %vm925_vm5, %v1056_v61, %v1087_v6  ;;  %v9041_v50 = vld [vmem:[%s15942_s4 + $0x10] sm:$0xff]  ;;  %v7442_v2 = vpack.i.bf16 %v9048_v10, %v8880_v63  ;;  %v2992_v61 = vperm.slane %v8909_v62, %v8804_v25 }
 0x183   : > { %v9051_v47 = vsel %vm925_vm5, %v1085_v22, %v1044_v23  ;;  %v4981_v23 = vperm.slane %v8695_v7, %v8804_v25  ;;  %v7472_v6 = vpack.i.bf16 %v8834_v35, %v8875_v12  ;;  %v3031_v7 = vrot.slane %v2980_v14, 4 }
 0x184   : > { %v2976_v12 = vperm.slane %v8704_v13, %v8804_v25  ;;  %v16528_v22 = vrot.slane %v8751_v49, 1  ;;  %v4977_v13 = vperm.slane %v8755_v51, %v8804_v25 }
 0x186   : > { %7428 = vrot.lane.b32.xlu1 %v7427_v58, %s8352_s13  ;;  %v9057_v58 = vpack.i.bf16 %v8812_v59, %v8757_v52  ;;  %v3019_v51 = vrot.slane %v2976_v12, 4  ;;  %v3104_v52 = vperm.slane %v8922_v0, %v8804_v25  ;;  %v3092_v0 = vperm.slane %v8742_v43, %v8804_v25 }
 0x187   : > { %7182 = vmatmul.msk.f32.gmra.mxu3 %vm625_vm2, %v9002_v60  ;;  %v682_v45 = vpop.f32.mrf.mxu2  ;;  %7433 = vrot.lane.b32.xlu2 %v7432_v20, %s8353_s21  ;;  %v790_v36 = vld.sshfl [vmem:[#allocation1 + $0x10] sm:$0xff pattern:$0x75316420]  ;;  %v3088_v43 = vperm.slane %v8766_v56, %v8804_v25 }
 0x188   : > { %v712_v46 = vrot.slane %v682_v45, 4  ;;  %828 = vst [vmem:[#allocation1] ss:$2 sm:$0xff] %v682_v45  ;;  %v4982_v45 = vrot.slane %v8880_v63, 4 }
 0x189   : > { %v791_v34 = vld.sshfl [vmem:[#allocation1 + $0x20] sm:$0xff pattern:$0x75316420]  ;;  %7438 = vrot.lane.b32.xlu0 %v7432_v20, %s8352_s13  ;;  %v4984_v20 = vrot.slane %v8655_v42, 4 }
 0x18a   : > { %7186 = vmatpush.msk.msrb.mxu0 %vm646_vm1, %v791_v34  ;;  %830 = vst [vmem:[#allocation1 + $0x1] ss:$2 sm:$0xff] %v712_v46  ;;  %v16529_v34 = vrot.slane %v8700_v11, 1  ;;  %v4983_v49 = vsel %vm925_vm5, %v4982_v45, %v8655_v42 }
 0x18b   : > { %v4985_v16 = vsel %vm925_vm5, %v8880_v63, %v4984_v20  ;;  %v2988_v63 = vperm.slane %v8938_v37, %v8804_v25  ;;  %v4989_v11 = vperm.slane %v4983_v49, %v8804_v25  ;;  %v5020_v20 = vrot.slane %v4977_v13, 4 }
 0x18c   : > { %810 = vmatpush.msrb.mxu0 %v790_v36  ;;  %v4993_v62 = vperm.slane %v4985_v16, %v8804_v25  ;;  %v9089_v17 = vsel %vm2864_vm4, %v16529_v34, %v16528_v22  ;;  %v9094_v36 = vld [vmem:[%s15942_s4 + $0x18] sm:$0xff]  ;;  %v7447_v16 = vpack.i.bf16 %v9048_v10, %v8648_v40 }
 0x18d   : > { %v7467_v37 = vpack.i.bf16 %v8831_v38, %v9089_v17  ;;  %v9115_v38 = vpack.i.bf16 %v8912_v39, %v8971_v57  ;;  %v3017_v42 = vrot.slane %v2988_v63, 4  ;;  %v9131_v57 = vsel %vm925_vm5, %v2988_v63, %v3019_v51 }
 0x18e   : > { %811 = vmatpush.msrb.mxu0 %v789_v4  ;;  %7443 = vrot.lane.b32.xlu1 %v7442_v2, %s8353_s21  ;;  %v3029_v4 = vrot.slane %v2992_v61, 4  ;;  %v5032_v2 = vrot.slane %v4981_v23, 4  ;;  %v5030_v34 = vrot.slane %v4993_v62, 4  ;;  %v5018_v63 = vrot.slane %v4989_v11, 4 }
 0x18f   : > { %7183 = vmatmul.msk.f32.gmra.mxu3 %vm625_vm2, %v9041_v50  ;;  %v685_v46 = vpop.f32.mrf.mxu2  ;;  %7458 = vrot.lane.b32.xlu2 %v9057_v58, %s8352_s13  ;;  %v9128_v39 = vsel %vm925_vm5, %v3017_v42, %v2976_v12  ;;  %v9150_v12 = vperm.slane %v8728_v29, %v8804_v25 }
 0x190   : > { %v713_v3 = vrot.slane %v685_v46, 4  ;;  %832 = vst [vmem:[#allocation1 + $0x10] ss:$2 sm:$0xff] %v685_v46  ;;  %7187 = vmatmul.msk.f32.vlgmr.msrb.gmra.mxu0 %vm625_vm2, %v8961_v55  ;;  %v9111_v46 = vsel %vm925_vm5, %v2992_v61, %v3031_v7  ;;  %v9118_v45 = vsel %vm925_vm5, %v3029_v4, %v2980_v14  ;;  %v9133_v14 = vpop.permute.xlu2 %7278  ;;  %v9137_v7 = vperm.slane %v8711_v18, %v8804_v25 }
 0x191   : > { %7473 = vrot.lane.b32.xlu0 %v7472_v6, %s8353_s21  ;;  %v9108_v6 = vsel %vm925_vm5, %v4993_v62, %v5032_v2  ;;  %v837_v61 = vld.sshfl [vmem:[#allocation1] sm:$0xff pattern:$0x75316420]  ;;  %v7477_v4 = vpack.i.bf16 %v8834_v35, %v8615_v24  ;;  %v9153_v18 = vsel %vm925_vm5, %v5030_v34, %v4981_v23  ;;  %v5093_v34 = vperm.slane %v8797_v33, %v8804_v25 }
 0x192   : > { %834 = vst [vmem:[#allocation1 + $0x11] ss:$2 sm:$0xff] %v713_v3  ;;  %v9121_v3 = vsel %vm925_vm5, %v4989_v11, %v5020_v20  ;;  %v9144_v62 = vld [vmem:[%s15942_s4 + $0x20] sm:$0x3]  ;;  %v1211_v49 = vrot.slane %v9137_v7, 4  ;;  %v9160_v20 = vperm.slane %v8775_v8, %v8804_v25  ;;  %v1168_v8 = vperm.slane %v8784_v19, %v8804_v25 }
 0x193   : > { %v16530_v11 = vrot.slane %v8812_v59, 2  ;;  %v5096_v19 = vrot.slane %v8648_v40, 4  ;;  %v5094_v59 = vrot.slane %v9048_v10, 4  ;;  %v5089_v33 = vperm.slane %v8793_v31, %v8804_v25 }
 0x194   : > { %v9186_v42 = vsel %vm925_vm5, %v9160_v20, %v1211_v49  ;;  %v3141_v49 = vrot.slane %v3104_v52, 4 }
 0x195   : > { %v5132_v31 = vrot.slane %v5089_v33, 4 }
 0x196   : > { %7448 = vrot.lane.b32.xlu1 %v7447_v16, %s8352_s13  ;;  %v9163_v16 = vsel %vm925_vm5, %v5018_v63, %v4977_v13  ;;  %v1199_v13 = vrot.slane %v9150_v12, 4  ;;  %v9230_v56 = vsel %vm925_vm5, %v3141_v49, %v3092_v0 }
 0x197   : > { %7184 = vmatmul.msk.f32.gmra.mxu3 %vm625_vm2, %v9094_v36  ;;  %v688_v22 = vpop.f32.mrf.mxu2  ;;  %7468 = vrot.lane.b32.xlu2 %v7467_v37, %s8352_s13 }
 0x198   : > { %v714_v2 = vrot.slane %v688_v22, 4  ;;  %836 = vst [vmem:[#allocation1 + $0x20] ss:$2 sm:$0xff] %v688_v22  ;;  %7188 = vmatmul.msk.f32.gmra.mxu0 %vm625_vm2, %v9002_v60  ;;  %v9182_v51 = vsel %vm925_vm5, %v1168_v8, %v1199_v13  ;;  %v9188_v22 = vpop.permute.xlu2 %7298  ;;  %v3143_v13 = vrot.slane %v3092_v0, 4 }
 0x199   : > { %7488 = vrot.lane.b32.xlu0 %v9115_v38, %s8353_s21  ;;  %v838_v35 = vld.sshfl [vmem:[#allocation1 + $0x10] sm:$0xff pattern:$0x75316420] }
 0x19a   : > { %876 = vst [vmem:[#allocation1] ss:$2 sm:$0xff] %v714_v2  ;;  %v5097_v2 = vsel %vm925_vm5, %v9048_v10, %v5096_v19  ;;  %v3100_v10 = vperm.slane %v8955_v44, %v8804_v25  ;;  %v1209_v44 = vrot.slane %v9160_v20, 4 }
 0x19e   : > { %7453 = vrot.lane.b32.xlu1 %v9057_v58, %s8353_s21  ;;  %v9179_v58 = vsel %vm4865_vm3, %v4896_v27, %v16530_v11  ;;  %v9222_v11 = vpop.permute.xlu0 %7268 }
 0x19f   : > { %7185 = vmatmul.msk.f32.gmra.mxu3 %vm625_vm2, %v9144_v62  ;;  %v691_v24 = vpop.f32.mrf.mxu2  ;;  %7478 = vrot.lane.b32.xlu2 %v7477_v4, %s8352_s13  ;;  %v839_v29 = vld.sshfl [vmem:[#allocation1 + $0x20] sm:$0xff pattern:$0x75316420]  ;;  %16531 = vst [vmem:[#allocation21_spill] sm:$0xff] %v9179_v58  ;;  %v7482_v27 = vpack.i.bf16 %v9179_v58, %v8870_v21  ;;  %v9206_v4 = vpop.permute.xlu1 %7273 }
 0x1a0   : > { %v715_v23 = vrot.slane %v691_v24, 4  ;;  %7189 = vmatmul.msk.f32.gmra.mxu0 %vm625_vm2, %v9041_v50  ;;  %7192 = vmatpush.msk.msra.mxu1 %vm646_vm1, %v839_v29  ;;  %878 = vst [vmem:[#allocation1 + $0x1] ss:$2 sm:$0xff] %v691_v24  ;;  %v5105_v24 = vperm.slane %v5097_v2, %v8804_v25  ;;  %v5144_v29 = vrot.slane %v5093_v34, 4  ;;  %v9225_v19 = vpop.permute.xlu2 %7303  ;;  %v3131_v2 = vrot.slane %v3088_v43, 4 }
 0x1a2   : > { %858 = vmatpush.msra.mxu1 %v838_v35  ;;  %880 = vst [vmem:[#allocation1 + $0x10] ss:$2 sm:$0xff] %v715_v23  ;;  %v7497_v35 = vpack.i.bf16 %v8917_v9, %v9179_v58  ;;  %v9251_v49 = vsel %vm925_vm5, %v3100_v10, %v3131_v2 }
 0x1a4   : > { %859 = vmatpush.msra.mxu1 %v837_v61 }
 0x1a5   : > { %7193 = vmatmul.msk.f32.vlgmr.msra.gmra.mxu1 %vm625_vm2, %v8961_v55 }
 0x1a6   : > { %7463 = vrot.lane.b32.xlu1 %v7467_v37, %s8353_s21  ;;  %v5095_v37 = vsel %vm925_vm5, %v5094_v59, %v8648_v40  ;;  %v3129_v40 = vrot.slane %v3100_v10, 4 }
 0x1a7   : > { %v694_v61 = vpop.f32.mrf.mxu2  ;;  %7483 = vrot.lane.b32.xlu2 %v7482_v27, %s8352_s13  ;;  %v5101_v23 = vperm.slane %v5095_v37, %v8804_v25  ;;  %v9236_v27 = vsel %vm925_vm5, %v5105_v24, %v5144_v29  ;;  %v9254_v37 = vsel %vm925_vm5, %v3104_v52, %v3143_v13  ;;  %v16535_v52 = vld [vmem:[#allocation8_spill] sm:$0xff] }
 0x1a8   : > { %v716_v63 = vrot.slane %v694_v61, 4  ;;  %882 = vst [vmem:[#allocation1 + $0x11] ss:$2 sm:$0xff] %v694_v61  ;;  %7190 = vmatmul.msk.f32.gmra.mxu0 %vm625_vm2, %v9094_v36  ;;  %v9242_v20 = vsel %vm925_vm5, %v3129_v40, %v3088_v43  ;;  %v16532_v61 = vld [vmem:[#allocation7_spill] sm:$0xff]  ;;  %v5142_v43 = vrot.slane %v5105_v24, 4  ;;  %v16534_v40 = vld [vmem:[#allocation6_spill] sm:$0xff]  ;;  %v9271_v13 = vperm.slane %v16535_v52, %v8804_v25 }
 0x1a9   : > { %v9233_v59 = vsel %vm925_vm5, %v5101_v23, %v5132_v31  ;;  %v9260_v31 = vpop.permute.xlu1 %7288 }
 0x1aa   : > { %884 = vst [vmem:[#allocation1 + $0x20] ss:$2 sm:$0xff] %v716_v63  ;;  %v9246_v63 = vperm.slane %v16532_v61, %v8804_v25  ;;  %v7502_v61 = vpack.i.bf16 %v8917_v9, %v16534_v40  ;;  %v9280_v9 = vpop.permute.xlu0 %7283  ;;  %v9283_v2 = vsel %vm925_vm5, %v5142_v43, %v5093_v34  ;;  %v1311_v40 = vrot.slane %v9271_v13, 4 }
 0x1ab   : > { %16536 = vst [vmem:[#allocation6_spill] sm:$0xff] %v9271_v13 }
 0x1ac   : > { %16533 = vst [vmem:[#allocation7_spill] sm:$0xff] %v9246_v63 }
 0x1ad   : > { %7194 = vmatmul.msk.f32.gmra.mxu1 %vm625_vm2, %v9002_v60 }
 0x1ae   : > { %7493 = vrot.lane.b32.xlu1 %v9115_v38, %s8352_s13  ;;  %v9258_v38 = vsel %vm925_vm5, %v1209_v44, %v9137_v7  ;;  %v16537_v7 = vld [vmem:[#allocation9_spill] sm:$0xff]  ;;  %v885_v44 = vld.sshfl [vmem:[#allocation1] sm:$0xff pattern:$0x75316420] }
 0x1af   : > { %7498 = vrot.lane.b32.xlu2 %v7497_v35, %s8353_s21  ;;  %v886_v0 = vld.sshfl [vmem:[#allocation1 + $0x10] sm:$0xff pattern:$0x75316420]  ;;  %v1197_v35 = vrot.slane %v1168_v8, 4  ;;  %v1323_v8 = vrot.slane %v9246_v63, 4  ;;  %v9276_v24 = vperm.slane %v16537_v7, %v8804_v25  ;;  %16539 = vst [vmem:[#allocation9_spill] sm:$0xff] %v9283_v2 }
 0x1b0   : > { %7191 = vmatmul.msk.f32.gmra.mxu0 %vm625_vm2, %v9144_v62  ;;  %v8355_v7 = vmov 1934713408   ;;  %v3193_v63 = vrot.slane %v9089_v17, 4 }
 0x1b1   : > { %v887_v29 = vld.sshfl [vmem:[#allocation1 + $0x20] sm:$0xff pattern:$0x75316420]  ;;  %v9267_v10 = vsel %vm925_vm5, %v1197_v35, %v9150_v12  ;;  %16538 = vst [vmem:[#allocation8_spill] sm:$0xff] %v9276_v24  ;;  %v5130_v12 = vrot.slane %v5101_v23, 4  ;;  %v9297_v52 = vsel %vm925_vm5, %v9276_v24, %v1323_v8  ;;  %v16543_v23 = vld [vmem:[#allocation5_spill] sm:$0xff]  ;;  %v9311_v48 = vpop.permute.xlu1 %7293 }
 0x1b2   : > { %7198 = vmatpush.msk.msra.mxu3 %vm646_vm1, %v887_v29  ;;  %v9285_v29 = vpop.permute.xlu2 %7323  ;;  %v3195_v43 = vrot.slane %v16543_v23, 4  ;;  %v16547_v8 = vld [vmem:[#allocation12_spill] sm:$0xff] }
 0x1b3   : > { %v9300_v34 = vsel %vm925_vm5, %v5130_v12, %v5089_v33  ;;  %v9315_v13 = vperm.slane %v16547_v8, %v8804_v25  ;;  %v5208_v33 = vrot.slane %v8870_v21, 4  ;;  %v16549_v12 = vld [vmem:[#allocation18_spill] sm:$0xff] }
 0x1b4   : > { %906 = vmatpush.msra.mxu3 %v886_v0  ;;  %v16540_v0 = vld [vmem:[#allocation10_spill] sm:$0xff]  ;;  %16542 = vst [vmem:[#allocation22_spill] sm:$0xff] %v9300_v34 }
 0x1b5   : > { %7195 = vmatmul.msk.f32.gmra.mxu1 %vm625_vm2, %v9041_v50  ;;  %v9292_v35 = vperm.slane %v16540_v0, %v8804_v25  ;;  %16548 = vst [vmem:[#allocation12_spill] sm:$0xff] %v9315_v13  ;;  %v5209_v21 = vsel %vm925_vm5, %v9179_v58, %v5208_v33  ;;  %v16557_v33 = vld [vmem:[#allocation16_spill] sm:$0xff] }
 0x1b6   : > { %907 = vmatpush.msra.mxu3 %v885_v44  ;;  %v978_v44 = vunpack.c.l.s4 %v8355_v7  ;;  %v9322_v7 = vperm.slane %v16549_v12, %v8804_v25  ;;  %v16553_v12 = vld [vmem:[#allocation13_spill] sm:$0xff]  ;;  %v9352_v34 = vperm.slane %v16557_v33, %v8804_v25  ;;  %v9369_v24 = vperm.slane %v5209_v21, %v8804_v25 }
 0x1b7   : > { %7199 = vmatmul.msk.f32.vlgmr.msra.gmra.mxu3 %vm625_vm2, %v8961_v55  ;;  %7503 = vrot.lane.b32.xlu2 %v7502_v61, %s8352_s13  ;;  %16541 = vst [vmem:[#allocation10_spill] sm:$0xff] %v9292_v35  ;;  %v9305_v55 = vsel %vm925_vm5, %v9292_v35, %v1311_v40  ;;  %v16545_v61 = vld [vmem:[#allocation11_spill] sm:$0xff]  ;;  %v3196_v40 = vsel %vm925_vm5, %v9089_v17, %v3195_v43 }
 0x1b8   : > { %16544 = vst [vmem:[#allocation5_spill] sm:$0xff] %v9305_v55  ;;  %v9309_v0 = vperm.slane %v16545_v61, %v8804_v25  ;;  %v9326_v61 = vunpack.c.0.s8 %v978_v44  ;;  %v16551_v35 = vld [vmem:[#allocation19_spill] sm:$0xff]  ;;  %v9339_v55 = vperm.slane %v16553_v12, %v8804_v25  ;;  %v16555_v44 = vld [vmem:[#allocation14_spill] sm:$0xff]  ;;  %v9359_v12 = vperm.slane %v8984_v28, %v8804_v25 }
 0x1b9   : > { %16550 = vst [vmem:[#allocation18_spill] sm:$0xff] %v9322_v7  ;;  %v9331_v8 = vperm.slane %v16551_v35, %v8804_v25  ;;  %v9344_v2 = vperm.slane %v16555_v44, %v8804_v25  ;;  %v9347_v35 = vpop.permute.xlu0 %7308  ;;  %v9365_v17 = vperm.slane %v8942_v41, %v8804_v25  ;;  %v9390_v21 = vsel %vm925_vm5, %v3193_v63, %v16543_v23  ;;  %v9415_v23 = vpop.permute.xlu1 %7318 }
 0x1ba   : > { %16546 = vst [vmem:[#allocation11_spill] sm:$0xff] %v9309_v0  ;;  %v9361_v43 = vpop.permute.xlu2 %7333  ;;  %v9373_v33 = vperm.slane %v9005_v5, %v9326_v61  ;;  %v9378_v28 = vperm.slane %v9015_v30, %v9326_v61  ;;  %v9382_v13 = vperm.slane %v9018_v54, %v9326_v61  ;;  %v9386_v41 = vperm.slane %v9012_v32, %v9326_v61 }
 0x1bb   : > { %16552 = vst [vmem:[#allocation19_spill] sm:$0xff] %v9331_v8  ;;  %v9399_v30 = vperm.slane %v9026_v15, %v9326_v61  ;;  %v9404_v32 = vperm.slane %v8992_v1, %v8804_v25  ;;  %v3253_v44 = vrot.slane %v9359_v12, 4  ;;  %v9411_v63 = vperm.slane %v9034_v53, %v9326_v61 }
 0x1bc   : > { %16554 = vst [vmem:[#allocation13_spill] sm:$0xff] %v9339_v55  ;;  %v9420_v1 = vperm.slane %v9051_v47, %v9326_v61  ;;  %v9432_v54 = vperm.slane %v9128_v39, %v9326_v61  ;;  %v9436_v47 = vperm.slane %v9118_v45, %v9326_v61  ;;  %v9454_v45 = vperm.slane %v9108_v6, %v9326_v61 }
 0x1bd   : > { %7196 = vmatmul.msk.f32.gmra.mxu1 %vm625_vm2, %v9094_v36  ;;  %16556 = vst [vmem:[#allocation14_spill] sm:$0xff] %v9344_v2  ;;  %v16575_v2 = vunpack.i.h.bf16 %v9133_v14  ;;  %v9458_v53 = vperm.slane %v9131_v57, %v9326_v61  ;;  %v16579_v8 = vunpack.i.l.bf16 %v9133_v14  ;;  %v9509_v57 = vperm.slane %v9182_v51, %v9326_v61 }
 0x1be   : > { %16558 = vst [vmem:[#allocation16_spill] sm:$0xff] %v9352_v34  ;;  %v9524_v6 = vperm.slane %v9163_v16, %v9326_v61  ;;  %v16590_v34 = vunpack.i.h.bf16 %v9225_v19  ;;  %v3241_v16 = vrot.slane %v9404_v32, 4  ;;  %v16594_v51 = vunpack.i.l.bf16 %v9260_v31 }
 0x1bf   : > { %7200 = vmatmul.msk.f32.gmra.mxu3 %vm625_vm2, %v9002_v60  ;;  %v9355_v60 = vperm.slane %v3196_v40, %v8804_v25  ;;  %16560 = vst [vmem:[#allocation24_spill] sm:$0xff] %v9359_v12  ;;  %v9395_v40 = vperm.slane %v9031_v26, %v9326_v61  ;;  %v9443_v26 = vperm.slane %v9111_v46, %v9326_v61  ;;  %v9447_v15 = vrot.slane %v16575_v2, 4 }
 0x1c0   : > { %16561 = vst [vmem:[#allocation25_spill] sm:$0xff] %v9365_v17  ;;  %v9462_v46 = vrot.slane %v16579_v8, 4  ;;  %v9477_v8 = vperm.slane %v9121_v3, %v9326_v61  ;;  %v16582_v2 = vunpack.i.l.bf16 %v9188_v22  ;;  %v9493_v3 = vperm.slane %v9153_v18, %v9326_v61 }
 0x1c1   : > { %16559 = vst [vmem:[#allocation23_spill] sm:$0xff] %v9355_v60  ;;  %v9449_v39 = vpop.permute.xlu0 %7313  ;;  %v9470_v5 = vsel %vm925_vm5, %v3253_v44, %v9355_v60  ;;  %v15980_v44 = vunpack.i.l.bf16 %v9222_v11  ;;  %v16587_v18 = vunpack.i.h.bf16 %v9222_v11  ;;  %v9516_v0 = vpop.permute.xlu1 %7328  ;;  %v9535_v58 = vrot.slane %v16590_v34, 4 }
 0x1c2   : > { %16562 = vst [vmem:[#allocation26_spill] sm:$0xff] %v9369_v24  ;;  %v9466_v7 = vpop.permute.xlu2 %7358  ;;  %v9485_v17 = vrot.slane %v16582_v2, 4  ;;  %v16585_v2 = vunpack.i.l.bf16 %v9206_v4 }
 0x1c3   : > { %16563 = vst [vmem:[#allocation27_spill] sm:$0xff] %v9373_v33  ;;  %v9513_v24 = vrot.slane %v16587_v18, 4 }
 0x1c4   : > { %16564 = vst [vmem:[#allocation28_spill] sm:$0xff] %v9378_v28  ;;  %v9502_v60 = vrot.slane %v16585_v2, 4  ;;  %v9520_v2 = vperm.slane %v9186_v42, %v9326_v61  ;;  %v9575_v42 = vperm.slane %v9230_v56, %v9326_v61  ;;  %v9617_v56 = vperm.slane %v9233_v59, %v9326_v61 }
 0x1c5   : > { %16565 = vst [vmem:[#allocation29_spill] sm:$0xff] %v9382_v13  ;;  %7197 = vmatmul.msk.f32.gmra.mxu1 %vm625_vm2, %v9144_v62  ;;  %v16610_v59 = vunpack.i.h.bf16 %v9361_v43 }
 0x1c6   : > { %16566 = vst [vmem:[#allocation30_spill] sm:$0xff] %v9386_v41 }
 0x1c7   : > { %16567 = vst [vmem:[#allocation31_spill] sm:$0xff] %v9395_v40  ;;  %7201 = vmatmul.msk.f32.gmra.mxu3 %vm625_vm2, %v9041_v50  ;;  %v16581_v50 = vunpack.i.h.bf16 %v9188_v22 }
 0x1c8   : > { %16568 = vst [vmem:[#allocation32_spill] sm:$0xff] %v9399_v30  ;;  %v16623_v30 = vunpack.i.l.bf16 %v9206_v4 }
 0x1c9   : > { %16569 = vst [vmem:[#allocation33_spill] sm:$0xff] %v9404_v32  ;;  %v9481_v55 = vrot.slane %v16581_v50, 4  ;;  %v16584_v50 = vunpack.i.h.bf16 %v9206_v4  ;;  %v9561_v32 = vrot.slane %v16594_v51, 4  ;;  %v9602_v51 = vperm.slane %v9236_v27, %v9326_v61 }
 0x1ca   : > { %16570 = vst [vmem:[#allocation34_spill] sm:$0xff] %v9411_v63  ;;  %v16592_v63 = vunpack.i.h.bf16 %v9260_v31  ;;  %v16607_v27 = vunpack.i.h.bf16 %v9311_v48 }
 0x1cb   : > { %16571 = vst [vmem:[#allocation35_spill] sm:$0xff] %v9420_v1  ;;  %v9498_v12 = vrot.slane %v16584_v50, 4  ;;  %v9551_v1 = vpop.permute.xlu0 %7338  ;;  %v16595_v50 = vunpack.i.h.bf16 %v9285_v29 }
 0x1cc   : > { %16572 = vst [vmem:[#allocation36_spill] sm:$0xff] %v9432_v54  ;;  %v16591_v54 = vunpack.i.l.bf16 %v9225_v19  ;;  %v9549_v34 = vrot.slane %v16592_v63, 4  ;;  %v16596_v63 = vunpack.i.l.bf16 %v9285_v29  ;;  %v16648_v33 = vunpack.i.l.bf16 %v9551_v1 }
 0x1cd   : > { %16573 = vst [vmem:[#allocation37_spill] sm:$0xff] %v9436_v47  ;;  %v9565_v18 = vrot.slane %v16595_v50, 4  ;;  %v9584_v50 = vperm.slane %v9242_v20, %v9326_v61  ;;  %v7361_v20 = vunpack.i.h.bf16 %v9466_v7 }
 0x1ce   : > { %16574 = vst [vmem:[#allocation38_spill] sm:$0xff] %v9443_v26  ;;  %v7349_v26 = vpop.permute.xlu1 %7348 }
 0x1cf   : > { %16576 = vst [vmem:[#allocation39_spill] sm:$0xff] %v9449_v39  ;;  %7202 = vmatmul.msk.f32.gmra.mxu3 %vm625_vm2, %v9094_v36  ;;  %v9528_v36 = vrot.slane %v15980_v44, 4  ;;  %v9542_v44 = vrot.slane %v16591_v54, 4  ;;  %v9557_v54 = vperm.slane %v9390_v21, %v8804_v25  ;;  %v16600_v21 = vunpack.i.h.bf16 %v9280_v9 }
 0x1d0   : > { %16577 = vst [vmem:[#allocation40_spill] sm:$0xff] %v9454_v45  ;;  %v7351_v40 = vunpack.i.h.bf16 %v7349_v26 }
 0x1d1   : > { %16578 = vst [vmem:[#allocation41_spill] sm:$0xff] %v9458_v53  ;;  %v9579_v47 = vrot.slane %v16600_v21, 4  ;;  %v16609_v21 = vunpack.i.l.bf16 %v9311_v48  ;;  %v16613_v53 = vunpack.i.h.bf16 %v9347_v35 }
 0x1d2   : > { %16580 = vst [vmem:[#allocation42_spill] sm:$0xff] %v9477_v8  ;;  %v9627_v8 = vperm.slane %v9251_v49, %v9326_v61 }
 0x1d3   : > { %16583 = vst [vmem:[#allocation43_spill] sm:$0xff] %v9493_v3  ;;  %v9569_v3 = vrot.slane %v16596_v63, 4  ;;  %v9588_v63 = vsel %vm925_vm5, %v3241_v16, %v9557_v54  ;;  %v9606_v16 = vperm.slane %v9254_v37, %v9326_v61  ;;  %v7360_v37 = vunpack.i.l.bf16 %v9466_v7 }
 0x1d4   : > { %16586 = vst [vmem:[#allocation44_spill] sm:$0xff] %v9509_v57  ;;  %v9571_v57 = vpop.permute.xlu2 %7373  ;;  %v9643_v7 = vperm.slane %v9267_v10, %v9326_v61  ;;  %v9650_v41 = vrot.slane %v16613_v53, 4  ;;  %v9660_v10 = vperm.slane %v9297_v52, %v9326_v61  ;;  %v16616_v53 = vld [vmem:[#allocation22_spill] sm:$0xff] }
 0x1d5   : > { %16588 = vst [vmem:[#allocation45_spill] sm:$0xff] %v9520_v2  ;;  %v2288_v49 = vrot.slane %v7360_v37, 4 }
 0x1d6   : > { %16589 = vst [vmem:[#allocation46_spill] sm:$0xff] %v9524_v6  ;;  %v16602_v6 = vunpack.i.l.bf16 %v9280_v9 }
 0x1d7   : > { %16593 = vst [vmem:[#allocation47_spill] sm:$0xff] %v9557_v54  ;;  %7203 = vmatmul.msk.f32.gmra.mxu3 %vm625_vm2, %v9144_v62  ;;  %v9621_v54 = vrot.slane %v16607_v27, 4  ;;  %v9631_v62 = vrot.slane %v16609_v21, 4  ;;  %v16611_v27 = vunpack.i.l.bf16 %v9361_v43  ;;  %v9664_v21 = vpop.permute.xlu0 %7343 }
 0x1d8   : > { %16597 = vst [vmem:[#allocation48_spill] sm:$0xff] %v9569_v3  ;;  %v9592_v2 = vrot.slane %v16602_v6, 4  ;;  %v9610_v6 = vperm.slane %v9258_v38, %v9326_v61  ;;  %v2400_v38 = vrot.slane %v7361_v20, 4 }
 0x1d9   : > { %16598 = vst [vmem:[#allocation49_spill] sm:$0xff] %v9571_v57  ;;  %v9639_v45 = vrot.slane %v16611_v27, 4  ;;  %v2403_v27 = vsel %vm925_vm5, %v7361_v20, %v9498_v12  ;;  %v16627_v12 = vunpack.i.l.bf16 %v9415_v23 }
 0x1da   : > { %16599 = vst [vmem:[#allocation50_spill] sm:$0xff] %v9575_v42  ;;  %v9635_v42 = vrot.slane %v16610_v59, 4  ;;  %v16614_v59 = vunpack.i.l.bf16 %v9347_v35 }
 0x1db   : > { %16601 = vst [vmem:[#allocation51_spill] sm:$0xff] %v9584_v50  ;;  %v2291_v50 = vsel %vm925_vm5, %v7360_v37, %v9502_v60  ;;  %v16620_v60 = vunpack.i.h.bf16 %v9206_v4  ;;  %v9706_v20 = vrot.slane %v16627_v12, 4 }
 0x1dc   : > { %16603 = vst [vmem:[#allocation52_spill] sm:$0xff] %v9602_v51  ;;  %v9654_v13 = vrot.slane %v16614_v59, 4  ;;  %v16618_v59 = vld [vmem:[#allocation9_spill] sm:$0xff]  ;;  %v7399_v52 = vpop.permute.xlu2 %7398  ;;  %v9686_v28 = vperm.slane %v2291_v50, %v8804_v25  ;;  %v16626_v50 = vunpack.i.h.bf16 %v9415_v23 }
 0x1dd   : > { %16604 = vst [vmem:[#allocation53_spill] sm:$0xff] %v9606_v16  ;;  %v9672_v16 = vperm.slane %v16618_v59, %v9326_v61  ;;  %v2401_v37 = vsel %vm925_vm5, %v2400_v38, %v16620_v60  ;;  %v16624_v38 = vld [vmem:[#allocation5_spill] sm:$0xff]  ;;  %v7401_v51 = vunpack.i.h.bf16 %v7399_v52  ;;  %v9712_v60 = vpop.permute.xlu1 %7353 }
 0x1de   : > { %16605 = vst [vmem:[#allocation54_spill] sm:$0xff] %v9610_v6  ;;  %v9668_v6 = vperm.slane %v16616_v53, %v9326_v61  ;;  %v9682_v53 = vperm.slane %v2403_v27, %v8804_v25  ;;  %v9696_v27 = vperm.slane %v16624_v38, %v9326_v61  ;;  %v9709_v4 = vperm.slane %v2401_v37, %v8804_v25 }
 0x1df   : > { %16606 = vst [vmem:[#allocation55_spill] sm:$0xff] %v9617_v56  ;;  %v1736_v38 = vrot.slane %v7351_v40, 4  ;;  %v16632_v37 = vunpack.i.l.bf16 %v9449_v39 }
 0x1e0   : > { %16608 = vst [vmem:[#allocation56_spill] sm:$0xff] %v9627_v8  ;;  %v9702_v8 = vrot.slane %v16626_v50, 4  ;;  %v1739_v50 = vsel %vm925_vm5, %v7351_v40, %v9513_v24  ;;  %v16641_v40 = vunpack.i.l.bf16 %v9222_v11 }
 0x1e1   : > { %16612 = vst [vmem:[#allocation57_spill] sm:$0xff] %v9643_v7  ;;  %v2289_v7 = vsel %vm925_vm5, %v2288_v49, %v16623_v30  ;;  %v7350_v30 = vunpack.i.l.bf16 %v7349_v26  ;;  %v5746_v26 = vrot.slane %v7401_v51, 4  ;;  %v5749_v49 = vsel %vm925_vm5, %v7401_v51, %v9549_v34 }
 0x1e2   : > { %16615 = vst [vmem:[#allocation58_spill] sm:$0xff] %v9660_v10  ;;  %v7400_v10 = vunpack.i.l.bf16 %v7399_v52  ;;  %v9715_v59 = vperm.slane %v2289_v7, %v8804_v25  ;;  %v16637_v34 = vunpack.i.h.bf16 %v9571_v57 }
 0x1e3   : > { %16617 = vst [vmem:[#allocation22_spill] sm:$0xff] %v9668_v6  ;;  %v9724_v6 = vrot.slane %v16632_v37, 4  ;;  %v16634_v37 = vunpack.i.h.bf16 %v9222_v11 }
 0x1e4   : > { %16619 = vst [vmem:[#allocation9_spill] sm:$0xff] %v9672_v16  ;;  %v16630_v16 = vunpack.i.h.bf16 %v9449_v39  ;;  %v5634_v52 = vrot.slane %v7400_v10, 4  ;;  %v7364_v39 = vpop.permute.xlu0 %7363  ;;  %v9754_v51 = vrot.slane %v16637_v34, 4 }
 0x1e5   : > { %16621 = vst [vmem:[#allocation59_spill] sm:$0xff] %v9682_v53  ;;  %v1737_v56 = vsel %vm925_vm5, %v1736_v38, %v16634_v37  ;;  %v16636_v38 = vunpack.i.l.bf16 %v9516_v0  ;;  %v9757_v53 = vperm.slane %v1739_v50, %v8804_v25  ;;  %v16644_v50 = vunpack.i.l.bf16 %v9260_v31 }
 0x1e6   : > { %16622 = vst [vmem:[#allocation60_spill] sm:$0xff] %v9686_v28  ;;  %v9720_v12 = vrot.slane %v16630_v16, 4  ;;  %v1624_v28 = vrot.slane %v7350_v30, 4  ;;  %v1627_v16 = vsel %vm925_vm5, %v7350_v30, %v9528_v36  ;;  %v16635_v36 = vunpack.i.h.bf16 %v9516_v0 }
 0x1e7   : > { %16625 = vst [vmem:[#allocation5_spill] sm:$0xff] %v9696_v27  ;;  %v9750_v37 = vrot.slane %v16636_v38, 4  ;;  %v9760_v24 = vperm.slane %v1737_v56, %v8804_v25  ;;  %v9769_v38 = vperm.slane %v5749_v49, %v8804_v25  ;;  %v5635_v27 = vsel %vm925_vm5, %v5634_v52, %v16644_v50  ;;  %v7369_v52 = vpop.permute.xlu1 %7368 }
 0x1e8   : > { %16628 = vst [vmem:[#allocation61_spill] sm:$0xff] %v9709_v4  ;;  %v7414_v4 = vpop.permute.xlu2 %7413  ;;  %v9746_v30 = vrot.slane %v16635_v36, 4  ;;  %v1625_v7 = vsel %vm925_vm5, %v1624_v28, %v16641_v40  ;;  %v9766_v36 = vperm.slane %v1627_v16, %v8804_v25  ;;  %v5637_v56 = vsel %vm925_vm5, %v7400_v10, %v9561_v32 }
 0x1e9   : > { %16629 = vst [vmem:[#allocation62_spill] sm:$0xff] %v9715_v59  ;;  %v16643_v59 = vunpack.i.h.bf16 %v9260_v31  ;;  %v7416_v11 = vunpack.i.h.bf16 %v7414_v4  ;;  %v16645_v28 = vunpack.i.l.bf16 %v9571_v57  ;;  %v16647_v16 = vunpack.i.h.bf16 %v9551_v1 }
 0x1ea   : > { %16631 = vst [vmem:[#allocation63_spill] sm:$0xff] %v9720_v12  ;;  %v7366_v32 = vunpack.i.h.bf16 %v7364_v39  ;;  %v7365_v10 = vunpack.i.l.bf16 %v7364_v39  ;;  %v16653_v39 = vunpack.i.h.bf16 %v9664_v21 }
 0x1eb   : > { %16633 = vst [vmem:[#allocation64_spill] sm:$0xff] %v9724_v6  ;;  %v5747_v34 = vsel %vm925_vm5, %v5746_v26, %v16643_v59  ;;  %v9781_v40 = vrot.slane %v16645_v28, 4  ;;  %v9785_v49 = vrot.slane %v16647_v16, 4  ;;  %v9789_v6 = vrot.slane %v16648_v33, 4 }
 0x1ec   : > { %16638 = vst [vmem:[#allocation65_spill] sm:$0xff] %v9754_v51  ;;  %v7415_v59 = vunpack.i.l.bf16 %v7414_v4  ;;  %v9793_v26 = vperm.slane %v1625_v7, %v8804_v25  ;;  %v9796_v50 = vperm.slane %v5747_v34, %v8804_v25  ;;  %v9799_v28 = vperm.slane %v5635_v27, %v8804_v25  ;;  %v9812_v33 = vpop.permute.xlu0 %7378 }
 0x1ed   : > { %16639 = vst [vmem:[#allocation66_spill] sm:$0xff] %v9757_v53  ;;  %v9802_v16 = vperm.slane %v5637_v56, %v8804_v25  ;;  %v6310_v53 = vrot.slane %v7416_v11, 4  ;;  %v1748_v57 = vrot.slane %v7366_v32, 4  ;;  %v1636_v51 = vrot.slane %v7365_v10, 4 }
 0x1ee   : > { %16640 = vst [vmem:[#allocation67_spill] sm:$0xff] %v9760_v24  ;;  %v6312_v12 = vrot.slane %v7415_v59, 4  ;;  %v9819_v24 = vrot.slane %v16653_v39, 4  ;;  %v1751_v27 = vsel %vm925_vm5, %v7366_v32, %v9535_v58  ;;  %v1639_v56 = vsel %vm925_vm5, %v7365_v10, %v9542_v44 }
 0x1ef   : > { %16642 = vst [vmem:[#allocation68_spill] sm:$0xff] %v9766_v36  ;;  %v6311_v36 = vsel %vm925_vm5, %v6310_v53, %v7415_v59  ;;  %v16654_v4 = vunpack.i.l.bf16 %v9664_v21  ;;  %v16655_v7 = vunpack.i.h.bf16 %v9712_v60  ;;  %v16656_v53 = vunpack.i.l.bf16 %v9712_v60 }
 0x1f0   : > { %16646 = vst [vmem:[#allocation69_spill] sm:$0xff] %v9781_v40  ;;  %v7371_v40 = vunpack.i.h.bf16 %v7369_v52  ;;  %v7419_v34 = vpop.permute.xlu2 %7418  ;;  %v6313_v39 = vsel %vm925_vm5, %v7416_v11, %v6312_v12  ;;  %v16657_v58 = vunpack.i.h.bf16 %v9225_v19  ;;  %v16658_v32 = vunpack.i.l.bf16 %v9225_v19 }
 0x1f1   : > { %16649 = vst [vmem:[#allocation70_spill] sm:$0xff] %v9793_v26  ;;  %v7370_v26 = vunpack.i.l.bf16 %v7369_v52  ;;  %v9828_v3 = vrot.slane %v16654_v4, 4  ;;  %v9832_v31 = vrot.slane %v16655_v7, 4  ;;  %v9837_v59 = vrot.slane %v16656_v53, 4 }
 0x1f2   : > { %16650 = vst [vmem:[#allocation71_spill] sm:$0xff] %v9796_v50  ;;  %v1749_v44 = vsel %vm925_vm5, %v1748_v57, %v16657_v58  ;;  %v1637_v10 = vsel %vm925_vm5, %v1636_v51, %v16658_v32  ;;  %v7421_v52 = vunpack.i.h.bf16 %v7419_v34  ;;  %v9846_v4 = vperm.slane %v6311_v36, %v8804_v25 }
 0x1f3   : > { %16651 = vst [vmem:[#allocation72_spill] sm:$0xff] %v9799_v28  ;;  %v2412_v28 = vrot.slane %v7371_v40, 4  ;;  %v9849_v7 = vperm.slane %v1751_v27, %v8804_v25  ;;  %v9852_v12 = vperm.slane %v1639_v56, %v8804_v25  ;;  %v9856_v11 = vperm.slane %v9470_v5, %v9326_v61 }
 0x1f4   : > { %16652 = vst [vmem:[#allocation73_spill] sm:$0xff] %v9802_v16  ;;  %v9859_v57 = vperm.slane %v6313_v39, %v8804_v25  ;;  %v2415_v19 = vsel %vm925_vm5, %v7371_v40, %v9650_v41  ;;  %v2300_v51 = vrot.slane %v7370_v26, 4  ;;  %v7420_v53 = vunpack.i.l.bf16 %v7419_v34  ;;  %v7389_v40 = vpop.permute.xlu1 %7388 }
 0x1f5   : > { %16659 = vst [vmem:[#allocation74_spill] sm:$0xff] %v9846_v4  ;;  %v9864_v36 = vperm.slane %v1749_v44, %v8804_v25  ;;  %v9867_v27 = vperm.slane %v1637_v10, %v8804_v25  ;;  %v16666_v56 = vunpack.i.h.bf16 %v9347_v35  ;;  %v2303_v5 = vsel %vm925_vm5, %v7370_v26, %v9654_v13 }
 0x1f6   : > { %16660 = vst [vmem:[#allocation75_spill] sm:$0xff] %v9849_v7  ;;  %v1960_v39 = vrot.slane %v7421_v52, 4  ;;  %v7381_v32 = vunpack.i.h.bf16 %v9812_v33  ;;  %v7380_v41 = vunpack.i.l.bf16 %v9812_v33  ;;  %v9878_v34 = vperm.slane %v9588_v63, %v9326_v61 }
 0x1f7   : > { %16661 = vst [vmem:[#allocation76_spill] sm:$0xff] %v9852_v12  ;;  %v2413_v58 = vsel %vm925_vm5, %v2412_v28, %v16666_v56  ;;  %v9884_v28 = vperm.slane %v2415_v19, %v8804_v25  ;;  %v16670_v26 = vunpack.i.l.bf16 %v9347_v35  ;;  %v9893_v56 = vperm.slane %v2303_v5, %v8804_v25 }
 0x1f8   : > { %16662 = vst [vmem:[#allocation77_spill] sm:$0xff] %v9856_v11  ;;  %v9887_v13 = vperm.slane %v2413_v58, %v8804_v25  ;;  %v1848_v63 = vrot.slane %v7420_v53, 4  ;;  %v1963_v58 = vsel %vm925_vm5, %v7421_v52, %v9621_v54  ;;  %v7434_v44 = vpop.permute.xlu2 %7433  ;;  %v16673_v35 = vunpack.i.h.bf16 %v9311_v48 }
 0x1f9   : > { %16663 = vst [vmem:[#allocation78_spill] sm:$0xff] %v9859_v57  ;;  %v2301_v33 = vsel %vm925_vm5, %v2300_v51, %v16670_v26  ;;  %v3745_v26 = vrot.slane %v7381_v32, 4  ;;  %v3633_v5 = vrot.slane %v7380_v41, 4  ;;  %v7391_v7 = vunpack.i.h.bf16 %v7389_v40 }
 0x1fa   : > { %16664 = vst [vmem:[#allocation79_spill] sm:$0xff] %v9864_v36  ;;  %v1961_v51 = vsel %vm925_vm5, %v1960_v39, %v16673_v35  ;;  %v9907_v4 = vperm.slane %v2301_v33, %v8804_v25  ;;  %v1851_v11 = vsel %vm925_vm5, %v7420_v53, %v9631_v62  ;;  %v7390_v19 = vunpack.i.l.bf16 %v7389_v40 }
 0x1fb   : > { %16665 = vst [vmem:[#allocation80_spill] sm:$0xff] %v9867_v27  ;;  %v9914_v52 = vperm.slane %v1963_v58, %v8804_v25  ;;  %v16675_v39 = vunpack.i.l.bf16 %v9311_v48  ;;  %v9920_v12 = vperm.slane %v1961_v51, %v8804_v25  ;;  %v3748_v33 = vsel %vm925_vm5, %v7381_v32, %v9447_v15 }
 0x1fc   : > { %16667 = vst [vmem:[#allocation81_spill] sm:$0xff] %v9878_v34  ;;  %v9895_v34 = vpop.permute.xlu0 %7383  ;;  %v3636_v62 = vsel %vm925_vm5, %v7380_v41, %v9462_v46  ;;  %v7436_v53 = vunpack.i.h.bf16 %v7434_v44  ;;  %v9927_v40 = vperm.slane %v1851_v11, %v8804_v25  ;;  %v16677_v58 = vunpack.i.h.bf16 %v9133_v14 }
 0x1fd   : > { %16668 = vst [vmem:[#allocation82_spill] sm:$0xff] %v9884_v28  ;;  %v1849_v35 = vsel %vm925_vm5, %v1848_v63, %v16675_v39  ;;  %v16678_v48 = vunpack.i.l.bf16 %v9133_v14  ;;  %v4409_v51 = vrot.slane %v7391_v7, 4  ;;  %v4297_v32 = vrot.slane %v7390_v19, 4 }
 0x1fe   : > { %16669 = vst [vmem:[#allocation83_spill] sm:$0xff] %v9887_v13  ;;  %v3746_v10 = vsel %vm925_vm5, %v3745_v26, %v16677_v58  ;;  %v9937_v15 = vperm.slane %v1849_v35, %v8804_v25  ;;  %v7435_v46 = vunpack.i.l.bf16 %v7434_v44  ;;  %v9941_v11 = vperm.slane %v3748_v33, %v8804_v25  ;;  %v9948_v26 = vpop.permute.xlu1 %7393 }
 0x1ff   : > { %16671 = vst [vmem:[#allocation84_spill] sm:$0xff] %v9893_v56  ;;  %v3634_v63 = vsel %vm925_vm5, %v3633_v5, %v16678_v48  ;;  %v9944_v54 = vperm.slane %v3636_v62, %v8804_v25  ;;  %v4412_v14 = vsel %vm925_vm5, %v7391_v7, %v9579_v47  ;;  %v9952_v35 = vperm.slane %v3746_v10, %v8804_v25 }
 0x200   : > { %16672 = vst [vmem:[#allocation85_spill] sm:$0xff] %v9895_v34  ;;  %v9955_v44 = vperm.slane %v3634_v63, %v8804_v25  ;;  %v3760_v33 = vsel %vm925_vm5, %v7436_v53, %v9746_v30  ;;  %v16683_v62 = vunpack.i.h.bf16 %v9280_v9  ;;  %v4300_v47 = vsel %vm925_vm5, %v7390_v19, %v9592_v2  ;;  %v7459_v58 = vpop.permute.xlu2 %7458 }
 0x201   : > { %16674 = vst [vmem:[#allocation86_spill] sm:$0xff] %v9907_v4  ;;  %v3757_v7 = vrot.slane %v7436_v53, 4  ;;  %v9967_v39 = vperm.slane %v4412_v14, %v8804_v25  ;;  %v16684_v63 = vunpack.i.l.bf16 %v9280_v9  ;;  %v3645_v41 = vrot.slane %v7435_v46, 4 }
 0x202   : > { %16676 = vst [vmem:[#allocation87_spill] sm:$0xff] %v9920_v12  ;;  %v4410_v48 = vsel %vm925_vm5, %v4409_v51, %v16683_v62  ;;  %v3807_v12 = vrot.slane %v9941_v11, 4  ;;  %v3768_v62 = vperm.slane %v3760_v33, %v8804_v25  ;;  %v3648_v2 = vsel %vm925_vm5, %v7435_v46, %v9750_v37  ;;  %v10042_v36 = vpop.f32.mrf.mxu3 }
 0x203   : > { %16679 = vst [vmem:[#allocation88_spill] sm:$0xff] %v9937_v15  ;;  %v4298_v30 = vsel %vm925_vm5, %v4297_v32, %v16684_v63  ;;  %v3795_v19 = vrot.slane %v9952_v35, 4  ;;  %v9980_v14 = vperm.slane %v4410_v48, %v8804_v25  ;;  %v9983_v9 = vperm.slane %v4300_v47, %v8804_v25 }
 0x204   : > { %16680 = vst [vmem:[#allocation89_spill] sm:$0xff] %v9944_v54  ;;  %v7404_v5 = vpop.permute.xlu0 %7403  ;;  %v9986_v32 = vperm.slane %v4298_v30, %v8804_v25  ;;  %v16687_v63 = vunpack.i.h.bf16 %v9516_v0  ;;  %v16076_v10 = vunpack.i.h.bf16 %v9895_v34  ;;  %v7461_v37 = vunpack.i.h.bf16 %v7459_v58 }
 0x205   : > { %16681 = vst [vmem:[#allocation90_spill] sm:$0xff] %v9952_v35  ;;  %v16688_v51 = vunpack.i.l.bf16 %v9516_v0  ;;  %v9997_v53 = vperm.slane %v3648_v2, %v8804_v25  ;;  %v7460_v47 = vunpack.i.l.bf16 %v7459_v58  ;;  %v3808_v30 = vsel %vm925_vm5, %v3768_v62, %v3807_v12 }
 0x206   : > { %16682 = vst [vmem:[#allocation91_spill] sm:$0xff] %v9955_v44  ;;  %v3758_v33 = vsel %vm925_vm5, %v3757_v7, %v16687_v63  ;;  %v16082_v35 = vunpack.i.l.bf16 %v9895_v34  ;;  %v7406_v15 = vunpack.i.h.bf16 %v7404_v5  ;;  %v7405_v44 = vunpack.i.l.bf16 %v7404_v5  ;;  %v10012_v2 = vpop.permute.xlu1 %7408 }
 0x207   : > { %16685 = vst [vmem:[#allocation92_spill] sm:$0xff] %v9980_v14  ;;  %v3646_v48 = vsel %vm925_vm5, %v3645_v41, %v16688_v51  ;;  %v10004_v46 = vperm.slane %v3758_v33, %v8804_v25  ;;  %v3805_v51 = vrot.slane %v3768_v62, 4  ;;  %v10010_v58 = vrot.slane %v16076_v10, 4 }
 0x208   : > { %16686 = vst [vmem:[#allocation93_spill] sm:$0xff] %v9986_v32  ;;  %v2636_v12 = vrot.slane %v7461_v37, 4  ;;  %v10015_v5 = vperm.slane %v3808_v30, %v9326_v61  ;;  %v10018_v7 = vperm.slane %v3646_v48, %v8804_v25  ;;  %v3693_v33 = vrot.slane %v9997_v53, 4 }
 0x209   : > { %16689 = vst [vmem:[#allocation94_spill] sm:$0xff] %v9997_v53  ;;  %v2524_v63 = vrot.slane %v7460_v47, 4  ;;  %v10023_v41 = vrot.slane %v16082_v35, 4  ;;  %v2639_v62 = vsel %vm925_vm5, %v7461_v37, %v9832_v31  ;;  %v6410_v10 = vrot.slane %v7406_v15, 4  ;;  %v7469_v53 = vpop.permute.xlu2 %7468 }
 0x20a   : > { %16690 = vst [vmem:[#allocation95_spill] sm:$0xff] %v10004_v46  ;;  %v6412_v0 = vrot.slane %v7405_v44, 4  ;;  %v10030_v30 = vsel %vm925_vm5, %v10004_v46, %v3795_v19  ;;  %v16696_v48 = vunpack.i.h.bf16 %v9948_v26  ;;  %v2527_v35 = vsel %vm925_vm5, %v7460_v47, %v9837_v59 }
 0x20b   : > { %16691 = vst [vmem:[#allocation96_spill] sm:$0xff] %v10010_v58  ;;  %v16697_v31 = vunpack.i.h.bf16 %v9712_v60  ;;  %v7471_v13 = vunpack.i.h.bf16 %v7469_v53  ;;  %v7470_v32 = vunpack.i.l.bf16 %v7469_v53  ;;  %v10045_v19 = vperm.slane %v2639_v62, %v8804_v25 }
 0x20c   : > { %16692 = vst [vmem:[#allocation97_spill] sm:$0xff] %v10015_v5  ;;  %v7424_v14 = vpop.permute.xlu0 %7423  ;;  %v10034_v5 = vrot.slane %v16696_v48, 4  ;;  %v16698_v48 = vunpack.i.l.bf16 %v9712_v60  ;;  %v16094_v59 = vunpack.i.h.bf16 %v10012_v2  ;;  %v10052_v28 = vperm.slane %v2527_v35, %v8804_v25 }
 0x20d   : > { %16693 = vst [vmem:[#allocation98_spill] sm:$0xff] %v10018_v7  ;;  %v2637_v37 = vsel %vm925_vm5, %v2636_v12, %v16697_v31  ;;  %v7426_v47 = vunpack.i.h.bf16 %v7424_v14  ;;  %v6413_v12 = vsel %vm925_vm5, %v7406_v15, %v6412_v0  ;;  %v7425_v53 = vunpack.i.l.bf16 %v7424_v14 }
 0x20e   : > { %16694 = vst [vmem:[#allocation99_spill] sm:$0xff] %v10023_v41  ;;  %v2525_v46 = vsel %vm925_vm5, %v2524_v63, %v16698_v48  ;;  %v10058_v31 = vsel %vm925_vm5, %v3805_v51, %v9941_v11  ;;  %v10062_v60 = vperm.slane %v2637_v37, %v8804_v25  ;;  %v10067_v35 = vsel %vm925_vm5, %v3693_v33, %v9944_v54  ;;  %v7429_v63 = vpop.permute.xlu1 %7428 }
 0x20f   : > { %16695 = vst [vmem:[#allocation100_spill] sm:$0xff] %v10030_v30  ;;  %v6411_v30 = vsel %vm925_vm5, %v6410_v10, %v7405_v44  ;;  %v16702_v44 = vunpack.i.l.bf16 %v9948_v26  ;;  %v4633_v15 = vrot.slane %v7471_v13, 4  ;;  %v4521_v14 = vrot.slane %v7470_v32, 4 }
 0x210   : > { %16699 = vst [vmem:[#allocation101_spill] sm:$0xff] %v10058_v31  ;;  %v10074_v11 = vperm.slane %v2525_v46, %v8804_v25  ;;  %v10077_v0 = vperm.slane %v6411_v30, %v8804_v25  ;;  %v10080_v51 = vperm.slane %v6413_v12, %v8804_v25  ;;  %v2624_v37 = vrot.slane %v7426_v47, 4 }
 0x211   : > { %16700 = vst [vmem:[#allocation102_spill] sm:$0xff] %v10062_v60  ;;  %v10071_v10 = vrot.slane %v16702_v44, 4  ;;  %v2684_v48 = vrot.slane %v10045_v19, 4  ;;  %v2572_v33 = vrot.slane %v10052_v28, 4  ;;  %v10086_v44 = vrot.slane %v16094_v59, 4 }
 0x212   : > { %16701 = vst [vmem:[#allocation103_spill] sm:$0xff] %v10067_v35  ;;  %v2512_v62 = vrot.slane %v7425_v53, 4  ;;  %v2672_v46 = vrot.slane %v10062_v60, 4  ;;  %v16704_v31 = vunpack.i.l.bf16 %v10012_v2  ;;  %v4636_v12 = vsel %vm925_vm5, %v7471_v13, %v9702_v8 }
 0x213   : > { %16703 = vst [vmem:[#allocation104_spill] sm:$0xff] %v10074_v11  ;;  %v4524_v35 = vsel %vm925_vm5, %v7470_v32, %v9706_v20  ;;  %v16705_v54 = vunpack.i.h.bf16 %v9415_v23  ;;  %v16706_v59 = vunpack.i.l.bf16 %v9415_v23  ;;  %v2627_v60 = vsel %vm925_vm5, %v7426_v47, %v9481_v55  ;;  %v7479_v32 = vpop.permute.xlu2 %7478 }
 0x214   : > { %v10091_v30 = vrot.slane %v16704_v31, 4  ;;  %v7431_v4 = vunpack.i.h.bf16 %v7429_v63  ;;  %v2560_v31 = vrot.slane %v10074_v11, 4  ;;  %v16707_v20 = vunpack.i.h.bf16 %v9188_v22 }
 0x215   : > { %v4634_v7 = vsel %vm925_vm5, %v4633_v15, %v16705_v54  ;;  %v4522_v56 = vsel %vm925_vm5, %v4521_v14, %v16706_v59  ;;  %v10112_v54 = vperm.slane %v4636_v12, %v8804_v25  ;;  %v10115_v23 = vperm.slane %v4524_v35, %v8804_v25  ;;  %v7439_v15 = vpop.permute.xlu0 %7438  ;;  %v10120_v14 = vpop.f32.mrf.mxu3 }
 0x216   : > { %v2625_v13 = vsel %vm925_vm5, %v2624_v37, %v16707_v20  ;;  %v16710_v55 = vunpack.i.l.bf16 %v9188_v22  ;;  %v7430_v47 = vunpack.i.l.bf16 %v7429_v63  ;;  %v10123_v8 = vperm.slane %v4634_v7, %v8804_v25 }
 0x217   : > { %16708 = vst [vmem:[#allocation105_spill] sm:$0xff] %v10112_v54  ;;  %v10126_v37 = vperm.slane %v4522_v56, %v8804_v25  ;;  %v2635_v12 = vperm.slane %v2627_v60, %v8804_v25  ;;  %v7481_v20 = vunpack.i.h.bf16 %v7479_v32  ;;  %v10130_v35 = vperm.slane %v2625_v13, %v8804_v25  ;;  %v7444_v60 = vpop.permute.xlu1 %7443 }
 0x218   : > { %16709 = vst [vmem:[#allocation106_spill] sm:$0xff] %v10115_v23  ;;  %v2513_v59 = vsel %vm925_vm5, %v2512_v62, %v16710_v55  ;;  %v2515_v22 = vsel %vm925_vm5, %v7425_v53, %v9485_v17  ;;  %v6522_v62 = vrot.slane %v7431_v4, 4  ;;  %v7480_v63 = vunpack.i.l.bf16 %v7479_v32 }
 0x219   : > { %16711 = vst [vmem:[#allocation107_spill] sm:$0xff] %v10123_v8  ;;  %v10135_v55 = vperm.slane %v2513_v59, %v8804_v25  ;;  %v7441_v27 = vunpack.i.h.bf16 %v7439_v15  ;;  %v7507_v7 = vpack.i.bf16 %v10120_v14, %v10042_v36  ;;  %v6524_v11 = vrot.slane %v7430_v47, 4 }
 0x21a   : > { %16712 = vst [vmem:[#allocation108_spill] sm:$0xff] %v10126_v37  ;;  %v7440_v41 = vunpack.i.l.bf16 %v7439_v15  ;;  %v2686_v34 = vrot.slane %v2635_v12, 4  ;;  %v2523_v17 = vperm.slane %v2515_v22, %v8804_v25  ;;  %v6634_v53 = vrot.slane %v7481_v20, 4 }
 0x21b   : > { %16713 = vst [vmem:[#allocation109_spill] sm:$0xff] %v10130_v35  ;;  %7508 = vrot.lane.b32.xlu2 %v7507_v7, %s8353_s21  ;;  %v10148_v58 = vsel %vm925_vm5, %v2672_v46, %v10130_v35  ;;  %v6636_v56 = vrot.slane %v7480_v63, 4  ;;  %7513 = vrot.lane.b32.xlu0 %v7507_v7, %s8352_s13  ;;  %v10153_v15 = vsel %vm925_vm5, %v2560_v31, %v10135_v55  ;;  %v4421_v8 = vrot.slane %v7441_v27, 4 }
 0x21c   : > { %16714 = vst [vmem:[#allocation110_spill] sm:$0xff] %v10135_v55  ;;  %v2685_v22 = vsel %vm925_vm5, %v2684_v48, %v2635_v12  ;;  %v6523_v13 = vsel %vm925_vm5, %v6522_v62, %v7430_v47  ;;  %v6525_v59 = vsel %vm925_vm5, %v7431_v4, %v6524_v11  ;;  %v4424_v46 = vsel %vm925_vm5, %v7441_v27, %v9635_v42  ;;  %v7484_v42 = vpop.permute.xlu2 %7483 }
 0x21d   : > { %16715 = vst [vmem:[#allocation111_spill] sm:$0xff] %v10148_v58  ;;  %v4309_v37 = vrot.slane %v7440_v41, 4  ;;  %v2573_v58 = vsel %vm925_vm5, %v2572_v33, %v2523_v17  ;;  %v10164_v7 = vsel %vm925_vm5, %v10045_v19, %v2686_v34  ;;  %v6635_v31 = vsel %vm925_vm5, %v6634_v53, %v7480_v63 }
 0x21e   : > { %16716 = vst [vmem:[#allocation112_spill] sm:$0xff] %v10153_v15  ;;  %v7446_v48 = vunpack.i.h.bf16 %v7444_v60  ;;  %v2574_v12 = vrot.slane %v2523_v17, 4  ;;  %v10168_v47 = vperm.slane %v2685_v22, %v9326_v61  ;;  %v10171_v62 = vperm.slane %v6523_v13, %v8804_v25 }
 0x21f   : > { %16717 = vst [vmem:[#allocation113_spill] sm:$0xff] %v10164_v7  ;;  %v6637_v4 = vsel %vm925_vm5, %v7481_v20, %v6636_v56  ;;  %v10175_v27 = vperm.slane %v6525_v59, %v8804_v25  ;;  %v16719_v11 = vunpack.i.h.bf16 %v9361_v43  ;;  %v4432_v19 = vperm.slane %v4424_v46, %v8804_v25 }
 0x220   : > { %16718 = vst [vmem:[#allocation114_spill] sm:$0xff] %v10168_v47  ;;  %v4312_v33 = vsel %vm925_vm5, %v7440_v41, %v9639_v45  ;;  %v10184_v63 = vperm.slane %v2573_v58, %v9326_v61  ;;  %v10187_v13 = vperm.slane %v6635_v31, %v8804_v25  ;;  %v16722_v20 = vunpack.i.l.bf16 %v9361_v43 }
 0x221   : > { %v4422_v34 = vsel %vm925_vm5, %v4421_v8, %v16719_v11  ;;  %v7445_v17 = vunpack.i.l.bf16 %v7444_v60  ;;  %v10193_v53 = vperm.slane %v6637_v4, %v8804_v25  ;;  %v5758_v8 = vrot.slane %v7446_v48, 4  ;;  %v10225_v60 = vpop.f32.mrf.mxu3 }
 0x222   : > { %16720 = vst [vmem:[#allocation115_spill] sm:$0xff] %v10184_v63  ;;  %v4310_v56 = vsel %vm925_vm5, %v4309_v37, %v16722_v20  ;;  %v5761_v59 = vsel %vm925_vm5, %v7446_v48, %v9785_v49  ;;  %v7486_v22 = vunpack.i.h.bf16 %v7484_v42  ;;  %v10199_v45 = vsel %vm925_vm5, %v10052_v28, %v2574_v12  ;;  %v10206_v37 = vpop.f32.mrf.mxu0  ;;  %v7474_v48 = vpop.permute.xlu0 %7473 }
 0x223   : > { %16721 = vst [vmem:[#allocation116_spill] sm:$0xff] %v10187_v13  ;;  %v10203_v58 = vperm.slane %v4422_v34, %v8804_v25  ;;  %v4320_v43 = vperm.slane %v4312_v33, %v8804_v25  ;;  %v4469_v46 = vrot.slane %v4432_v19, 4  ;;  %v10210_v31 = vperm.slane %v4310_v56, %v8804_v25 }
 0x224   : > { %16723 = vst [vmem:[#allocation117_spill] sm:$0xff] %v10199_v45  ;;  %v7485_v49 = vunpack.i.l.bf16 %v7484_v42  ;;  %v16726_v28 = vrot.slane %v9967_v39, 4  ;;  %v5769_v4 = vperm.slane %v5761_v59, %v8804_v25  ;;  %v5646_v11 = vrot.slane %v7445_v17, 4 }
 0x225   : > { %16724 = vst [vmem:[#allocation118_spill] sm:$0xff] %v10203_v58  ;;  %v5649_v34 = vsel %vm925_vm5, %v7445_v17, %v9789_v6  ;;  %v16728_v56 = vunpack.i.h.bf16 %v9551_v1  ;;  %v6534_v32 = vrot.slane %v7486_v22, 4  ;;  %v7476_v41 = vunpack.i.h.bf16 %v7474_v48 }
 0x226   : > { %16725 = vst [vmem:[#allocation119_spill] sm:$0xff] %v10210_v31  ;;  %v10215_v12 = vsel %vm925_vm5, %v4432_v19, %v16726_v28  ;;  %v4357_v28 = vrot.slane %v4320_v43, 4  ;;  %v10231_v6 = vsel %vm925_vm5, %v4469_v46, %v9967_v39  ;;  %v10235_v33 = vperm.slane %v5649_v34, %v8804_v25 }
 0x227   : > { %16727 = vst [vmem:[#allocation120_spill] sm:$0xff] %v10215_v12  ;;  %v5759_v42 = vsel %vm925_vm5, %v5758_v8, %v16728_v56  ;;  %v6536_v20 = vrot.slane %v7485_v49, 4  ;;  %v16732_v56 = vrot.slane %v9769_v38, 4  ;;  %v16733_v59 = vunpack.i.l.bf16 %v9551_v1 }
 0x228   : > { %16729 = vst [vmem:[#allocation121_spill] sm:$0xff] %v10231_v6  ;;  %v10238_v8 = vperm.slane %v5759_v42, %v8804_v25  ;;  %v16734_v46 = vrot.slane %v9983_v9, 4  ;;  %v2901_v34 = vrot.slane %v10042_v36, 1  ;;  %v4902_v42 = vrot.slane %v10042_v36, 2 }
 0x229   : > { %16730 = vst [vmem:[#allocation122_spill] sm:$0xff] %v10235_v33  ;;  %v5809_v19 = vsel %vm925_vm5, %v5769_v4, %v16732_v56  ;;  %v5647_v47 = vsel %vm925_vm5, %v5646_v11, %v16733_v59  ;;  %v6535_v7 = vsel %vm925_vm5, %v6534_v32, %v7485_v49  ;;  %v10257_v56 = vsel %vm925_vm5, %v4357_v28, %v9983_v9  ;;  %v7449_v59 = vpop.permute.xlu1 %7448  ;;  %v7499_v28 = vpop.permute.xlu2 %7498 }
 0x22a   : > { %16731 = vst [vmem:[#allocation123_spill] sm:$0xff] %v10238_v8  ;;  %v10250_v17 = vsel %vm925_vm5, %v4320_v43, %v16734_v46  ;;  %v5970_v1 = vrot.slane %v7476_v41, 4  ;;  %v7475_v35 = vunpack.i.l.bf16 %v7474_v48  ;;  %v2902_v11 = vrot.slane %v10120_v14, 1 }
 0x22b   : > { %16735 = vst [vmem:[#allocation124_spill] sm:$0xff] %v10250_v17  ;;  %v5806_v39 = vrot.slane %v5769_v4, 4  ;;  %v10261_v12 = vperm.slane %v5809_v19, %v9326_v61  ;;  %v10264_v43 = vperm.slane %v5647_v47, %v8804_v25  ;;  %v6537_v46 = vsel %vm925_vm5, %v7486_v22, %v6536_v20  ;;  %v10275_v4 = vpop.f32.mrf.mxu0 }
 0x22c   : > { %16736 = vst [vmem:[#allocation125_spill] sm:$0xff] %v10257_v56  ;;  %v5694_v49 = vrot.slane %v10235_v33, 4  ;;  %v6541_v9 = vperm.slane %v6535_v7, %v8804_v25  ;;  %v16739_v48 = vrot.slane %v10225_v60, 1  ;;  %v16740_v19 = vrot.slane %v9796_v50, 4 }
 0x22d   : > { %16737 = vst [vmem:[#allocation126_spill] sm:$0xff] %v10261_v12  ;;  %v4903_v22 = vrot.slane %v10120_v14, 2  ;;  %v7451_v20 = vunpack.i.h.bf16 %v7449_v59  ;;  %v6545_v7 = vperm.slane %v6537_v46, %v8804_v25  ;;  %v5858_v58 = vrot.slane %v7475_v35, 4 }
 0x22e   : > { %16738 = vst [vmem:[#allocation127_spill] sm:$0xff] %v10264_v43  ;;  %v10273_v6 = vsel %vm2864_vm4, %v2902_v11, %v16739_v48  ;;  %v10281_v47 = vsel %vm925_vm5, %v10238_v8, %v16740_v19  ;;  %v7450_v12 = vunpack.i.l.bf16 %v7449_v59  ;;  %v10287_v48 = vsel %vm2864_vm4, %v2901_v34, %v2902_v11  ;;  %v16744_v59 = vld [vmem:[#allocation48_spill] sm:$0xff] }
 0x22f   : > { %16741 = vst [vmem:[#allocation128_spill] sm:$0xff] %v10281_v47  ;;  %v10291_v63 = vsel %vm925_vm5, %v5806_v39, %v9769_v38  ;;  %v7501_v50 = vunpack.i.h.bf16 %v7499_v28  ;;  %v7522_v19 = vpack.i.bf16 %v10273_v6, %v10287_v48  ;;  %v6570_v8 = vrot.slane %v6541_v9, 4 }
 0x230   : > { %16742 = vst [vmem:[#allocation129_spill] sm:$0xff] %v10291_v63  ;;  %v16743_v47 = vunpack.i.h.bf16 %v9285_v29  ;;  %v5973_v46 = vsel %vm925_vm5, %v7476_v41, %v9565_v18  ;;  %v5861_v34 = vsel %vm925_vm5, %v7475_v35, %v16744_v59  ;;  %v6422_v11 = vrot.slane %v7451_v20, 4 }
 0x231   : > { %v7500_v15 = vunpack.i.l.bf16 %v7499_v28  ;;  %7523 = vrot.lane.b32.xlu2 %v7522_v19, %s8352_s13  ;;  %7518 = vrot.lane.b32.xlu1 %v7522_v19, %s8353_s21  ;;  %v10305_v38 = vsel %vm4865_vm3, %v4902_v42, %v4903_v22  ;;  %v16745_v39 = vrot.slane %v10225_v60, 2  ;;  %v6582_v18 = vrot.slane %v6545_v7, 4 }
 0x232   : > { %v5971_v32 = vsel %vm925_vm5, %v5970_v1, %v16743_v47  ;;  %v10312_v1 = vpop.f32.mrf.mxu1  ;;  %v16746_v41 = vunpack.i.l.bf16 %v9285_v29  ;;  %v6424_v28 = vrot.slane %v7450_v12, 4  ;;  %v10322_v42 = vsel %vm925_vm5, %v5694_v49, %v9802_v16 }
 0x233   : > { %v10310_v63 = vsel %vm4865_vm3, %v4903_v22, %v16745_v39  ;;  %16747 = vst [vmem:[#allocation48_spill] sm:$0xff] %v10322_v42  ;;  %v16748_v22 = vrot.slane %v10171_v62, 4  ;;  %v5982_v39 = vrot.slane %v7501_v50, 4  ;;  %v16750_v29 = vrot.slane %v10175_v27, 4 }
 0x234   : > { %v5859_v35 = vsel %vm925_vm5, %v5858_v58, %v16746_v41  ;;  %v7527_v47 = vpack.i.bf16 %v10310_v63, %v10305_v38  ;;  %v10335_v41 = vperm.slane %v5971_v32, %v8804_v25  ;;  %v5981_v19 = vperm.slane %v5973_v46, %v8804_v25 }
 0x235   : > { %v10327_v59 = vsel %vm925_vm5, %v6541_v9, %v16748_v22  ;;  %v10332_v58 = vsel %vm925_vm5, %v6545_v7, %v16750_v29  ;;  %v5985_v49 = vsel %vm925_vm5, %v7501_v50, %v10034_v5  ;;  %v10342_v45 = vperm.slane %v5859_v35, %v8804_v25  ;;  %v10358_v35 = vpop.f32.mrf.mxu3 }
 0x236   : > { %16749 = vst [vmem:[#allocation130_spill] sm:$0xff] %v10327_v59  ;;  %7528 = vrot.lane.b32.xlu0 %v7527_v47, %s8353_s21  ;;  %v10345_v9 = vperm.slane %v5861_v34, %v8804_v25  ;;  %v6423_v22 = vsel %vm925_vm5, %v6422_v11, %v7450_v12  ;;  %v5870_v7 = vrot.slane %v7500_v15, 4  ;;  %v10350_v32 = vsel %vm925_vm5, %v6570_v8, %v10171_v62  ;;  %v10360_v47 = vpop.f32.mrf.mxu0 }
 0x237   : > { %16751 = vst [vmem:[#allocation131_spill] sm:$0xff] %v10332_v58  ;;  %v10354_v46 = vsel %vm925_vm5, %v6582_v18, %v10175_v27  ;;  %v6425_v5 = vsel %vm925_vm5, %v7451_v20, %v6424_v28  ;;  %v16756_v34 = vunpack.i.h.bf16 %v9948_v26  ;;  %v5993_v11 = vperm.slane %v5985_v49, %v8804_v25  ;;  %v7489_v28 = vpop.permute.xlu0 %7488 }
 0x238   : > { %16752 = vst [vmem:[#allocation132_spill] sm:$0xff] %v10335_v41  ;;  %v7537_v62 = vpack.i.bf16 %v10275_v4, %v10206_v37  ;;  %v6020_v27 = vrot.slane %v10335_v41, 4  ;;  %v6032_v8 = vrot.slane %v5981_v19, 4  ;;  %v6429_v18 = vperm.slane %v6423_v22, %v8804_v25 }
 0x239   : > { %16753 = vst [vmem:[#allocation133_spill] sm:$0xff] %v10342_v45  ;;  %v5983_v12 = vsel %vm925_vm5, %v5982_v39, %v16756_v34  ;;  %v5873_v20 = vsel %vm925_vm5, %v7500_v15, %v10071_v10  ;;  %v5908_v29 = vrot.slane %v10342_v45, 4  ;;  %v5920_v50 = vrot.slane %v10345_v9, 4 }
 0x23a   : > { %16754 = vst [vmem:[#allocation134_spill] sm:$0xff] %v10350_v32  ;;  %v16757_v39 = vunpack.i.l.bf16 %v9948_v26  ;;  %7538 = vrot.lane.b32.xlu2 %v7537_v62, %s8352_s13  ;;  %7533 = vrot.lane.b32.xlu1 %v7537_v62, %s8353_s21  ;;  %v6433_v22 = vperm.slane %v6425_v5, %v8804_v25  ;;  %v10382_v41 = vperm.slane %v5983_v12, %v8804_v25  ;;  %v4912_v10 = vrot.slane %v10275_v4, 2  ;;  %v10388_v32 = vpop.f32.mrf.mxu1 }
 0x23b   : > { %16755 = vst [vmem:[#allocation135_spill] sm:$0xff] %v10354_v46  ;;  %v7542_v15 = vpack.i.bf16 %v10358_v35, %v10225_v60  ;;  %v6030_v46 = vrot.slane %v5993_v11, 4  ;;  %v5881_v26 = vperm.slane %v5873_v20, %v8804_v25  ;;  %v6458_v62 = vrot.slane %v6429_v18, 4 }
 0x23c   : > { %v5871_v49 = vsel %vm925_vm5, %v5870_v7, %v16757_v39  ;;  %16758 = vst [vmem:[#allocation136_spill] sm:$0xff] %v10382_v41  ;;  %v7491_v7 = vunpack.i.h.bf16 %v7489_v28  ;;  %v7490_v39 = vunpack.i.l.bf16 %v7489_v28  ;;  %v6033_v34 = vsel %vm925_vm5, %v5993_v11, %v6032_v8 }
 0x23d   : > { %v10392_v5 = vperm.slane %v5871_v49, %v8804_v25  ;;  %v4911_v12 = vrot.slane %v10206_v37, 2  ;;  %v16760_v58 = vrot.slane %v10077_v0, 4  ;;  %v2911_v20 = vrot.slane %v10275_v4, 1 }
 0x23e   : > { %7543 = vrot.lane.b32.xlu0 %v7542_v15, %s8353_s21  ;;  %v16762_v45 = vrot.slane %v10360_v47, 2  ;;  %v6470_v8 = vrot.slane %v6433_v22, 4  ;;  %v16763_v49 = vrot.slane %v10080_v51, 4  ;;  %v10422_v28 = vsel %vm925_vm5, %v6030_v46, %v5981_v19 }
 0x23f   : > { %16759 = vst [vmem:[#allocation137_spill] sm:$0xff] %v10392_v5  ;;  %v10399_v59 = vsel %vm925_vm5, %v6429_v18, %v16760_v58  ;;  %v10415_v58 = vsel %vm4865_vm3, %v4911_v12, %v4912_v10  ;;  %v10419_v18 = vsel %vm925_vm5, %v10382_v41, %v6020_v27  ;;  %v3981_v56 = vrot.slane %v7491_v7, 4 }
 0x240   : > { %16761 = vst [vmem:[#allocation138_spill] sm:$0xff] %v10399_v59  ;;  %v10406_v11 = vsel %vm4865_vm3, %v4912_v10, %v16762_v45  ;;  %v10411_v55 = vsel %vm925_vm5, %v6433_v22, %v16763_v49  ;;  %v2910_v45 = vrot.slane %v10206_v37, 1  ;;  %v7454_v59 = vpop.permute.xlu1 %7453  ;;  %v10428_v22 = vperm.slane %v6033_v34, %v9326_v61  ;;  %v777_v10 = vpop.f32.mrf.mxu3 }
 0x241   : > { %16764 = vst [vmem:[#allocation139_spill] sm:$0xff] %v10411_v55  ;;  %v7562_v42 = vpack.i.bf16 %v10406_v11, %v10415_v58  ;;  %v5918_v49 = vrot.slane %v5881_v26, 4  ;;  %v5921_v12 = vsel %vm925_vm5, %v5881_v26, %v5920_v50  ;;  %v3869_v55 = vrot.slane %v7490_v39, 4 }
 0x242   : > { %16765 = vst [vmem:[#allocation140_spill] sm:$0xff] %v10419_v18  ;;  %v10433_v19 = vsel %vm2864_vm4, %v2910_v45, %v2911_v20  ;;  %v16768_v46 = vrot.slane %v10360_v47, 1  ;;  %v7456_v41 = vunpack.i.h.bf16 %v7454_v59  ;;  %7548 = vrot.lane.b32.xlu1 %v7542_v15, %s8352_s13  ;;  %v2906_v26 = vrot.slane %v10358_v35, 1 }
 0x243   : > { %16766 = vst [vmem:[#allocation141_spill] sm:$0xff] %v10422_v28  ;;  %7563 = vrot.lane.b32.xlu2 %v7562_v42, %s8353_s21  ;;  %v16769_v28 = vld [vmem:[#allocation65_spill] sm:$0xff]  ;;  %v10448_v42 = vsel %vm925_vm5, %v6458_v62, %v10077_v0  ;;  %v10452_v45 = vsel %vm925_vm5, %v6470_v8, %v10080_v51  ;;  %v10461_v15 = vsel %vm925_vm5, %v10392_v5, %v5908_v29 }
 0x244   : > { %16767 = vst [vmem:[#allocation142_spill] sm:$0xff] %v10428_v22  ;;  %v10438_v27 = vsel %vm2864_vm4, %v2911_v20, %v16768_v46  ;;  %v3984_v34 = vsel %vm925_vm5, %v7491_v7, %v16769_v28  ;;  %v10455_v46 = vpop.permute.xlu2 %7503  ;;  %v2908_v7 = vrot.slane %v777_v10, 1  ;;  %v10457_v28 = vpop.f32.mrf.mxu0  ;;  %v10464_v22 = vperm.slane %v5921_v12, %v9326_v61  ;;  %v16774_v0 = vld [vmem:[#allocation49_spill] sm:$0xff] }
 0x245   : > { %v7552_v50 = vpack.i.bf16 %v10438_v27, %v10433_v19  ;;  %16770 = vst [vmem:[#allocation65_spill] sm:$0xff] %v10448_v42  ;;  %v16775_v62 = vunpack.i.h.bf16 %v16774_v0  ;;  %v16776_v51 = vld [vmem:[#allocation69_spill] sm:$0xff]  ;;  %v10473_v20 = vperm.slane %v3984_v34, %v8804_v25  ;;  %v16780_v34 = vrot.slane %v10225_v60, 1 }
 0x246   : > { %16771 = vst [vmem:[#allocation143_spill] sm:$0xff] %v10452_v45  ;;  %v3872_v8 = vsel %vm925_vm5, %v7490_v39, %v16776_v51  ;;  %v16778_v45 = vunpack.i.l.bf16 %v16774_v0  ;;  %v10479_v12 = vsel %vm2864_vm4, %v2906_v26, %v2908_v7  ;;  %v1972_v39 = vrot.slane %v7456_v41, 4 }
 0x247   : > { %16772 = vst [vmem:[#allocation144_spill] sm:$0xff] %v10461_v15  ;;  %v3982_v18 = vsel %vm925_vm5, %v3981_v56, %v16775_v62  ;;  %7553 = vrot.lane.b32.xlu0 %v7552_v50, %s8353_s21  ;;  %v7455_v15 = vunpack.i.l.bf16 %v7454_v59  ;;  %v10485_v56 = vsel %vm925_vm5, %v5918_v49, %v10345_v9  ;;  %v7506_v62 = vunpack.i.h.bf16 %v10455_v46 }
 0x248   : > { %16773 = vst [vmem:[#allocation145_spill] sm:$0xff] %v10464_v22  ;;  %v3870_v29 = vsel %vm925_vm5, %v3869_v55, %v16778_v45  ;;  %v10481_v22 = vpop.f32.mrf.mxu1  ;;  %v10491_v51 = vsel %vm2864_vm4, %v16780_v34, %v2906_v26  ;;  %v10494_v55 = vperm.slane %v3982_v18, %v8804_v25  ;;  %v10497_v59 = vperm.slane %v3872_v8, %v8804_v25  ;;  %v7464_v33 = vpop.permute.xlu1 %7463 }
 0x249   : > { %16777 = vst [vmem:[#allocation49_spill] sm:$0xff] %v10473_v20  ;;  %v1975_v45 = vsel %vm925_vm5, %v7456_v41, %v9819_v24  ;;  %v7567_v9 = vpack.i.bf16 %v10479_v12, %v10491_v51  ;;  %v10504_v49 = vperm.slane %v3870_v29, %v8804_v25  ;;  %v1175_v7 = vrot.slane %v10225_v60, 4 }
 0x24a   : > { %16779 = vst [vmem:[#allocation69_spill] sm:$0xff] %v10485_v56  ;;  %v7505_v26 = vunpack.i.l.bf16 %v10455_v46  ;;  %v1860_v18 = vrot.slane %v7455_v15, 4  ;;  %v1863_v8 = vsel %vm925_vm5, %v7455_v15, %v9828_v3  ;;  %v4909_v34 = vrot.slane %v777_v10, 2  ;;  %7558 = vrot.lane.b32.xlu1 %v7552_v50, %s8352_s13 }
 0x24b   : > { %16781 = vst [vmem:[#allocation146_spill] sm:$0xff] %v10491_v51  ;;  %7568 = vrot.lane.b32.xlu2 %v7567_v9, %s8353_s21  ;;  %v16785_v24 = vunpack.i.h.bf16 %v9664_v21  ;;  %v1983_v29 = vperm.slane %v1975_v45, %v8804_v25  ;;  %v6646_v56 = vrot.slane %v7506_v62, 4  ;;  %v4907_v3 = vrot.slane %v10358_v35, 2 }
 0x24c   : > { %16782 = vst [vmem:[#allocation147_spill] sm:$0xff] %v10494_v55  ;;  %v1871_v15 = vperm.slane %v1863_v8, %v8804_v25  ;;  %v16787_v45 = vunpack.i.l.bf16 %v9664_v21  ;;  %v10535_v5 = vpop.f32.mrf.mxu0  ;;  %v1173_v8 = vrot.slane %v10481_v22, 4  ;;  %v10548_v21 = vsel %vm925_vm5, %v10481_v22, %v1175_v7 }
 0x24d   : > { %16783 = vst [vmem:[#allocation148_spill] sm:$0xff] %v10497_v59  ;;  %v1973_v41 = vsel %vm925_vm5, %v1972_v39, %v16785_v24  ;;  %v6649_v39 = vsel %vm925_vm5, %v7506_v62, %v10086_v44  ;;  %v6298_v24 = vrot.slane %v7505_v26, 4  ;;  %v10533_v0 = vsel %vm4865_vm3, %v4907_v3, %v4909_v34 }
 0x24e   : > { %16784 = vst [vmem:[#allocation149_spill] sm:$0xff] %v10504_v49  ;;  %v10527_v50 = vperm.slane %v1973_v41, %v8804_v25  ;;  %v1861_v46 = vsel %vm925_vm5, %v1860_v18, %v16787_v45  ;;  %v2020_v10 = vrot.slane %v1983_v29, 4  ;;  %v16788_v44 = vrot.slane %v9914_v52, 4 }
 0x24f   : > { %7573 = vrot.lane.b32.xlu0 %v7567_v9, %s8352_s13  ;;  %v16790_v9 = vunpack.i.h.bf16 %v10012_v2  ;;  %v6657_v18 = vperm.slane %v6649_v39, %v8804_v25  ;;  %v7582_v34 = vpack.i.bf16 %v10457_v28, %v10360_v47  ;;  %v16791_v45 = vrot.slane %v10225_v60, 2 }
 0x250   : > { %16786 = vst [vmem:[#allocation150_spill] sm:$0xff] %v10527_v50  ;;  %v10541_v62 = vsel %vm925_vm5, %v1983_v29, %v16788_v44  ;;  %v10560_v29 = vsel %vm925_vm5, %v1173_v8, %v10225_v60  ;;  %v10562_v44 = vpop.f32.mrf.mxu1  ;;  %v1908_v7 = vrot.slane %v1871_v15, 4  ;;  %v16796_v60 = vunpack.i.l.bf16 %v10012_v2 }
 0x251   : > { %16789 = vst [vmem:[#allocation151_spill] sm:$0xff] %v10541_v62  ;;  %v6647_v41 = vsel %vm925_vm5, %v6646_v56, %v16790_v9  ;;  %v10556_v42 = vsel %vm4865_vm3, %v16791_v45, %v4907_v3  ;;  %v10565_v56 = vperm.slane %v1861_v46, %v8804_v25  ;;  %v2917_v9 = vrot.slane %v10535_v5, 1 }
 0x252   : > { %v7577_v39 = vpack.i.bf16 %v10533_v0, %v10556_v42  ;;  %v16793_v62 = vrot.slane %v9927_v40, 4  ;;  %v10576_v45 = vperm.slane %v6647_v41, %v8804_v25  ;;  %v6299_v8 = vsel %vm925_vm5, %v6298_v24, %v16796_v60 }
 0x253   : > { %16792 = vst [vmem:[#allocation152_spill] sm:$0xff] %v10565_v56  ;;  %v1287_v46 = vrot.slane %v10358_v35, 4  ;;  %7583 = vrot.lane.b32.xlu2 %v7582_v34, %s8353_s21  ;;  %v6301_v17 = vsel %vm925_vm5, %v7505_v26, %v10091_v30  ;;  %v2915_v31 = vrot.slane %v10457_v28, 1  ;;  %v6694_v41 = vrot.slane %v6657_v18, 4 }
 0x254   : > { %v10573_v3 = vsel %vm925_vm5, %v1871_v15, %v16793_v62  ;;  %16795 = vst [vmem:[#allocation154_spill] sm:$0xff] %v10576_v45  ;;  %7578 = vrot.lane.b32.xlu1 %v7577_v39, %s8353_s21  ;;  %v1285_v15 = vrot.slane %v10562_v44, 4  ;;  %v16797_v2 = vrot.slane %v10193_v53, 4  ;;  %v10598_v30 = vsel %vm925_vm5, %v2020_v10, %v9914_v52 }
 0x255   : > { %16794 = vst [vmem:[#allocation153_spill] sm:$0xff] %v10573_v3  ;;  %v10594_v60 = vsel %vm925_vm5, %v10562_v44, %v1287_v46  ;;  %v10603_v39 = vsel %vm2864_vm4, %v2915_v31, %v2917_v9  ;;  %v10615_v52 = vperm.slane %v6299_v8, %v8804_v25  ;;  %v10618_v10 = vperm.slane %v6301_v17, %v8804_v25 }
 0x256   : > { %v6697_v24 = vsel %vm925_vm5, %v6657_v18, %v16797_v2  ;;  %16798 = vst [vmem:[#allocation155_spill] sm:$0xff] %v10598_v30  ;;  %v10607_v62 = vsel %vm925_vm5, %v1285_v15, %v10358_v35  ;;  %v10611_v18 = vsel %vm925_vm5, %v1908_v7, %v9927_v40  ;;  %v16806_v7 = vrot.slane %v10360_v47, 1  ;;  %v10676_v30 = vpop.f32.mrf.mxu3 }
 0x257   : > { %7588 = vrot.lane.b32.xlu0 %v7582_v34, %s8352_s13  ;;  %16799 = vst [vmem:[#allocation156_spill] sm:$0xff] %v10603_v39  ;;  %v16803_v34 = vrot.slane %v10187_v13, 4  ;;  %v10627_v35 = vperm.slane %v6697_v24, %v9326_v61  ;;  %v10637_v17 = vsel %vm925_vm5, %v6694_v41, %v10193_v53  ;;  %v16809_v24 = vrot.slane %v10042_v36, 4  ;;  %v16810_v41 = vld [vmem:[#allocation74_spill] sm:$0xff] }
 0x258   : > { %16800 = vst [vmem:[#allocation157_spill] sm:$0xff] %v10611_v18  ;;  %v10633_v15 = vsel %vm2864_vm4, %v16806_v7, %v2915_v31  ;;  %v4921_v26 = vrot.slane %v10388_v32, 2  ;;  %v7597_v53 = vpack.i.bf16 %v10388_v32, %v10312_v1  ;;  %v16811_v7 = vrot.slane %v16810_v41, 4  ;;  %v873_v31 = vpop.f32.mrf.mxu1 }
 0x259   : > { %16801 = vst [vmem:[#allocation158_spill] sm:$0xff] %v10615_v52  ;;  %v10624_v9 = vsel %vm925_vm5, %v10576_v45, %v16803_v34  ;;  %v7612_v34 = vpack.i.bf16 %v10603_v39, %v10633_v15  ;;  %v952_v46 = vsel %vm925_vm5, %v10312_v1, %v16809_v24  ;;  %v16813_v8 = vrot.slane %v9859_v57, 4 }
 0x25a   : > { %16802 = vst [vmem:[#allocation159_spill] sm:$0xff] %v10618_v10  ;;  %v10655_v2 = vsel %vm925_vm5, %v16811_v7, %v10615_v52  ;;  %v5108_v24 = vrot.slane %v10310_v63, 4  ;;  %v16814_v7 = vrot.slane %v10481_v22, 2  ;;  %v10674_v13 = vperm.slane %v952_v46, %v8804_v25 }
 0x25b   : > { %16804 = vst [vmem:[#allocation160_spill] sm:$0xff] %v10624_v9  ;;  %v6359_v40 = vsel %vm925_vm5, %v16813_v8, %v10618_v10  ;;  %7613 = vrot.lane.b32.xlu2 %v7612_v34, %s8352_s13  ;;  %v4920_v9 = vrot.slane %v10312_v1, 2  ;;  %v949_v8 = vrot.slane %v10312_v1, 4  ;;  %v3331_v18 = vrot.slane %v10479_v12, 4 }
 0x25c   : > { %16805 = vst [vmem:[#allocation161_spill] sm:$0xff] %v10627_v35  ;;  %v2919_v35 = vrot.slane %v10312_v1, 1  ;;  %7598 = vrot.lane.b32.xlu1 %v7597_v53, %s8352_s13  ;;  %v10670_v45 = vsel %vm4865_vm3, %v4921_v26, %v16814_v7  ;;  %v16815_v7 = vrot.slane %v10481_v22, 1  ;;  %v2926_v46 = vrot.slane %v873_v31, 1 }
 0x25d   : > { %16807 = vst [vmem:[#allocation162_spill] sm:$0xff] %v10633_v15  ;;  %v5106_v50 = vrot.slane %v10670_v45, 4  ;;  %v5332_v56 = vrot.slane %v10533_v0, 4  ;;  %v4927_v41 = vrot.slane %v873_v31, 2  ;;  %v16817_v43 = vrot.slane %v10562_v44, 1 }
 0x25e   : > { %16808 = vst [vmem:[#allocation163_spill] sm:$0xff] %v10637_v17  ;;  %v2920_v17 = vrot.slane %v10388_v32, 1  ;;  %v16827_v39 = vrot.slane %v10360_v47, 2 }
 0x25f   : > { %16812 = vst [vmem:[#allocation164_spill] sm:$0xff] %v10655_v2  ;;  %v10681_v2 = vsel %vm925_vm5, %v10670_v45, %v5108_v24  ;;  %7593 = vrot.lane.b32.xlu0 %v7597_v53, %s8353_s21  ;;  %v10694_v57 = vsel %vm925_vm5, %v5106_v50, %v10310_v63  ;;  %v4925_v24 = vrot.slane %v10562_v44, 2  ;;  %v16816_v53 = vrot.slane %v10206_v37, 4 }
 0x260   : > { %v10688_v3 = vsel %vm2864_vm4, %v2920_v17, %v16815_v7  ;;  %v10702_v7 = vsel %vm4865_vm3, %v4920_v9, %v4921_v26  ;;  %v10705_v1 = vsel %vm2864_vm4, %v2919_v35, %v2920_v17  ;;  %v10710_v50 = vsel %vm2864_vm4, %v16817_v43, %v2926_v46 }
 0x261   : > { %v964_v16 = vsel %vm925_vm5, %v10676_v30, %v16816_v53  ;;  %v10714_v31 = vpack.i.bf16 %v10688_v3, %v10705_v1  ;;  %v3329_v15 = vrot.slane %v10710_v50, 4  ;;  %v10719_v53 = vsel %vm925_vm5, %v10710_v50, %v3331_v18 }
 0x262   : > { %16818 = vst [vmem:[#allocation165_spill] sm:$0xff] %v10719_v53  ;;  %v10722_v26 = vsel %vm4865_vm3, %v4925_v24, %v4927_v41  ;;  %v961_v9 = vrot.slane %v10676_v30, 4  ;;  %v7466_v17 = vunpack.i.h.bf16 %v7464_v33  ;;  %v950_v46 = vsel %vm925_vm5, %v949_v8, %v10042_v36 }
 0x263   : > { %v5330_v35 = vrot.slane %v10722_v26, 4  ;;  %v10728_v43 = vsel %vm925_vm5, %v10722_v26, %v5332_v56  ;;  %v10733_v51 = vperm.slane %v964_v16, %v8804_v25  ;;  %7623 = vrot.lane.b32.xlu2 %v10714_v31, %s8353_s21  ;;  %v10739_v18 = vsel %vm925_vm5, %v3329_v15, %v10479_v12 }
 0x264   : > { %16819 = vst [vmem:[#allocation166_spill] sm:$0xff] %v10728_v43  ;;  %v7465_v53 = vunpack.i.l.bf16 %v7464_v33  ;;  %7608 = vrot.lane.b32.xlu1 %v7612_v34, %s8353_s21  ;;  %v7602_v56 = vpack.i.bf16 %v10702_v7, %v10305_v38  ;;  %v10751_v8 = vperm.slane %v6359_v40, %v9326_v61  ;;  %v1011_v12 = vrot.slane %v10674_v13, 4  ;;  %v16823_v33 = vld [vmem:[#allocation63_spill] sm:$0xff] }
 0x265   : > { %16820 = vst [vmem:[#allocation167_spill] sm:$0xff] %v10739_v18  ;;  %v10747_v36 = vsel %vm925_vm5, %v5330_v35, %v10533_v0  ;;  %v4918_v15 = vrot.slane %v10535_v5, 2  ;;  %v1075_v34 = vrot.slane %v10275_v4, 4  ;;  %v10759_v41 = vperm.slane %v950_v46, %v8804_v25 }
 0x266   : > { %16821 = vst [vmem:[#allocation168_spill] sm:$0xff] %v10747_v36  ;;  %v962_v35 = vsel %vm925_vm5, %v961_v9, %v10206_v37  ;;  %v3969_v16 = vrot.slane %v7466_v17, 4  ;;  %v4916_v40 = vrot.slane %v10457_v28, 2  ;;  %v1012_v5 = vsel %vm925_vm5, %v10733_v51, %v1011_v12 }
 0x267   : > { %16822 = vst [vmem:[#allocation169_spill] sm:$0xff] %v10751_v8  ;;  %7603 = vrot.lane.b32.xlu0 %v7602_v56, %s8352_s13  ;;  %v10764_v8 = vpop.f32.mrf.mxu3  ;;  %v10767_v10 = vperm.slane %v962_v35, %v8804_v25  ;;  %v3972_v56 = vsel %vm925_vm5, %v7466_v17, %v16823_v33  ;;  %v3857_v52 = vrot.slane %v7465_v53, 4  ;;  %v16824_v46 = vrot.slane %v10120_v14, 4 }
 0x268   : > { %v999_v9 = vrot.slane %v10759_v41, 4  ;;  %v10779_v18 = vsel %vm4865_vm3, %v4916_v40, %v4918_v15  ;;  %v7637_v35 = vpack.i.bf16 %v10670_v45, %v10310_v63  ;;  %v1020_v36 = vperm.slane %v1012_v5, %v9326_v61 }
 0x269   : > { %v1064_v37 = vsel %vm925_vm5, %v10388_v32, %v16824_v46  ;;  %16825 = vst [vmem:[#allocation63_spill] sm:$0xff] %v10779_v18  ;;  %v16826_v12 = vrot.slane %v10481_v22, 2  ;;  %v1061_v33 = vrot.slane %v10388_v32, 4  ;;  %v1076_v46 = vsel %vm925_vm5, %v10764_v8, %v1075_v34  ;;  %v16829_v34 = vld [vmem:[#allocation64_spill] sm:$0xff] }
 0x26a   : > { %v7632_v43 = vpack.i.bf16 %v10670_v45, %v10702_v7  ;;  %v1000_v15 = vsel %vm925_vm5, %v10767_v10, %v999_v9  ;;  %v10797_v63 = vperm.slane %v1064_v37, %v8804_v25  ;;  %v5220_v5 = vrot.slane %v10556_v42, 4  ;;  %v16830_v37 = vld [vmem:[#allocation27_spill] sm:$0xff] }
 0x26b   : > { %v10787_v17 = vsel %vm4865_vm3, %v16826_v12, %v4925_v24  ;;  %v10803_v24 = vsel %vm4865_vm3, %v16827_v39, %v4916_v40  ;;  %7638 = vrot.lane.b32.xlu2 %v7637_v35, %s8352_s13  ;;  %v1008_v32 = vperm.slane %v1000_v15, %v9326_v61  ;;  %v3860_v45 = vsel %vm925_vm5, %v7465_v53, %v16829_v34  ;;  %v16832_v15 = vld [vmem:[#allocation28_spill] sm:$0xff] }
 0x26c   : > { %16828 = vst [vmem:[#allocation170_spill] sm:$0xff] %v10803_v24  ;;  %v7617_v9 = vpack.i.bf16 %v10779_v18, %v10803_v24  ;;  %7633 = vrot.lane.b32.xlu1 %v7632_v43, %s8353_s21  ;;  %v16831_v12 = vrot.slane %v16830_v37, 4  ;;  %v5218_v39 = vrot.slane %v10787_v17, 4  ;;  %v1073_v40 = vrot.slane %v10764_v8, 4 }
 0x26d   : > { %v10820_v35 = vperm.slane %v1076_v46, %v8804_v25  ;;  %v16833_v54 = vrot.slane %v16832_v15, 4  ;;  %v10829_v43 = vsel %vm925_vm5, %v10787_v17, %v5220_v5  ;;  %v10847_v5 = vperm.slane %v3972_v56, %v8804_v25 }
 0x26e   : > { %v10815_v23 = vsel %vm925_vm5, %v1020_v36, %v16831_v12  ;;  %16834 = vst [vmem:[#allocation64_spill] sm:$0xff] %v10829_v43  ;;  %v1062_v12 = vsel %vm925_vm5, %v1061_v33, %v10120_v14  ;;  %v10839_v24 = vsel %vm925_vm5, %v5218_v39, %v10556_v42  ;;  %v10850_v34 = vperm.slane %v3860_v45, %v8804_v25 }
 0x26f   : > { %v10825_v53 = vsel %vm925_vm5, %v1008_v32, %v16833_v54  ;;  %7618 = vrot.lane.b32.xlu0 %v7617_v9, %s8353_s21  ;;  %16835 = vst [vmem:[#allocation27_spill] sm:$0xff] %v10839_v24  ;;  %v16836_v54 = vld [vmem:[#allocation39_spill] sm:$0xff]  ;;  %v1123_v14 = vrot.slane %v10797_v63, 4  ;;  %v10867_v56 = vperm.slane %v1062_v12, %v8804_v25  ;;  %v1074_v45 = vsel %vm925_vm5, %v1073_v40, %v10275_v4 }
 0x270   : > { %v7667_v46 = vpack.i.bf16 %v10815_v23, %v10825_v53  ;;  %v16837_v18 = vunpack.i.h.bf16 %v16836_v54  ;;  %16838 = vst [vmem:[#allocation28_spill] sm:$0xff] %v10850_v34  ;;  %v16839_v33 = vunpack.i.l.bf16 %v16836_v54  ;;  %v2928_v39 = vrot.slane %v10676_v30, 1 }
 0x271   : > { %v1111_v12 = vrot.slane %v10867_v56, 4  ;;  %v4929_v40 = vrot.slane %v10676_v30, 2  ;;  %v1033_v9 = vrot.slane %v1020_v36, 4  ;;  %v1009_v54 = vrot.slane %v10733_v51, 4 }
 0x272   : > { %v10844_v55 = vsel %vm925_vm5, %v3969_v16, %v16837_v18  ;;  %v10856_v23 = vsel %vm925_vm5, %v3857_v52, %v16839_v33  ;;  %v10862_v18 = vperm.slane %v10548_v21, %v8804_v25  ;;  %v7647_v16 = vpack.i.bf16 %v10562_v44, %v10481_v22  ;;  %v16843_v21 = vld [vmem:[#allocation32_spill] sm:$0xff] }
 0x273   : > { %v1124_v52 = vsel %vm925_vm5, %v10820_v35, %v1123_v14  ;;  %v10876_v33 = vperm.slane %v1074_v45, %v8804_v25  ;;  %v1025_v14 = vrot.slane %v1008_v32, 4  ;;  %v4994_v24 = vrot.slane %v10702_v7, 4 }
 0x274   : > { %7648 = vrot.lane.b32.xlu2 %v7647_v16, %s8352_s13  ;;  %v1132_v4 = vperm.slane %v1124_v52, %v9326_v61  ;;  %7643 = vrot.lane.b32.xlu1 %v7647_v16, %s8353_s21  ;;  %v16840_v43 = vrot.slane %v10305_v38, 4  ;;  %v10899_v51 = vpack.i.bf16 %v10764_v8, %v10676_v30  ;;  %v997_v32 = vrot.slane %v10767_v10, 4 }
 0x275   : > { %v1112_v53 = vsel %vm925_vm5, %v10876_v33, %v1111_v12  ;;  %v10905_v16 = vsel %vm925_vm5, %v1025_v14, %v16832_v15  ;;  %v10909_v12 = vsel %vm925_vm5, %v1033_v9, %v16830_v37  ;;  %v10926_v37 = vperm.slane %v10594_v60, %v8804_v25 }
 0x276   : > { %v4997_v52 = vsel %vm925_vm5, %v10702_v7, %v16840_v43  ;;  %v1120_v36 = vperm.slane %v1112_v53, %v9326_v61  ;;  %v1145_v7 = vrot.slane %v1132_v4, 4  ;;  %v16844_v53 = vrot.slane %v16843_v21, 4 }
 0x277   : > { %7628 = vrot.lane.b32.xlu0 %v10714_v31, %s8352_s13  ;;  %v16841_v31 = vld [vmem:[#allocation31_spill] sm:$0xff]  ;;  %16845 = vst [vmem:[#allocation39_spill] sm:$0xff] %v10926_v37  ;;  %v2993_v9 = vrot.slane %v10705_v1, 4  ;;  %v10934_v49 = vperm.slane %v4997_v52, %v8804_v25  ;;  %v16848_v60 = vrot.slane %v10764_v8, 1  ;;  %v1121_v52 = vrot.slane %v10820_v35, 4 }
 0x278   : > { %v16842_v45 = vrot.slane %v16841_v31, 4  ;;  %v10920_v10 = vsel %vm925_vm5, %v1132_v4, %v16844_v53  ;;  %v1137_v43 = vrot.slane %v1120_v36, 4  ;;  %v16847_v4 = vrot.slane %v10287_v48, 4 }
 0x279   : > { %16846 = vst [vmem:[#allocation31_spill] sm:$0xff] %v10934_v49  ;;  %v10943_v15 = vsel %vm2864_vm4, %v2928_v39, %v16848_v60  ;;  %v10959_v39 = vpop.f32.mrf.mxu3  ;;  %v16852_v60 = vrot.slane %v10360_v47, 4  ;;  %v16855_v35 = vrot.slane %v10481_v22, 1  ;;  %v16858_v22 = vrot.slane %v10433_v19, 4 }
 0x27a   : > { %v10915_v30 = vsel %vm925_vm5, %v1120_v36, %v16842_v45  ;;  %v4995_v45 = vsel %vm925_vm5, %v4994_v24, %v10305_v38  ;;  %v2996_v53 = vsel %vm925_vm5, %v10705_v1, %v16847_v4  ;;  %v998_v36 = vsel %vm925_vm5, %v997_v32, %v10759_v41  ;;  %16849 = vst [vmem:[#allocation32_spill] sm:$0xff] %v10959_v39 }
 0x27b   : > { %v10951_v38 = vsel %vm925_vm5, %v1137_v43, %v16841_v31  ;;  %v10955_v24 = vsel %vm925_vm5, %v1145_v7, %v16843_v21  ;;  %v3005_v1 = vrot.slane %v10943_v15, 4  ;;  %v7652_v41 = vpack.i.bf16 %v10787_v17, %v10556_v42 }
 0x27c   : > { %7658 = vrot.lane.b32.xlu2 %v10899_v51, %s8353_s21  ;;  %7668 = vrot.lane.b32.xlu1 %v7667_v46, %s8356_s20  ;;  %v1010_v32 = vsel %vm925_vm5, %v1009_v54, %v10674_v13  ;;  %v10970_v7 = vperm.slane %v2996_v53, %v8804_v25  ;;  %v16850_v31 = vrot.slane %v10273_v6, 4  ;;  %v10980_v42 = vperm.slane %v4995_v45, %v8804_v25 }
 0x27d   : > { %v5056_v13 = vrot.slane %v10934_v49, 4  ;;  %v10985_v54 = vperm.slane %v998_v36, %v9326_v61  ;;  %v2994_v4 = vsel %vm925_vm5, %v2993_v9, %v10287_v48  ;;  %v1185_v53 = vrot.slane %v10959_v39, 4 }
 0x27e   : > { %v10977_v46 = vsel %vm925_vm5, %v10688_v3, %v16850_v31  ;;  %v1188_v31 = vsel %vm925_vm5, %v10959_v39, %v16852_v60  ;;  %v10995_v45 = vperm.slane %v1010_v32, %v9326_v61  ;;  %v3006_v21 = vsel %vm925_vm5, %v3005_v1, %v10433_v19  ;;  %v16861_v19 = vld [vmem:[#allocation30_spill] sm:$0xff] }
 0x27f   : > { %7653 = vrot.lane.b32.xlu0 %v7652_v41, %s8352_s13  ;;  %16851 = vst [vmem:[#allocation171_spill] sm:$0xff] %v10985_v54  ;;  %v16854_v36 = vrot.slane %v10562_v44, 1  ;;  %v11008_v9 = vperm.slane %v2994_v4, %v8804_v25  ;;  %v16857_v60 = vrot.slane %v10764_v8, 2  ;;  %v7692_v1 = vpack.i.bf16 %v10722_v26, %v10787_v17  ;;  %v16859_v4 = vld [vmem:[#allocation29_spill] sm:$0xff] }
 0x280   : > { %16853 = vst [vmem:[#allocation172_spill] sm:$0xff] %v10995_v45  ;;  %v11032_v43 = vperm.slane %v3006_v21, %v8804_v25  ;;  %v16862_v41 = vrot.slane %v16861_v19, 4  ;;  %v16863_v14 = vrot.slane %v10415_v58, 4  ;;  %v11147_v49 = vperm.slane %v10681_v2, %v8804_v25 }
 0x281   : > { %v11005_v48 = vsel %vm2864_vm4, %v16855_v35, %v16854_v36  ;;  %v11013_v32 = vsel %vm4865_vm3, %v4929_v40, %v16857_v60  ;;  %v3008_v35 = vsel %vm925_vm5, %v10943_v15, %v16858_v22  ;;  %v16860_v36 = vrot.slane %v16859_v4, 4 }
 0x282   : > { %16856 = vst [vmem:[#allocation173_spill] sm:$0xff] %v11005_v48  ;;  %v11020_v44 = vpack.i.bf16 %v10710_v50, %v11005_v48  ;;  %v1109_v60 = vrot.slane %v10876_v33, 4  ;;  %v5006_v17 = vrot.slane %v11013_v32, 4  ;;  %v11036_v50 = vperm.slane %v1188_v31, %v8804_v25 }
 0x283   : > { %v1024_v40 = vsel %vm925_vm5, %v10985_v54, %v16860_v36  ;;  %v1032_v22 = vsel %vm925_vm5, %v10995_v45, %v16862_v41  ;;  %v5009_v33 = vsel %vm925_vm5, %v11013_v32, %v16863_v14  ;;  %v11050_v21 = vperm.slane %v3008_v35, %v8804_v25  ;;  %v11058_v41 = vpop.permute.xlu2 %7508  ;;  %v16874_v45 = vld [vmem:[#allocation38_spill] sm:$0xff] }
 0x284   : > { %7693 = vrot.lane.b32.xlu2 %v7692_v1, %s8353_s21  ;;  %7688 = vrot.lane.b32.xlu1 %v11020_v44, %s8352_s13  ;;  %v5007_v31 = vsel %vm925_vm5, %v5006_v17, %v10415_v58  ;;  %v11055_v1 = vperm.slane %v5009_v33, %v8804_v25  ;;  %v3043_v36 = vrot.slane %v11008_v9, 4  ;;  %16864 = vst [vmem:[#allocation174_spill] sm:$0xff] %v11058_v41  ;;  %v5044_v35 = vrot.slane %v10980_v42, 4 }
 0x285   : > { %v7672_v19 = vpack.i.bf16 %v1032_v22, %v1024_v40  ;;  %v7702_v14 = vpack.i.bf16 %v10722_v26, %v10533_v0  ;;  %v11063_v4 = vperm.slane %v5007_v31, %v8804_v25  ;;  %v1110_v17 = vsel %vm925_vm5, %v1109_v60, %v10867_v56 }
 0x286   : > { %v5057_v33 = vsel %vm925_vm5, %v11055_v1, %v5056_v13  ;;  %v3044_v40 = vsel %vm925_vm5, %v11032_v43, %v3043_v36  ;;  %v3055_v22 = vrot.slane %v10970_v7, 4  ;;  %v1122_v0 = vsel %vm925_vm5, %v1121_v52, %v10797_v63 }
 0x287   : > { %7663 = vrot.lane.b32.xlu0 %v10899_v51, %s8352_s13  ;;  %v5045_v26 = vsel %vm925_vm5, %v11063_v4, %v5044_v35  ;;  %v5065_v31 = vperm.slane %v5057_v33, %v9326_v61  ;;  %v11081_v51 = vperm.slane %v3044_v40, %v9326_v61  ;;  %v11088_v60 = vperm.slane %v10560_v29, %v8804_v25  ;;  %v16865_v35 = vld [vmem:[#allocation41_spill] sm:$0xff] }
 0x288   : > { %v5053_v56 = vperm.slane %v5045_v26, %v9326_v61  ;;  %v3056_v13 = vsel %vm925_vm5, %v11050_v21, %v3055_v22  ;;  %v1186_v63 = vsel %vm925_vm5, %v1185_v53, %v10360_v47  ;;  %v16866_v33 = vrot.slane %v16865_v35, 4 }
 0x289   : > { %v5078_v52 = vrot.slane %v5065_v31, 4  ;;  %v3064_v36 = vperm.slane %v3056_v13, %v9326_v61  ;;  %v11100_v26 = vperm.slane %v1186_v63, %v8804_v25  ;;  %v11103_v22 = vperm.slane %v1110_v17, %v9326_v61  ;;  %v16872_v63 = vld [vmem:[#allocation40_spill] sm:$0xff] }
 0x28a   : > { %v11097_v40 = vsel %vm925_vm5, %v11081_v51, %v16866_v33  ;;  %v5070_v29 = vrot.slane %v5053_v56, 4  ;;  %v1223_v54 = vrot.slane %v11088_v60, 4  ;;  %v16869_v47 = vrot.slane %v10862_v18, 4 }
 0x28b   : > { %16867 = vst [vmem:[#allocation41_spill] sm:$0xff] %v11097_v40  ;;  %v16870_v13 = vpack.i.bf16 %v10920_v10, %v10915_v30  ;;  %v11115_v33 = vperm.slane %v1122_v0, %v9326_v61  ;;  %v11119_v17 = vsel %vm925_vm5, %v5078_v52, %v16872_v63  ;;  %v16875_v41 = vrot.slane %v16874_v45, 4  ;;  %v16879_v52 = vld [vmem:[#allocation42_spill] sm:$0xff] }
 0x28c   : > { %16868 = vst [vmem:[#allocation175_spill] sm:$0xff] %v11103_v22  ;;  %v1236_v53 = vsel %vm925_vm5, %v11036_v50, %v16869_v47  ;;  %v11129_v47 = vpop.f32.mrf.mxu3  ;;  %7703 = vrot.lane.b32.xlu1 %v7702_v14, %s8352_s13  ;;  %v16877_v30 = vrot.slane %v10959_v39, 1  ;;  %v16878_v10 = vrot.slane %v10764_v8, 1  ;;  %v11149_v14 = vpop.permute.xlu2 %7523  ;;  %v16886_v59 = vrot.slane %v10959_v39, 2 }
 0x28d   : > { %7708 = vrot.lane.b32.xlu2 %v16870_v13, %s8356_s20  ;;  %16871 = vst [vmem:[#allocation176_spill] sm:$0xff] %v11115_v33  ;;  %v11124_v48 = vsel %vm925_vm5, %v3064_v36, %v16875_v41  ;;  %v11127_v20 = vperm.slane %v1236_v53, %v9326_v61  ;;  %v11139_v13 = vsel %vm925_vm5, %v5070_v29, %v16879_v52  ;;  %v16884_v41 = vld [vmem:[#allocation35_spill] sm:$0xff]  ;;  %v16887_v40 = vrot.slane %v10764_v8, 2 }
 0x28e   : > { %16873 = vst [vmem:[#allocation40_spill] sm:$0xff] %v11119_v17  ;;  %v2932_v0 = vsel %vm2864_vm4, %v16878_v10, %v16877_v30  ;;  %v1224_v53 = vsel %vm925_vm5, %v11100_v26, %v1223_v54  ;;  %v16882_v10 = vld [vmem:[#allocation45_spill] sm:$0xff]  ;;  %v11162_v54 = vperm.slane %v10977_v46, %v8804_v25 }
 0x28f   : > { %16876 = vst [vmem:[#allocation38_spill] sm:$0xff] %v11124_v48  ;;  %v1232_v30 = vperm.slane %v1224_v53, %v9326_v61  ;;  %v16883_v29 = vrot.slane %v16882_v10, 4  ;;  %7673 = vrot.lane.b32.xlu0 %v7672_v19, %s8357_s22  ;;  %v16888_v48 = vrot.slane %v10438_v27, 4  ;;  %v3053_v19 = vrot.slane %v11050_v21, 4 }
 0x290   : > { %16880 = vst [vmem:[#allocation42_spill] sm:$0xff] %v11139_v13  ;;  %v16889_v13 = vld [vmem:[#allocation44_spill] sm:$0xff]  ;;  %v5168_v21 = vrot.slane %v11147_v49, 4 }
 0x291   : > { %16881 = vst [vmem:[#allocation177_spill] sm:$0xff] %v11149_v14  ;;  %v11158_v34 = vsel %vm925_vm5, %v11127_v20, %v16883_v29  ;;  %v16885_v14 = vrot.slane %v16884_v41, 4  ;;  %v11175_v29 = vsel %vm4865_vm3, %v16887_v40, %v16886_v59  ;;  %v3120_v2 = vsel %vm925_vm5, %v2932_v0, %v16888_v48 }
 0x292   : > { %v16890_v41 = vrot.slane %v16889_v13, 4  ;;  %v3117_v59 = vrot.slane %v2932_v0, 4  ;;  %v3041_v40 = vrot.slane %v11032_v43, 4  ;;  %v11196_v48 = vperm.slane %v10694_v57, %v8804_v25 }
 0x293   : > { %v1136_v53 = vsel %vm925_vm5, %v11103_v22, %v16885_v14  ;;  %v16892_v14 = vld [vmem:[#allocation34_spill] sm:$0xff]  ;;  %v16896_v57 = vrot.slane %v16872_v63, 4  ;;  %v16898_v63 = vrot.slane %v10457_v28, 4 }
 0x294   : > { %v11185_v17 = vsel %vm925_vm5, %v1232_v30, %v16890_v41  ;;  %v16893_v22 = vrot.slane %v16892_v14, 4  ;;  %v5118_v41 = vrot.slane %v11175_v29, 4  ;;  %v11201_v14 = vperm.slane %v3120_v2, %v8804_v25 }
 0x295   : > { %16891 = vst [vmem:[#allocation45_spill] sm:$0xff] %v11185_v17  ;;  %v11215_v17 = vsel %vm925_vm5, %v5065_v31, %v16896_v57  ;;  %v16897_v2 = vpack.i.bf16 %v10955_v24, %v10951_v38  ;;  %v1300_v31 = vsel %vm925_vm5, %v11129_v47, %v16898_v63  ;;  %v3118_v38 = vsel %vm925_vm5, %v3117_v59, %v10438_v27 }
 0x296   : > { %v1144_v8 = vsel %vm925_vm5, %v11115_v33, %v16893_v22  ;;  %v16894_v22 = vrot.slane %v10406_v11, 4  ;;  %v16895_v33 = vrot.slane %v16879_v52, 4  ;;  %v3042_v24 = vsel %vm925_vm5, %v3041_v40, %v11008_v9 }
 0x297   : > { %v7712_v39 = vpack.i.bf16 %v1144_v8, %v1136_v53  ;;  %7718 = vrot.lane.b32.xlu2 %v16897_v2, %s8358_s23  ;;  %v3054_v53 = vsel %vm925_vm5, %v3053_v19, %v10970_v7  ;;  %v7727_v8 = vpack.i.bf16 %v2932_v0, %v10943_v15  ;;  %v11236_v7 = vpop.permute.xlu2 %7538  ;;  %v16900_v15 = vrot.slane %v10688_v3, 4 }
 0x298   : > { %v5121_v43 = vsel %vm925_vm5, %v11175_v29, %v16894_v22  ;;  %v11210_v46 = vsel %vm925_vm5, %v5053_v56, %v16895_v33  ;;  %v3069_v56 = vrot.slane %v11081_v51, 4  ;;  %v3077_v33 = vrot.slane %v3064_v36, 4  ;;  %16899 = vst [vmem:[#allocation44_spill] sm:$0xff] %v11236_v7 }
 0x299   : > { %7713 = vrot.lane.b32.xlu1 %v7712_v39, %s8357_s22  ;;  %v5119_v51 = vsel %vm925_vm5, %v5118_v41, %v10406_v11  ;;  %v3106_v27 = vsel %vm925_vm5, %v16900_v15, %v10273_v6  ;;  %v16901_v9 = vpack.i.bf16 %v10909_v12, %v10905_v16  ;;  %v11257_v0 = vperm.slane %v3054_v53, %v9326_v61 }
 0x29a   : > { %v11242_v36 = vsel %vm925_vm5, %v3069_v56, %v16865_v35  ;;  %v11246_v39 = vsel %vm925_vm5, %v3077_v33, %v16874_v45  ;;  %v11260_v35 = vperm.slane %v5121_v43, %v8804_v25  ;;  %v3124_v19 = vperm.slane %v3118_v38, %v8804_v25  ;;  %v16906_v38 = vld [vmem:[#allocation36_spill] sm:$0xff]  ;;  %v11350_v45 = vpop.permute.xlu1 %7493 }
 0x29b   : > { %7678 = vrot.lane.b32.xlu0 %v16901_v9, %s8358_s23  ;;  %16902 = vst [vmem:[#allocation178_spill] sm:$0xff] %v11257_v0  ;;  %v3165_v3 = vrot.slane %v11201_v14, 4  ;;  %v1249_v59 = vrot.slane %v1232_v30, 4  ;;  %v1257_v6 = vrot.slane %v11127_v20, 4  ;;  %v11268_v40 = vperm.slane %v3042_v24, %v9326_v61 }
 0x29c   : > { %v3112_v16 = vperm.slane %v3106_v27, %v8804_v25  ;;  %v11272_v12 = vperm.slane %v5119_v51, %v8804_v25  ;;  %v5156_v41 = vrot.slane %v11196_v48, 4  ;;  %v3153_v22 = vrot.slane %v3124_v19, 4 }
 0x29d   : > { %16903 = vst [vmem:[#allocation179_spill] sm:$0xff] %v11268_v40  ;;  %v3166_v43 = vsel %vm925_vm5, %v3165_v3, %v11162_v54  ;;  %v11279_v57 = vsel %vm925_vm5, %v1249_v59, %v16889_v13  ;;  %v11283_v20 = vsel %vm925_vm5, %v1257_v6, %v16882_v10  ;;  %v5169_v56 = vsel %vm925_vm5, %v11260_v35, %v5168_v21  ;;  %v16910_v59 = vld [vmem:[#allocation37_spill] sm:$0xff] }
 0x29e   : > { %v11286_v30 = vperm.slane %v3166_v43, %v9326_v61  ;;  %v5157_v53 = vsel %vm925_vm5, %v11272_v12, %v5156_v41  ;;  %v11295_v33 = vperm.slane %v1300_v31, %v8804_v25  ;;  %v3154_v13 = vsel %vm925_vm5, %v3153_v22, %v3112_v16  ;;  %v16912_v41 = vld [vmem:[#allocation51_spill] sm:$0xff] }
 0x29f   : > { %7728 = vrot.lane.b32.xlu2 %v7727_v8, %s8352_s13  ;;  %v11300_v10 = vperm.slane %v5157_v53, %v9326_v61  ;;  %v11303_v63 = vperm.slane %v5169_v56, %v9326_v61  ;;  %v16907_v24 = vrot.slane %v16906_v38, 4  ;;  %v7737_v31 = vpack.i.bf16 %v11175_v29, %v10406_v11  ;;  %v11315_v15 = vpop.permute.xlu2 %7563  ;;  %v16914_v53 = vld [vmem:[#allocation50_spill] sm:$0xff] }
 0x2a0   : > { %16904 = vst [vmem:[#allocation180_spill] sm:$0xff] %v11286_v30  ;;  %v11313_v51 = vperm.slane %v3154_v13, %v9326_v61  ;;  %v3155_v3 = vrot.slane %v3112_v16, 4  ;;  %v16911_v6 = vrot.slane %v16910_v59, 4  ;;  %v16913_v22 = vrot.slane %v16912_v41, 4  ;;  %v16916_v13 = vld [vmem:[#allocation55_spill] sm:$0xff] }
 0x2a1   : > { %16905 = vst [vmem:[#allocation181_spill] sm:$0xff] %v11295_v33  ;;  %7723 = vrot.lane.b32.xlu1 %v7727_v8, %s8353_s21  ;;  %v3068_v21 = vsel %vm925_vm5, %v11268_v40, %v16907_v24  ;;  %v5182_v27 = vrot.slane %v11300_v10, 4  ;;  %v5190_v9 = vrot.slane %v11303_v63, 4  ;;  %v1221_v8 = vrot.slane %v11100_v26, 4 }
 0x2a2   : > { %16908 = vst [vmem:[#allocation182_spill] sm:$0xff] %v11313_v51  ;;  %v3076_v11 = vsel %vm925_vm5, %v11257_v0, %v16911_v6  ;;  %v11330_v43 = vsel %vm925_vm5, %v11313_v51, %v16913_v22  ;;  %v16915_v56 = vrot.slane %v16914_v53, 4  ;;  %v3167_v26 = vrot.slane %v11162_v54, 4  ;;  %v16917_v6 = vld [vmem:[#allocation52_spill] sm:$0xff]  ;;  %v11358_v53 = vpop.permute.xlu0 %7513  ;;  %v16929_v54 = vld [vmem:[#allocation54_spill] sm:$0xff] }
 0x2a3   : > { %16909 = vst [vmem:[#allocation183_spill] sm:$0xff] %v11315_v15  ;;  %7683 = vrot.lane.b32.xlu0 %v11020_v44, %s8353_s21  ;;  %v11343_v24 = vsel %vm925_vm5, %v5182_v27, %v16916_v13  ;;  %v11347_v2 = vsel %vm925_vm5, %v5190_v9, %v16917_v6  ;;  %v3156_v22 = vsel %vm925_vm5, %v3124_v19, %v3155_v3  ;;  %v16918_v19 = vrot.slane %v11036_v50, 4 }
 0x2a4   : > { %v11336_v16 = vsel %vm925_vm5, %v11286_v30, %v16915_v56  ;;  %v7752_v52 = vpack.i.bf16 %v3076_v11, %v3068_v21  ;;  %v5042_v56 = vrot.slane %v11063_v4, 4  ;;  %v11356_v44 = vperm.slane %v3156_v22, %v9326_v61  ;;  %v16920_v11 = vld [vmem:[#allocation56_spill] sm:$0xff] }
 0x2a5   : > { %v3168_v27 = vsel %vm925_vm5, %v11201_v14, %v3167_v26  ;;  %v1222_v9 = vsel %vm925_vm5, %v1221_v8, %v11088_v60  ;;  %v1234_v21 = vsel %vm925_vm5, %v16918_v19, %v10862_v18  ;;  %v11370_v4 = vperm.slane %v10607_v62, %v8804_v25 }
 0x2a6   : > { %v11373_v3 = vperm.slane %v3168_v27, %v9326_v61  ;;  %v16921_v22 = vrot.slane %v16920_v11, 4  ;;  %v11382_v60 = vperm.slane %v1222_v9, %v9326_v61  ;;  %v11385_v50 = vperm.slane %v1234_v21, %v9326_v61  ;;  %v16925_v9 = vld [vmem:[#allocation53_spill] sm:$0xff] }
 0x2a7   : > { %16919 = vst [vmem:[#allocation55_spill] sm:$0xff] %v11370_v4  ;;  %v7496_v18 = vunpack.i.h.bf16 %v11350_v45  ;;  %7753 = vrot.lane.b32.xlu2 %v7752_v52, %s8357_s22  ;;  %v7697_v62 = vpack.i.bf16 %v11013_v32, %v10415_v58  ;;  %v16924_v8 = vrot.slane %v11129_v47, 4  ;;  %v5154_v27 = vrot.slane %v11272_v12, 4 }
 0x2a8   : > { %v11379_v14 = vsel %vm925_vm5, %v11356_v44, %v16921_v22  ;;  %16922 = vst [vmem:[#allocation52_spill] sm:$0xff] %v11382_v60  ;;  %v16926_v19 = vrot.slane %v16925_v9, 4  ;;  %v16927_v22 = vld [vmem:[#allocation57_spill] sm:$0xff]  ;;  %v16930_v41 = vrot.slane %v16929_v54, 4  ;;  %v16931_v12 = vrot.slane %v10926_v37, 4  ;;  %v16950_v37 = vld [vmem:[#allocation42_spill] sm:$0xff] }
 0x2a9   : > { %16923 = vst [vmem:[#allocation56_spill] sm:$0xff] %v11385_v50  ;;  %v1298_v26 = vsel %vm925_vm5, %v16924_v8, %v10457_v28  ;;  %7738 = vrot.lane.b32.xlu1 %v7737_v31, %s8352_s13  ;;  %v16928_v52 = vrot.slane %v16927_v22, 4  ;;  %v7495_v8 = vunpack.i.l.bf16 %v11350_v45  ;;  %v5054_v22 = vrot.slane %v11055_v1, 4 }
 0x2aa   : > { %v11401_v21 = vsel %vm925_vm5, %v11373_v3, %v16926_v19  ;;  %v11413_v28 = vsel %vm925_vm5, %v11385_v50, %v16930_v41  ;;  %v1348_v31 = vsel %vm925_vm5, %v11295_v33, %v16931_v12  ;;  %v11420_v19 = vpop.permute.xlu2 %7568  ;;  %v11429_v41 = vperm.slane %v10844_v55, %v8804_v25  ;;  %v16937_v50 = vld [vmem:[#allocation148_spill] sm:$0xff] }
 0x2ab   : > { %v11407_v58 = vsel %vm925_vm5, %v11382_v60, %v16928_v52  ;;  %16932 = vst [vmem:[#allocation53_spill] sm:$0xff] %v11420_v19  ;;  %7698 = vrot.lane.b32.xlu0 %v7697_v62, %s8352_s13  ;;  %v5043_v45 = vsel %vm925_vm5, %v5042_v56, %v10980_v42  ;;  %v1335_v12 = vrot.slane %v11370_v4, 4  ;;  %v11437_v1 = vperm.slane %v1298_v26, %v8804_v25  ;;  %v16936_v62 = vld [vmem:[#allocation28_spill] sm:$0xff] }
 0x2ac   : > { %16933 = vst [vmem:[#allocation184_spill] sm:$0xff] %v11429_v41  ;;  %v11440_v52 = vperm.slane %v1348_v31, %v9326_v61  ;;  %v5155_v54 = vsel %vm925_vm5, %v5154_v27, %v11196_v48  ;;  %v5166_v55 = vrot.slane %v11260_v35, 4  ;;  %v11447_v60 = vperm.slane %v10856_v23, %v8804_v25  ;;  %v16939_v26 = vld [vmem:[#allocation96_spill] sm:$0xff]  ;;  %v11455_v31 = vpop.permute.xlu0 %7528  ;;  %v16942_v48 = vld [vmem:[#allocation31_spill] sm:$0xff]  ;;  %v16943_v27 = vld [vmem:[#allocation58_spill] sm:$0xff] }
 0x2ad   : > { %16934 = vst [vmem:[#allocation185_spill] sm:$0xff] %v11437_v1  ;;  %v16938_v42 = vrot.slane %v16937_v50, 4  ;;  %v4645_v51 = vrot.slane %v7496_v18, 4  ;;  %v4648_v30 = vsel %vm925_vm5, %v7496_v18, %v16939_v26  ;;  %v11458_v59 = vperm.slane %v5043_v45, %v9326_v61 }
 0x2ae   : > { %16935 = vst [vmem:[#allocation186_spill] sm:$0xff] %v11447_v60  ;;  %v5055_v35 = vsel %vm925_vm5, %v5054_v22, %v16942_v48  ;;  %v1336_v23 = vsel %vm925_vm5, %v11437_v1, %v1335_v12  ;;  %v16944_v38 = vrot.slane %v16943_v27, 4  ;;  %v11472_v18 = vperm.slane %v5155_v54, %v9326_v61  ;;  %v16949_v48 = vld [vmem:[#allocation40_spill] sm:$0xff] }
 0x2af   : > { %v3918_v56 = vsel %vm925_vm5, %v16938_v42, %v16936_v62  ;;  %16940 = vst [vmem:[#allocation28_spill] sm:$0xff] %v11455_v31  ;;  %v1344_v4 = vperm.slane %v1336_v23, %v9326_v61  ;;  %v5167_v45 = vsel %vm925_vm5, %v5166_v55, %v11147_v49  ;;  %v16947_v26 = vrot.slane %v16916_v13, 4  ;;  %v16956_v55 = vld [vmem:[#allocation41_spill] sm:$0xff] }
 0x2b0   : > { %16941 = vst [vmem:[#allocation148_spill] sm:$0xff] %v11458_v59  ;;  %v11468_v42 = vsel %vm925_vm5, %v11440_v52, %v16944_v38  ;;  %v4533_v12 = vrot.slane %v7495_v8, 4  ;;  %v16951_v38 = vpack.i.bf16 %v16949_v48, %v16950_v37  ;;  %v7732_v23 = vpack.i.bf16 %v11175_v29, %v11013_v32  ;;  %v16959_v48 = vld [vmem:[#allocation5_spill] sm:$0xff]  ;;  %v16962_v29 = vld [vmem:[#allocation22_spill] sm:$0xff] }
 0x2b1   : > { %16945 = vst [vmem:[#allocation96_spill] sm:$0xff] %v11468_v42  ;;  %v11480_v22 = vsel %vm925_vm5, %v11300_v10, %v16947_v26  ;;  %v11489_v54 = vperm.slane %v5167_v45, %v9326_v61  ;;  %v16953_v49 = vrot.slane %v16917_v6, 4  ;;  %v16955_v10 = vld [vmem:[#allocation38_spill] sm:$0xff]  ;;  %v11502_v37 = vperm.slane %v5055_v35, %v9326_v61  ;;  %v16965_v35 = vld [vmem:[#allocation49_spill] sm:$0xff]  ;;  %v16979_v42 = vld [vmem:[#allocation43_spill] sm:$0xff] }
 0x2b2   : > { %16946 = vst [vmem:[#allocation31_spill] sm:$0xff] %v11472_v18  ;;  %7768 = vrot.lane.b32.xlu2 %v16951_v38, %s8358_s23  ;;  %v16957_v26 = vpack.i.bf16 %v16955_v10, %v16956_v55  ;;  %v16960_v38 = vrot.slane %v16959_v48, 4  ;;  %v16963_v45 = vrot.slane %v16962_v29, 4  ;;  %v11519_v10 = vperm.slane %v3918_v56, %v9326_v61  ;;  %v16970_v56 = vld [vmem:[#allocation46_spill] sm:$0xff] }
 0x2b3   : > { %16948 = vst [vmem:[#allocation58_spill] sm:$0xff] %v11480_v22  ;;  %v11495_v13 = vsel %vm925_vm5, %v11303_v63, %v16953_v49  ;;  %v3919_v49 = vrot.slane %v16936_v62, 4  ;;  %v16966_v55 = vrot.slane %v16965_v35, 4  ;;  %v921_v62 = vpop.f32.mrf.mxu3  ;;  %7733 = vrot.lane.b32.xlu0 %v7732_v23, %s8353_s21 }
 0x2b4   : > { %16952 = vst [vmem:[#allocation40_spill] sm:$0xff] %v11489_v54  ;;  %7743 = vrot.lane.b32.xlu1 %v16957_v26, %s8356_s20  ;;  %v11507_v32 = vsel %vm925_vm5, %v1344_v4, %v16960_v38  ;;  %v11513_v6 = vsel %vm925_vm5, %v11472_v18, %v16963_v45  ;;  %v11525_v38 = vpop.permute.xlu2 %7583  ;;  %v16968_v18 = vld [vmem:[#allocation85_spill] sm:$0xff]  ;;  %v2935_v31 = vrot.slane %v921_v62, 1 }
 0x2b5   : > { %16954 = vst [vmem:[#allocation42_spill] sm:$0xff] %v11495_v13  ;;  %v4030_v26 = vsel %vm925_vm5, %v16966_v55, %v10847_v5  ;;  %v16969_v1 = vunpack.i.h.bf16 %v16968_v18  ;;  %v16972_v55 = vld [vmem:[#allocation9_spill] sm:$0xff] }
 0x2b6   : > { %16958 = vst [vmem:[#allocation38_spill] sm:$0xff] %v11502_v37  ;;  %v16973_v13 = vrot.slane %v16972_v55, 4  ;;  %v16974_v45 = vld [vmem:[#allocation149_spill] sm:$0xff]  ;;  %v16203_v55 = vrot.slane %v11129_v47, 1 }
 0x2b7   : > { %16961 = vst [vmem:[#allocation41_spill] sm:$0xff] %v11507_v32  ;;  %v4646_v63 = vsel %vm925_vm5, %v4645_v51, %v16969_v1  ;;  %v16975_v29 = vrot.slane %v16974_v45, 4  ;;  %v4656_v51 = vperm.slane %v4648_v30, %v8804_v25  ;;  %v11551_v1 = vpop.permute.xlu1 %7518 }
 0x2b8   : > { %16964 = vst [vmem:[#allocation5_spill] sm:$0xff] %v11519_v10  ;;  %v16971_v10 = vrot.slane %v16970_v56, 4  ;;  %v16977_v56 = vunpack.i.l.bf16 %v16968_v18 }
 0x2b9   : > { %16967 = vst [vmem:[#allocation49_spill] sm:$0xff] %v11525_v38  ;;  %v11542_v38 = vsel %vm925_vm5, %v11489_v54, %v16973_v13  ;;  %v11548_v32 = vsel %vm925_vm5, %v16975_v29, %v11447_v60  ;;  %v16978_v54 = vld [vmem:[#allocation99_spill] sm:$0xff]  ;;  %v16980_v29 = vrot.slane %v16979_v42, 4  ;;  %v11581_v42 = vpop.permute.xlu0 %7543 }
 0x2ba   : > { %v5069_v22 = vsel %vm925_vm5, %v11458_v59, %v16971_v10  ;;  %16976 = vst [vmem:[#allocation85_spill] sm:$0xff] %v11548_v32  ;;  %v1361_v10 = vrot.slane %v1344_v4, 4  ;;  %v4534_v13 = vsel %vm925_vm5, %v4533_v12, %v16977_v56  ;;  %v4536_v45 = vsel %vm925_vm5, %v7495_v8, %v16978_v54 }
 0x2bb   : > { %v5077_v30 = vsel %vm925_vm5, %v11502_v37, %v16980_v29  ;;  %v11566_v32 = vperm.slane %v4646_v63, %v8804_v25  ;;  %v4934_v4 = vrot.slane %v11129_v47, 2  ;;  %v1369_v12 = vrot.slane %v11440_v52, 4  ;;  %16983 = vst [vmem:[#allocation188_spill] sm:$0xff] %v11581_v42 }
 0x2bc   : > { %v7762_v23 = vpack.i.bf16 %v5077_v30, %v5069_v22  ;;  %v11571_v18 = vsel %vm925_vm5, %v1361_v10, %v16959_v48  ;;  %v3181_v8 = vrot.slane %v11356_v44, 4  ;;  %v3189_v54 = vrot.slane %v11373_v3, 4  ;;  %v16984_v22 = vld [vmem:[#allocation45_spill] sm:$0xff] }
 0x2bd   : > { %16981 = vst [vmem:[#allocation99_spill] sm:$0xff] %v11566_v32  ;;  %v4693_v56 = vrot.slane %v4656_v51, 4  ;;  %v11577_v29 = vperm.slane %v4534_v13, %v8804_v25  ;;  %v4544_v63 = vperm.slane %v4536_v45, %v8804_v25  ;;  %v16985_v48 = vpack.i.bf16 %v11158_v34, %v16984_v22  ;;  %v16989_v34 = vld [vmem:[#allocation147_spill] sm:$0xff]  ;;  %v16999_v22 = vld [vmem:[#allocation105_spill] sm:$0xff] }
 0x2be   : > { %v4936_v52 = vrot.slane %v921_v62, 2  ;;  %7763 = vrot.lane.b32.xlu1 %v7762_v23, %s8357_s22  ;;  %v11590_v44 = vsel %vm925_vm5, %v1369_v12, %v16943_v27  ;;  %v11594_v3 = vsel %vm925_vm5, %v3181_v8, %v16920_v11  ;;  %v11598_v45 = vsel %vm925_vm5, %v3189_v54, %v16925_v9  ;;  %v11610_v27 = vpop.permute.xlu2 %7613  ;;  %v16997_v8 = vld [vmem:[#allocation32_spill] sm:$0xff]  ;;  %v17008_v11 = vld [vmem:[#allocation63_spill] sm:$0xff] }
 0x2bf   : > { %16982 = vst [vmem:[#allocation187_spill] sm:$0xff] %v11577_v29  ;;  %7783 = vrot.lane.b32.xlu2 %v16985_v48, %s8356_s20  ;;  %v11602_v10 = vsel %vm925_vm5, %v16937_v50, %v3919_v49  ;;  %v16990_v62 = vrot.slane %v16989_v34, 4  ;;  %v16993_v9 = vrot.slane %v10847_v5, 4  ;;  %v11623_v49 = vperm.slane %v4030_v26, %v9326_v61  ;;  %v17016_v32 = vld [vmem:[#allocation15_spill] sm:$0xff] }
 0x2c0   : > { %16986 = vst [vmem:[#allocation45_spill] sm:$0xff] %v11594_v3  ;;  %v11628_v30 = vsel %vm2864_vm4, %v16203_v55, %v2935_v31  ;;  %v16996_v12 = vpack.i.bf16 %v11215_v17, %v11210_v46  ;;  %v16998_v54 = vrot.slane %v16997_v8, 2  ;;  %v17000_v26 = vrot.slane %v16999_v22, 4  ;;  %v17002_v31 = vld [vmem:[#allocation106_spill] sm:$0xff]  ;;  %v11661_v55 = vpop.permute.xlu1 %7533  ;;  %v17012_v46 = vld [vmem:[#allocation7_spill] sm:$0xff] }
 0x2c1   : > { %16987 = vst [vmem:[#allocation189_spill] sm:$0xff] %v11598_v45  ;;  %v11608_v23 = vsel %vm925_vm5, %v16990_v62, %v11429_v41  ;;  %v11620_v50 = vsel %vm925_vm5, %v16965_v35, %v16993_v9  ;;  %v4581_v62 = vrot.slane %v4544_v63, 4  ;;  %v17003_v9 = vrot.slane %v17002_v31, 4  ;;  %v17029_v3 = vld [vmem:[#allocation23_spill] sm:$0xff] }
 0x2c2   : > { %16988 = vst [vmem:[#allocation190_spill] sm:$0xff] %v11602_v10  ;;  %7748 = vrot.lane.b32.xlu0 %v16996_v12, %s8356_s20  ;;  %v11637_v5 = vsel %vm4865_vm3, %v16998_v54, %v4934_v4  ;;  %v11643_v48 = vsel %vm925_vm5, %v4656_v51, %v17000_v26  ;;  %v11652_v17 = vsel %vm925_vm5, %v4693_v56, %v16999_v22  ;;  %v17006_v12 = vld [vmem:[#allocation156_spill] sm:$0xff]  ;;  %v5344_v51 = vrot.slane %v17008_v11, 4  ;;  %v17011_v22 = vld [vmem:[#allocation10_spill] sm:$0xff] }
 0x2c3   : > { %16991 = vst [vmem:[#allocation191_spill] sm:$0xff] %v11608_v23  ;;  %v11648_v13 = vsel %vm925_vm5, %v4544_v63, %v17003_v9  ;;  %v3343_v54 = vrot.slane %v17006_v12, 4  ;;  %v11657_v35 = vsel %vm4865_vm3, %v4934_v4, %v4936_v52  ;;  %v3341_v26 = vrot.slane %v11628_v30, 4  ;;  %v17013_v23 = vld [vmem:[#allocation8_spill] sm:$0xff]  ;;  %v17015_v52 = vld [vmem:[#allocation17_spill] sm:$0xff]  ;;  %v17025_v10 = vld [vmem:[#allocation146_spill] sm:$0xff] }
 0x2c4   : > { %16992 = vst [vmem:[#allocation192_spill] sm:$0xff] %v11610_v27  ;;  %v7777_v56 = vpack.i.bf16 %v11129_v47, %v16997_v8  ;;  %v1309_v9 = vrot.slane %v17011_v22, 4  ;;  %v17083_v37 = vunpack.i.h.bf16 %v11551_v1 }
 0x2c5   : > { %16994 = vst [vmem:[#allocation193_spill] sm:$0xff] %v11620_v50  ;;  %v17017_v50 = vld [vmem:[#allocation21_spill] sm:$0xff]  ;;  %v3344_v22 = vsel %vm925_vm5, %v11628_v30, %v3343_v54  ;;  %v11699_v54 = vsel %vm925_vm5, %v4581_v62, %v17002_v31  ;;  %v3342_v62 = vsel %vm925_vm5, %v3341_v26, %v17006_v12 }
 0x2c6   : > { %16995 = vst [vmem:[#allocation194_spill] sm:$0xff] %v11623_v49  ;;  %v17010_v49 = vld [vmem:[#allocation170_spill] sm:$0xff]  ;;  %v17018_v34 = vrot.slane %v17017_v50, 4  ;;  %7778 = vrot.lane.b32.xlu1 %v7777_v56, %s8352_s13  ;;  %v11719_v31 = vperm.slane %v3344_v22, %v8804_v25 }
 0x2c7   : > { %17001 = vst [vmem:[#allocation32_spill] sm:$0xff] %v11643_v48  ;;  %v7797_v63 = vpack.i.bf16 %v11637_v5, %v17010_v49  ;;  %v17014_v48 = vrot.slane %v17013_v23, 4  ;;  %v5342_v23 = vrot.slane %v11657_v35, 4  ;;  %v17021_v50 = vld [vmem:[#allocation6_spill] sm:$0xff] }
 0x2c8   : > { %17004 = vst [vmem:[#allocation105_spill] sm:$0xff] %v11648_v13  ;;  %v5207_v41 = vsel %vm925_vm5, %v17018_v34, %v17016_v32  ;;  %v17019_v13 = vld [vmem:[#allocation165_spill] sm:$0xff]  ;;  %v11694_v32 = vsel %vm925_vm5, %v1309_v9, %v17021_v50  ;;  %v17030_v9 = vrot.slane %v17029_v3, 4  ;;  %v17031_v50 = vld [vmem:[#allocation24_spill] sm:$0xff] }
 0x2c9   : > { %17005 = vst [vmem:[#allocation106_spill] sm:$0xff] %v11652_v17  ;;  %v11672_v4 = vsel %vm925_vm5, %v17014_v48, %v17012_v46  ;;  %v5201_v17 = vperm.slane %v17015_v52, %v8804_v25  ;;  %v11682_v29 = vperm.slane %v17019_v13, %v8804_v25  ;;  %7798 = vrot.lane.b32.xlu2 %v7797_v63, %s8352_s13  ;;  %v17023_v13 = vld [vmem:[#allocation16_spill] sm:$0xff]  ;;  %v3219_v63 = vrot.slane %v17025_v10, 4 }
 0x2ca   : > { %17007 = vst [vmem:[#allocation156_spill] sm:$0xff] %v11657_v35  ;;  %v5213_v48 = vperm.slane %v5207_v41, %v8804_v25  ;;  %v5345_v46 = vsel %vm925_vm5, %v11657_v35, %v5344_v51  ;;  %v5256_v52 = vrot.slane %v17023_v13, 4  ;;  %v17026_v41 = vld [vmem:[#allocation166_spill] sm:$0xff]  ;;  %v11706_v51 = vpop.permute.xlu0 %7553  ;;  %v11708_v35 = vpop.permute.xlu2 %7623  ;;  %v11714_v45 = vsel %vm925_vm5, %v17031_v50, %v17030_v9  ;;  %v17046_v50 = vld [vmem:[#allocation27_spill] sm:$0xff] }
 0x2cb   : > { %17009 = vst [vmem:[#allocation195_spill] sm:$0xff] %v11661_v55  ;;  %v5244_v34 = vrot.slane %v5201_v17, 4  ;;  %v11704_v60 = vperm.slane %v17026_v41, %v8804_v25  ;;  %v17033_v41 = vpack.i.bf16 %v11246_v39, %v11242_v36  ;;  %v17036_v9 = vld [vmem:[#allocation162_spill] sm:$0xff]  ;;  %v5343_v12 = vsel %vm925_vm5, %v5342_v23, %v17008_v11  ;;  %v17038_v39 = vld [vmem:[#allocation168_spill] sm:$0xff]  ;;  %v17042_v23 = vld [vmem:[#allocation173_spill] sm:$0xff] }
 0x2cc   : > { %17020 = vst [vmem:[#allocation170_spill] sm:$0xff] %v11682_v29  ;;  %v11737_v26 = vperm.slane %v5345_v46, %v8804_v25  ;;  %v11742_v22 = vperm.slane %v17038_v39, %v8804_v25  ;;  %v3220_v46 = vsel %vm925_vm5, %v17042_v23, %v3219_v63  ;;  %v17043_v11 = vld [vmem:[#allocation47_spill] sm:$0xff]  ;;  %v11758_v39 = vperm.slane %v5343_v12, %v8804_v25 }
 0x2cd   : > { %17022 = vst [vmem:[#allocation10_spill] sm:$0xff] %v11694_v32  ;;  %7758 = vrot.lane.b32.xlu0 %v17033_v41, %s8358_s23  ;;  %v17034_v32 = vld [vmem:[#allocation26_spill] sm:$0xff]  ;;  %v3243_v36 = vrot.slane %v17043_v11, 4  ;;  %v5242_v33 = vrot.slane %v5213_v48, 4  ;;  %v17047_v11 = vpack.i.bf16 %v11336_v16, %v11330_v43  ;;  %v17052_v43 = vrot.slane %v11129_v47, 1 }
 0x2ce   : > { %17024 = vst [vmem:[#allocation7_spill] sm:$0xff] %v11699_v54  ;;  %v11726_v54 = vsel %vm925_vm5, %v5213_v48, %v5244_v34  ;;  %v11730_v3 = vsel %vm925_vm5, %v17034_v32, %v5256_v52  ;;  %v17040_v52 = vld [vmem:[#allocation64_spill] sm:$0xff]  ;;  %v17045_v34 = vld [vmem:[#allocation174_spill] sm:$0xff]  ;;  %v11776_v48 = vperm.slane %v3220_v46, %v8804_v25  ;;  %v17053_v16 = vrot.slane %v16997_v8, 1 }
 0x2cf   : > { %17027 = vst [vmem:[#allocation8_spill] sm:$0xff] %v11704_v60  ;;  %v11747_v41 = vperm.slane %v17040_v52, %v8804_v25  ;;  %v11764_v60 = vperm.slane %v17046_v50, %v8804_v25  ;;  %v17049_v50 = vpack.i.bf16 %v11283_v20, %v11279_v57  ;;  %v17055_v57 = vunpack.i.h.bf16 %v17045_v34 }
 0x2d0   : > { %17028 = vst [vmem:[#allocation17_spill] sm:$0xff] %v11706_v51  ;;  %v11792_v46 = vsel %vm2864_vm4, %v17053_v16, %v17052_v43  ;;  %v11806_v47 = vsel %vm925_vm5, %v5242_v33, %v5201_v17  ;;  %v17056_v8 = vunpack.i.l.bf16 %v17045_v34  ;;  %v5230_v16 = vrot.slane %v11637_v5, 4 }
 0x2d1   : > { %17032 = vst [vmem:[#allocation15_spill] sm:$0xff] %v11714_v45  ;;  %v5232_v45 = vrot.slane %v17010_v49, 4  ;;  %7813 = vrot.lane.b32.xlu2 %v17047_v11, %s8357_s22  ;;  %7793 = vrot.lane.b32.xlu1 %v17049_v50, %s8358_s23  ;;  %v17054_v11 = vld [vmem:[#allocation33_spill] sm:$0xff]  ;;  %v11800_v20 = vrot.slane %v17055_v57, 4  ;;  %v3229_v33 = vrot.slane %v11792_v46, 4  ;;  %v17058_v17 = vrot.slane %v17034_v32, 4 }
 0x2d2   : > { %17035 = vst [vmem:[#allocation21_spill] sm:$0xff] %v11730_v3  ;;  %v11751_v3 = vperm.slane %v3342_v62, %v8804_v25  ;;  %v11796_v29 = vsel %vm925_vm5, %v17054_v11, %v3243_v36  ;;  %v11810_v43 = vrot.slane %v17056_v8, 4  ;;  %v11816_v57 = vpop.permute.xlu0 %7573  ;;  %v17059_v52 = vunpack.i.h.bf16 %v11358_v53 }
 0x2d3   : > { %17037 = vst [vmem:[#allocation165_spill] sm:$0xff] %v11737_v26  ;;  %v5233_v11 = vsel %vm925_vm5, %v11637_v5, %v5232_v45  ;;  %v11825_v8 = vsel %vm925_vm5, %v17058_v17, %v17023_v13  ;;  %v17064_v17 = vunpack.i.l.bf16 %v11236_v7  ;;  %v11867_v63 = vsel %vm925_vm5, %v5230_v16, %v17010_v49 }
 0x2d4   : > { %17039 = vst [vmem:[#allocation6_spill] sm:$0xff] %v11742_v22  ;;  %v17051_v22 = vld [vmem:[#allocation177_spill] sm:$0xff]  ;;  %v11840_v32 = vrot.slane %v17059_v52, 4  ;;  %v11851_v45 = vperm.slane %v5233_v11, %v8804_v25  ;;  %v17061_v52 = vpack.i.bf16 %v11347_v2, %v11343_v24  ;;  %v17066_v11 = vpack.i.bf16 %v11401_v21, %v11379_v14 }
 0x2d5   : > { %17041 = vst [vmem:[#allocation16_spill] sm:$0xff] %v11751_v3  ;;  %v11768_v3 = vpop.permute.xlu1 %7548  ;;  %v16226_v26 = vunpack.i.h.bf16 %v17051_v22  ;;  %v16227_v50 = vunpack.i.l.bf16 %v17051_v22  ;;  %7773 = vrot.lane.b32.xlu0 %v7777_v56, %s8353_s21  ;;  %v3230_v2 = vsel %vm925_vm5, %v3229_v33, %v17036_v9  ;;  %v17067_v24 = vunpack.i.h.bf16 %v11315_v15 }
 0x2d6   : > { %17044 = vst [vmem:[#allocation146_spill] sm:$0xff] %v11758_v39  ;;  %v11785_v39 = vpop.permute.xlu2 %7638  ;;  %v7551_v13 = vunpack.i.h.bf16 %v11768_v3  ;;  %v17070_v16 = vrot.slane %v17036_v9, 4  ;;  %v11897_v59 = vperm.slane %v3230_v2, %v8804_v25  ;;  %v17077_v2 = vld [vmem:[#allocation28_spill] sm:$0xff] }
 0x2d7   : > { %17057 = vst [vmem:[#allocation166_spill] sm:$0xff] %v11816_v57  ;;  %v11829_v36 = vrot.slane %v16226_v26, 4  ;;  %v11836_v56 = vrot.slane %v16227_v50, 4  ;;  %v17060_v26 = vunpack.i.l.bf16 %v11358_v53  ;;  %v17062_v50 = vunpack.i.h.bf16 %v11236_v7 }
 0x2d8   : > { %v3232_v14 = vsel %vm925_vm5, %v11792_v46, %v17070_v16  ;;  %v2650_v21 = vrot.slane %v7551_v13, 4 }
 0x2d9   : > { %v11846_v62 = vrot.slane %v17060_v26, 4  ;;  %7828 = vrot.lane.b32.xlu2 %v17061_v52, %s8358_s23  ;;  %v11859_v0 = vrot.slane %v17062_v50, 4  ;;  %v11863_v26 = vrot.slane %v17064_v17, 4  ;;  %7803 = vrot.lane.b32.xlu1 %v17066_v11, %s8356_s20  ;;  %v11877_v50 = vrot.slane %v17067_v24, 4 }
 0x2da   : > { %v17071_v11 = vunpack.i.l.bf16 %v11768_v3  ;;  %v17072_v24 = vpack.i.bf16 %v11413_v28, %v11407_v58  ;;  %v11906_v58 = vperm.slane %v3232_v14, %v8804_v25  ;;  %v17073_v28 = vunpack.i.l.bf16 %v11315_v15 }
 0x2db   : > { %17063 = vst [vmem:[#allocation23_spill] sm:$0xff] %v11859_v0  ;;  %v3771_v17 = vrot.slane %v17083_v37, 4  ;;  %v17085_v0 = vld [vmem:[#allocation41_spill] sm:$0xff]  ;;  %v3265_v14 = vrot.slane %v11897_v59, 4  ;;  %v17088_v37 = vpack.i.bf16 %v11542_v38, %v11513_v6 }
 0x2dc   : > { %17065 = vst [vmem:[#allocation24_spill] sm:$0xff] %v11863_v26  ;;  %v2538_v33 = vrot.slane %v17071_v11, 4  ;;  %v12019_v26 = vperm.slane %v11672_v4, %v9326_v61  ;;  %v17114_v4 = vpack.i.bf16 %v11590_v44, %v11571_v18 }
 0x2dd   : > { %17068 = vst [vmem:[#allocation26_spill] sm:$0xff] %v11877_v50  ;;  %v11881_v12 = vpop.permute.xlu1 %7558  ;;  %7788 = vrot.lane.b32.xlu0 %v17072_v24, %s8357_s22  ;;  %v17075_v24 = vunpack.i.h.bf16 %v11420_v19 }
 0x2de   : > { %17069 = vst [vmem:[#allocation162_spill] sm:$0xff] %v11881_v12  ;;  %v7649_v49 = vpop.permute.xlu2 %7648 }
 0x2df   : > { %v7651_v52 = vunpack.i.h.bf16 %v7649_v49  ;;  %v7650_v40 = vunpack.i.l.bf16 %v7649_v49  ;;  %v11910_v49 = vrot.slane %v17073_v28, 4  ;;  %v11914_v9 = vrot.slane %v17075_v24, 4  ;;  %17110 = vst [vmem:[#allocation196_spill] sm:$0xff] %v12019_v26 }
 0x2e0   : > { %v17080_v28 = vrot.slane %v17042_v23, 4  ;;  %v17081_v24 = vunpack.i.l.bf16 %v11420_v19  ;;  %v17087_v23 = vunpack.i.l.bf16 %v11551_v1  ;;  %v17101_v19 = vunpack.i.l.bf16 %v11661_v55 }
 0x2e1   : > { %v2648_v16 = vrot.slane %v7651_v52, 4  ;;  %v11900_v50 = vsel %vm925_vm5, %v7651_v52, %v2650_v21  ;;  %v11903_v11 = vsel %vm925_vm5, %v7650_v40, %v2538_v33  ;;  %17074 = vst [vmem:[#allocation168_spill] sm:$0xff] %v11910_v49  ;;  %v11918_v52 = vpop.permute.xlu0 %7588  ;;  %v17079_v21 = vld [vmem:[#allocation49_spill] sm:$0xff]  ;;  %v17084_v33 = vld [vmem:[#allocation96_spill] sm:$0xff]  ;;  %7823 = vrot.lane.b32.xlu1 %v17088_v37, %s8357_s22  ;;  %v17097_v37 = vunpack.i.h.bf16 %v11661_v55 }
 0x2e2   : > { %17076 = vst [vmem:[#allocation64_spill] sm:$0xff] %v11914_v9  ;;  %v3218_v49 = vsel %vm925_vm5, %v17080_v28, %v17025_v10  ;;  %v11929_v15 = vrot.slane %v17081_v24, 4  ;;  %v17086_v7 = vpack.i.bf16 %v17084_v33, %v17085_v0  ;;  %v3659_v10 = vrot.slane %v17087_v23, 4 }
 0x2e3   : > { %17078 = vst [vmem:[#allocation173_spill] sm:$0xff] %v11918_v52  ;;  %v11934_v9 = vsel %vm925_vm5, %v2648_v16, %v7551_v13  ;;  %v3277_v13 = vrot.slane %v11906_v58, 4  ;;  %v17089_v16 = vunpack.i.h.bf16 %v17077_v2  ;;  %v2536_v23 = vrot.slane %v7650_v40, 4  ;;  %v17099_v40 = vld [vmem:[#allocation58_spill] sm:$0xff] }
 0x2e4   : > { %17082 = vst [vmem:[#allocation47_spill] sm:$0xff] %v11929_v15  ;;  %7833 = vrot.lane.b32.xlu2 %v17086_v7, %s8356_s20  ;;  %v17091_v7 = vunpack.i.l.bf16 %v17077_v2  ;;  %v11959_v28 = vperm.slane %v3218_v49, %v8804_v25  ;;  %v17093_v24 = vunpack.i.h.bf16 %v17079_v21  ;;  %v17095_v6 = vunpack.i.l.bf16 %v17079_v21 }
 0x2e5   : > { %v11952_v0 = vrot.slane %v17089_v16, 4  ;;  %v11971_v16 = vrot.slane %v17097_v37, 4  ;;  %v11981_v21 = vpop.permute.xlu1 %7578 }
 0x2e6   : > { %v11956_v33 = vrot.slane %v17091_v7, 4  ;;  %v11963_v15 = vrot.slane %v17093_v24, 4  ;;  %v11967_v38 = vrot.slane %v17095_v6, 4  ;;  %v17098_v7 = vld [vmem:[#allocation42_spill] sm:$0xff]  ;;  %v7626_v24 = vunpack.i.h.bf16 %v11708_v35  ;;  %v11983_v6 = vpop.permute.xlu2 %7658 }
 0x2e7   : > { %17090 = vst [vmem:[#allocation174_spill] sm:$0xff] %v11952_v0  ;;  %v17100_v2 = vpack.i.bf16 %v17098_v7, %v17099_v40  ;;  %v3266_v37 = vsel %vm925_vm5, %v3265_v14, %v11959_v28  ;;  %v17103_v7 = vunpack.i.h.bf16 %v11581_v42  ;;  %v17118_v0 = vunpack.i.l.bf16 %v11610_v27 }
 0x2e8   : > { %17092 = vst [vmem:[#allocation27_spill] sm:$0xff] %v11956_v33  ;;  %v17105_v33 = vunpack.i.l.bf16 %v11768_v3  ;;  %v12014_v40 = vperm.slane %v3266_v37, %v9326_v61  ;;  %v17111_v3 = vunpack.i.h.bf16 %v11610_v27 }
 0x2e9   : > { %17094 = vst [vmem:[#allocation177_spill] sm:$0xff] %v11963_v15  ;;  %7808 = vrot.lane.b32.xlu0 %v17100_v2, %s8356_s20  ;;  %v7625_v15 = vunpack.i.l.bf16 %v11708_v35  ;;  %v11993_v2 = vrot.slane %v17103_v7, 4  ;;  %v3278_v35 = vsel %vm925_vm5, %v3277_v13, %v11776_v48  ;;  %v17106_v7 = vunpack.i.l.bf16 %v11581_v42  ;;  %v17109_v13 = vld [vmem:[#allocation81_spill] sm:$0xff]  ;;  %7843 = vrot.lane.b32.xlu1 %v17114_v4, %s8358_s23 }
 0x2ea   : > { %17096 = vst [vmem:[#allocation33_spill] sm:$0xff] %v11967_v38  ;;  %v11989_v38 = vrot.slane %v17101_v19, 4  ;;  %v12003_v14 = vsel %vm925_vm5, %v2536_v23, %v17105_v33  ;;  %v12007_v19 = vpack.i.bf16 %v11628_v30, %v11792_v46  ;;  %v3291_v49 = vrot.slane %v17109_v13, 4  ;;  %v12025_v46 = vpop.permute.xlu0 %7593  ;;  %v17125_v4 = vld [vmem:[#allocation45_spill] sm:$0xff] }
 0x2eb   : > { %17104 = vst [vmem:[#allocation41_spill] sm:$0xff] %v11993_v2  ;;  %v12011_v2 = vrot.slane %v17106_v7, 4  ;;  %v12023_v33 = vrot.slane %v17111_v3, 4  ;;  %v3769_v23 = vrot.slane %v7626_v24, 4  ;;  %v3657_v30 = vrot.slane %v7625_v15, 4  ;;  %v17113_v7 = vld [vmem:[#allocation77_spill] sm:$0xff] }
 0x2ec   : > { %17102 = vst [vmem:[#allocation96_spill] sm:$0xff] %v11989_v38  ;;  %7848 = vrot.lane.b32.xlu2 %v12007_v19, %s8353_s21  ;;  %v3299_v37 = vrot.slane %v17113_v7, 4  ;;  %v3772_v13 = vsel %vm925_vm5, %v7626_v24, %v3771_v17  ;;  %v12037_v3 = vperm.slane %v3278_v35, %v9326_v61  ;;  %v12045_v55 = vrot.slane %v17118_v0, 4 }
 0x2ed   : > { %17107 = vst [vmem:[#allocation42_spill] sm:$0xff] %v12011_v2  ;;  %v17120_v42 = vunpack.i.h.bf16 %v11706_v51  ;;  %v17122_v17 = vunpack.i.l.bf16 %v11706_v51  ;;  %v3660_v35 = vsel %vm925_vm5, %v7625_v15, %v3659_v10  ;;  %v3292_v0 = vsel %vm925_vm5, %v12014_v40, %v3291_v49 }
 0x2ee   : > { %17108 = vst [vmem:[#allocation58_spill] sm:$0xff] %v12014_v40  ;;  %v12070_v44 = vperm.slane %v3772_v13, %v8804_v25  ;;  %v17129_v15 = vunpack.i.l.bf16 %v11551_v1  ;;  %v3300_v49 = vsel %vm925_vm5, %v12037_v3, %v3299_v37  ;;  %v17132_v13 = vunpack.i.l.bf16 %v11881_v12 }
 0x2ef   : > { %17112 = vst [vmem:[#allocation197_spill] sm:$0xff] %v12023_v33  ;;  %v17116_v33 = vld [vmem:[#allocation10_spill] sm:$0xff]  ;;  %v12049_v7 = vrot.slane %v17120_v42, 4  ;;  %v12053_v24 = vrot.slane %v17122_v17, 4  ;;  %v17127_v17 = vunpack.i.h.bf16 %v11551_v1  ;;  %v12084_v42 = vperm.slane %v11726_v54, %v9326_v61 }
 0x2f0   : > { %17115 = vst [vmem:[#allocation198_spill] sm:$0xff] %v12037_v3  ;;  %v12041_v2 = vperm.slane %v17116_v33, %v9326_v61  ;;  %v17124_v33 = vld [vmem:[#allocation189_spill] sm:$0xff]  ;;  %v3658_v10 = vsel %vm925_vm5, %v3657_v30, %v17129_v15  ;;  %v12091_v1 = vperm.slane %v3660_v35, %v8804_v25  ;;  %v7581_v30 = vunpack.i.h.bf16 %v11981_v21  ;;  %v7694_v15 = vpop.permute.xlu2 %7693 }
 0x2f1   : > { %17119 = vst [vmem:[#allocation199_spill] sm:$0xff] %v12045_v55  ;;  %v17126_v27 = vpack.i.bf16 %v17124_v33, %v17125_v4  ;;  %v3770_v18 = vsel %vm925_vm5, %v3769_v23, %v17127_v17  ;;  %v12088_v23 = vrot.slane %v17132_v13, 4  ;;  %v7599_v17 = vpop.permute.xlu1 %7598  ;;  %v12098_v4 = vperm.slane %v3658_v10, %v8804_v25  ;;  %v17137_v55 = vld [vmem:[#allocation156_spill] sm:$0xff] }
 0x2f2   : > { %17117 = vst [vmem:[#allocation10_spill] sm:$0xff] %v12041_v2  ;;  %v12095_v37 = vperm.slane %v3770_v18, %v8804_v25  ;;  %v7641_v54 = vunpack.i.h.bf16 %v11785_v39  ;;  %v7862_v13 = vpack.i.bf16 %v11637_v5, %v17137_v55  ;;  %v17138_v40 = vunpack.i.h.bf16 %v11816_v57  ;;  %v17142_v5 = vld [vmem:[#allocation15_spill] sm:$0xff] }
 0x2f3   : > { %17121 = vst [vmem:[#allocation200_spill] sm:$0xff] %v12049_v7  ;;  %7818 = vrot.lane.b32.xlu0 %v17126_v27, %s8358_s23  ;;  %v17130_v27 = vunpack.i.h.bf16 %v11881_v12  ;;  %v17140_v3 = vunpack.i.l.bf16 %v11816_v57  ;;  %v7640_v18 = vunpack.i.l.bf16 %v11785_v39  ;;  %v7580_v10 = vunpack.i.l.bf16 %v11981_v21 }
 0x2f4   : > { %17123 = vst [vmem:[#allocation201_spill] sm:$0xff] %v12053_v24  ;;  %v12105_v35 = vrot.slane %v17138_v40, 4  ;;  %v7695_v51 = vunpack.i.l.bf16 %v7694_v15  ;;  %7863 = vrot.lane.b32.xlu1 %v7862_v13, %s8353_s21  ;;  %v12118_v40 = vperm.slane %v17142_v5, %v9326_v61  ;;  %v12129_v21 = vperm.slane %v11796_v29, %v9326_v61 }
 0x2f5   : > { %17128 = vst [vmem:[#allocation189_spill] sm:$0xff] %v12070_v44  ;;  %v12077_v33 = vrot.slane %v17130_v27, 4  ;;  %v7877_v27 = vpack.i.bf16 %v3300_v49, %v3292_v0  ;;  %v12109_v24 = vrot.slane %v17140_v3, 4  ;;  %v7696_v49 = vunpack.i.h.bf16 %v7694_v15  ;;  %v17143_v0 = vld [vmem:[#allocation21_spill] sm:$0xff] }
 0x2f6   : > { %17133 = vst [vmem:[#allocation202_spill] sm:$0xff] %v12088_v23  ;;  %v5996_v3 = vrot.slane %v7581_v30, 4  ;;  %v12125_v39 = vperm.slane %v17143_v0, %v9326_v61  ;;  %v6434_v13 = vrot.slane %v7641_v54, 4  ;;  %v7601_v5 = vunpack.i.h.bf16 %v7599_v17  ;;  %v17144_v0 = vld [vmem:[#allocation185_spill] sm:$0xff] }
 0x2f7   : > { %17131 = vst [vmem:[#allocation45_spill] sm:$0xff] %v12077_v33  ;;  %7878 = vrot.lane.b32.xlu2 %v7877_v27, %s8357_s22  ;;  %v7600_v44 = vunpack.i.l.bf16 %v7599_v17  ;;  %v5994_v57 = vrot.slane %v7696_v49, 4  ;;  %v5884_v7 = vrot.slane %v7580_v10, 4  ;;  %v5882_v23 = vrot.slane %v7695_v51, 4  ;;  %v17145_v33 = vld [vmem:[#allocation39_spill] sm:$0xff]  ;;  %v17146_v15 = vld [vmem:[#allocation181_spill] sm:$0xff] }
 0x2f8   : > { %17134 = vst [vmem:[#allocation203_spill] sm:$0xff] %v12091_v1  ;;  %v12134_v1 = vsel %vm925_vm5, %v7696_v49, %v5996_v3  ;;  %v1333_v38 = vrot.slane %v17144_v0, 4  ;;  %v12146_v17 = vperm.slane %v11806_v47, %v9326_v61  ;;  %v2424_v49 = vrot.slane %v7601_v5, 4 }
 0x2f9   : > { %17135 = vst [vmem:[#allocation204_spill] sm:$0xff] %v12095_v37  ;;  %v17147_v37 = vrot.slane %v17146_v15, 4  ;;  %v12149_v3 = vsel %vm925_vm5, %v5994_v57, %v7581_v30  ;;  %v12152_v0 = vsel %vm925_vm5, %v5882_v23, %v7580_v10  ;;  %v12155_v12 = vsel %vm925_vm5, %v7695_v51, %v5884_v7  ;;  %v12160_v29 = vpop.permute.xlu1 %7608  ;;  %v17150_v30 = vld [vmem:[#allocation55_spill] sm:$0xff] }
 0x2fa   : > { %17136 = vst [vmem:[#allocation205_spill] sm:$0xff] %v12098_v4  ;;  %v6435_v15 = vsel %vm925_vm5, %v6434_v13, %v7640_v18  ;;  %v7596_v4 = vunpack.i.h.bf16 %v12025_v46  ;;  %v7595_v57 = vunpack.i.l.bf16 %v12025_v46  ;;  %v1334_v23 = vsel %vm925_vm5, %v1333_v38, %v17150_v30 }
 0x2fb   : > { %17139 = vst [vmem:[#allocation156_spill] sm:$0xff] %v12105_v35  ;;  %v6436_v35 = vrot.slane %v7640_v18, 4  ;;  %v1346_v27 = vsel %vm925_vm5, %v17147_v37, %v17145_v33  ;;  %v2312_v37 = vrot.slane %v7600_v44, 4  ;;  %v2427_v51 = vsel %vm925_vm5, %v7601_v5, %v11840_v32 }
 0x2fc   : > { %17141 = vst [vmem:[#allocation206_spill] sm:$0xff] %v12109_v24  ;;  %v12121_v24 = vpop.permute.xlu0 %7603  ;;  %v12167_v10 = vperm.slane %v1346_v27, %v9326_v61  ;;  %v12172_v7 = vperm.slane %v1334_v23, %v9326_v61  ;;  %v12180_v46 = vperm.slane %v6435_v15, %v8804_v25  ;;  %v17156_v18 = vunpack.i.h.bf16 %v11358_v53 }
 0x2fd   : > { %17148 = vst [vmem:[#allocation15_spill] sm:$0xff] %v12146_v17  ;;  %v6437_v33 = vsel %vm925_vm5, %v7641_v54, %v6436_v35  ;;  %v12176_v54 = vperm.slane %v11825_v8, %v9326_v61  ;;  %v2315_v32 = vsel %vm925_vm5, %v7600_v44, %v11846_v62  ;;  %v17157_v13 = vunpack.i.l.bf16 %v11358_v53 }
 0x2fe   : > { %17149 = vst [vmem:[#allocation21_spill] sm:$0xff] %v12160_v29  ;;  %v12183_v38 = vperm.slane %v6437_v33, %v8804_v25  ;;  %v2425_v27 = vsel %vm925_vm5, %v2424_v49, %v17156_v18  ;;  %v1760_v5 = vrot.slane %v7596_v4, 4  ;;  %v17159_v15 = vrot.slane %v12041_v2, 4  ;;  %v12203_v18 = vpop.permute.xlu2 %7708 }
 0x2ff   : > { %17151 = vst [vmem:[#allocation185_spill] sm:$0xff] %v12167_v10  ;;  %v2313_v8 = vsel %vm925_vm5, %v2312_v37, %v17157_v13  ;;  %v17160_v23 = vrot.slane %v12019_v26, 4  ;;  %v12206_v62 = vperm.slane %v2427_v51, %v8804_v25  ;;  %v1763_v53 = vsel %vm925_vm5, %v7596_v4, %v11800_v20 }
 0x300   : > { %17152 = vst [vmem:[#allocation39_spill] sm:$0xff] %v12172_v7  ;;  %v1360_v33 = vsel %vm925_vm5, %v12172_v7, %v17159_v15  ;;  %v1648_v44 = vrot.slane %v7595_v57, 4  ;;  %v17163_v13 = vunpack.i.h.bf16 %v11918_v52  ;;  %v12215_v15 = vperm.slane %v2425_v27, %v8804_v25 }
 0x301   : > { %17153 = vst [vmem:[#allocation181_spill] sm:$0xff] %v12176_v54  ;;  %v1368_v49 = vsel %vm925_vm5, %v12167_v10, %v17160_v23  ;;  %v12218_v47 = vperm.slane %v2315_v32, %v8804_v25  ;;  %v1651_v23 = vsel %vm925_vm5, %v7595_v57, %v11810_v43  ;;  %v17166_v51 = vunpack.i.l.bf16 %v11918_v52 }
 0x302   : > { %17154 = vst [vmem:[#allocation55_spill] sm:$0xff] %v12180_v46  ;;  %v7837_v37 = vpack.i.bf16 %v1368_v49, %v1360_v33  ;;  %v12212_v35 = vrot.slane %v17163_v13, 4  ;;  %v12227_v20 = vperm.slane %v2313_v8, %v8804_v25  ;;  %v12231_v4 = vperm.slane %v11900_v50, %v8804_v25  ;;  %v17171_v49 = vld [vmem:[#allocation25_spill] sm:$0xff] }
 0x303   : > { %17155 = vst [vmem:[#allocation207_spill] sm:$0xff] %v12183_v38  ;;  %v12224_v2 = vrot.slane %v17166_v51, 4  ;;  %v17169_v33 = vunpack.i.h.bf16 %v17045_v34  ;;  %v12240_v57 = vperm.slane %v1763_v53, %v8804_v25  ;;  %v17172_v51 = vunpack.i.l.bf16 %v17045_v34 }
 0x304   : > { %v12193_v30 = vpop.permute.xlu0 %7618  ;;  %17161 = vst [vmem:[#allocation209_spill] sm:$0xff] %v12203_v18  ;;  %7838 = vrot.lane.b32.xlu0 %v7837_v37, %s8357_s22  ;;  %v12249_v27 = vperm.slane %v1651_v23, %v8804_v25  ;;  %v12255_v53 = vperm.slane %v11934_v9, %v8804_v25  ;;  %v5237_v13 = vperm.slane %v11867_v63, %v8804_v25  ;;  %v17174_v9 = vrot.slane %v11747_v41, 4 }
 0x305   : > { %17158 = vst [vmem:[#allocation208_spill] sm:$0xff] %v12193_v30  ;;  %v1761_v43 = vsel %vm925_vm5, %v1760_v5, %v17169_v33  ;;  %v1649_v37 = vsel %vm925_vm5, %v1648_v44, %v17172_v51  ;;  %v12257_v33 = vpop.permute.xlu1 %7633  ;;  %v5268_v51 = vrot.slane %v11764_v60, 4  ;;  %v3267_v63 = vrot.slane %v11959_v28, 4 }
 0x306   : > { %17162 = vst [vmem:[#allocation210_spill] sm:$0xff] %v12206_v62  ;;  %v12263_v44 = vperm.slane %v1761_v43, %v8804_v25  ;;  %v12269_v32 = vperm.slane %v1649_v37, %v8804_v25  ;;  %v5281_v5 = vsel %vm925_vm5, %v11851_v45, %v17174_v9  ;;  %v3279_v8 = vrot.slane %v11776_v48, 4  ;;  %v12290_v28 = vpop.permute.xlu2 %7718 }
 0x307   : > { %17164 = vst [vmem:[#allocation211_spill] sm:$0xff] %v12212_v35  ;;  %v5269_v43 = vsel %vm925_vm5, %v5237_v13, %v5268_v51  ;;  %v12279_v23 = vperm.slane %v5281_v5, %v9326_v61  ;;  %v3268_v9 = vsel %vm925_vm5, %v11897_v59, %v3267_v63  ;;  %v12294_v51 = vperm.slane %v11903_v11, %v8804_v25 }
 0x308   : > { %17165 = vst [vmem:[#allocation212_spill] sm:$0xff] %v12215_v15  ;;  %v12286_v26 = vperm.slane %v5269_v43, %v9326_v61  ;;  %v12298_v48 = vperm.slane %v3268_v9, %v9326_v61  ;;  %v3280_v50 = vsel %vm925_vm5, %v11906_v58, %v3279_v8  ;;  %v17177_v58 = vrot.slane %v12129_v21, 4 }
 0x309   : > { %17167 = vst [vmem:[#allocation213_spill] sm:$0xff] %v12224_v2  ;;  %v5302_v5 = vrot.slane %v12279_v23, 4  ;;  %v12306_v63 = vperm.slane %v3280_v50, %v9326_v61  ;;  %v12320_v43 = vperm.slane %v12003_v14, %v8804_v25  ;;  %v17179_v11 = vrot.slane %v12118_v40, 4 }
 0x30a   : > { %17168 = vst [vmem:[#allocation214_spill] sm:$0xff] %v12231_v4  ;;  %v5294_v59 = vrot.slane %v12286_v26, 4  ;;  %v3296_v8 = vsel %vm925_vm5, %v12298_v48, %v17177_v58  ;;  %v5266_v18 = vrot.slane %v5237_v13, 4  ;;  %v7605_v58 = vunpack.i.l.bf16 %v12121_v24  ;;  %v17180_v13 = vld [vmem:[#allocation16_spill] sm:$0xff]  ;;  %v17188_v4 = vld [vmem:[#allocation11_spill] sm:$0xff] }
 0x30b   : > { %17170 = vst [vmem:[#allocation215_spill] sm:$0xff] %v12240_v57  ;;  %v5303_v7 = vsel %vm925_vm5, %v5302_v5, %v12125_v39  ;;  %v3304_v34 = vsel %vm925_vm5, %v12306_v63, %v17179_v11  ;;  %v7606_v5 = vunpack.i.h.bf16 %v12121_v24  ;;  %v7661_v14 = vunpack.i.h.bf16 %v11983_v6  ;;  %v17182_v11 = vld [vmem:[#allocation63_spill] sm:$0xff] }
 0x30c   : > { %17173 = vst [vmem:[#allocation25_spill] sm:$0xff] %v12255_v53  ;;  %v12283_v37 = vpop.permute.xlu0 %7628  ;;  %7853 = vrot.lane.b32.xlu0 %v12007_v19, %s8352_s13  ;;  %v5295_v19 = vsel %vm925_vm5, %v5294_v59, %v12084_v42  ;;  %v5278_v59 = vrot.slane %v11851_v45, 4  ;;  %v3377_v24 = vrot.slane %v17180_v13, 4  ;;  %v7857_v45 = vpack.i.bf16 %v17137_v55, %v17182_v11 }
 0x30d   : > { %17175 = vst [vmem:[#allocation216_spill] sm:$0xff] %v12290_v28  ;;  %v7631_v9 = vunpack.i.h.bf16 %v12283_v37  ;;  %v7892_v10 = vpack.i.bf16 %v5303_v7, %v5295_v19  ;;  %v7867_v28 = vpack.i.bf16 %v3304_v34, %v3296_v8  ;;  %v7630_v53 = vunpack.i.l.bf16 %v12283_v37  ;;  %v12333_v50 = vpop.permute.xlu1 %7643  ;;  %v17183_v8 = vld [vmem:[#allocation13_spill] sm:$0xff] }
 0x30e   : > { %17176 = vst [vmem:[#allocation217_spill] sm:$0xff] %v12294_v51  ;;  %v5267_v7 = vsel %vm925_vm5, %v5266_v18, %v11764_v60  ;;  %v5279_v37 = vsel %vm925_vm5, %v5278_v59, %v11747_v41  ;;  %v17184_v19 = vrot.slane %v17171_v49, 4  ;;  %v17186_v60 = vld [vmem:[#allocation167_spill] sm:$0xff]  ;;  %v17189_v41 = vld [vmem:[#allocation18_spill] sm:$0xff]  ;;  %v17193_v46 = vunpack.i.h.bf16 %v17051_v22 }
 0x30f   : > { %17178 = vst [vmem:[#allocation218_spill] sm:$0xff] %v12320_v43  ;;  %v4433_v35 = vrot.slane %v7631_v9, 4  ;;  %7893 = vrot.lane.b32.xlu2 %v7892_v10, %s8358_s23  ;;  %7868 = vrot.lane.b32.xlu1 %v7867_v28, %s8356_s20  ;;  %v12343_v34 = vperm.slane %v5267_v7, %v9326_v61  ;;  %v12354_v28 = vperm.slane %v5279_v37, %v9326_v61  ;;  %v17190_v59 = vrot.slane %v17189_v41, 4 }
 0x310   : > { %v3354_v10 = vsel %vm925_vm5, %v17184_v19, %v17183_v8  ;;  %v12358_v18 = vperm.slane %v17186_v60, %v8804_v25  ;;  %v4436_v11 = vsel %vm925_vm5, %v7631_v9, %v11829_v36  ;;  %v4321_v38 = vrot.slane %v7630_v53, 4 }
 0x311   : > { %17181 = vst [vmem:[#allocation16_spill] sm:$0xff] %v12343_v34  ;;  %v12361_v7 = vperm.slane %v3354_v10, %v9326_v61  ;;  %v3366_v55 = vsel %vm925_vm5, %v17190_v59, %v17188_v4  ;;  %v17191_v19 = vrot.slane %v12146_v17, 4  ;;  %v7729_v10 = vpop.permute.xlu2 %7728  ;;  %v4434_v52 = vsel %vm925_vm5, %v4433_v35, %v17193_v46  ;;  %v17195_v17 = vld [vmem:[#allocation170_spill] sm:$0xff] }
 0x312   : > { %17185 = vst [vmem:[#allocation63_spill] sm:$0xff] %v12354_v28  ;;  %v12375_v60 = vperm.slane %v3366_v55, %v9326_v61  ;;  %v17194_v59 = vrot.slane %v12176_v54, 4  ;;  %v3378_v9 = vsel %vm925_vm5, %v3377_v24, %v12358_v18  ;;  %v6322_v46 = vrot.slane %v7606_v5, 4 }
 0x313   : > { %17187 = vst [vmem:[#allocation13_spill] sm:$0xff] %v12361_v7  ;;  %v5293_v37 = vsel %vm925_vm5, %v12343_v34, %v17191_v19  ;;  %v17196_v19 = vrot.slane %v11719_v31, 4  ;;  %v12391_v34 = vperm.slane %v3378_v9, %v9326_v61  ;;  %v3403_v35 = vrot.slane %v12361_v7, 4 }
 0x314   : > { %7858 = vrot.lane.b32.xlu0 %v7857_v45, %s8352_s13  ;;  %17192 = vst [vmem:[#allocation167_spill] sm:$0xff] %v12375_v60  ;;  %v5301_v36 = vsel %vm925_vm5, %v12354_v28, %v17194_v59  ;;  %v6324_v54 = vrot.slane %v7605_v58, 4  ;;  %v3411_v59 = vrot.slane %v12375_v60, 4  ;;  %v7731_v28 = vunpack.i.h.bf16 %v7729_v10 }
 0x315   : > { %v3390_v45 = vsel %vm925_vm5, %v17196_v19, %v17195_v17  ;;  %v7887_v55 = vpack.i.bf16 %v5301_v36, %v5293_v37  ;;  %17197 = vst [vmem:[#allocation11_spill] sm:$0xff] %v12391_v34  ;;  %v4444_v62 = vperm.slane %v4436_v11, %v8804_v25  ;;  %v4324_v37 = vsel %vm925_vm5, %v7630_v53, %v11836_v56  ;;  %v12415_v53 = vpop.permute.xlu1 %7668 }
 0x316   : > { %v12394_v2 = vperm.slane %v3390_v45, %v9326_v61  ;;  %v3404_v36 = vsel %vm925_vm5, %v12391_v34, %v3403_v35  ;;  %v12405_v9 = vperm.slane %v4434_v52, %v8804_v25  ;;  %v17200_v19 = vunpack.i.l.bf16 %v17051_v22  ;;  %17201 = vst [vmem:[#allocation219_spill] sm:$0xff] %v12415_v53  ;;  %v12417_v35 = vpop.permute.xlu0 %7653  ;;  %v17203_v34 = vld [vmem:[#allocation45_spill] sm:$0xff] }
 0x317   : > { %7888 = vrot.lane.b32.xlu1 %v7887_v55, %s8357_s22  ;;  %v7730_v7 = vunpack.i.l.bf16 %v7729_v10  ;;  %v1772_v11 = vrot.slane %v7661_v14, 4  ;;  %v1775_v56 = vsel %vm925_vm5, %v7661_v14, %v11971_v16  ;;  %v4445_v60 = vrot.slane %v7731_v28, 4  ;;  %v17205_v14 = vld [vmem:[#allocation162_spill] sm:$0xff] }
 0x318   : > { %17198 = vst [vmem:[#allocation18_spill] sm:$0xff] %v12394_v2  ;;  %v4322_v45 = vsel %vm925_vm5, %v4321_v38, %v17200_v19  ;;  %v3412_v24 = vsel %vm925_vm5, %v12394_v2, %v3411_v59  ;;  %v6323_v22 = vsel %vm925_vm5, %v6322_v46, %v7605_v58  ;;  %v6325_v38 = vsel %vm925_vm5, %v7606_v5, %v6324_v54 }
 0x319   : > { %17199 = vst [vmem:[#allocation170_spill] sm:$0xff] %v12405_v9  ;;  %v7907_v52 = vpack.i.bf16 %v3412_v24, %v3404_v36  ;;  %v17202_v55 = vunpack.i.l.bf16 %v11983_v6  ;;  %v4448_v10 = vsel %vm925_vm5, %v7731_v28, %v17203_v34  ;;  %v4495_v59 = vrot.slane %v4444_v62, 4 }
 0x31a   : > { %v12426_v2 = vperm.slane %v4322_v45, %v8804_v25  ;;  %v4332_v16 = vperm.slane %v4324_v37, %v8804_v25  ;;  %v17206_v24 = vunpack.i.h.bf16 %v17205_v14  ;;  %v4483_v54 = vrot.slane %v12405_v9, 4  ;;  %v17210_v37 = vld [vmem:[#allocation96_spill] sm:$0xff] }
 0x31b   : > { %v1660_v19 = vrot.slane %v17202_v55, 4  ;;  %7908 = vrot.lane.b32.xlu2 %v7907_v52, %s8357_s22  ;;  %v4456_v46 = vperm.slane %v4448_v10, %v8804_v25  ;;  %v4333_v34 = vrot.slane %v7730_v7, 4  ;;  %v12439_v28 = vperm.slane %v6323_v22, %v8804_v25 }
 0x31c   : > { %17204 = vst [vmem:[#allocation45_spill] sm:$0xff] %v12426_v2  ;;  %v4446_v58 = vsel %vm925_vm5, %v4445_v60, %v17206_v24  ;;  %v12442_v36 = vperm.slane %v1775_v56, %v8804_v25  ;;  %v17211_v45 = vmov %v17202_v55  ;;  %v17212_v60 = vld [vmem:[#allocation202_spill] sm:$0xff]  ;;  %v12451_v24 = vperm.slane %v6325_v38, %v8804_v25  ;;  %v17214_v56 = vld [vmem:[#allocation195_spill] sm:$0xff] }
 0x31d   : > { %v12435_v5 = vperm.slane %v4446_v58, %v8804_v25  ;;  %17208 = vst [vmem:[#allocation220_spill] sm:$0xff] %v12439_v28  ;;  %v1663_v52 = vsel %vm925_vm5, %v17211_v45, %v17210_v37  ;;  %v4336_v55 = vsel %vm925_vm5, %v7730_v7, %v17212_v60  ;;  %v4493_v22 = vrot.slane %v4456_v46, 4 }
 0x31e   : > { %17209 = vst [vmem:[#allocation221_spill] sm:$0xff] %v12442_v36  ;;  %v12458_v58 = vsel %vm925_vm5, %v4456_v46, %v4495_v59  ;;  %v17215_v53 = vunpack.i.h.bf16 %v17214_v56  ;;  %v4383_v9 = vrot.slane %v4332_v16, 4  ;;  %v17216_v37 = vunpack.i.l.bf16 %v17205_v14 }
 0x31f   : > { %17207 = vst [vmem:[#allocation162_spill] sm:$0xff] %v12435_v5  ;;  %v12455_v10 = vsel %vm925_vm5, %v12435_v5, %v4483_v54  ;;  %v4344_v38 = vperm.slane %v4336_v55, %v8804_v25  ;;  %v17217_v45 = vunpack.i.l.bf16 %v17214_v56  ;;  %v4371_v60 = vrot.slane %v12426_v2, 4 }
 0x320   : > { %17213 = vst [vmem:[#allocation96_spill] sm:$0xff] %v12451_v24  ;;  %v1773_v6 = vsel %vm925_vm5, %v1772_v11, %v17215_v53  ;;  %v4334_v7 = vsel %vm925_vm5, %v4333_v34, %v17216_v37  ;;  %v12472_v59 = vsel %vm925_vm5, %v4493_v22, %v4444_v62  ;;  %v17219_v11 = vunpack.i.h.bf16 %v12160_v29  ;;  %v17238_v24 = vld [vmem:[#allocation165_spill] sm:$0xff] }
 0x321   : > { %v1661_v54 = vsel %vm925_vm5, %v1660_v19, %v17217_v45  ;;  %17218 = vst [vmem:[#allocation202_spill] sm:$0xff] %v12472_v59  ;;  %v12475_v46 = vperm.slane %v4334_v7, %v8804_v25  ;;  %v12482_v14 = vperm.slane %v1663_v52, %v8804_v25  ;;  %v4381_v34 = vrot.slane %v4344_v38, 4  ;;  %v12509_v45 = vpop.permute.xlu0 %7663 }
 0x322   : > { %v12479_v53 = vrot.slane %v17219_v11, 4  ;;  %v12485_v55 = vsel %vm925_vm5, %v4344_v38, %v4383_v9  ;;  %v17221_v56 = vunpack.i.l.bf16 %v12160_v29  ;;  %v12493_v22 = vperm.slane %v1773_v6, %v8804_v25  ;;  %v12514_v11 = vpop.permute.xlu1 %7688 }
 0x323   : > { %v12497_v37 = vsel %vm925_vm5, %v12475_v46, %v4371_v60  ;;  %v17224_v7 = vrot.slane %v12240_v57, 4  ;;  %v12507_v38 = vperm.slane %v1661_v54, %v8804_v25  ;;  %v12512_v6 = vsel %vm925_vm5, %v4381_v34, %v4332_v16  ;;  %v17245_v57 = vld [vmem:[#allocation174_spill] sm:$0xff] }
 0x324   : > { %17220 = vst [vmem:[#allocation195_spill] sm:$0xff] %v12479_v53  ;;  %v12490_v62 = vrot.slane %v17221_v56, 4  ;;  %v5296_v19 = vrot.slane %v12084_v42, 4  ;;  %v5304_v52 = vrot.slane %v12125_v39, 4  ;;  %v17226_v54 = vrot.slane %v12249_v27, 4 }
 0x325   : > { %17223 = vst [vmem:[#allocation223_spill] sm:$0xff] %v12497_v37  ;;  %v12504_v9 = vsel %vm925_vm5, %v12442_v36, %v17224_v7  ;;  %v3355_v16 = vrot.slane %v17183_v8, 4  ;;  %v17227_v34 = vrot.slane %v17188_v4, 4  ;;  %v7636_v51 = vunpack.i.h.bf16 %v12257_v33 }
 0x326   : > { %17222 = vst [vmem:[#allocation222_spill] sm:$0xff] %v12490_v62  ;;  %v12525_v59 = vsel %vm925_vm5, %v12482_v14, %v17226_v54  ;;  %v5297_v42 = vsel %vm925_vm5, %v12286_v26, %v5296_v19  ;;  %v5305_v39 = vsel %vm925_vm5, %v12279_v23, %v5304_v52  ;;  %v3379_v26 = vrot.slane %v12358_v18, 4  ;;  %v17231_v18 = vld [vmem:[#allocation12_spill] sm:$0xff] }
 0x327   : > { %17225 = vst [vmem:[#allocation224_spill] sm:$0xff] %v12512_v6  ;;  %v3368_v60 = vsel %vm925_vm5, %v17189_v41, %v17227_v34  ;;  %v7872_v43 = vpack.i.bf16 %v5305_v39, %v5297_v42  ;;  %v3356_v4 = vsel %vm925_vm5, %v17171_v49, %v3355_v16  ;;  %v17228_v23 = vrot.slane %v17195_v17, 4  ;;  %v17229_v49 = vld [vmem:[#allocation20_spill] sm:$0xff]  ;;  %v17230_v42 = vld [vmem:[#allocation14_spill] sm:$0xff] }
 0x328   : > { %v12538_v7 = vperm.slane %v3368_v60, %v9326_v61  ;;  %v12546_v34 = vperm.slane %v3356_v4, %v9326_v61  ;;  %v5325_v16 = vperm.slane %v17229_v49, %v8804_v25  ;;  %v5356_v39 = vrot.slane %v17230_v42, 4 }
 0x329   : > { %v3392_v19 = vsel %vm925_vm5, %v11719_v31, %v17228_v23  ;;  %7873 = vrot.lane.b32.xlu0 %v7872_v43, %s8356_s20  ;;  %v7665_v4 = vunpack.i.l.bf16 %v12509_v45  ;;  %v3380_v17 = vsel %vm925_vm5, %v17180_v13, %v3379_v26  ;;  %v17232_v56 = vrot.slane %v17231_v18, 4  ;;  %v17233_v31 = vld [vmem:[#allocation19_spill] sm:$0xff]  ;;  %v17234_v23 = vld [vmem:[#allocation6_spill] sm:$0xff]  ;;  %v12596_v53 = vpop.permute.xlu0 %7673 }
 0x32a   : > { %v12555_v52 = vperm.slane %v3392_v19, %v9326_v61  ;;  %v3415_v60 = vrot.slane %v12538_v7, 4  ;;  %v5380_v19 = vrot.slane %v17234_v23, 4  ;;  %v12570_v54 = vperm.slane %v3380_v17, %v9326_v61  ;;  %v17235_v26 = vld [vmem:[#allocation146_spill] sm:$0xff]  ;;  %17241 = vst [vmem:[#allocation14_spill] sm:$0xff] %v12596_v53 }
 0x32b   : > { %v5369_v43 = vsel %vm925_vm5, %v17233_v31, %v17232_v56  ;;  %v3407_v41 = vrot.slane %v12546_v34, 4  ;;  %v5357_v8 = vsel %vm925_vm5, %v5325_v16, %v5356_v39  ;;  %v7635_v13 = vunpack.i.l.bf16 %v12257_v33  ;;  %v17236_v56 = vld [vmem:[#allocation8_spill] sm:$0xff] }
 0x32c   : > { %v3416_v49 = vsel %vm925_vm5, %v12555_v52, %v3415_v60  ;;  %v5381_v6 = vsel %vm925_vm5, %v17235_v26, %v5380_v19  ;;  %v17237_v2 = vrot.slane %v17236_v56, 4  ;;  %v17239_v29 = vunpack.i.h.bf16 %v12193_v30  ;;  %v12598_v19 = vpop.permute.xlu1 %7703 }
 0x32d   : > { %v3408_v60 = vsel %vm925_vm5, %v12570_v54, %v3407_v41  ;;  %v12591_v39 = vperm.slane %v5381_v6, %v9326_v61  ;;  %17242 = vst [vmem:[#allocation12_spill] sm:$0xff] %v12598_v19  ;;  %v17243_v28 = vunpack.i.l.bf16 %v12193_v30  ;;  %v2324_v36 = vrot.slane %v7665_v4, 4 }
 0x32e   : > { %v5393_v17 = vsel %vm925_vm5, %v17238_v24, %v17237_v2  ;;  %v12586_v62 = vrot.slane %v17239_v29, 4  ;;  %v7897_v29 = vpack.i.bf16 %v3416_v49, %v3408_v60  ;;  %v12608_v41 = vperm.slane %v5357_v8, %v9326_v61  ;;  %v17247_v60 = vld [vmem:[#allocation27_spill] sm:$0xff] }
 0x32f   : > { %v12594_v33 = vperm.slane %v5393_v17, %v9326_v61  ;;  %v12602_v2 = vrot.slane %v17243_v28, 4  ;;  %v5406_v6 = vrot.slane %v12591_v39, 4  ;;  %v3293_v53 = vrot.slane %v12298_v48, 4 }
 0x330   : > { %17240 = vst [vmem:[#allocation20_spill] sm:$0xff] %v12586_v62  ;;  %v12605_v62 = vperm.slane %v5369_v43, %v9326_v61  ;;  %v5773_v19 = vsel %vm925_vm5, %v7636_v51, %v17245_v57  ;;  %7898 = vrot.lane.b32.xlu1 %v7897_v29, %s8356_s20  ;;  %v3301_v28 = vrot.slane %v12306_v63, 4  ;;  %v5354_v49 = vrot.slane %v5325_v16, 4  ;;  %v17248_v29 = vld [vmem:[#allocation24_spill] sm:$0xff] }
 0x331   : > { %17244 = vst [vmem:[#allocation19_spill] sm:$0xff] %v12602_v2  ;;  %v5414_v17 = vrot.slane %v12594_v33, 4  ;;  %v17246_v43 = vrot.slane %v17233_v31, 4  ;;  %v5661_v30 = vsel %vm925_vm5, %v7635_v13, %v17247_v60  ;;  %v5407_v2 = vsel %vm925_vm5, %v5406_v6, %v12608_v41  ;;  %v17249_v60 = vld [vmem:[#allocation44_spill] sm:$0xff] }
 0x332   : > { %v3294_v57 = vsel %vm925_vm5, %v3293_v53, %v12129_v21  ;;  %v2327_v63 = vsel %vm925_vm5, %v7665_v4, %v17248_v29  ;;  %v3302_v31 = vsel %vm925_vm5, %v3301_v28, %v12118_v40  ;;  %v17250_v37 = vunpack.i.l.bf16 %v17249_v60  ;;  %v12642_v53 = vpop.permute.xlu2 %7753  ;;  %v17263_v29 = vld [vmem:[#allocation76_spill] sm:$0xff] }
 0x333   : > { %v5367_v8 = vsel %vm925_vm5, %v17246_v43, %v17231_v18  ;;  %v5415_v48 = vsel %vm925_vm5, %v5414_v17, %v12605_v62  ;;  %v5355_v18 = vsel %vm925_vm5, %v5354_v49, %v17230_v42  ;;  %v5770_v43 = vrot.slane %v7636_v51, 4  ;;  %17252 = vst [vmem:[#allocation146_spill] sm:$0xff] %v12642_v53  ;;  %v17259_v49 = vld [vmem:[#allocation80_spill] sm:$0xff] }
 0x334   : > { %v7922_v16 = vpack.i.bf16 %v5415_v48, %v5407_v2  ;;  %v2325_v6 = vsel %vm925_vm5, %v2324_v36, %v17250_v37  ;;  %v7882_v15 = vpack.i.bf16 %v3302_v31, %v3294_v57  ;;  %v12639_v17 = vperm.slane %v5355_v18, %v9326_v61  ;;  %v17261_v48 = vld [vmem:[#allocation68_spill] sm:$0xff]  ;;  %v12685_v31 = vpop.permute.xlu0 %7678  ;;  %v12687_v18 = vpop.permute.xlu1 %7713 }
 0x335   : > { %v5658_v21 = vrot.slane %v7635_v13, 4  ;;  %v12645_v4 = vperm.slane %v5367_v8, %v9326_v61  ;;  %v5378_v40 = vrot.slane %v17235_v26, 4  ;;  %v17254_v51 = vrot.slane %v17238_v24, 4  ;;  %17265 = vst [vmem:[#allocation24_spill] sm:$0xff] %v12685_v31 }
 0x336   : > { %17251 = vst [vmem:[#allocation6_spill] sm:$0xff] %v12639_v17  ;;  %7923 = vrot.lane.b32.xlu2 %v7922_v16, %s8358_s23  ;;  %v12653_v36 = vperm.slane %v5773_v19, %v8804_v25  ;;  %v12656_v37 = vperm.slane %v5661_v30, %v8804_v25  ;;  %v12659_v13 = vperm.slane %v2327_v63, %v8804_v25  ;;  %v17257_v19 = vld [vmem:[#allocation70_spill] sm:$0xff]  ;;  %v17262_v57 = vrot.slane %v17261_v48, 4 }
 0x337   : > { %17253 = vst [vmem:[#allocation8_spill] sm:$0xff] %v12645_v4  ;;  %v5391_v42 = vsel %vm925_vm5, %v17254_v51, %v17236_v56  ;;  %7883 = vrot.lane.b32.xlu0 %v7882_v15, %s8358_s23  ;;  %v2331_v26 = vperm.slane %v2325_v6, %v8804_v25  ;;  %v5379_v24 = vsel %vm925_vm5, %v5378_v40, %v17234_v23  ;;  %v5404_v56 = vrot.slane %v12639_v17, 4  ;;  %v17267_v6 = vld [vmem:[#allocation28_spill] sm:$0xff] }
 0x338   : > { %17255 = vst [vmem:[#allocation165_spill] sm:$0xff] %v12656_v37  ;;  %v12663_v2 = vperm.slane %v5391_v42, %v9326_v61  ;;  %v17258_v28 = vrot.slane %v17257_v19, 4  ;;  %v12674_v8 = vperm.slane %v5379_v24, %v9326_v61  ;;  %v5412_v15 = vrot.slane %v12645_v4, 4  ;;  %v17307_v37 = vld [vmem:[#allocation47_spill] sm:$0xff] }
 0x339   : > { %v1687_v63 = vsel %vm925_vm5, %v17263_v29, %v17262_v57  ;;  %v17264_v16 = vrot.slane %v12269_v32, 4  ;;  %17266 = vst [vmem:[#allocation44_spill] sm:$0xff] %v12687_v18  ;;  %v17268_v40 = vunpack.i.h.bf16 %v17267_v6  ;;  %v17269_v42 = vunpack.i.l.bf16 %v17267_v6 }
 0x33a   : > { %17256 = vst [vmem:[#allocation174_spill] sm:$0xff] %v12663_v2  ;;  %v1675_v30 = vsel %vm925_vm5, %v17259_v49, %v17258_v28  ;;  %v12700_v57 = vperm.slane %v12525_v59, %v9326_v61  ;;  %v5405_v17 = vsel %vm925_vm5, %v12674_v8, %v5404_v56  ;;  %v2372_v56 = vrot.slane %v12659_v13, 4 }
 0x33b   : > { %17260 = vst [vmem:[#allocation27_spill] sm:$0xff] %v12674_v8  ;;  %v1699_v23 = vsel %vm925_vm5, %v12507_v38, %v17264_v16  ;;  %v5771_v51 = vsel %vm925_vm5, %v5770_v43, %v17268_v40  ;;  %v5659_v24 = vsel %vm925_vm5, %v5658_v21, %v17269_v42  ;;  %v12704_v16 = vperm.slane %v12134_v1, %v8804_v25  ;;  %v17275_v8 = vld [vmem:[#allocation86_spill] sm:$0xff] }
 0x33c   : > { %v12696_v28 = vperm.slane %v1699_v23, %v9326_v61  ;;  %17270 = vst [vmem:[#allocation70_spill] sm:$0xff] %v12700_v57  ;;  %v5413_v43 = vsel %vm925_vm5, %v12663_v2, %v5412_v15  ;;  %v12711_v6 = vperm.slane %v1675_v30, %v9326_v61  ;;  %v12714_v23 = vperm.slane %v1687_v63, %v9326_v61  ;;  %v17273_v63 = vld [vmem:[#allocation62_spill] sm:$0xff] }
 0x33d   : > { %17271 = vst [vmem:[#allocation80_spill] sm:$0xff] %v12704_v16  ;;  %v7917_v21 = vpack.i.bf16 %v5413_v43, %v5405_v17  ;;  %v1732_v40 = vrot.slane %v12700_v57, 4  ;;  %v12719_v1 = vperm.slane %v5771_v51, %v8804_v25  ;;  %v2360_v42 = vrot.slane %v2331_v26, 4 }
 0x33e   : > { %v1724_v59 = vrot.slane %v12696_v28, 4  ;;  %v5408_v4 = vrot.slane %v12608_v41, 4  ;;  %v5416_v15 = vrot.slane %v12605_v62, 4  ;;  %v17274_v43 = vrot.slane %v17273_v63, 4 }
 0x33f   : > { %17272 = vst [vmem:[#allocation68_spill] sm:$0xff] %v12719_v1  ;;  %7918 = vrot.lane.b32.xlu1 %v7917_v21, %s8357_s22  ;;  %v1733_v30 = vsel %vm925_vm5, %v1732_v40, %v12714_v23  ;;  %v17276_v21 = vld [vmem:[#allocation60_spill] sm:$0xff]  ;;  %v12742_v40 = vpop.permute.xlu2 %7768 }
 0x340   : > { %v1725_v17 = vsel %vm925_vm5, %v1724_v59, %v12711_v6  ;;  %v2339_v51 = vsel %vm925_vm5, %v17275_v8, %v17274_v43  ;;  %v5409_v18 = vsel %vm925_vm5, %v12591_v39, %v5408_v4  ;;  %v17277_v31 = vrot.slane %v17276_v21, 4  ;;  %v17278_v59 = vld [vmem:[#allocation84_spill] sm:$0xff]  ;;  %17279 = vst [vmem:[#allocation76_spill] sm:$0xff] %v12742_v40 }
 0x341   : > { %v7942_v2 = vpack.i.bf16 %v1733_v30, %v1725_v17  ;;  %v12736_v41 = vperm.slane %v2339_v51, %v9326_v61  ;;  %v5417_v62 = vsel %vm925_vm5, %v12594_v33, %v5416_v15  ;;  %v17280_v17 = vrot.slane %v12227_v20, 4  ;;  %v17303_v40 = vld [vmem:[#allocation204_spill] sm:$0xff] }
 0x342   : > { %v2351_v53 = vsel %vm925_vm5, %v17278_v59, %v17277_v31  ;;  %v17281_v4 = vrot.slane %v12218_v47, 4  ;;  %v7902_v31 = vpack.i.bf16 %v5417_v62, %v5409_v18  ;;  %v2361_v18 = vsel %vm925_vm5, %v2360_v42, %v12227_v20 }
 0x343   : > { %v12747_v57 = vperm.slane %v2351_v53, %v9326_v61  ;;  %v2363_v39 = vsel %vm925_vm5, %v2331_v26, %v17280_v17  ;;  %7943 = vrot.lane.b32.xlu2 %v7942_v2, %s8358_s23  ;;  %v2390_v53 = vrot.slane %v12736_v41, 4  ;;  %v17282_v26 = vrot.slane %v17275_v8, 4 }
 0x344   : > { %v2375_v30 = vsel %vm925_vm5, %v12659_v13, %v17281_v4  ;;  %v12758_v43 = vperm.slane %v2363_v39, %v9326_v61  ;;  %v17283_v13 = vrot.slane %v17278_v59, 4  ;;  %7903 = vrot.lane.b32.xlu0 %v7902_v31, %s8356_s20  ;;  %v12787_v59 = vpop.permute.xlu1 %7723  ;;  %v12791_v20 = vperm.slane %v5659_v24, %v8804_v25 }
 0x345   : > { %v12761_v33 = vperm.slane %v2375_v30, %v9326_v61  ;;  %v2398_v15 = vrot.slane %v12747_v57, 4  ;;  %v2337_v51 = vsel %vm925_vm5, %v17282_v26, %v17273_v63  ;;  %v12785_v63 = vperm.slane %v2361_v18, %v9326_v61 }
 0x346   : > { %v2349_v2 = vsel %vm925_vm5, %v17283_v13, %v17276_v21  ;;  %v2391_v62 = vsel %vm925_vm5, %v12758_v43, %v2390_v53  ;;  %v12779_v17 = vperm.slane %v2337_v51, %v9326_v61  ;;  %v7684_v21 = vpop.permute.xlu0 %7683  ;;  %v2373_v4 = vsel %vm925_vm5, %v2372_v56, %v12218_v47  ;;  %v17289_v13 = vld [vmem:[#allocation200_spill] sm:$0xff] }
 0x347   : > { %v12782_v8 = vperm.slane %v2349_v2, %v9326_v61  ;;  %17286 = vst [vmem:[#allocation86_spill] sm:$0xff] %v12785_v63  ;;  %v2399_v42 = vsel %vm925_vm5, %v12761_v33, %v2398_v15  ;;  %v12798_v31 = vperm.slane %v2373_v4, %v9326_v61  ;;  %v7726_v24 = vunpack.i.h.bf16 %v12787_v59 }
 0x348   : > { %17284 = vst [vmem:[#allocation28_spill] sm:$0xff] %v12779_v17  ;;  %v7932_v30 = vpack.i.bf16 %v2399_v42, %v2391_v62  ;;  %v2386_v53 = vrot.slane %v12779_v17, 4  ;;  %v7686_v2 = vunpack.i.h.bf16 %v7684_v21  ;;  %v12807_v15 = vperm.slane %v12149_v3, %v8804_v25  ;;  %v17290_v17 = vld [vmem:[#allocation64_spill] sm:$0xff] }
 0x349   : > { %17285 = vst [vmem:[#allocation62_spill] sm:$0xff] %v12782_v8  ;;  %v2394_v26 = vrot.slane %v12782_v8, 4  ;;  %v7646_v47 = vunpack.i.h.bf16 %v12333_v50  ;;  %v7656_v62 = vunpack.i.h.bf16 %v12417_v35  ;;  %v3781_v4 = vrot.slane %v7726_v24, 4 }
 0x34a   : > { %17287 = vst [vmem:[#allocation60_spill] sm:$0xff] %v12798_v31  ;;  %7933 = vrot.lane.b32.xlu1 %v7932_v30, %s8356_s20  ;;  %v2387_v56 = vsel %vm925_vm5, %v12785_v63, %v2386_v53  ;;  %v3784_v51 = vsel %vm925_vm5, %v7726_v24, %v17289_v13  ;;  %v7655_v3 = vunpack.i.l.bf16 %v12417_v35  ;;  %v3993_v8 = vrot.slane %v7686_v2, 4 }
 0x34b   : > { %17288 = vst [vmem:[#allocation84_spill] sm:$0xff] %v12807_v15  ;;  %v2395_v18 = vsel %vm925_vm5, %v12798_v31, %v2394_v26  ;;  %v3792_v39 = vperm.slane %v3784_v51, %v8804_v25  ;;  %v12822_v30 = vsel %vm925_vm5, %v7686_v2, %v17290_v17  ;;  %v7685_v35 = vunpack.i.l.bf16 %v7684_v21  ;;  %v17297_v2 = vld [vmem:[#allocation189_spill] sm:$0xff] }
 0x34c   : > { %v7947_v42 = vpack.i.bf16 %v2395_v18, %v2387_v56  ;;  %17291 = vst [vmem:[#allocation200_spill] sm:$0xff] %v12822_v30  ;;  %v12827_v56 = vpop.permute.xlu2 %7783  ;;  %v17293_v18 = vld [vmem:[#allocation17_spill] sm:$0xff]  ;;  %v12834_v51 = vperm.slane %v12152_v0, %v8804_v25  ;;  %v17298_v53 = vrot.slane %v17297_v2, 4  ;;  %v6546_v21 = vrot.slane %v7656_v62, 4 }
 0x34d   : > { %17292 = vst [vmem:[#allocation64_spill] sm:$0xff] %v12827_v56  ;;  %v17294_v63 = vunpack.i.h.bf16 %v17293_v18  ;;  %v3829_v24 = vrot.slane %v3792_v39, 4  ;;  %v17300_v56 = vld [vmem:[#allocation41_spill] sm:$0xff]  ;;  %v6548_v16 = vrot.slane %v7655_v3, 4  ;;  %v17304_v30 = vrot.slane %v17303_v40, 4  ;;  %v17329_v40 = vld [vmem:[#allocation23_spill] sm:$0xff] }
 0x34e   : > { %7948 = vrot.lane.b32.xlu2 %v7947_v42, %s8357_s22  ;;  %17295 = vst [vmem:[#allocation17_spill] sm:$0xff] %v12834_v51  ;;  %v12842_v26 = vsel %vm925_vm5, %v3792_v39, %v17298_v53  ;;  %v12846_v42 = vperm.slane %v12155_v12, %v8804_v25  ;;  %v1984_v53 = vrot.slane %v7646_v47, 4  ;;  %v7691_v15 = vunpack.i.h.bf16 %v12514_v11 }
 0x34f   : > { %v3782_v13 = vsel %vm925_vm5, %v3781_v4, %v17294_v63  ;;  %17299 = vst [vmem:[#allocation189_spill] sm:$0xff] %v12842_v26  ;;  %v1987_v63 = vsel %vm925_vm5, %v7646_v47, %v17300_v56  ;;  %v17301_v4 = vld [vmem:[#allocation53_spill] sm:$0xff]  ;;  %v12864_v12 = vsel %vm925_vm5, %v3829_v24, %v17297_v2  ;;  %v7645_v56 = vunpack.i.l.bf16 %v12333_v50 }
 0x350   : > { %v12837_v17 = vperm.slane %v3782_v13, %v8804_v25  ;;  %v17302_v0 = vunpack.i.h.bf16 %v17301_v4  ;;  %17306 = vst [vmem:[#allocation53_spill] sm:$0xff] %v12864_v12  ;;  %v3881_v26 = vrot.slane %v7685_v35, 4  ;;  %v17308_v13 = vrot.slane %v17259_v49, 4 }
 0x351   : > { %v17309_v24 = vrot.slane %v17263_v29, 4  ;;  %v17310_v50 = vrot.slane %v12507_v38, 4  ;;  %v7666_v29 = vunpack.i.h.bf16 %v12509_v45 }
 0x352   : > { %17296 = vst [vmem:[#allocation225_spill] sm:$0xff] %v12837_v17  ;;  %v12853_v31 = vsel %vm925_vm5, %v3993_v8, %v17302_v0  ;;  %v12860_v39 = vsel %vm925_vm5, %v12837_v17, %v17304_v30  ;;  %v12869_v8 = vsel %vm925_vm5, %v7685_v35, %v17307_v37  ;;  %v12872_v0 = vperm.slane %v1987_v63, %v8804_v25 }
 0x353   : > { %17305 = vst [vmem:[#allocation41_spill] sm:$0xff] %v12860_v39  ;;  %v1673_v30 = vsel %vm925_vm5, %v17308_v13, %v17257_v19  ;;  %v1685_v47 = vsel %vm925_vm5, %v17309_v24, %v17261_v48  ;;  %v1697_v2 = vsel %vm925_vm5, %v17310_v50, %v12269_v32  ;;  %v6547_v37 = vsel %vm925_vm5, %v6546_v21, %v7655_v3 }
 0x354   : > { %v17311_v35 = vunpack.i.l.bf16 %v17301_v4  ;;  %v12893_v49 = vperm.slane %v1673_v30, %v9326_v61  ;;  %v12896_v19 = vperm.slane %v1685_v47, %v9326_v61  ;;  %v6549_v48 = vsel %vm925_vm5, %v7656_v62, %v6548_v16  ;;  %v17317_v62 = vld [vmem:[#allocation42_spill] sm:$0xff] }
 0x355   : > { %v12901_v38 = vperm.slane %v1697_v2, %v9326_v61  ;;  %v17315_v32 = vrot.slane %v12482_v14, 4  ;;  %v3405_v13 = vrot.slane %v12570_v54, 4  ;;  %v1872_v16 = vrot.slane %v7645_v56, 4  ;;  %v7799_v54 = vpop.permute.xlu2 %7798 }
 0x356   : > { %v12890_v63 = vsel %vm925_vm5, %v3881_v26, %v17311_v35  ;;  %17312 = vst [vmem:[#allocation47_spill] sm:$0xff] %v12893_v49  ;;  %v1722_v21 = vrot.slane %v12893_v49, 4  ;;  %v1730_v4 = vrot.slane %v12896_v19, 4  ;;  %v1875_v45 = vsel %vm925_vm5, %v7645_v56, %v17317_v62  ;;  %v17321_v62 = vld [vmem:[#allocation66_spill] sm:$0xff] }
 0x357   : > { %17313 = vst [vmem:[#allocation226_spill] sm:$0xff] %v12896_v19  ;;  %v1709_v3 = vsel %vm925_vm5, %v17315_v32, %v12249_v27  ;;  %v6553_v30 = vperm.slane %v6547_v37, %v8804_v25  ;;  %v3413_v24 = vrot.slane %v12555_v52, 4  ;;  %v6557_v14 = vperm.slane %v6549_v48, %v8804_v25  ;;  %v17318_v37 = vld [vmem:[#allocation67_spill] sm:$0xff] }
 0x358   : > { %17314 = vst [vmem:[#allocation227_spill] sm:$0xff] %v12901_v38  ;;  %v12908_v26 = vperm.slane %v1709_v3, %v9326_v61  ;;  %v1723_v27 = vsel %vm925_vm5, %v12901_v38, %v1722_v21  ;;  %v3406_v50 = vsel %vm925_vm5, %v3405_v13, %v12546_v34  ;;  %v2436_v2 = vrot.slane %v7666_v29, 4  ;;  %v17320_v52 = vld [vmem:[#allocation79_spill] sm:$0xff] }
 0x359   : > { %v3414_v56 = vsel %vm925_vm5, %v3413_v24, %v12538_v7  ;;  %v17319_v32 = vrot.slane %v17318_v37, 4  ;;  %v17322_v21 = vrot.slane %v17321_v62, 4  ;;  %v17323_v19 = vld [vmem:[#allocation75_spill] sm:$0xff]  ;;  %v17324_v49 = vrot.slane %v12263_v44, 4  ;;  %v12942_v7 = vpop.permute.xlu1 %7738  ;;  %v17325_v24 = vld [vmem:[#allocation188_spill] sm:$0xff] }
 0x35a   : > { %17316 = vst [vmem:[#allocation228_spill] sm:$0xff] %v12908_v26  ;;  %v1731_v47 = vsel %vm925_vm5, %v12908_v26, %v1730_v4  ;;  %v7912_v3 = vpack.i.bf16 %v3414_v56, %v3406_v50  ;;  %v12940_v13 = vperm.slane %v12504_v9, %v9326_v61  ;;  %v7801_v56 = vunpack.i.h.bf16 %v7799_v54 }
 0x35b   : > { %v7937_v35 = vpack.i.bf16 %v1731_v47, %v1723_v27  ;;  %v1787_v48 = vsel %vm925_vm5, %v17320_v52, %v17319_v32  ;;  %v1799_v4 = vsel %vm925_vm5, %v17323_v19, %v17322_v21  ;;  %v1811_v34 = vsel %vm925_vm5, %v12493_v22, %v17324_v49 }
 0x35c   : > { %v17326_v27 = vunpack.i.h.bf16 %v17325_v24  ;;  %v12949_v50 = vperm.slane %v1811_v34, %v9326_v61  ;;  %v7800_v32 = vunpack.i.l.bf16 %v7799_v54  ;;  %v17327_v21 = vunpack.i.l.bf16 %v17325_v24  ;;  %7913 = vrot.lane.b32.xlu0 %v7912_v3, %s8358_s23  ;;  %v12966_v24 = vpop.permute.xlu0 %7698 }
 0x35d   : > { %7938 = vrot.lane.b32.xlu1 %v7937_v35, %s8357_s22  ;;  %v12955_v9 = vperm.slane %v1875_v45, %v8804_v25  ;;  %v12959_v12 = vperm.slane %v1787_v48, %v9326_v61  ;;  %v12963_v35 = vperm.slane %v1799_v4, %v9326_v61  ;;  %v6558_v54 = vrot.slane %v7801_v56, 4 }
 0x35e   : > { %v1985_v47 = vsel %vm925_vm5, %v1984_v53, %v17326_v27  ;;  %v1873_v49 = vsel %vm925_vm5, %v1872_v16, %v17327_v21  ;;  %v1844_v53 = vrot.slane %v12940_v13, 4  ;;  %v1836_v34 = vrot.slane %v12949_v50, 4 }
 0x35f   : > { %v6560_v27 = vrot.slane %v7800_v32, 4  ;;  %v6596_v16 = vrot.slane %v6553_v30, 4  ;;  %v6608_v21 = vrot.slane %v6557_v14, 4  ;;  %v17328_v45 = vunpack.i.h.bf16 %v17249_v60 }
 0x360   : > { %v2439_v48 = vsel %vm925_vm5, %v7666_v29, %v17329_v40  ;;  %v1837_v26 = vsel %vm925_vm5, %v1836_v34, %v12959_v12  ;;  %v1845_v4 = vsel %vm925_vm5, %v1844_v53, %v12963_v35  ;;  %v6559_v38 = vsel %vm925_vm5, %v6558_v54, %v7800_v32  ;;  %v17336_v34 = vld [vmem:[#allocation61_spill] sm:$0xff] }
 0x361   : > { %v2437_v3 = vsel %vm925_vm5, %v2436_v2, %v17328_v45  ;;  %v6561_v17 = vsel %vm925_vm5, %v7801_v56, %v6560_v27  ;;  %v7972_v39 = vpack.i.bf16 %v1845_v4, %v1837_v26  ;;  %v6565_v60 = vperm.slane %v6559_v38, %v8804_v25  ;;  %v17332_v27 = vld [vmem:[#allocation156_spill] sm:$0xff] }
 0x362   : > { %v6569_v2 = vperm.slane %v6561_v17, %v8804_v25  ;;  %v12983_v45 = vperm.slane %v1985_v47, %v8804_v25  ;;  %v12986_v40 = vperm.slane %v1873_v49, %v8804_v25  ;;  %v2443_v29 = vperm.slane %v2437_v3, %v8804_v25 }
 0x363   : > { %v2447_v53 = vperm.slane %v2439_v48, %v8804_v25  ;;  %7973 = vrot.lane.b32.xlu2 %v7972_v39, %s8358_s23  ;;  %v6594_v56 = vrot.slane %v6565_v60, 4  ;;  %v12992_v32 = vsel %vm925_vm5, %v6565_v60, %v6596_v16  ;;  %v4657_v54 = vrot.slane %v7691_v15, 4 }
 0x364   : > { %17330 = vst [vmem:[#allocation42_spill] sm:$0xff] %v12992_v32  ;;  %v6606_v26 = vrot.slane %v6569_v2, 4  ;;  %v12995_v38 = vsel %vm925_vm5, %v6569_v2, %v6608_v21  ;;  %v4660_v39 = vsel %vm925_vm5, %v7691_v15, %v17332_v27  ;;  %v13009_v21 = vpop.permute.xlu1 %7743  ;;  %v7690_v2 = vunpack.i.l.bf16 %v12514_v11  ;;  %v17338_v27 = vld [vmem:[#allocation83_spill] sm:$0xff] }
 0x365   : > { %17331 = vst [vmem:[#allocation67_spill] sm:$0xff] %v12995_v38  ;;  %v13004_v3 = vsel %vm925_vm5, %v6594_v56, %v6553_v30  ;;  %v2484_v60 = vrot.slane %v2447_v53, 4  ;;  %v2472_v17 = vrot.slane %v2443_v29, 4  ;;  %v17337_v15 = vrot.slane %v17336_v34, 4  ;;  %v17339_v56 = vld [vmem:[#allocation59_spill] sm:$0xff]  ;;  %v17347_v38 = vld [vmem:[#allocation212_spill] sm:$0xff] }
 0x366   : > { %17333 = vst [vmem:[#allocation79_spill] sm:$0xff] %v13004_v3  ;;  %v13007_v16 = vsel %vm925_vm5, %v6606_v26, %v6557_v14  ;;  %v17340_v14 = vrot.slane %v17339_v56, 4  ;;  %v17341_v26 = vld [vmem:[#allocation82_spill] sm:$0xff]  ;;  %v13025_v48 = vperm.slane %v12455_v10, %v9326_v61  ;;  %v13029_v11 = vperm.slane %v12458_v58, %v9326_v61 }
 0x367   : > { %17334 = vst [vmem:[#allocation66_spill] sm:$0xff] %v13007_v16  ;;  %v2451_v30 = vsel %vm925_vm5, %v17338_v27, %v17337_v15  ;;  %v13033_v4 = vperm.slane %v4660_v39, %v8804_v25  ;;  %v13035_v16 = vpop.permute.xlu0 %7733  ;;  %v13039_v15 = vperm.slane %v12485_v55, %v9326_v61  ;;  %v4545_v47 = vrot.slane %v7690_v2, 4 }
 0x368   : > { %17335 = vst [vmem:[#allocation75_spill] sm:$0xff] %v13009_v21  ;;  %v2463_v49 = vsel %vm925_vm5, %v17341_v26, %v17340_v14  ;;  %v17345_v14 = vld [vmem:[#allocation166_spill] sm:$0xff]  ;;  %v13045_v21 = vperm.slane %v2451_v30, %v9326_v61  ;;  %v7725_v39 = vunpack.i.l.bf16 %v12787_v59  ;;  %v17348_v32 = vrot.slane %v17347_v38, 4 }
 0x369   : > { %17342 = vst [vmem:[#allocation188_spill] sm:$0xff] %v13025_v48  ;;  %v17346_v3 = vunpack.i.h.bf16 %v17345_v14  ;;  %v13048_v58 = vperm.slane %v2463_v49, %v9326_v61  ;;  %v17349_v48 = vld [vmem:[#allocation210_spill] sm:$0xff]  ;;  %v1726_v59 = vrot.slane %v12711_v6, 4  ;;  %v1734_v30 = vrot.slane %v12714_v23, 4 }
 0x36a   : > { %17343 = vst [vmem:[#allocation23_spill] sm:$0xff] %v13029_v11  ;;  %v2475_v11 = vsel %vm925_vm5, %v2443_v29, %v17348_v32  ;;  %v17350_v55 = vrot.slane %v17349_v48, 4  ;;  %v2502_v49 = vrot.slane %v13045_v21, 4  ;;  %v17351_v29 = vrot.slane %v17338_v27, 4 }
 0x36b   : > { %17344 = vst [vmem:[#allocation156_spill] sm:$0xff] %v13033_v4  ;;  %v4658_v10 = vsel %vm925_vm5, %v4657_v54, %v17346_v3  ;;  %v13058_v51 = vperm.slane %v2475_v11, %v9326_v61  ;;  %v2510_v3 = vrot.slane %v13048_v58, 4 }
 0x36c   : > { %v2487_v5 = vsel %vm925_vm5, %v2447_v53, %v17350_v55  ;;  %v2449_v32 = vsel %vm925_vm5, %v17351_v29, %v17336_v34  ;;  %v17352_v53 = vrot.slane %v17341_v26, 4  ;;  %v1727_v34 = vsel %vm925_vm5, %v12696_v28, %v1726_v59  ;;  %v17355_v29 = vld [vmem:[#allocation70_spill] sm:$0xff] }
 0x36d   : > { %v13061_v54 = vperm.slane %v2487_v5, %v9326_v61  ;;  %v2503_v5 = vsel %vm925_vm5, %v13058_v51, %v2502_v49  ;;  %v13080_v6 = vperm.slane %v2449_v32, %v9326_v61  ;;  %v1735_v26 = vsel %vm925_vm5, %v17355_v29, %v1734_v30 }
 0x36e   : > { %v2461_v11 = vsel %vm925_vm5, %v17352_v53, %v17339_v56  ;;  %v2473_v56 = vsel %vm925_vm5, %v2472_v17, %v17347_v38  ;;  %v7927_v49 = vpack.i.bf16 %v1735_v26, %v1727_v34  ;;  %v13104_v59 = vperm.slane %v4658_v10, %v8804_v25  ;;  %v13117_v10 = vpop.permute.xlu2 %7813 }
 0x36f   : > { %v2511_v55 = vsel %vm925_vm5, %v13061_v54, %v2510_v3  ;;  %17353 = vst [vmem:[#allocation61_spill] sm:$0xff] %v13080_v6  ;;  %v13083_v23 = vperm.slane %v2461_v11, %v9326_v61  ;;  %v13092_v53 = vperm.slane %v2473_v56, %v9326_v61  ;;  %v2485_v3 = vsel %vm925_vm5, %v2484_v60, %v17349_v48  ;;  %v13097_v11 = vpop.permute.xlu1 %7763  ;;  %v17361_v60 = vld [vmem:[#allocation206_spill] sm:$0xff] }
 0x370   : > { %v7962_v27 = vpack.i.bf16 %v2511_v55, %v2503_v5  ;;  %v2498_v32 = vrot.slane %v13080_v6, 4  ;;  %17357 = vst [vmem:[#allocation82_spill] sm:$0xff] %v13097_v11  ;;  %v17358_v5 = vld [vmem:[#allocation223_spill] sm:$0xff]  ;;  %v13108_v38 = vperm.slane %v2485_v3, %v9326_v61  ;;  %v4548_v30 = vsel %vm925_vm5, %v7690_v2, %v17361_v60  ;;  %7928 = vrot.lane.b32.xlu0 %v7927_v49, %s8356_s20  ;;  %v13126_v2 = vpop.permute.xlu0 %7748  ;;  %v17392_v6 = vld [vmem:[#allocation98_spill] sm:$0xff]  ;;  %v17406_v11 = vld [vmem:[#allocation73_spill] sm:$0xff] }
 0x371   : > { %17354 = vst [vmem:[#allocation83_spill] sm:$0xff] %v13083_v23  ;;  %v13101_v28 = vperm.slane %v17358_v5, %v9326_v61  ;;  %v2506_v17 = vrot.slane %v13083_v23, 4  ;;  %v3669_v55 = vrot.slane %v7725_v39, 4  ;;  %v7736_v56 = vunpack.i.h.bf16 %v13035_v16 }
 0x372   : > { %17356 = vst [vmem:[#allocation59_spill] sm:$0xff] %v13092_v53  ;;  %7963 = vrot.lane.b32.xlu1 %v7962_v27, %s8356_s20  ;;  %v2499_v34 = vsel %vm925_vm5, %v13092_v53, %v2498_v32  ;;  %v17363_v27 = vunpack.i.l.bf16 %v17345_v14  ;;  %v7735_v3 = vunpack.i.l.bf16 %v13035_v16  ;;  %v17365_v49 = vrot.slane %v17320_v52, 4 }
 0x373   : > { %17359 = vst [vmem:[#allocation166_spill] sm:$0xff] %v13104_v59  ;;  %v2507_v26 = vsel %vm925_vm5, %v13108_v38, %v2506_v17  ;;  %v17366_v14 = vrot.slane %v17323_v19, 4  ;;  %v17367_v17 = vrot.slane %v12493_v22, 4  ;;  %v13141_v16 = vperm.slane %v4548_v30, %v8804_v25  ;;  %v17373_v30 = vld [vmem:[#allocation183_spill] sm:$0xff] }
 0x374   : > { %17360 = vst [vmem:[#allocation212_spill] sm:$0xff] %v13108_v38  ;;  %v4546_v29 = vsel %vm925_vm5, %v4545_v47, %v17363_v27  ;;  %v7977_v5 = vpack.i.bf16 %v2507_v26, %v2499_v34  ;;  %v1785_v32 = vsel %vm925_vm5, %v17365_v49, %v17318_v37  ;;  %v5782_v27 = vrot.slane %v7736_v56, 4  ;;  %v17369_v34 = vld [vmem:[#allocation26_spill] sm:$0xff] }
 0x375   : > { %17362 = vst [vmem:[#allocation210_spill] sm:$0xff] %v13117_v10  ;;  %v1797_v47 = vsel %vm925_vm5, %v17366_v14, %v17321_v62  ;;  %v1809_v60 = vsel %vm925_vm5, %v17367_v17, %v12263_v44  ;;  %v5785_v26 = vsel %vm925_vm5, %v7736_v56, %v17369_v34  ;;  %v5670_v52 = vrot.slane %v7735_v3, 4  ;;  %v17378_v17 = vld [vmem:[#allocation221_spill] sm:$0xff] }
 0x376   : > { %17364 = vst [vmem:[#allocation70_spill] sm:$0xff] %v13126_v2  ;;  %v13146_v37 = vperm.slane %v4546_v29, %v8804_v25  ;;  %v17371_v19 = vunpack.i.l.bf16 %v17293_v18  ;;  %7978 = vrot.lane.b32.xlu2 %v7977_v5, %s8357_s22  ;;  %v5793_v22 = vperm.slane %v5785_v26, %v8804_v25  ;;  %v13154_v44 = vperm.slane %v1785_v32, %v9326_v61  ;;  %v17377_v18 = vld [vmem:[#allocation215_spill] sm:$0xff]  ;;  %v17380_v34 = vld [vmem:[#allocation201_spill] sm:$0xff]  ;;  %v13220_v53 = vpop.permute.xlu2 %7828 }
 0x377   : > { %17368 = vst [vmem:[#allocation223_spill] sm:$0xff] %v13141_v16  ;;  %v17374_v49 = vunpack.i.h.bf16 %v17373_v30  ;;  %v13160_v56 = vperm.slane %v1797_v47, %v9326_v61  ;;  %v13163_v29 = vperm.slane %v1809_v60, %v9326_v61  ;;  %v3672_v26 = vsel %vm925_vm5, %v7725_v39, %v17380_v34 }
 0x378   : > { %17370 = vst [vmem:[#allocation206_spill] sm:$0xff] %v13146_v37  ;;  %v3670_v62 = vsel %vm925_vm5, %v3669_v55, %v17371_v19  ;;  %v17379_v55 = vrot.slane %v17378_v17, 4  ;;  %v5830_v19 = vrot.slane %v5793_v22, 4  ;;  %v1834_v39 = vrot.slane %v13154_v44, 4  ;;  %v13235_v10 = vpop.permute.xlu0 %7758 }
 0x379   : > { %17372 = vst [vmem:[#allocation26_spill] sm:$0xff] %v13154_v44  ;;  %v5783_v14 = vsel %vm925_vm5, %v5782_v27, %v17374_v49  ;;  %v17382_v27 = vrot.slane %v12653_v36, 4  ;;  %v13180_v60 = vperm.slane %v3670_v62, %v8804_v25  ;;  %v17384_v49 = vunpack.i.l.bf16 %v17373_v30 }
 0x37a   : > { %17375 = vst [vmem:[#allocation183_spill] sm:$0xff] %v13160_v56  ;;  %v1821_v5 = vsel %vm925_vm5, %v17379_v55, %v17377_v18  ;;  %v13172_v32 = vperm.slane %v5783_v14, %v8804_v25  ;;  %v17386_v14 = vld [vmem:[#allocation12_spill] sm:$0xff]  ;;  %v17387_v48 = vrot.slane %v12719_v1, 4  ;;  %v13199_v62 = vsel %vm925_vm5, %v5830_v19, %v12653_v36  ;;  %v17390_v19 = vld [vmem:[#allocation91_spill] sm:$0xff] }
 0x37b   : > { %17376 = vst [vmem:[#allocation229_spill] sm:$0xff] %v13163_v29  ;;  %v13177_v47 = vsel %vm925_vm5, %v5793_v22, %v17382_v27  ;;  %v5671_v17 = vsel %vm925_vm5, %v5670_v52, %v17384_v49  ;;  %v13186_v18 = vperm.slane %v1821_v5, %v9326_v61  ;;  %v7706_v55 = vunpack.i.h.bf16 %v17386_v14  ;;  %v13201_v52 = vpop.permute.xlu1 %7778  ;;  %v17389_v5 = vld [vmem:[#allocation168_spill] sm:$0xff] }
 0x37c   : > { %17381 = vst [vmem:[#allocation215_spill] sm:$0xff] %v13172_v32  ;;  %v7705_v34 = vunpack.i.l.bf16 %v17386_v14  ;;  %v13195_v22 = vsel %vm925_vm5, %v13172_v32, %v17387_v48  ;;  %v13204_v30 = vperm.slane %v3672_v26, %v8804_v25  ;;  %v5673_v27 = vsel %vm925_vm5, %v7735_v3, %v17389_v5  ;;  %v17394_v5 = vld [vmem:[#allocation89_spill] sm:$0xff] }
 0x37d   : > { %17383 = vst [vmem:[#allocation221_spill] sm:$0xff] %v13177_v47  ;;  %v1835_v49 = vsel %vm925_vm5, %v13163_v29, %v1834_v39  ;;  %v1842_v14 = vrot.slane %v13160_v56, 4  ;;  %v13212_v48 = vperm.slane %v5671_v17, %v8804_v25  ;;  %v2388_v44 = vrot.slane %v12758_v43, 4  ;;  %v17396_v56 = vld [vmem:[#allocation94_spill] sm:$0xff]  ;;  %v17397_v29 = vld [vmem:[#allocation205_spill] sm:$0xff] }
 0x37e   : > { %17385 = vst [vmem:[#allocation201_spill] sm:$0xff] %v13186_v18  ;;  %v2396_v36 = vrot.slane %v12761_v33, 4  ;;  %v17391_v23 = vrot.slane %v17390_v19, 4  ;;  %v17395_v17 = vrot.slane %v17394_v5, 4  ;;  %v17398_v33 = vrot.slane %v17397_v29, 4  ;;  %v13311_v59 = vpop.permute.xlu2 %7833 }
 0x37f   : > { %17388 = vst [vmem:[#allocation12_spill] sm:$0xff] %v13199_v62  ;;  %v1843_v3 = vsel %vm925_vm5, %v13186_v18, %v1842_v14  ;;  %v17408_v62 = vld [vmem:[#allocation122_spill] sm:$0xff]  ;;  %v7700_v47 = vunpack.i.l.bf16 %v12966_v24 }
 0x380   : > { %v3684_v26 = vsel %vm925_vm5, %v17392_v6, %v17391_v23  ;;  %17393 = vst [vmem:[#allocation168_spill] sm:$0xff] %v13220_v53  ;;  %v3696_v43 = vsel %vm925_vm5, %v17396_v56, %v17395_v17  ;;  %v3708_v38 = vsel %vm925_vm5, %v13180_v60, %v17398_v33  ;;  %v7967_v23 = vpack.i.bf16 %v1843_v3, %v1835_v49  ;;  %v17400_v17 = vld [vmem:[#allocation203_spill] sm:$0xff] }
 0x381   : > { %v13225_v39 = vperm.slane %v3684_v26, %v9326_v61  ;;  %17399 = vst [vmem:[#allocation91_spill] sm:$0xff] %v13235_v10  ;;  %v2389_v53 = vsel %vm925_vm5, %v2388_v44, %v12736_v41  ;;  %v2397_v14 = vsel %vm925_vm5, %v2396_v36, %v12747_v57  ;;  %v13242_v26 = vperm.slane %v3696_v43, %v9326_v61  ;;  %v17403_v10 = vld [vmem:[#allocation72_spill] sm:$0xff] }
 0x382   : > { %v7952_v5 = vpack.i.bf16 %v2397_v14, %v2389_v53  ;;  %v13245_v56 = vperm.slane %v3708_v38, %v9326_v61  ;;  %v17401_v18 = vrot.slane %v17400_v17, 4  ;;  %v13254_v41 = vperm.slane %v5673_v27, %v8804_v25  ;;  %7968 = vrot.lane.b32.xlu1 %v7967_v23, %s8357_s22  ;;  %v17405_v38 = vld [vmem:[#allocation127_spill] sm:$0xff]  ;;  %17416 = vst [vmem:[#allocation89_spill] sm:$0xff] %v13311_v59 }
 0x383   : > { %v3735_v49 = vrot.slane %v13225_v39, 4  ;;  %v3743_v53 = vrot.slane %v13242_v26, 4  ;;  %v6658_v14 = vrot.slane %v7706_v55, 4  ;;  %v6660_v23 = vrot.slane %v7705_v34, 4 }
 0x384   : > { %v3720_v33 = vsel %vm925_vm5, %v13204_v30, %v17401_v18  ;;  %7953 = vrot.lane.b32.xlu0 %v7952_v5, %s8358_s23  ;;  %v17404_v2 = vrot.slane %v17403_v10, 4  ;;  %v17407_v18 = vrot.slane %v17406_v11, 4  ;;  %v6336_v4 = vrot.slane %v7700_v47, 4 }
 0x385   : > { %v13258_v57 = vperm.slane %v3720_v33, %v9326_v61  ;;  %v3736_v43 = vsel %vm925_vm5, %v13245_v56, %v3735_v49  ;;  %v17409_v49 = vrot.slane %v12791_v20, 4  ;;  %v6659_v37 = vsel %vm925_vm5, %v6658_v14, %v7705_v34  ;;  %v13321_v34 = vpop.permute.xlu0 %7773 }
 0x386   : > { %v5685_v44 = vsel %vm925_vm5, %v17405_v38, %v17404_v2  ;;  %v5697_v5 = vsel %vm925_vm5, %v17408_v62, %v17407_v18  ;;  %v17410_v2 = vld [vmem:[#allocation165_spill] sm:$0xff]  ;;  %v13295_v62 = vpop.permute.xlu1 %7793 }
 0x387   : > { %v3744_v33 = vsel %vm925_vm5, %v13258_v57, %v3743_v53  ;;  %v5709_v27 = vsel %vm925_vm5, %v13212_v48, %v17409_v49  ;;  %v13283_v36 = vperm.slane %v5685_v44, %v9326_v61  ;;  %v13286_v53 = vperm.slane %v5697_v5, %v9326_v61  ;;  %17412 = vst [vmem:[#allocation98_spill] sm:$0xff] %v13295_v62  ;;  %v17413_v49 = vld [vmem:[#allocation93_spill] sm:$0xff] }
 0x388   : > { %v7987_v3 = vpack.i.bf16 %v3744_v33, %v3736_v43  ;;  %v13289_v43 = vperm.slane %v5709_v27, %v9326_v61  ;;  %v17411_v33 = vrot.slane %v17410_v2, 4  ;;  %v1838_v44 = vrot.slane %v12959_v12, 4  ;;  %v17415_v27 = vld [vmem:[#allocation119_spill] sm:$0xff] }
 0x389   : > { %v1846_v5 = vrot.slane %v12963_v35, 4  ;;  %v17414_v1 = vrot.slane %v17413_v49, 4  ;;  %v5736_v62 = vrot.slane %v13283_v36, 4 }
 0x38a   : > { %v5721_v11 = vsel %vm925_vm5, %v13254_v41, %v17411_v33  ;;  %7988 = vrot.lane.b32.xlu2 %v7987_v3, %s8356_s20  ;;  %v7701_v33 = vunpack.i.h.bf16 %v12966_v24  ;;  %v5744_v3 = vrot.slane %v13286_v53, 4  ;;  %v1839_v12 = vsel %vm925_vm5, %v12949_v50, %v1838_v44  ;;  %v17418_v44 = vld [vmem:[#allocation124_spill] sm:$0xff] }
 0x38b   : > { %v13299_v18 = vperm.slane %v5721_v11, %v9326_v61  ;;  %v4348_v32 = vsel %vm925_vm5, %v17415_v27, %v17414_v1  ;;  %v6661_v11 = vsel %vm925_vm5, %v7706_v55, %v6660_v23  ;;  %v1847_v35 = vsel %vm925_vm5, %v12940_v13, %v1846_v5 }
 0x38c   : > { %v13319_v1 = vperm.slane %v4348_v32, %v9326_v61  ;;  %v5737_v14 = vsel %vm925_vm5, %v13289_v43, %v5736_v62  ;;  %v7957_v59 = vpack.i.bf16 %v1847_v35, %v1839_v12  ;;  %v4397_v55 = vrot.slane %v13101_v28, 4 }
 0x38d   : > { %v5745_v16 = vsel %vm925_vm5, %v13299_v18, %v5744_v3  ;;  %v13331_v13 = vperm.slane %v17418_v44, %v9326_v61  ;;  %v4405_v32 = vrot.slane %v13039_v15, 4  ;;  %v6334_v5 = vrot.slane %v7701_v33, 4 }
 0x38e   : > { %v8002_v50 = vpack.i.bf16 %v5745_v16, %v5737_v14  ;;  %v3733_v62 = vrot.slane %v13245_v56, 4  ;;  %7958 = vrot.lane.b32.xlu0 %v7957_v59, %s8356_s20  ;;  %v4398_v3 = vsel %vm925_vm5, %v4397_v55, %v13319_v1  ;;  %v13341_v16 = vperm.slane %v6659_v37, %v8804_v25  ;;  %v17420_v59 = vld [vmem:[#allocation200_spill] sm:$0xff] }
 0x38f   : > { %v13344_v35 = vperm.slane %v6661_v11, %v8804_v25  ;;  %v4406_v24 = vsel %vm925_vm5, %v4405_v32, %v13331_v13  ;;  %v13351_v56 = vperm.slane %v12853_v31, %v8804_v25  ;;  %v13355_v14 = vperm.slane %v17420_v59, %v8804_v25 }
 0x390   : > { %8003 = vrot.lane.b32.xlu1 %v8002_v50, %s8356_s20  ;;  %v3741_v55 = vrot.slane %v13258_v57, 4  ;;  %v8022_v37 = vpack.i.bf16 %v4406_v24, %v4398_v3  ;;  %v13360_v11 = vperm.slane %v12890_v63, %v8804_v25  ;;  %v13364_v50 = vperm.slane %v12869_v8, %v8804_v25  ;;  %v13373_v63 = vpop.permute.xlu1 %7803  ;;  %v13391_v8 = vpop.permute.xlu0 %7788 }
 0x391   : > { %17419 = vst [vmem:[#allocation94_spill] sm:$0xff] %v13351_v56  ;;  %v5718_v44 = vrot.slane %v13254_v41, 4  ;;  %v2500_v31 = vrot.slane %v13058_v51, 4  ;;  %v6335_v32 = vsel %vm925_vm5, %v6334_v5, %v7700_v47  ;;  %v3734_v57 = vsel %vm925_vm5, %v3733_v62, %v13225_v39  ;;  %v7849_v39 = vpop.permute.xlu2 %7848 }
 0x392   : > { %17421 = vst [vmem:[#allocation205_spill] sm:$0xff] %v13360_v11  ;;  %8023 = vrot.lane.b32.xlu2 %v8022_v37, %s8358_s23  ;;  %v2508_v3 = vrot.slane %v13061_v54, 4  ;;  %v5706_v51 = vrot.slane %v13212_v48, 4  ;;  %v4055_v47 = vrot.slane %v13355_v14, 4  ;;  %v3742_v37 = vsel %vm925_vm5, %v3741_v55, %v13242_v26 }
 0x393   : > { %17422 = vst [vmem:[#allocation203_spill] sm:$0xff] %v13373_v63  ;;  %v2501_v54 = vsel %vm925_vm5, %v2500_v31, %v13045_v21  ;;  %v4043_v62 = vrot.slane %v13351_v56, 4  ;;  %v13387_v12 = vperm.slane %v6335_v32, %v8804_v25  ;;  %v5719_v41 = vsel %vm925_vm5, %v5718_v44, %v17410_v2  ;;  %v17426_v44 = vld [vmem:[#allocation48_spill] sm:$0xff] }
 0x394   : > { %v8012_v48 = vpack.i.bf16 %v3742_v37, %v3734_v57  ;;  %17424 = vst [vmem:[#allocation72_spill] sm:$0xff] %v13391_v8  ;;  %v3931_v24 = vrot.slane %v13360_v11, 4  ;;  %v3943_v5 = vrot.slane %v13364_v50, 4  ;;  %v6337_v26 = vsel %vm925_vm5, %v7701_v33, %v6336_v4  ;;  %v17435_v8 = vld [vmem:[#allocation21_spill] sm:$0xff]  ;;  %v17489_v56 = vld [vmem:[#allocation104_spill] sm:$0xff] }
 0x395   : > { %v2509_v21 = vsel %vm925_vm5, %v2508_v3, %v13048_v58  ;;  %v17425_v31 = vrot.slane %v17405_v38, 4  ;;  %v13405_v32 = vperm.slane %v17426_v44, %v9326_v61  ;;  %v5707_v57 = vsel %vm925_vm5, %v5706_v51, %v12791_v20 }
 0x396   : > { %v7982_v55 = vpack.i.bf16 %v2509_v21, %v2501_v54  ;;  %v13413_v58 = vperm.slane %v5707_v57, %v9326_v61  ;;  %v13416_v33 = vperm.slane %v5719_v41, %v9326_v61  ;;  %v7851_v3 = vunpack.i.h.bf16 %v7849_v39 }
 0x397   : > { %v5683_v2 = vsel %vm925_vm5, %v17425_v31, %v17403_v10  ;;  %17427 = vst [vmem:[#allocation127_spill] sm:$0xff] %v13405_v32  ;;  %v13419_v38 = vperm.slane %v6337_v26, %v8804_v25  ;;  %v17431_v10 = vld [vmem:[#allocation220_spill] sm:$0xff]  ;;  %v5740_v20 = vrot.slane %v13405_v32, 4  ;;  %v7850_v51 = vunpack.i.l.bf16 %v7849_v39  ;;  %v17433_v31 = vld [vmem:[#allocation195_spill] sm:$0xff] }
 0x398   : > { %8013 = vrot.lane.b32.xlu1 %v8012_v48, %s8358_s23  ;;  %v13410_v4 = vperm.slane %v5683_v2, %v9326_v61  ;;  %17429 = vst [vmem:[#allocation122_spill] sm:$0xff] %v13413_v58  ;;  %v17432_v37 = vrot.slane %v17431_v10, 4  ;;  %7983 = vrot.lane.b32.xlu0 %v7982_v55, %s8358_s23  ;;  %v4005_v21 = vrot.slane %v7851_v3, 4  ;;  %v4008_v41 = vsel %vm925_vm5, %v7851_v3, %v17433_v31  ;;  %v13442_v23 = vpop.permute.xlu1 %7823 }
 0x399   : > { %17430 = vst [vmem:[#allocation165_spill] sm:$0xff] %v13416_v33  ;;  %v7776_v2 = vunpack.i.h.bf16 %v13321_v34  ;;  %v5741_v26 = vsel %vm925_vm5, %v13416_v33, %v5740_v20  ;;  %v4016_v44 = vperm.slane %v4008_v41, %v8804_v25  ;;  %v3893_v57 = vrot.slane %v7850_v51, 4  ;;  %v17460_v33 = vld [vmem:[#allocation224_spill] sm:$0xff] }
 0x39a   : > { %17428 = vst [vmem:[#allocation73_spill] sm:$0xff] %v13410_v4  ;;  %v6373_v54 = vsel %vm925_vm5, %v13387_v12, %v17432_v37  ;;  %v5732_v48 = vrot.slane %v13410_v4, 4  ;;  %v17434_v37 = vld [vmem:[#allocation222_spill] sm:$0xff]  ;;  %v17436_v63 = vunpack.i.h.bf16 %v17435_v8  ;;  %v17438_v4 = vunpack.i.l.bf16 %v17435_v8 }
 0x39b   : > { %v3896_v55 = vsel %vm925_vm5, %v7850_v51, %v17434_v37  ;;  %v1996_v31 = vrot.slane %v7776_v2, 4  ;;  %17437 = vst [vmem:[#allocation93_spill] sm:$0xff] %v13442_v23  ;;  %v4053_v41 = vrot.slane %v4016_v44, 4  ;;  %v17457_v23 = vrot.slane %v12872_v0, 4 }
 0x39c   : > { %v5733_v39 = vsel %vm925_vm5, %v13413_v58, %v5732_v48  ;;  %v4006_v59 = vsel %vm925_vm5, %v4005_v21, %v17436_v63  ;;  %v3904_v3 = vperm.slane %v3896_v55, %v8804_v25  ;;  %v3894_v51 = vsel %vm925_vm5, %v3893_v57, %v17438_v4  ;;  %v13459_v55 = vpop.permute.xlu2 %7878 }
 0x39d   : > { %v8037_v32 = vpack.i.bf16 %v5741_v26, %v5733_v39  ;;  %v13445_v20 = vperm.slane %v4006_v59, %v8804_v25  ;;  %v13451_v48 = vperm.slane %v3894_v51, %v8804_v25  ;;  %v13457_v21 = vsel %vm925_vm5, %v4016_v44, %v4055_v47  ;;  %17439 = vst [vmem:[#allocation119_spill] sm:$0xff] %v13459_v55  ;;  %v17440_v26 = vld [vmem:[#allocation96_spill] sm:$0xff]  ;;  %v13477_v47 = vpop.permute.xlu0 %7808 }
 0x39e   : > { %v3941_v37 = vrot.slane %v3904_v3, 4  ;;  %v13454_v63 = vsel %vm925_vm5, %v3904_v3, %v3943_v5  ;;  %v13462_v59 = vperm.slane %v6373_v54, %v9326_v61  ;;  %v17441_v39 = vrot.slane %v17440_v26, 4  ;;  %17444 = vst [vmem:[#allocation48_spill] sm:$0xff] %v13477_v47 }
 0x39f   : > { %8038 = vrot.lane.b32.xlu2 %v8037_v32, %s8357_s22  ;;  %v13471_v4 = vsel %vm925_vm5, %v13445_v20, %v4043_v62  ;;  %v13475_v5 = vsel %vm925_vm5, %v4053_v41, %v13355_v14  ;;  %v5734_v54 = vrot.slane %v13289_v43, 4  ;;  %v7780_v44 = vunpack.i.l.bf16 %v13201_v52  ;;  %v17446_v62 = vld [vmem:[#allocation49_spill] sm:$0xff] }
 0x3a0   : > { %v6385_v8 = vsel %vm925_vm5, %v13419_v38, %v17441_v39  ;;  %17442 = vst [vmem:[#allocation124_spill] sm:$0xff] %v13471_v4  ;;  %v13483_v57 = vsel %vm925_vm5, %v13451_v48, %v3931_v24  ;;  %v13487_v32 = vsel %vm925_vm5, %v3941_v37, %v13364_v50  ;;  %v17447_v3 = vunpack.i.h.bf16 %v17446_v62  ;;  %v17448_v14 = vld [vmem:[#allocation177_spill] sm:$0xff] }
 0x3a1   : > { %17443 = vst [vmem:[#allocation200_spill] sm:$0xff] %v13475_v5  ;;  %v1999_v41 = vsel %vm925_vm5, %v7776_v2, %v17448_v14  ;;  %v7775_v39 = vunpack.i.l.bf16 %v13321_v34  ;;  %v17449_v43 = vrot.slane %v17415_v27, 4  ;;  %v5742_v24 = vrot.slane %v13299_v18, 4  ;;  %v17452_v34 = vld [vmem:[#allocation125_spill] sm:$0xff] }
 0x3a2   : > { %17445 = vst [vmem:[#allocation220_spill] sm:$0xff] %v13487_v32  ;;  %v1997_v51 = vsel %vm925_vm5, %v1996_v31, %v17447_v3  ;;  %v2007_v50 = vperm.slane %v1999_v41, %v8804_v25  ;;  %v17451_v3 = vld [vmem:[#allocation33_spill] sm:$0xff]  ;;  %v13511_v14 = vperm.slane %v17452_v34, %v9326_v61  ;;  %v13536_v58 = vperm.slane %v17460_v33, %v9326_v61 }
 0x3a3   : > { %v4346_v55 = vsel %vm925_vm5, %v17449_v43, %v17413_v49  ;;  %v13501_v47 = vperm.slane %v1997_v51, %v8804_v25  ;;  %v1884_v31 = vrot.slane %v7775_v39, 4  ;;  %v1887_v2 = vsel %vm925_vm5, %v7775_v39, %v17451_v3  ;;  %v17454_v27 = vld [vmem:[#allocation45_spill] sm:$0xff] }
 0x3a4   : > { %v13505_v37 = vperm.slane %v4346_v55, %v9326_v61  ;;  %17453 = vst [vmem:[#allocation222_spill] sm:$0xff] %v13511_v14  ;;  %v17455_v49 = vrot.slane %v12475_v46, 4  ;;  %v2548_v51 = vrot.slane %v7780_v44, 4  ;;  %v17456_v43 = vrot.slane %v12983_v45, 4  ;;  %v17458_v3 = vld [vmem:[#allocation213_spill] sm:$0xff] }
 0x3a5   : > { %v2044_v41 = vrot.slane %v2007_v50, 4  ;;  %v13526_v39 = vsel %vm925_vm5, %v2007_v50, %v17457_v23  ;;  %v2551_v34 = vsel %vm925_vm5, %v7780_v44, %v17458_v3  ;;  %v17459_v46 = vunpack.i.l.bf16 %v17446_v62  ;;  %17461 = vst [vmem:[#allocation21_spill] sm:$0xff] %v13536_v58  ;;  %v13549_v62 = vpop.permute.xlu1 %7843  ;;  %v17490_v32 = vld [vmem:[#allocation117_spill] sm:$0xff] }
 0x3a6   : > { %17450 = vst [vmem:[#allocation195_spill] sm:$0xff] %v13505_v37  ;;  %v4370_v18 = vsel %vm925_vm5, %v17455_v49, %v17454_v27  ;;  %v13521_v55 = vsel %vm925_vm5, %v13501_v47, %v17456_v43  ;;  %v1895_v49 = vperm.slane %v1887_v2, %v8804_v25  ;;  %v4395_v44 = vrot.slane %v13505_v37, 4 }
 0x3a7   : > { %v1885_v27 = vsel %vm925_vm5, %v1884_v31, %v17459_v46  ;;  %v13540_v43 = vsel %vm925_vm5, %v2044_v41, %v12872_v0  ;;  %v13546_v50 = vperm.slane %v4370_v18, %v9326_v61  ;;  %17463 = vst [vmem:[#allocation49_spill] sm:$0xff] %v13549_v62  ;;  %v17464_v2 = vrot.slane %v12955_v9, 4  ;;  %v17465_v41 = vld [vmem:[#allocation173_spill] sm:$0xff] }
 0x3a8   : > { %v13543_v23 = vperm.slane %v1885_v27, %v8804_v25  ;;  %v1932_v31 = vrot.slane %v1895_v49, 4  ;;  %v4403_v3 = vrot.slane %v13511_v14, 4  ;;  %v4399_v0 = vrot.slane %v13319_v1, 4 }
 0x3a9   : > { %17462 = vst [vmem:[#allocation96_spill] sm:$0xff] %v13546_v50  ;;  %v1935_v33 = vsel %vm925_vm5, %v1895_v49, %v17464_v2  ;;  %v17466_v46 = vunpack.i.l.bf16 %v17465_v41  ;;  %v13560_v18 = vperm.slane %v2551_v34, %v8804_v25  ;;  %v17467_v37 = vrot.slane %v12986_v40, 4  ;;  %v13568_v49 = vpop.permute.xlu2 %7893 }
 0x3aa   : > { %v4396_v5 = vsel %vm925_vm5, %v13546_v50, %v4395_v44  ;;  %17468 = vst [vmem:[#allocation177_spill] sm:$0xff] %v13568_v49  ;;  %v6393_v2 = vperm.slane %v6385_v8, %v9326_v61  ;;  %v13573_v1 = vsel %vm925_vm5, %v1932_v31, %v12955_v9  ;;  %v4400_v34 = vsel %vm925_vm5, %v13101_v28, %v4399_v0  ;;  %v17472_v0 = vld [vmem:[#allocation217_spill] sm:$0xff] }
 0x3ab   : > { %v2549_v27 = vsel %vm925_vm5, %v2548_v51, %v17466_v46  ;;  %v1923_v62 = vsel %vm925_vm5, %v13543_v23, %v17467_v37  ;;  %v4404_v51 = vsel %vm925_vm5, %v13536_v58, %v4403_v3  ;;  %v13579_v46 = vpop.permute.xlu0 %7818  ;;  %v4407_v14 = vrot.slane %v13331_v13, 4 }
 0x3ac   : > { %17469 = vst [vmem:[#allocation33_spill] sm:$0xff] %v13579_v46  ;;  %v8017_v37 = vpack.i.bf16 %v4404_v51, %v4396_v5  ;;  %v5735_v44 = vsel %vm925_vm5, %v5734_v54, %v13283_v36  ;;  %v5743_v8 = vsel %vm925_vm5, %v5742_v24, %v13286_v53  ;;  %v3705_v31 = vrot.slane %v13180_v60, 4  ;;  %v17474_v24 = vld [vmem:[#allocation158_spill] sm:$0xff]  ;;  %v17477_v51 = vld [vmem:[#allocation159_spill] sm:$0xff]  ;;  %v17485_v46 = vld [vmem:[#allocation153_spill] sm:$0xff] }
 0x3ad   : > { %v13589_v3 = vperm.slane %v2549_v27, %v8804_v25  ;;  %v8042_v58 = vpack.i.bf16 %v5743_v8, %v5735_v44  ;;  %v17471_v28 = vrot.slane %v13204_v30, 4  ;;  %v6370_v13 = vrot.slane %v13387_v12, 4  ;;  %v17476_v30 = vld [vmem:[#allocation74_spill] sm:$0xff] }
 0x3ae   : > { %v17473_v36 = vrot.slane %v17472_v0, 4  ;;  %8018 = vrot.lane.b32.xlu1 %v8017_v37, %s8357_s22  ;;  %v4408_v60 = vsel %vm925_vm5, %v13039_v15, %v4407_v14  ;;  %v17475_v27 = vrot.slane %v17474_v24, 4  ;;  %v17478_v12 = vrot.slane %v17477_v51, 4  ;;  %v17479_v44 = vld [vmem:[#allocation78_spill] sm:$0xff] }
 0x3af   : > { %v3718_v5 = vsel %vm925_vm5, %v17471_v28, %v17400_v17  ;;  %v7992_v54 = vpack.i.bf16 %v4408_v60, %v4400_v34  ;;  %8043 = vrot.lane.b32.xlu2 %v8042_v58, %s8358_s23  ;;  %v6398_v28 = vrot.slane %v13462_v59, 4  ;;  %v13614_v37 = vperm.slane %v1923_v62, %v9326_v61 }
 0x3b0   : > { %v2599_v53 = vsel %vm925_vm5, %v13560_v18, %v17473_v36  ;;  %v6349_v17 = vsel %vm925_vm5, %v17476_v30, %v17475_v27  ;;  %v6361_v8 = vsel %vm925_vm5, %v17479_v44, %v17478_v12  ;;  %v6406_v58 = vrot.slane %v6393_v2, 4  ;;  %v17480_v36 = vld [vmem:[#allocation218_spill] sm:$0xff]  ;;  %v13630_v44 = vpop.permute.xlu1 %7863 }
 0x3b1   : > { %v6357_v15 = vperm.slane %v6349_v17, %v9326_v61  ;;  %v6369_v14 = vperm.slane %v6361_v8, %v9326_v61  ;;  %v2584_v34 = vrot.slane %v13589_v3, 4  ;;  %v17481_v60 = vrot.slane %v17480_v36, 4  ;;  %7993 = vrot.lane.b32.xlu0 %v7992_v54, %s8356_s20 }
 0x3b2   : > { %v2596_v27 = vrot.slane %v13560_v18, 4  ;;  %v13625_v30 = vperm.slane %v1935_v33, %v9326_v61  ;;  %v13633_v8 = vperm.slane %v2599_v53, %v9326_v61  ;;  %v17484_v18 = vld [vmem:[#allocation152_spill] sm:$0xff]  ;;  %v13641_v54 = vperm.slane %v17485_v46, %v9326_v61 }
 0x3b3   : > { %v2587_v24 = vsel %vm925_vm5, %v13589_v3, %v17481_v60  ;;  %v6399_v62 = vsel %vm925_vm5, %v6398_v28, %v6357_v15  ;;  %v6407_v17 = vsel %vm925_vm5, %v6406_v58, %v6369_v14  ;;  %v6400_v51 = vrot.slane %v6357_v15, 4  ;;  %v17482_v3 = vld [vmem:[#allocation88_spill] sm:$0xff]  ;;  %v13650_v58 = vpop.permute.xlu2 %7908 }
 0x3b4   : > { %v6408_v12 = vrot.slane %v6369_v14, 4  ;;  %v8032_v9 = vpack.i.bf16 %v6407_v17, %v6399_v62  ;;  %v17483_v60 = vrot.slane %v17482_v3, 4  ;;  %v1948_v53 = vrot.slane %v13614_v37, 4  ;;  %17486 = vst [vmem:[#allocation125_spill] sm:$0xff] %v13650_v58 }
 0x3b5   : > { %v6401_v28 = vsel %vm925_vm5, %v13462_v59, %v6400_v51  ;;  %v1956_v17 = vrot.slane %v13625_v30, 4  ;;  %v13659_v59 = vperm.slane %v17490_v32, %v9326_v61 }
 0x3b6   : > { %v1899_v33 = vsel %vm925_vm5, %v17484_v18, %v17483_v60  ;;  %v6409_v15 = vsel %vm925_vm5, %v6393_v2, %v6408_v12  ;;  %v17487_v60 = vld [vmem:[#allocation110_spill] sm:$0xff]  ;;  %v13661_v2 = vpop.permute.xlu0 %7838  ;;  %8033 = vrot.lane.b32.xlu1 %v8032_v9, %s8358_s23 }
 0x3b7   : > { %v13647_v14 = vperm.slane %v1899_v33, %v9326_v61  ;;  %v7997_v62 = vpack.i.bf16 %v6409_v15, %v6401_v28  ;;  %v17488_v50 = vrot.slane %v17487_v60, 4  ;;  %17491 = vst [vmem:[#allocation45_spill] sm:$0xff] %v13661_v2  ;;  %v13670_v33 = vperm.slane %v2587_v24, %v9326_v61  ;;  %v17494_v15 = vld [vmem:[#allocation103_spill] sm:$0xff] }
 0x3b8   : > { %v1957_v32 = vsel %vm925_vm5, %v1956_v17, %v13641_v54  ;;  %v2622_v28 = vrot.slane %v13659_v59, 4  ;;  %v6382_v17 = vrot.slane %v13419_v38, 4 }
 0x3b9   : > { %v2563_v46 = vsel %vm925_vm5, %v17489_v56, %v17488_v50  ;;  %v1949_v51 = vsel %vm925_vm5, %v1948_v53, %v13647_v14  ;;  %v17492_v56 = vrot.slane %v17392_v6, 4  ;;  %v13684_v53 = vperm.slane %v17494_v15, %v9326_v61  ;;  %7998 = vrot.lane.b32.xlu0 %v7997_v62, %s8356_s20 }
 0x3ba   : > { %v13667_v12 = vperm.slane %v2563_v46, %v9326_v61  ;;  %v8062_v60 = vpack.i.bf16 %v1957_v32, %v1949_v51  ;;  %v3706_v6 = vsel %vm925_vm5, %v3705_v31, %v17397_v29  ;;  %v2597_v46 = vsel %vm925_vm5, %v2596_v27, %v17472_v0  ;;  %v17498_v32 = vld [vmem:[#allocation112_spill] sm:$0xff] }
 0x3bb   : > { %v3682_v50 = vsel %vm925_vm5, %v17492_v56, %v17390_v19  ;;  %17495 = vst [vmem:[#allocation224_spill] sm:$0xff] %v13684_v53  ;;  %v13690_v19 = vperm.slane %v3718_v5, %v9326_v61  ;;  %v13697_v56 = vperm.slane %v3706_v6, %v9326_v61  ;;  %v2623_v38 = vsel %vm925_vm5, %v13633_v8, %v2622_v28 }
 0x3bc   : > { %v13680_v9 = vperm.slane %v3682_v50, %v9326_v61  ;;  %v2614_v24 = vrot.slane %v13667_v12, 4  ;;  %v1920_v50 = vrot.slane %v13543_v23, 4  ;;  %8063 = vrot.lane.b32.xlu2 %v8062_v60, %s8358_s23  ;;  %v3739_v31 = vrot.slane %v13684_v53, 4 }
 0x3bd   : > { %17496 = vst [vmem:[#allocation173_spill] sm:$0xff] %v13690_v19  ;;  %v6371_v0 = vsel %vm925_vm5, %v6370_v13, %v17431_v10  ;;  %v13716_v15 = vperm.slane %v17498_v32, %v9326_v61  ;;  %v2585_v28 = vsel %vm925_vm5, %v2584_v34, %v17480_v36  ;;  %v13721_v60 = vperm.slane %v2597_v46, %v9326_v61  ;;  %v17505_v46 = vld [vmem:[#allocation157_spill] sm:$0xff]  ;;  %v17511_v32 = vld [vmem:[#allocation164_spill] sm:$0xff] }
 0x3be   : > { %17493 = vst [vmem:[#allocation213_spill] sm:$0xff] %v13680_v9  ;;  %v3731_v51 = vrot.slane %v13680_v9, 4  ;;  %v2615_v29 = vsel %vm925_vm5, %v13670_v33, %v2614_v24  ;;  %v3740_v23 = vsel %vm925_vm5, %v13690_v19, %v3739_v31  ;;  %v13723_v24 = vpop.permute.xlu1 %7868  ;;  %v6383_v10 = vsel %vm925_vm5, %v6382_v17, %v17440_v26  ;;  %v13743_v17 = vpop.permute.xlu2 %7923 }
 0x3bf   : > { %17497 = vst [vmem:[#allocation217_spill] sm:$0xff] %v13697_v56  ;;  %v8052_v27 = vpack.i.bf16 %v2623_v38, %v2615_v29  ;;  %v13728_v6 = vperm.slane %v2585_v28, %v9326_v61  ;;  %v2610_v38 = vrot.slane %v13716_v15, 4  ;;  %v17504_v34 = vrot.slane %v17484_v18, 4  ;;  %v13757_v18 = vpop.permute.xlu0 %7853 }
 0x3c0   : > { %v3732_v62 = vsel %vm925_vm5, %v13697_v56, %v3731_v51  ;;  %17499 = vst [vmem:[#allocation158_spill] sm:$0xff] %v13716_v15  ;;  %v17503_v51 = vld [vmem:[#allocation115_spill] sm:$0xff]  ;;  %v13739_v31 = vperm.slane %v17505_v46, %v9326_v61  ;;  %v1921_v26 = vsel %vm925_vm5, %v1920_v50, %v12986_v40  ;;  %v13764_v28 = vperm.slane %v17511_v32, %v9326_v61  ;;  %v17515_v46 = vld [vmem:[#allocation169_spill] sm:$0xff] }
 0x3c1   : > { %17500 = vst [vmem:[#allocation74_spill] sm:$0xff] %v13721_v60  ;;  %v8007_v13 = vpack.i.bf16 %v3740_v23, %v3732_v62  ;;  %v2618_v29 = vrot.slane %v17503_v51, 4  ;;  %8053 = vrot.lane.b32.xlu1 %v8052_v27, %s8356_s20  ;;  %v1897_v36 = vsel %vm925_vm5, %v17504_v34, %v17482_v3  ;;  %v13751_v23 = vperm.slane %v1921_v26, %v9326_v61 }
 0x3c2   : > { %17501 = vst [vmem:[#allocation159_spill] sm:$0xff] %v13723_v24  ;;  %v13748_v27 = vperm.slane %v1897_v36, %v9326_v61  ;;  %v13755_v3 = vperm.slane %v13573_v1, %v9326_v61  ;;  %v2611_v40 = vsel %vm925_vm5, %v13728_v6, %v2610_v38  ;;  %v1954_v50 = vrot.slane %v13739_v31, 4  ;;  %v17518_v24 = vld [vmem:[#allocation20_spill] sm:$0xff] }
 0x3c3   : > { %17502 = vst [vmem:[#allocation78_spill] sm:$0xff] %v13728_v6  ;;  %v2619_v62 = vsel %vm925_vm5, %v13721_v60, %v2618_v29  ;;  %v13767_v29 = vperm.slane %v6371_v0, %v9326_v61  ;;  %8008 = vrot.lane.b32.xlu0 %v8007_v13, %s8357_s22  ;;  %v13772_v36 = vperm.slane %v6383_v10, %v9326_v61  ;;  %v6404_v26 = vrot.slane %v17515_v46, 4 }
 0x3c4   : > { %17506 = vst [vmem:[#allocation218_spill] sm:$0xff] %v13739_v31  ;;  %v8067_v34 = vpack.i.bf16 %v2619_v62, %v2611_v40  ;;  %v1946_v1 = vrot.slane %v13748_v27, 4  ;;  %v7740_v38 = vunpack.i.l.bf16 %v12942_v7  ;;  %v6396_v5 = vrot.slane %v13764_v28, 4 }
 0x3c5   : > { %17507 = vst [vmem:[#allocation88_spill] sm:$0xff] %v13743_v17  ;;  %v7866_v32 = vunpack.i.h.bf16 %v13630_v44  ;;  %v7865_v31 = vunpack.i.l.bf16 %v13630_v44  ;;  %v17516_v0 = vunpack.i.h.bf16 %v12942_v7  ;;  %v1955_v10 = vsel %vm925_vm5, %v13755_v3, %v1954_v50  ;;  %v17517_v44 = vld [vmem:[#allocation19_spill] sm:$0xff]  ;;  %v17519_v50 = vld [vmem:[#allocation208_spill] sm:$0xff] }
 0x3c6   : > { %17508 = vst [vmem:[#allocation152_spill] sm:$0xff] %v13748_v27  ;;  %8068 = vrot.lane.b32.xlu2 %v8067_v34, %s8357_s22  ;;  %v1947_v13 = vsel %vm925_vm5, %v13751_v23, %v1946_v1  ;;  %v6405_v62 = vsel %vm925_vm5, %v13772_v36, %v6404_v26  ;;  %v6397_v27 = vsel %vm925_vm5, %v13767_v29, %v6396_v5  ;;  %v17521_v5 = vld [vmem:[#allocation100_spill] sm:$0xff]  ;;  %v13827_v17 = vpop.permute.xlu2 %7943  ;;  %v1950_v49 = vrot.slane %v13647_v14, 4 }
 0x3c7   : > { %17509 = vst [vmem:[#allocation153_spill] sm:$0xff] %v13751_v23  ;;  %v6446_v51 = vrot.slane %v17516_v0, 4  ;;  %v8057_v40 = vpack.i.bf16 %v1955_v10, %v1947_v13  ;;  %v5894_v15 = vrot.slane %v7866_v32, 4  ;;  %v5897_v60 = vsel %vm925_vm5, %v7866_v32, %v17517_v44  ;;  %v17522_v32 = vld [vmem:[#allocation41_spill] sm:$0xff]  ;;  %v17527_v23 = vld [vmem:[#allocation80_spill] sm:$0xff] }
 0x3c8   : > { %17510 = vst [vmem:[#allocation110_spill] sm:$0xff] %v13755_v3  ;;  %v8027_v0 = vpack.i.bf16 %v6405_v62, %v6397_v27  ;;  %v5905_v34 = vperm.slane %v5897_v60, %v8804_v25  ;;  %v6006_v6 = vrot.slane %v7865_v31, 4  ;;  %v6009_v1 = vsel %vm925_vm5, %v7865_v31, %v17518_v24  ;;  %v13804_v62 = vpop.permute.xlu1 %7888  ;;  %v17526_v44 = vld [vmem:[#allocation189_spill] sm:$0xff] }
 0x3c9   : > { %17512 = vst [vmem:[#allocation104_spill] sm:$0xff] %v13764_v28  ;;  %8058 = vrot.lane.b32.xlu1 %v8057_v40, %s8357_s22  ;;  %v17520_v3 = vunpack.i.l.bf16 %v17519_v50  ;;  %v6017_v13 = vperm.slane %v6009_v1, %v8804_v25  ;;  %v3804_v10 = vperm.slane %v17521_v5, %v9326_v61  ;;  %v3828_v27 = vperm.slane %v17522_v32, %v9326_v61  ;;  %v17559_v28 = vld [vmem:[#allocation118_spill] sm:$0xff] }
 0x3ca   : > { %17513 = vst [vmem:[#allocation117_spill] sm:$0xff] %v13767_v29  ;;  %v5942_v24 = vrot.slane %v5905_v34, 4  ;;  %v17524_v31 = vrot.slane %v12846_v42, 4  ;;  %v3840_v1 = vperm.slane %v17526_v44, %v9326_v61  ;;  %v13841_v44 = vpop.permute.xlu0 %7858  ;;  %v17539_v46 = vunpack.i.h.bf16 %v12942_v7 }
 0x3cb   : > { %17514 = vst [vmem:[#allocation103_spill] sm:$0xff] %v13772_v36  ;;  %v5895_v26 = vsel %vm925_vm5, %v5894_v15, %v17520_v3  ;;  %v17525_v15 = vunpack.i.h.bf16 %v17519_v50  ;;  %v6054_v32 = vrot.slane %v6017_v13, 4  ;;  %8028 = vrot.lane.b32.xlu0 %v8027_v0, %s8357_s22  ;;  %v3845_v56 = vrot.slane %v3828_v27, 4 }
 0x3cc   : > { %17523 = vst [vmem:[#allocation112_spill] sm:$0xff] %v13804_v62  ;;  %v13807_v60 = vperm.slane %v5895_v26, %v8804_v25  ;;  %v13812_v40 = vsel %vm925_vm5, %v5905_v34, %v17524_v31  ;;  %v17528_v26 = vrot.slane %v17527_v23, 4  ;;  %v6448_v31 = vrot.slane %v7740_v38, 4 }
 0x3cd   : > { %v6007_v3 = vsel %vm925_vm5, %v6006_v6, %v17525_v15  ;;  %v17529_v6 = vld [vmem:[#allocation17_spill] sm:$0xff]  ;;  %v13852_v0 = vsel %vm925_vm5, %v6054_v32, %v17527_v23  ;;  %v1951_v14 = vsel %vm925_vm5, %v13614_v37, %v1950_v49  ;;  %v13887_v49 = vperm.slane %v13195_v22, %v9326_v61 }
 0x3ce   : > { %v13820_v5 = vperm.slane %v6007_v3, %v8804_v25  ;;  %v13825_v62 = vsel %vm925_vm5, %v6017_v13, %v17528_v26  ;;  %v17530_v50 = vrot.slane %v17529_v6, 4  ;;  %v13839_v3 = vsel %vm925_vm5, %v5942_v24, %v12846_v42  ;;  %v17532_v26 = vld [vmem:[#allocation84_spill] sm:$0xff]  ;;  %17535 = vst [vmem:[#allocation19_spill] sm:$0xff] %v13852_v0  ;;  %v17538_v24 = vld [vmem:[#allocation97_spill] sm:$0xff] }
 0x3cf   : > { %v6447_v13 = vsel %vm925_vm5, %v6446_v51, %v7740_v38  ;;  %v17533_v2 = vrot.slane %v17532_v26, 4  ;;  %v3855_v19 = vrot.slane %v17538_v24, 4  ;;  %v3853_v38 = vrot.slane %v3840_v1, 4  ;;  %v17564_v26 = vld [vmem:[#allocation166_spill] sm:$0xff] }
 0x3d0   : > { %v13835_v15 = vsel %vm925_vm5, %v13807_v60, %v17530_v50  ;;  %v3847_v50 = vrot.slane %v3804_v10, 4  ;;  %v6449_v23 = vsel %vm925_vm5, %v17539_v46, %v6448_v31  ;;  %v13864_v32 = vperm.slane %v6447_v13, %v8804_v25  ;;  %v17540_v13 = vld [vmem:[#allocation225_spill] sm:$0xff]  ;;  %v13889_v37 = vpop.permute.xlu1 %7898 }
 0x3d1   : > { %17531 = vst [vmem:[#allocation157_spill] sm:$0xff] %v13835_v15  ;;  %v13848_v34 = vsel %vm925_vm5, %v13820_v5, %v17533_v2  ;;  %v1958_v2 = vrot.slane %v13641_v54, 4  ;;  %v3856_v53 = vsel %vm925_vm5, %v3840_v1, %v3855_v19  ;;  %v3846_v42 = vsel %vm925_vm5, %v3845_v56, %v3804_v10  ;;  %v17554_v19 = vld [vmem:[#allocation156_spill] sm:$0xff] }
 0x3d2   : > { %17534 = vst [vmem:[#allocation164_spill] sm:$0xff] %v13848_v34  ;;  %v3848_v51 = vsel %vm925_vm5, %v3828_v27, %v3847_v50  ;;  %v3854_v27 = vsel %vm925_vm5, %v3853_v38, %v17538_v24  ;;  %v7856_v46 = vunpack.i.h.bf16 %v13757_v18  ;;  %v7855_v31 = vunpack.i.l.bf16 %v13757_v18  ;;  %v17543_v18 = vld [vmem:[#allocation197_spill] sm:$0xff] }
 0x3d3   : > { %v8077_v58 = vpack.i.bf16 %v3856_v53, %v3848_v51  ;;  %v1959_v54 = vsel %vm925_vm5, %v13625_v30, %v1958_v2  ;;  %v8102_v7 = vpack.i.bf16 %v3854_v27, %v3846_v42  ;;  %v13878_v56 = vperm.slane %v6449_v23, %v8804_v25  ;;  %v17541_v53 = vld [vmem:[#allocation128_spill] sm:$0xff]  ;;  %17542 = vst [vmem:[#allocation20_spill] sm:$0xff] %v13889_v37  ;;  %v17545_v51 = vld [vmem:[#allocation55_spill] sm:$0xff]  ;;  %v17547_v2 = vld [vmem:[#allocation221_spill] sm:$0xff] }
 0x3d4   : > { %v8047_v50 = vpack.i.bf16 %v1959_v54, %v1951_v14  ;;  %v13883_v10 = vperm.slane %v17541_v53, %v9326_v61  ;;  %v4669_v30 = vrot.slane %v7856_v46, 4  ;;  %v4672_v1 = vsel %vm925_vm5, %v7856_v46, %v17543_v18  ;;  %v13907_v54 = vpop.permute.xlu2 %7948 }
 0x3d5   : > { %8078 = vrot.lane.b32.xlu2 %v8077_v58, %s8356_s20  ;;  %8103 = vrot.lane.b32.xlu1 %v8102_v7, %s8358_s23  ;;  %v4557_v42 = vrot.slane %v7855_v31, 4  ;;  %v17544_v58 = vld [vmem:[#allocation199_spill] sm:$0xff]  ;;  %v17546_v38 = vrot.slane %v17545_v51, 4  ;;  %v13903_v23 = vperm.slane %v17547_v2, %v9326_v61  ;;  %v4680_v27 = vperm.slane %v4672_v1, %v8804_v25  ;;  %17548 = vst [vmem:[#allocation208_spill] sm:$0xff] %v13907_v54  ;;  %v17549_v7 = vld [vmem:[#allocation192_spill] sm:$0xff]  ;;  %v13917_v2 = vpop.permute.xlu0 %7873 }
 0x3d6   : > { %8048 = vrot.lane.b32.xlu0 %v8047_v50, %s8356_s20  ;;  %v4560_v24 = vsel %vm925_vm5, %v7855_v31, %v17544_v58  ;;  %v17550_v50 = vunpack.i.h.bf16 %v17549_v7  ;;  %v17551_v31 = vunpack.i.l.bf16 %v17549_v7  ;;  %v5848_v18 = vrot.slane %v13883_v10, 4  ;;  %v17552_v58 = vld [vmem:[#allocation126_spill] sm:$0xff]  ;;  %17553 = vst [vmem:[#allocation100_spill] sm:$0xff] %v13917_v2 }
 0x3d7   : > { %v6485_v22 = vsel %vm925_vm5, %v13864_v32, %v17546_v38  ;;  %v4568_v14 = vperm.slane %v4560_v24, %v8804_v25  ;;  %v5856_v38 = vrot.slane %v17552_v58, 4  ;;  %v4717_v24 = vrot.slane %v4680_v27, 4 }
 0x3d8   : > { %v4670_v46 = vsel %vm925_vm5, %v4669_v30, %v17550_v50  ;;  %v4558_v53 = vsel %vm925_vm5, %v4557_v42, %v17551_v31  ;;  %v17555_v37 = vrot.slane %v17554_v19, 4  ;;  %v17556_v42 = vld [vmem:[#allocation223_spill] sm:$0xff]  ;;  %v5849_v2 = vsel %vm925_vm5, %v13887_v49, %v5848_v18 }
 0x3d9   : > { %v13920_v1 = vperm.slane %v4670_v46, %v8804_v25  ;;  %v13928_v30 = vperm.slane %v4558_v53, %v8804_v25  ;;  %v4605_v7 = vrot.slane %v4568_v14, 4  ;;  %v17557_v50 = vrot.slane %v17556_v42, 4  ;;  %v17558_v46 = vld [vmem:[#allocation92_spill] sm:$0xff] }
 0x3da   : > { %v13925_v9 = vsel %vm925_vm5, %v4680_v27, %v17555_v37  ;;  %v17560_v36 = vrot.slane %v17559_v28, 4  ;;  %v17562_v27 = vld [vmem:[#allocation207_spill] sm:$0xff]  ;;  %v17565_v34 = vrot.slane %v17564_v26, 4  ;;  %v13954_v18 = vsel %vm925_vm5, %v4717_v24, %v17554_v19  ;;  %v17574_v26 = vld [vmem:[#allocation162_spill] sm:$0xff] }
 0x3db   : > { %v13933_v31 = vsel %vm925_vm5, %v4568_v14, %v17557_v50  ;;  %v17563_v0 = vrot.slane %v17562_v27, 4  ;;  %17567 = vst [vmem:[#allocation189_spill] sm:$0xff] %v13954_v18  ;;  %v7781_v50 = vunpack.i.h.bf16 %v13201_v52  ;;  %v13970_v15 = vperm.slane %v6485_v22, %v9326_v61  ;;  %v17571_v52 = vld [vmem:[#allocation121_spill] sm:$0xff] }
 0x3dc   : > { %v4458_v29 = vsel %vm925_vm5, %v17560_v36, %v17558_v46  ;;  %v13950_v14 = vsel %vm925_vm5, %v13920_v1, %v17565_v34  ;;  %v17568_v36 = vld [vmem:[#allocation206_spill] sm:$0xff]  ;;  %v5857_v34 = vsel %vm925_vm5, %v13903_v23, %v5856_v38  ;;  %v13977_v18 = vperm.slane %v17571_v52, %v9326_v61 }
 0x3dd   : > { %v6497_v53 = vsel %vm925_vm5, %v13878_v56, %v17563_v0  ;;  %17566 = vst [vmem:[#allocation41_spill] sm:$0xff] %v13950_v14  ;;  %v17569_v11 = vrot.slane %v17568_v36, 4  ;;  %v13965_v0 = vsel %vm925_vm5, %v4605_v7, %v17556_v42  ;;  %v8092_v19 = vpack.i.bf16 %v5857_v34, %v5849_v2  ;;  %v17576_v42 = vld [vmem:[#allocation202_spill] sm:$0xff]  ;;  %v13998_v34 = vpop.permute.xlu1 %7918  ;;  %v14018_v4 = vpop.permute.xlu0 %7883 }
 0x3de   : > { %v13973_v24 = vperm.slane %v4458_v29, %v9326_v61  ;;  %17572 = vst [vmem:[#allocation17_spill] sm:$0xff] %v13977_v18  ;;  %v17575_v54 = vrot.slane %v17574_v26, 4  ;;  %v13985_v14 = vperm.slane %v17576_v42, %v9326_v61  ;;  %v2612_v22 = vrot.slane %v13670_v33, 4 }
 0x3df   : > { %v13961_v37 = vsel %vm925_vm5, %v13928_v30, %v17569_v11  ;;  %v17573_v11 = vld [vmem:[#allocation170_spill] sm:$0xff]  ;;  %v2620_v38 = vrot.slane %v13633_v8, 4  ;;  %v13990_v29 = vperm.slane %v6497_v53, %v9326_v61  ;;  %8093 = vrot.lane.b32.xlu2 %v8092_v19, %s8356_s20  ;;  %17579 = vst [vmem:[#allocation128_spill] sm:$0xff] %v13998_v34  ;;  %v2660_v52 = vrot.slane %v7781_v50, 4 }
 0x3e0   : > { %17570 = vst [vmem:[#allocation80_spill] sm:$0xff] %v13973_v24  ;;  %v4482_v7 = vsel %vm925_vm5, %v17575_v54, %v17573_v11  ;;  %v4507_v26 = vrot.slane %v13973_v24, 4  ;;  %v4515_v54 = vrot.slane %v13977_v18, 4  ;;  %v2613_v33 = vsel %vm925_vm5, %v2612_v22, %v13667_v12  ;;  %v14010_v18 = vpop.permute.xlu2 %7973  ;;  %v17582_v22 = vld [vmem:[#allocation120_spill] sm:$0xff] }
 0x3e1   : > { %17577 = vst [vmem:[#allocation97_spill] sm:$0xff] %v13985_v14  ;;  %v13994_v2 = vperm.slane %v4482_v7, %v9326_v61  ;;  %v2621_v8 = vsel %vm925_vm5, %v2620_v38, %v13659_v59  ;;  %v7861_v53 = vunpack.i.h.bf16 %v13841_v44  ;;  %v7860_v42 = vunpack.i.l.bf16 %v13841_v44  ;;  %v17584_v44 = vld [vmem:[#allocation188_spill] sm:$0xff] }
 0x3e2   : > { %v4516_v11 = vsel %vm925_vm5, %v13985_v14, %v4515_v54  ;;  %v8072_v7 = vpack.i.bf16 %v2621_v8, %v2613_v33  ;;  %17580 = vst [vmem:[#allocation197_spill] sm:$0xff] %v14010_v18  ;;  %v17581_v12 = vrot.slane %v17558_v46, 4  ;;  %v4480_v38 = vperm.slane %v17582_v22, %v9326_v61  ;;  %v17585_v8 = vld [vmem:[#allocation23_spill] sm:$0xff] }
 0x3e3   : > { %17578 = vst [vmem:[#allocation225_spill] sm:$0xff] %v13994_v2  ;;  %v4508_v19 = vsel %vm925_vm5, %v13994_v2, %v4507_v26  ;;  %v6670_v24 = vrot.slane %v7861_v53, 4  ;;  %v6672_v26 = vrot.slane %v7860_v42, 4  ;;  %v4509_v33 = vrot.slane %v17584_v44, 4 }
 0x3e4   : > { %v8107_v34 = vpack.i.bf16 %v4516_v11, %v4508_v19  ;;  %v4460_v59 = vsel %vm925_vm5, %v17559_v28, %v17581_v12  ;;  %17583 = vst [vmem:[#allocation199_spill] sm:$0xff] %v14018_v4  ;;  %8073 = vrot.lane.b32.xlu0 %v8072_v7, %s8358_s23  ;;  %v4517_v19 = vrot.slane %v17585_v8, 4  ;;  %v17586_v11 = vld [vmem:[#allocation215_spill] sm:$0xff]  ;;  %v17587_v46 = vunpack.i.h.bf16 %v17465_v41 }
 0x3e5   : > { %v4468_v54 = vperm.slane %v4460_v59, %v9326_v61  ;;  %v5818_v14 = vrot.slane %v17586_v11, 4  ;;  %v17588_v12 = vld [vmem:[#allocation211_spill] sm:$0xff]  ;;  %v6671_v7 = vsel %vm925_vm5, %v6670_v24, %v7860_v42  ;;  %v6673_v4 = vsel %vm925_vm5, %v7861_v53, %v6672_v26 }
 0x3e6   : > { %v2661_v28 = vsel %vm925_vm5, %v2660_v52, %v17587_v46  ;;  %v2663_v22 = vsel %vm925_vm5, %v7781_v50, %v17588_v12  ;;  %8108 = vrot.lane.b32.xlu1 %v8107_v34, %s8357_s22  ;;  %v6677_v59 = vperm.slane %v6671_v7, %v8804_v25  ;;  %v4518_v18 = vsel %vm925_vm5, %v4517_v19, %v4480_v38  ;;  %v17589_v52 = vld [vmem:[#allocation138_spill] sm:$0xff]  ;;  %v17592_v53 = vld [vmem:[#allocation139_spill] sm:$0xff] }
 0x3e7   : > { %v4510_v2 = vsel %vm925_vm5, %v4509_v33, %v4468_v54  ;;  %v6681_v11 = vperm.slane %v6673_v4, %v8804_v25  ;;  %v6469_v46 = vperm.slane %v17589_v52, %v9326_v61  ;;  %v6510_v50 = vrot.slane %v13970_v15, 4  ;;  %v17597_v52 = vld [vmem:[#allocation123_spill] sm:$0xff] }
 0x3e8   : > { %v8112_v41 = vpack.i.bf16 %v4518_v18, %v4510_v2  ;;  %v6706_v12 = vrot.slane %v6677_v59, 4  ;;  %v17590_v34 = vrot.slane %v13341_v16, 4  ;;  %v6481_v42 = vperm.slane %v17592_v53, %v9326_v61 }
 0x3e9   : > { %v6518_v26 = vrot.slane %v13990_v29, 4  ;;  %v6718_v33 = vrot.slane %v6681_v11, 4  ;;  %v17593_v4 = vrot.slane %v13344_v35, 4  ;;  %v6511_v2 = vsel %vm925_vm5, %v6510_v50, %v6469_v46 }
 0x3ea   : > { %v14043_v24 = vsel %vm925_vm5, %v6677_v59, %v17590_v34  ;;  %8113 = vrot.lane.b32.xlu2 %v8112_v41, %s8358_s23  ;;  %v4511_v19 = vrot.slane %v4468_v54, 4  ;;  %v14057_v59 = vperm.slane %v2663_v22, %v8804_v25  ;;  %v14061_v34 = vsel %vm925_vm5, %v6706_v12, %v13341_v16  ;;  %v17595_v22 = vld [vmem:[#allocation42_spill] sm:$0xff] }
 0x3eb   : > { %17591 = vst [vmem:[#allocation55_spill] sm:$0xff] %v14043_v24  ;;  %v14051_v18 = vsel %vm925_vm5, %v6681_v11, %v17593_v4  ;;  %v6519_v53 = vsel %vm925_vm5, %v6518_v26, %v6481_v42  ;;  %v14064_v24 = vpop.permute.xlu1 %7933  ;;  %v14068_v11 = vsel %vm925_vm5, %v6718_v33, %v13344_v35  ;;  %v4519_v50 = vrot.slane %v4480_v38, 4  ;;  %v17596_v26 = vld [vmem:[#allocation71_spill] sm:$0xff]  ;;  %v14084_v33 = vpop.permute.xlu2 %7978 }
 0x3ec   : > { %v8122_v41 = vpack.i.bf16 %v6519_v53, %v6511_v2  ;;  %v4512_v54 = vsel %vm925_vm5, %v17584_v44, %v4511_v19  ;;  %v14074_v4 = vperm.slane %v17595_v22, %v9326_v61  ;;  %v14078_v12 = vperm.slane %v2661_v28, %v8804_v25  ;;  %17599 = vst [vmem:[#allocation221_spill] sm:$0xff] %v14084_v33  ;;  %v17601_v2 = vld [vmem:[#allocation129_spill] sm:$0xff]  ;;  %v17603_v25 = vld [vmem:[#allocation68_spill] sm:$0xff] }
 0x3ed   : > { %v17598_v7 = vrot.slane %v17597_v52, 4  ;;  %v4520_v38 = vsel %vm925_vm5, %v17585_v8, %v4519_v50  ;;  %v14094_v19 = vperm.slane %v17601_v2, %v9326_v61  ;;  %v5819_v28 = vsel %vm925_vm5, %v5818_v14, %v17603_v25  ;;  %v14098_v52 = vpop.permute.xlu0 %7903  ;;  %v17608_v50 = vld [vmem:[#allocation12_spill] sm:$0xff] }
 0x3ee   : > { %8123 = vrot.lane.b32.xlu1 %v8122_v41, %s8358_s23  ;;  %17604 = vst [vmem:[#allocation156_spill] sm:$0xff] %v14098_v52  ;;  %v8082_v22 = vpack.i.bf16 %v4520_v38, %v4512_v54  ;;  %v14105_v8 = vperm.slane %v5819_v28, %v9326_v61  ;;  %v5846_v25 = vrot.slane %v13887_v49, 4  ;;  %v14120_v54 = vperm.slane %v13526_v39, %v9326_v61 }
 0x3ef   : > { %v5795_v35 = vsel %vm925_vm5, %v17598_v7, %v17596_v26  ;;  %17602 = vst [vmem:[#allocation126_spill] sm:$0xff] %v14094_v19  ;;  %v17605_v7 = vld [vmem:[#allocation214_spill] sm:$0xff]  ;;  %v14109_v26 = vperm.slane %v17608_v50, %v9326_v61  ;;  %v5852_v2 = vrot.slane %v14094_v19, 4  ;;  %v5854_v38 = vrot.slane %v13903_v23, 4 }
 0x3f0   : > { %v14090_v44 = vperm.slane %v5795_v35, %v9326_v61  ;;  %v17606_v53 = vrot.slane %v17605_v7, 4  ;;  %17607 = vst [vmem:[#allocation223_spill] sm:$0xff] %v14105_v8  ;;  %v14113_v35 = vperm.slane %v13521_v55, %v9326_v61  ;;  %8083 = vrot.lane.b32.xlu0 %v8082_v22, %s8356_s20  ;;  %v6512_v28 = vrot.slane %v6469_v46, 4 }
 0x3f1   : > { %17609 = vst [vmem:[#allocation92_spill] sm:$0xff] %v14109_v26  ;;  %v6494_v50 = vrot.slane %v13878_v56, 4  ;;  %v5853_v16 = vsel %vm925_vm5, %v14109_v26, %v5852_v2  ;;  %v5847_v49 = vsel %vm925_vm5, %v5846_v25, %v13883_v10  ;;  %v5855_v39 = vsel %vm925_vm5, %v5854_v38, %v17552_v58  ;;  %v17610_v56 = vld [vmem:[#allocation25_spill] sm:$0xff]  ;;  %v17612_v58 = vld [vmem:[#allocation87_spill] sm:$0xff]  ;;  %v17614_v25 = vld [vmem:[#allocation150_spill] sm:$0xff] }
 0x3f2   : > { %17600 = vst [vmem:[#allocation192_spill] sm:$0xff] %v14090_v44  ;;  %v2711_v41 = vsel %vm925_vm5, %v14057_v59, %v17606_v53  ;;  %v5844_v14 = vrot.slane %v14090_v44, 4  ;;  %v6520_v53 = vrot.slane %v6481_v42, 4  ;;  %v6513_v23 = vsel %vm925_vm5, %v13970_v15, %v6512_v28  ;;  %v17619_v44 = vld [vmem:[#allocation113_spill] sm:$0xff]  ;;  %v17625_v26 = vld [vmem:[#allocation204_spill] sm:$0xff] }
 0x3f3   : > { %v17611_v42 = vrot.slane %v17610_v56, 4  ;;  %v14143_v2 = vperm.slane %v2711_v41, %v9326_v61  ;;  %v8132_v10 = vpack.i.bf16 %v5855_v39, %v5847_v49  ;;  %v2060_v28 = vrot.slane %v14113_v35, 4  ;;  %v17616_v49 = vld [vmem:[#allocation109_spill] sm:$0xff] }
 0x3f4   : > { %v5845_v55 = vsel %vm925_vm5, %v14105_v8, %v5844_v14  ;;  %v6521_v46 = vsel %vm925_vm5, %v13990_v29, %v6520_v53  ;;  %v2708_v14 = vrot.slane %v14057_v59, 4  ;;  %v17615_v29 = vld [vmem:[#allocation151_spill] sm:$0xff]  ;;  %v2068_v53 = vrot.slane %v14120_v54, 4  ;;  %v14156_v59 = vpop.permute.xlu1 %7938 }
 0x3f5   : > { %v8127_v52 = vpack.i.bf16 %v5853_v16, %v5845_v55  ;;  %v2699_v22 = vsel %vm925_vm5, %v14078_v12, %v17611_v42  ;;  %v17613_v16 = vrot.slane %v17612_v58, 4  ;;  %v14152_v38 = vperm.slane %v17615_v29, %v9326_v61  ;;  %v17618_v42 = vld [vmem:[#allocation102_spill] sm:$0xff]  ;;  %v14195_v8 = vpop.permute.xlu0 %7913 }
 0x3f6   : > { %v2696_v41 = vrot.slane %v14078_v12, 4  ;;  %8133 = vrot.lane.b32.xlu1 %v8132_v10, %s8358_s23  ;;  %v17617_v39 = vrot.slane %v17616_v49, 4  ;;  %v14174_v12 = vperm.slane %v17619_v44, %v9326_v61  ;;  %v17621_v49 = vld [vmem:[#allocation95_spill] sm:$0xff]  ;;  %v17626_v44 = vrot.slane %v17540_v13, 4  ;;  %17627 = vst [vmem:[#allocation207_spill] sm:$0xff] %v14195_v8  ;;  %v17630_v13 = vld [vmem:[#allocation53_spill] sm:$0xff] }
 0x3f7   : > { %8128 = vrot.lane.b32.xlu2 %v8127_v52, %s8357_s22  ;;  %v2011_v15 = vsel %vm925_vm5, %v17614_v25, %v17613_v16  ;;  %v8087_v52 = vpack.i.bf16 %v6521_v46, %v6513_v23  ;;  %v2069_v29 = vsel %vm925_vm5, %v2068_v53, %v14152_v38  ;;  %v14177_v23 = vperm.slane %v2699_v22, %v9326_v61  ;;  %v14179_v46 = vpop.permute.xlu2 %7988 }
 0x3f8   : > { %v14161_v55 = vperm.slane %v2011_v15, %v9326_v61  ;;  %v2675_v16 = vsel %vm925_vm5, %v17618_v42, %v17617_v39  ;;  %v17620_v15 = vld [vmem:[#allocation90_spill] sm:$0xff]  ;;  %v17622_v39 = vrot.slane %v17621_v49, 4  ;;  %v17623_v42 = vld [vmem:[#allocation101_spill] sm:$0xff]  ;;  %v3818_v22 = vsel %vm925_vm5, %v17626_v44, %v17625_v26 }
 0x3f9   : > { %v14170_v19 = vperm.slane %v2675_v16, %v9326_v61  ;;  %v14189_v16 = vperm.slane %v17623_v42, %v9326_v61  ;;  %8088 = vrot.lane.b32.xlu0 %v8087_v52, %s8356_s20  ;;  %v2734_v49 = vrot.slane %v14174_v12, 4  ;;  %v14206_v42 = vperm.slane %v3818_v22, %v9326_v61 }
 0x3fa   : > { %v2061_v10 = vsel %vm925_vm5, %v2060_v28, %v14161_v55  ;;  %v3794_v53 = vsel %vm925_vm5, %v17622_v39, %v17620_v15  ;;  %v2709_v39 = vsel %vm925_vm5, %v2708_v14, %v17605_v7  ;;  %v14210_v26 = vperm.slane %v17630_v13, %v9326_v61 }
 0x3fb   : > { %17624 = vst [vmem:[#allocation118_spill] sm:$0xff] %v14189_v16  ;;  %v8152_v33 = vpack.i.bf16 %v2069_v29, %v2061_v10  ;;  %v2726_v28 = vrot.slane %v14170_v19, 4  ;;  %v14201_v15 = vperm.slane %v3794_v53, %v9326_v61  ;;  %v3851_v52 = vrot.slane %v14189_v16, 4  ;;  %v17632_v29 = vld [vmem:[#allocation67_spill] sm:$0xff] }
 0x3fc   : > { %17629 = vst [vmem:[#allocation121_spill] sm:$0xff] %v14206_v42  ;;  %v14215_v10 = vperm.slane %v17632_v29, %v9326_v61  ;;  %v2735_v44 = vsel %vm925_vm5, %v14143_v2, %v2734_v49  ;;  %v17633_v14 = vrot.slane %v13864_v32, 4  ;;  %v2032_v13 = vrot.slane %v13501_v47, 4  ;;  %v17634_v49 = vld [vmem:[#allocation111_spill] sm:$0xff] }
 0x3fd   : > { %17628 = vst [vmem:[#allocation206_spill] sm:$0xff] %v14201_v15  ;;  %v2727_v53 = vsel %vm925_vm5, %v14177_v23, %v2726_v28  ;;  %v3843_v7 = vrot.slane %v14201_v15, 4  ;;  %v3852_v29 = vsel %vm925_vm5, %v14210_v26, %v3851_v52  ;;  %v14234_v16 = vperm.slane %v17634_v49, %v9326_v61 }
 0x3fe   : > { %17631 = vst [vmem:[#allocation170_spill] sm:$0xff] %v14210_v26  ;;  %v6483_v22 = vsel %vm925_vm5, %v17633_v14, %v17545_v51  ;;  %v8142_v8 = vpack.i.bf16 %v2735_v44, %v2727_v53  ;;  %v2697_v32 = vsel %vm925_vm5, %v2696_v41, %v17610_v56  ;;  %v14239_v51 = vperm.slane %v2709_v39, %v9326_v61  ;;  %v17637_v53 = vld [vmem:[#allocation75_spill] sm:$0xff]  ;;  %v17639_v14 = vld [vmem:[#allocation114_spill] sm:$0xff] }
 0x3ff   : > { %8153 = vrot.lane.b32.xlu2 %v8152_v33, %s8358_s23  ;;  %v3844_v28 = vsel %vm925_vm5, %v14206_v42, %v3843_v7  ;;  %17635 = vst [vmem:[#allocation162_spill] sm:$0xff] %v14234_v16  ;;  %v6495_v47 = vsel %vm925_vm5, %v6494_v50, %v17562_v27  ;;  %v14246_v44 = vperm.slane %v2697_v32, %v9326_v61  ;;  %v2722_v7 = vrot.slane %v14234_v16, 4  ;;  %v17641_v39 = vld [vmem:[#allocation155_spill] sm:$0xff]  ;;  %v14258_v50 = vpop.permute.xlu1 %7963 }
 0x400   : > { %17636 = vst [vmem:[#allocation202_spill] sm:$0xff] %v14239_v51  ;;  %8143 = vrot.lane.b32.xlu1 %v8142_v8, %s8356_s20  ;;  %v8097_v33 = vpack.i.bf16 %v3852_v29, %v3844_v28  ;;  %v2730_v49 = vrot.slane %v17639_v14, 4  ;;  %v17640_v56 = vrot.slane %v17614_v25, 4  ;;  %v14256_v27 = vperm.slane %v17641_v39, %v9326_v61  ;;  %v17649_v14 = vld [vmem:[#allocation82_spill] sm:$0xff] }
 0x401   : > { %17638 = vst [vmem:[#allocation120_spill] sm:$0xff] %v14246_v44  ;;  %v2033_v28 = vsel %vm925_vm5, %v2032_v13, %v12983_v45  ;;  %v14268_v32 = vperm.slane %v13540_v43, %v9326_v61  ;;  %v14282_v45 = vpop.permute.xlu2 %8023  ;;  %v14298_v8 = vperm.slane %v6495_v47, %v9326_v61 }
 0x402   : > { %v2009_v41 = vsel %vm925_vm5, %v17640_v56, %v17612_v58  ;;  %17642 = vst [vmem:[#allocation188_spill] sm:$0xff] %v14256_v27  ;;  %8098 = vrot.lane.b32.xlu0 %v8097_v33, %s8357_s22  ;;  %v2723_v58 = vsel %vm925_vm5, %v14246_v44, %v2722_v7  ;;  %v2731_v25 = vsel %vm925_vm5, %v14239_v51, %v2730_v49  ;;  %v2066_v13 = vrot.slane %v14256_v27, 4  ;;  %v17647_v33 = vld [vmem:[#allocation143_spill] sm:$0xff]  ;;  %v14293_v49 = vpop.permute.xlu0 %7928  ;;  %v17652_v44 = vld [vmem:[#allocation149_spill] sm:$0xff] }
 0x403   : > { %v14262_v29 = vperm.slane %v2009_v41, %v9326_v61  ;;  %17644 = vst [vmem:[#allocation215_spill] sm:$0xff] %v14268_v32  ;;  %v14276_v56 = vperm.slane %v2033_v28, %v9326_v61  ;;  %v17646_v41 = vld [vmem:[#allocation65_spill] sm:$0xff]  ;;  %v14288_v52 = vperm.slane %v17647_v33, %v9326_v61  ;;  %v14291_v7 = vperm.slane %v6483_v22, %v9326_v61 }
 0x404   : > { %v14280_v39 = vperm.slane %v17646_v41, %v9326_v61  ;;  %v3952_v28 = vperm.slane %v13454_v63, %v9326_v61  ;;  %v8157_v41 = vpack.i.bf16 %v2731_v25, %v2723_v58  ;;  %v2067_v22 = vsel %vm925_vm5, %v14268_v32, %v2066_v13  ;;  %v17650_v58 = vld [vmem:[#allocation186_spill] sm:$0xff] }
 0x405   : > { %17643 = vst [vmem:[#allocation23_spill] sm:$0xff] %v14262_v29  ;;  %v2058_v43 = vrot.slane %v14262_v29, 4  ;;  %v6516_v16 = vrot.slane %v14288_v52, 4  ;;  %v17651_v25 = vrot.slane %v17650_v58, 4  ;;  %v17653_v32 = vld [vmem:[#allocation190_spill] sm:$0xff] }
 0x406   : > { %17645 = vst [vmem:[#allocation211_spill] sm:$0xff] %v14276_v56  ;;  %v6508_v29 = vrot.slane %v14280_v39, 4  ;;  %v3965_v51 = vrot.slane %v3952_v28, 4 }
 0x407   : > { %17648 = vst [vmem:[#allocation138_spill] sm:$0xff] %v14288_v52  ;;  %v2059_v33 = vsel %vm925_vm5, %v14276_v56, %v2058_v43  ;;  %8158 = vrot.lane.b32.xlu2 %v8157_v41, %s8357_s22  ;;  %v3908_v27 = vsel %vm925_vm5, %v17652_v44, %v17651_v25  ;;  %v6517_v43 = vsel %vm925_vm5, %v14298_v8, %v6516_v16  ;;  %v2062_v16 = vrot.slane %v14161_v55, 4 }
 0x408   : > { %v8147_v63 = vpack.i.bf16 %v2067_v22, %v2059_v33  ;;  %v6509_v47 = vsel %vm925_vm5, %v14291_v7, %v6508_v29  ;;  %v3916_v13 = vperm.slane %v3908_v27, %v9326_v61  ;;  %v3928_v56 = vperm.slane %v17653_v32, %v9326_v61  ;;  %v17654_v33 = vld [vmem:[#allocation70_spill] sm:$0xff] }
 0x409   : > { %v3940_v41 = vperm.slane %v13483_v57, %v9326_v61  ;;  %v4593_v29 = vrot.slane %v13928_v30, 4  ;;  %v8117_v58 = vpack.i.bf16 %v6517_v43, %v6509_v47  ;;  %v14328_v27 = vperm.slane %v13961_v37, %v9326_v61 }
 0x40a   : > { %8148 = vrot.lane.b32.xlu1 %v8147_v63, %s8357_s22  ;;  %v3959_v44 = vrot.slane %v3916_v13, 4  ;;  %v3967_v25 = vrot.slane %v3928_v56, 4  ;;  %v14332_v57 = vperm.slane %v13933_v31, %v9326_v61  ;;  %v3966_v30 = vsel %vm925_vm5, %v3965_v51, %v3928_v56  ;;  %v14337_v63 = vpop.permute.xlu1 %7968  ;;  %v14347_v56 = vpop.permute.xlu2 %8038 }
 0x40b   : > { %v3957_v15 = vrot.slane %v3940_v41, 4  ;;  %8118 = vrot.lane.b32.xlu0 %v8117_v58, %s8357_s22  ;;  %v2070_v32 = vrot.slane %v14152_v38, 4  ;;  %v2063_v37 = vsel %vm925_vm5, %v14113_v35, %v2062_v16  ;;  %v17655_v38 = vld [vmem:[#allocation91_spill] sm:$0xff]  ;;  %v14355_v35 = vpop.permute.xlu0 %7953 }
 0x40c   : > { %v3960_v47 = vsel %vm925_vm5, %v3940_v41, %v3959_v44  ;;  %v3968_v55 = vsel %vm925_vm5, %v3952_v28, %v3967_v25  ;;  %v17656_v28 = vld [vmem:[#allocation108_spill] sm:$0xff] }
 0x40d   : > { %v3958_v43 = vsel %vm925_vm5, %v3957_v15, %v3916_v13  ;;  %v8167_v22 = vpack.i.bf16 %v3968_v55, %v3960_v47  ;;  %v2071_v51 = vsel %vm925_vm5, %v14120_v54, %v2070_v32  ;;  %v17657_v25 = vrot.slane %v17656_v28, 4  ;;  %v17658_v15 = vld [vmem:[#allocation187_spill] sm:$0xff]  ;;  %v17659_v54 = vld [vmem:[#allocation105_spill] sm:$0xff] }
 0x40e   : > { %v8182_v26 = vpack.i.bf16 %v3966_v30, %v3958_v43  ;;  %v8137_v44 = vpack.i.bf16 %v2071_v51, %v2063_v37  ;;  %v14361_v30 = vperm.slane %v17659_v54, %v9326_v61  ;;  %v4621_v32 = vrot.slane %v14328_v27, 4  ;;  %v17661_v51 = vld [vmem:[#allocation7_spill] sm:$0xff] }
 0x40f   : > { %v4572_v13 = vsel %vm925_vm5, %v17658_v15, %v17657_v25  ;;  %8168 = vrot.lane.b32.xlu2 %v8167_v22, %s8356_s20  ;;  %v4629_v47 = vrot.slane %v14332_v57, 4  ;;  %v17660_v43 = vrot.slane %v17658_v15, 4  ;;  %v14372_v22 = vperm.slane %v17661_v51, %v9326_v61 }
 0x410   : > { %v4580_v16 = vperm.slane %v4572_v13, %v9326_v61  ;;  %v4594_v25 = vsel %vm925_vm5, %v4593_v29, %v17568_v36  ;;  %v14389_v51 = vperm.slane %v13965_v0, %v9326_v61  ;;  %v2724_v36 = vrot.slane %v14177_v23, 4 }
 0x411   : > { %v4570_v37 = vsel %vm925_vm5, %v17660_v43, %v17656_v28  ;;  %17662 = vst [vmem:[#allocation139_spill] sm:$0xff] %v14372_v22  ;;  %v4630_v54 = vsel %vm925_vm5, %v4629_v47, %v14361_v30  ;;  %v14384_v15 = vperm.slane %v4594_v25, %v9326_v61  ;;  %v5930_v28 = vrot.slane %v13807_v60, 4 }
 0x412   : > { %8183 = vrot.lane.b32.xlu1 %v8182_v26, %s8358_s23  ;;  %v4622_v13 = vsel %vm925_vm5, %v4621_v32, %v4580_v16  ;;  %v14381_v58 = vperm.slane %v4570_v37, %v9326_v61  ;;  %17665 = vst [vmem:[#allocation123_spill] sm:$0xff] %v14389_v51  ;;  %v3929_v26 = vrot.slane %v13451_v48, 4  ;;  %v14395_v29 = vperm.slane %v13457_v21, %v9326_v61  ;;  %v17667_v37 = vld [vmem:[#allocation137_spill] sm:$0xff] }
 0x413   : > { %17664 = vst [vmem:[#allocation71_spill] sm:$0xff] %v14384_v15  ;;  %v8192_v43 = vpack.i.bf16 %v4630_v54, %v4622_v13  ;;  %8138 = vrot.lane.b32.xlu0 %v8137_v44, %s8356_s20  ;;  %v2732_v47 = vrot.slane %v14143_v2, 4  ;;  %v14402_v60 = vperm.slane %v13812_v40, %v9326_v61  ;;  %v14406_v0 = vperm.slane %v13825_v62, %v9326_v61  ;;  %v17666_v2 = vld [vmem:[#allocation133_spill] sm:$0xff]  ;;  %v14423_v54 = vpop.permute.xlu1 %8003 }
 0x414   : > { %17663 = vst [vmem:[#allocation42_spill] sm:$0xff] %v14381_v58  ;;  %v4619_v32 = vrot.slane %v14381_v58, 4  ;;  %v4627_v48 = vrot.slane %v14372_v22, 4  ;;  %v2725_v21 = vsel %vm925_vm5, %v2724_v36, %v14170_v19  ;;  %v17668_v25 = vrot.slane %v17667_v37, 4  ;;  %v17669_v13 = vld [vmem:[#allocation69_spill] sm:$0xff] }
 0x415   : > { %v2733_v44 = vsel %vm925_vm5, %v2732_v47, %v14174_v12  ;;  %v14421_v62 = vperm.slane %v17669_v13, %v9326_v61  ;;  %v5931_v12 = vsel %vm925_vm5, %v5930_v28, %v17529_v6  ;;  %v17674_v28 = vld [vmem:[#allocation130_spill] sm:$0xff]  ;;  %v6622_v13 = vrot.slane %v14074_v4, 4  ;;  %v17676_v47 = vld [vmem:[#allocation184_spill] sm:$0xff] }
 0x416   : > { %v4620_v23 = vsel %vm925_vm5, %v14384_v15, %v4619_v32  ;;  %v5907_v40 = vsel %vm925_vm5, %v17668_v25, %v17666_v2  ;;  %v4628_v19 = vsel %vm925_vm5, %v14389_v51, %v4627_v48  ;;  %v8162_v36 = vpack.i.bf16 %v2733_v44, %v2725_v21  ;;  %v14441_v48 = vpop.permute.xlu2 %8043 }
 0x417   : > { %17670 = vst [vmem:[#allocation129_spill] sm:$0xff] %v14421_v62  ;;  %v14428_v32 = vperm.slane %v5907_v40, %v9326_v61  ;;  %8193 = vrot.lane.b32.xlu2 %v8192_v43, %s8358_s23  ;;  %v8187_v2 = vpack.i.bf16 %v4628_v19, %v4620_v23  ;;  %v14435_v37 = vperm.slane %v5931_v12, %v9326_v61  ;;  %v5964_v6 = vrot.slane %v14421_v62, 4  ;;  %v14450_v43 = vpop.permute.xlu0 %7958  ;;  %v17675_v23 = vld [vmem:[#allocation131_spill] sm:$0xff] }
 0x418   : > { %v14439_v25 = vperm.slane %v13839_v3, %v9326_v61  ;;  %v14448_v40 = vperm.slane %v17674_v28, %v9326_v61  ;;  %v14455_v3 = vperm.slane %v17675_v23, %v9326_v61  ;;  %v6630_v19 = vrot.slane %v14215_v10, 4 }
 0x419   : > { %17671 = vst [vmem:[#allocation68_spill] sm:$0xff] %v14428_v32  ;;  %v5956_v44 = vrot.slane %v14428_v32, 4  ;;  %v4623_v12 = vrot.slane %v4580_v16, 4  ;;  %v14461_v21 = vperm.slane %v13925_v9, %v9326_v61  ;;  %v4705_v28 = vrot.slane %v13920_v1, 4 }
 0x41a   : > { %17672 = vst [vmem:[#allocation214_spill] sm:$0xff] %v14435_v37  ;;  %8188 = vrot.lane.b32.xlu1 %v8187_v2, %s8357_s22  ;;  %v4631_v2 = vrot.slane %v14361_v30, 4  ;;  %v5965_v23 = vsel %vm925_vm5, %v14439_v25, %v5964_v6  ;;  %v6623_v31 = vsel %vm925_vm5, %v6622_v13, %v14448_v40  ;;  %v6631_v16 = vsel %vm925_vm5, %v6630_v19, %v14455_v3  ;;  %v17678_v6 = vld [vmem:[#allocation147_spill] sm:$0xff]  ;;  %v17679_v13 = vld [vmem:[#allocation193_spill] sm:$0xff]  ;;  %v17680_v19 = vld [vmem:[#allocation124_spill] sm:$0xff] }
 0x41b   : > { %17673 = vst [vmem:[#allocation12_spill] sm:$0xff] %v14439_v25  ;;  %v5957_v41 = vsel %vm925_vm5, %v14435_v37, %v5956_v44  ;;  %8163 = vrot.lane.b32.xlu0 %v8162_v36, %s8358_s23  ;;  %v4624_v9 = vsel %vm925_vm5, %v14328_v27, %v4623_v12  ;;  %v8202_v44 = vpack.i.bf16 %v6631_v16, %v6623_v31  ;;  %v17677_v22 = vrot.slane %v17676_v47, 4  ;;  %v17681_v27 = vld [vmem:[#allocation41_spill] sm:$0xff]  ;;  %v17682_v31 = vld [vmem:[#allocation208_spill] sm:$0xff]  ;;  %v17705_v37 = vld [vmem:[#allocation134_spill] sm:$0xff] }
 0x41c   : > { %v8207_v55 = vpack.i.bf16 %v5965_v23, %v5957_v41  ;;  %v4632_v30 = vsel %vm925_vm5, %v14332_v57, %v4631_v2  ;;  %v4040_v51 = vperm.slane %v17679_v13, %v9326_v61  ;;  %v4052_v15 = vperm.slane %v17680_v19, %v9326_v61  ;;  %v17684_v23 = vld [vmem:[#allocation85_spill] sm:$0xff] }
 0x41d   : > { %v8172_v36 = vpack.i.bf16 %v4632_v30, %v4624_v9  ;;  %v4020_v58 = vsel %vm925_vm5, %v17678_v6, %v17677_v22  ;;  %v14489_v1 = vperm.slane %v17681_v27, %v9326_v61  ;;  %v4077_v12 = vrot.slane %v14395_v29, 4  ;;  %v17686_v9 = vld [vmem:[#allocation205_spill] sm:$0xff]  ;;  %v14504_v6 = vpop.permute.xlu1 %8013 }
 0x41e   : > { %v4028_v57 = vperm.slane %v4020_v58, %v9326_v61  ;;  %v14496_v22 = vpop.permute.xlu2 %8063  ;;  %v4069_v2 = vrot.slane %v4052_v15, 4  ;;  %v14500_v16 = vperm.slane %v17684_v23, %v9326_v61  ;;  %v3930_v30 = vsel %vm925_vm5, %v3929_v26, %v17686_v9  ;;  %v17687_v58 = vld [vmem:[#allocation55_spill] sm:$0xff] }
 0x41f   : > { %8208 = vrot.lane.b32.xlu2 %v8207_v55, %s8357_s22  ;;  %17683 = vst [vmem:[#allocation25_spill] sm:$0xff] %v14496_v22  ;;  %v14508_v13 = vperm.slane %v17687_v58, %v9326_v61  ;;  %v14512_v19 = vperm.slane %v14051_v18, %v9326_v61  ;;  %v4079_v27 = vrot.slane %v4040_v51, 4  ;;  %v4078_v26 = vsel %vm925_vm5, %v4077_v12, %v4040_v51  ;;  %v14525_v25 = vpop.permute.xlu0 %7983  ;;  %v17689_v51 = vld [vmem:[#allocation220_spill] sm:$0xff] }
 0x420   : > { %17685 = vst [vmem:[#allocation87_spill] sm:$0xff] %v14500_v16  ;;  %v4071_v55 = vrot.slane %v4028_v57, 4  ;;  %v4070_v23 = vsel %vm925_vm5, %v4069_v2, %v4028_v57  ;;  %v14519_v9 = vperm.slane %v3930_v30, %v9326_v61  ;;  %v14531_v57 = vperm.slane %v17689_v51, %v9326_v61  ;;  %v17696_v51 = vld [vmem:[#allocation99_spill] sm:$0xff]  ;;  %v17698_v2 = vld [vmem:[#allocation166_spill] sm:$0xff] }
 0x421   : > { %v4080_v18 = vsel %vm925_vm5, %v14395_v29, %v4079_v27  ;;  %v8237_v62 = vpack.i.bf16 %v4078_v26, %v4070_v23  ;;  %v3955_v12 = vrot.slane %v14500_v16, 4  ;;  %v17692_v29 = vld [vmem:[#allocation140_spill] sm:$0xff]  ;;  %v17697_v58 = vrot.slane %v17696_v51, 4 }
 0x422   : > { %8203 = vrot.lane.b32.xlu1 %v8202_v44, %s8358_s23  ;;  %17688 = vst [vmem:[#allocation150_spill] sm:$0xff] %v14519_v9  ;;  %v4072_v47 = vsel %vm925_vm5, %v4052_v15, %v4071_v55  ;;  %v17691_v15 = vld [vmem:[#allocation5_spill] sm:$0xff]  ;;  %v14538_v55 = vperm.slane %v17692_v29, %v9326_v61  ;;  %v17693_v27 = vld [vmem:[#allocation164_spill] sm:$0xff] }
 0x423   : > { %8173 = vrot.lane.b32.xlu0 %v8172_v36, %s8356_s20  ;;  %v8212_v44 = vpack.i.bf16 %v4080_v18, %v4072_v47  ;;  %17690 = vst [vmem:[#allocation151_spill] sm:$0xff] %v14531_v57  ;;  %v3963_v30 = vrot.slane %v17691_v15, 4  ;;  %v14542_v23 = vperm.slane %v17693_v27, %v9326_v61  ;;  %v3956_v36 = vsel %vm925_vm5, %v14519_v9, %v3955_v12  ;;  %v17694_v47 = vld [vmem:[#allocation142_spill] sm:$0xff]  ;;  %v17695_v18 = vld [vmem:[#allocation107_spill] sm:$0xff] }
 0x424   : > { %v6080_v26 = vrot.slane %v17694_v47, 4  ;;  %v4682_v41 = vsel %vm925_vm5, %v17697_v58, %v17695_v18  ;;  %v4706_v15 = vsel %vm925_vm5, %v4705_v28, %v17698_v2  ;;  %v6072_v29 = vrot.slane %v14538_v55, 4  ;;  %v17700_v27 = vld [vmem:[#allocation106_spill] sm:$0xff] }
 0x425   : > { %v14555_v16 = vperm.slane %v4682_v41, %v9326_v61  ;;  %v14559_v32 = vperm.slane %v17700_v27, %v9326_v61  ;;  %v14562_v12 = vperm.slane %v4706_v15, %v9326_v61  ;;  %v3964_v58 = vsel %vm925_vm5, %v14531_v57, %v3963_v30  ;;  %v17703_v41 = vld [vmem:[#allocation189_spill] sm:$0xff] }
 0x426   : > { %v6081_v28 = vsel %vm925_vm5, %v14406_v0, %v6080_v26  ;;  %v14572_v2 = vperm.slane %v17703_v41, %v9326_v61  ;;  %v6073_v27 = vsel %vm925_vm5, %v14542_v23, %v6072_v29  ;;  %v14579_v9 = vperm.slane %v17705_v37, %v9326_v61  ;;  %v14586_v57 = vpop.permute.xlu2 %8068  ;;  %v17710_v41 = vld [vmem:[#allocation79_spill] sm:$0xff]  ;;  %v17712_v29 = vld [vmem:[#allocation66_spill] sm:$0xff]  ;;  %v14596_v37 = vpop.permute.xlu1 %8018 }
 0x427   : > { %17699 = vst [vmem:[#allocation109_spill] sm:$0xff] %v14555_v16  ;;  %8213 = vrot.lane.b32.xlu2 %v8212_v44, %s8356_s20  ;;  %v4731_v15 = vrot.slane %v14555_v16, 4  ;;  %v17707_v44 = vld [vmem:[#allocation135_spill] sm:$0xff]  ;;  %v8177_v30 = vpack.i.bf16 %v3964_v58, %v3956_v36  ;;  %v8227_v26 = vpack.i.bf16 %v6081_v28, %v6073_v27  ;;  %v14590_v42 = vperm.slane %v17710_v41, %v9326_v61  ;;  %v17715_v58 = vld [vmem:[#allocation32_spill] sm:$0xff] }
 0x428   : > { %17701 = vst [vmem:[#allocation102_spill] sm:$0xff] %v14559_v32  ;;  %v14583_v22 = vperm.slane %v17707_v44, %v9326_v61  ;;  %v14594_v16 = vperm.slane %v17712_v29, %v9326_v61  ;;  %v4739_v36 = vrot.slane %v14559_v32, 4  ;;  %v6620_v28 = vrot.slane %v14579_v9, 4  ;;  %v14613_v44 = vpop.permute.xlu0 %7993 }
 0x429   : > { %17702 = vst [vmem:[#allocation113_spill] sm:$0xff] %v14562_v12  ;;  %v17714_v41 = vrot.slane %v17695_v18, 4  ;;  %v4704_v32 = vperm.slane %v17715_v58, %v9326_v61  ;;  %v17719_v58 = vld [vmem:[#allocation163_spill] sm:$0xff] }
 0x42a   : > { %17704 = vst [vmem:[#allocation90_spill] sm:$0xff] %v14572_v2  ;;  %8238 = vrot.lane.b32.xlu1 %v8237_v62, %s8358_s23  ;;  %v4732_v62 = vsel %vm925_vm5, %v14562_v12, %v4731_v15  ;;  %v6628_v27 = vrot.slane %v14583_v22, 4  ;;  %v4740_v52 = vsel %vm925_vm5, %v14572_v2, %v4739_v36  ;;  %v17717_v2 = vld [vmem:[#allocation154_spill] sm:$0xff] }
 0x42b   : > { %17706 = vst [vmem:[#allocation95_spill] sm:$0xff] %v14579_v9  ;;  %8178 = vrot.lane.b32.xlu0 %v8177_v30, %s8357_s22  ;;  %v4684_v29 = vsel %vm925_vm5, %v17696_v51, %v17714_v41  ;;  %v4733_v30 = vrot.slane %v14489_v1, 4  ;;  %v8242_v12 = vpack.i.bf16 %v4740_v52, %v4732_v62  ;;  %v4741_v51 = vrot.slane %v14461_v21, 4  ;;  %v17716_v41 = vld [vmem:[#allocation116_spill] sm:$0xff] }
 0x42c   : > { %17708 = vst [vmem:[#allocation101_spill] sm:$0xff] %v14583_v22  ;;  %v4692_v15 = vperm.slane %v4684_v29, %v9326_v61  ;;  %v6621_v22 = vsel %vm925_vm5, %v14590_v42, %v6620_v28  ;;  %v6629_v18 = vsel %vm925_vm5, %v14594_v16, %v6628_v27  ;;  %v17718_v9 = vrot.slane %v17717_v2, 4 }
 0x42d   : > { %17709 = vst [vmem:[#allocation204_spill] sm:$0xff] %v14586_v57  ;;  %v14631_v57 = vperm.slane %v17719_v58, %v9326_v61  ;;  %v14635_v52 = vperm.slane %v14061_v34, %v9326_v61  ;;  %v4742_v62 = vsel %vm925_vm5, %v4741_v51, %v4704_v32  ;;  %v14644_v2 = vperm.slane %v14068_v11, %v9326_v61  ;;  %v17724_v58 = vld [vmem:[#allocation132_spill] sm:$0xff] }
 0x42e   : > { %17711 = vst [vmem:[#allocation53_spill] sm:$0xff] %v14590_v42  ;;  %v4734_v36 = vsel %vm925_vm5, %v4733_v30, %v4692_v15  ;;  %v6683_v29 = vsel %vm925_vm5, %v17718_v9, %v17716_v41  ;;  %v4735_v9 = vrot.slane %v4692_v15, 4  ;;  %v4743_v41 = vrot.slane %v4704_v32, 4  ;;  %v17735_v15 = vld [vmem:[#allocation160_spill] sm:$0xff] }
 0x42f   : > { %17713 = vst [vmem:[#allocation67_spill] sm:$0xff] %v14594_v16  ;;  %8228 = vrot.lane.b32.xlu2 %v8227_v26, %s8356_s20  ;;  %v14640_v28 = vperm.slane %v6683_v29, %v9326_v61  ;;  %v8247_v27 = vpack.i.bf16 %v4742_v62, %v4734_v36  ;;  %v6740_v30 = vrot.slane %v14631_v57, 4  ;;  %v17725_v16 = vld [vmem:[#allocation136_spill] sm:$0xff]  ;;  %v8197_v51 = vpack.i.bf16 %v6629_v18, %v6621_v22  ;;  %v14662_v62 = vpop.permute.xlu1 %8033  ;;  %v14665_v22 = vpop.permute.xlu2 %8078  ;;  %v17730_v26 = vld [vmem:[#allocation141_spill] sm:$0xff] }
 0x430   : > { %17720 = vst [vmem:[#allocation111_spill] sm:$0xff] %v14631_v57  ;;  %v17726_v34 = vrot.slane %v17725_v16, 4  ;;  %v4736_v11 = vsel %vm925_vm5, %v14489_v1, %v4735_v9  ;;  %v4744_v16 = vsel %vm925_vm5, %v14461_v21, %v4743_v41  ;;  %v17728_v9 = vld [vmem:[#allocation84_spill] sm:$0xff]  ;;  %v6078_v21 = vrot.slane %v14406_v0, 4  ;;  %v17738_v41 = vld [vmem:[#allocation157_spill] sm:$0xff] }
 0x431   : > { %17721 = vst [vmem:[#allocation75_spill] sm:$0xff] %v14635_v52  ;;  %v6732_v29 = vrot.slane %v14640_v28, 4  ;;  %v6741_v32 = vsel %vm925_vm5, %v14644_v2, %v6740_v30  ;;  %v8217_v1 = vpack.i.bf16 %v4744_v16, %v4736_v11  ;;  %v17736_v11 = vld [vmem:[#allocation161_spill] sm:$0xff] }
 0x432   : > { %17722 = vst [vmem:[#allocation155_spill] sm:$0xff] %v14640_v28  ;;  %v6019_v42 = vsel %vm925_vm5, %v17726_v34, %v17724_v58  ;;  %8243 = vrot.lane.b32.xlu1 %v8242_v12, %s8357_s22  ;;  %v17729_v58 = vrot.slane %v13820_v5, 4  ;;  %v17732_v5 = vld [vmem:[#allocation19_spill] sm:$0xff]  ;;  %v6070_v34 = vrot.slane %v14542_v23, 4  ;;  %v6079_v23 = vsel %vm925_vm5, %v6078_v21, %v17694_v47 }
 0x433   : > { %17723 = vst [vmem:[#allocation65_spill] sm:$0xff] %v14644_v2  ;;  %8198 = vrot.lane.b32.xlu0 %v8197_v51, %s8357_s22  ;;  %v6733_v12 = vsel %vm925_vm5, %v14635_v52, %v6732_v29  ;;  %v14670_v18 = vperm.slane %v6019_v42, %v9326_v61  ;;  %v14679_v51 = vpop.permute.xlu0 %7998  ;;  %v14683_v29 = vperm.slane %v17730_v26, %v9326_v61  ;;  %v17765_v2 = vld [vmem:[#allocation96_spill] sm:$0xff] }
 0x434   : > { %v6043_v30 = vsel %vm925_vm5, %v17729_v58, %v17728_v9  ;;  %v8252_v16 = vpack.i.bf16 %v6741_v32, %v6733_v12  ;;  %v14689_v9 = vperm.slane %v17732_v5, %v9326_v61  ;;  %v6693_v26 = vperm.slane %v17735_v15, %v9326_v61  ;;  %v17737_v12 = vld [vmem:[#allocation144_spill] sm:$0xff] }
 0x435   : > { %17727 = vst [vmem:[#allocation143_spill] sm:$0xff] %v14670_v18  ;;  %v14692_v58 = vperm.slane %v6043_v30, %v9326_v61  ;;  %v6068_v42 = vrot.slane %v14670_v18, 4  ;;  %v6744_v32 = vrot.slane %v17736_v11, 4  ;;  %v5917_v5 = vperm.slane %v17737_v12, %v9326_v61  ;;  %v17739_v12 = vld [vmem:[#allocation145_spill] sm:$0xff]  ;;  %v17873_v52 = vld [vmem:[#allocation92_spill] sm:$0xff] }
 0x436   : > { %17731 = vst [vmem:[#allocation82_spill] sm:$0xff] %v14683_v29  ;;  %v5941_v30 = vperm.slane %v17738_v41, %v9326_v61  ;;  %v6076_v36 = vrot.slane %v14683_v29, 4  ;;  %v6071_v0 = vsel %vm925_vm5, %v6070_v34, %v14538_v55  ;;  %v6736_v15 = vrot.slane %v6693_v26, 4 }
 0x437   : > { %17733 = vst [vmem:[#allocation186_spill] sm:$0xff] %v14689_v9  ;;  %8248 = vrot.lane.b32.xlu2 %v8247_v27, %s8358_s23  ;;  %v8272_v27 = vpack.i.bf16 %v6079_v23, %v6071_v0  ;;  %v6745_v18 = vsel %vm925_vm5, %v14512_v19, %v6744_v32  ;;  %v5960_v57 = vrot.slane %v5917_v5, 4  ;;  %v5968_v28 = vrot.slane %v17739_v12, 4  ;;  %v14725_v0 = vpop.permute.xlu1 %8053 }
 0x438   : > { %17734 = vst [vmem:[#allocation149_spill] sm:$0xff] %v14692_v58  ;;  %v6069_v41 = vsel %vm925_vm5, %v14692_v58, %v6068_v42  ;;  %v6077_v29 = vsel %vm925_vm5, %v14689_v9, %v6076_v36  ;;  %v6737_v55 = vsel %vm925_vm5, %v14508_v13, %v6736_v15  ;;  %v5958_v47 = vrot.slane %v5941_v30, 4  ;;  %v17741_v15 = vld [vmem:[#allocation191_spill] sm:$0xff] }
 0x439   : > { %v8222_v21 = vpack.i.bf16 %v6745_v18, %v6737_v55  ;;  %v5961_v34 = vsel %vm925_vm5, %v5941_v30, %v5960_v57  ;;  %v5966_v32 = vrot.slane %v14402_v60, 4  ;;  %17740 = vst [vmem:[#allocation190_spill] sm:$0xff] %v14725_v0  ;;  %v14732_v9 = vperm.slane %v17741_v15, %v9326_v61  ;;  %v17969_v0 = vld [vmem:[#allocation8_spill] sm:$0xff] }
 0x43a   : > { %8253 = vrot.lane.b32.xlu1 %v8252_v16, %s8357_s22  ;;  %v5969_v16 = vsel %vm925_vm5, %v14402_v60, %v5968_v28  ;;  %v5959_v36 = vsel %vm925_vm5, %v5958_v47, %v5917_v5  ;;  %v17744_v18 = vrot.slane %v13445_v20, 4  ;;  %v8267_v30 = vpack.i.bf16 %v6077_v29, %v6069_v41  ;;  %v14739_v60 = vpop.permute.xlu2 %8093  ;;  %v17746_v20 = vld [vmem:[#allocation200_spill] sm:$0xff]  ;;  %v17748_v41 = vld [vmem:[#allocation117_spill] sm:$0xff]  ;;  %v17750_v28 = vld [vmem:[#allocation103_spill] sm:$0xff] }
 0x43b   : > { %8218 = vrot.lane.b32.xlu0 %v8217_v1, %s8356_s20  ;;  %v14727_v42 = vpop.permute.xlu0 %8008  ;;  %v8282_v23 = vpack.i.bf16 %v5969_v16, %v5961_v34  ;;  %17742 = vst [vmem:[#allocation70_spill] sm:$0xff] %v14732_v9  ;;  %v17743_v1 = vld [vmem:[#allocation94_spill] sm:$0xff]  ;;  %v5967_v55 = vsel %vm925_vm5, %v5966_v32, %v17739_v12  ;;  %v14750_v15 = vperm.slane %v17746_v20, %v9326_v61  ;;  %v8036_v29 = vunpack.i.h.bf16 %v14662_v62 }
 0x43c   : > { %v4042_v57 = vsel %vm925_vm5, %v17744_v18, %v17743_v1  ;;  %v8277_v16 = vpack.i.bf16 %v5967_v55, %v5959_v36  ;;  %v4067_v12 = vrot.slane %v14732_v9, 4  ;;  %v6394_v32 = vrot.slane %v17748_v41, 4  ;;  %v17749_v18 = vld [vmem:[#allocation194_spill] sm:$0xff] }
 0x43d   : > { %v14744_v34 = vperm.slane %v4042_v57, %v9326_v61  ;;  %17747 = vst [vmem:[#allocation108_spill] sm:$0xff] %v14750_v15  ;;  %v4075_v57 = vrot.slane %v17749_v18, 4  ;;  %v6402_v5 = vrot.slane %v17750_v28, 4  ;;  %v6734_v36 = vrot.slane %v14508_v13, 4  ;;  %v17751_v28 = vld [vmem:[#allocation104_spill] sm:$0xff] }
 0x43e   : > { %v6742_v55 = vrot.slane %v14512_v19, 4  ;;  %v8035_v61 = vunpack.i.l.bf16 %v14662_v62  ;;  %v8001_v20 = vunpack.i.h.bf16 %v14679_v51  ;;  %v8000_v1 = vunpack.i.l.bf16 %v14679_v51  ;;  %v17752_v51 = vld [vmem:[#allocation122_spill] sm:$0xff] }
 0x43f   : > { %17745 = vst [vmem:[#allocation91_spill] sm:$0xff] %v14744_v34  ;;  %8268 = vrot.lane.b32.xlu2 %v8267_v30, %s8357_s22  ;;  %v4068_v30 = vsel %vm925_vm5, %v14744_v34, %v4067_v12  ;;  %v4076_v41 = vsel %vm925_vm5, %v14750_v15, %v4075_v57  ;;  %v6395_v13 = vsel %vm925_vm5, %v6394_v32, %v17751_v28  ;;  %v17753_v12 = vld [vmem:[#allocation165_spill] sm:$0xff]  ;;  %v17756_v28 = vld [vmem:[#allocation148_spill] sm:$0xff] }
 0x440   : > { %v14773_v19 = vsel %vm925_vm5, %v6734_v36, %v6693_v26  ;;  %v14777_v62 = vsel %vm925_vm5, %v6742_v55, %v17736_v11  ;;  %v5738_v47 = vrot.slane %v17753_v12, 4  ;;  %v8232_v18 = vpack.i.bf16 %v4076_v41, %v4068_v30  ;;  %v17754_v57 = vld [vmem:[#allocation169_spill] sm:$0xff]  ;;  %v17755_v36 = vld [vmem:[#allocation46_spill] sm:$0xff]  ;;  %v17758_v55 = vld [vmem:[#allocation43_spill] sm:$0xff]  ;;  %v14793_v41 = vpop.permute.xlu1 %8058 }
 0x441   : > { %v6403_v9 = vsel %vm925_vm5, %v6402_v5, %v17754_v57  ;;  %v17757_v34 = vrot.slane %v17756_v28, 4  ;;  %17761 = vst [vmem:[#allocation187_spill] sm:$0xff] %v14793_v41  ;;  %v17762_v5 = vld [vmem:[#allocation73_spill] sm:$0xff]  ;;  %v17763_v57 = vunpack.i.l.bf16 %v17649_v14 }
 0x442   : > { %8273 = vrot.lane.b32.xlu1 %v8272_v27, %s8358_s23  ;;  %v5730_v27 = vrot.slane %v17752_v51, 4  ;;  %v17759_v51 = vld [vmem:[#allocation38_spill] sm:$0xff] }
 0x443   : > { %8223 = vrot.lane.b32.xlu0 %v8222_v21, %s8356_s20  ;;  %v8029_v15 = vpop.permute.xlu0 %8028  ;;  %v5067_v11 = vsel %vm925_vm5, %v17757_v34, %v17755_v36  ;;  %v17760_v58 = vrot.slane %v17759_v51, 4  ;;  %v4393_v34 = vrot.slane %v17765_v2, 4  ;;  %v17768_v2 = vunpack.i.l.bf16 %v14441_v48 }
 0x444   : > { %v8031_v21 = vunpack.i.h.bf16 %v8029_v15  ;;  %v8030_v26 = vunpack.i.l.bf16 %v8029_v15  ;;  %v5731_v12 = vsel %vm925_vm5, %v5730_v27, %v17762_v5  ;;  %v5514_v32 = vsel %vm1469_vm6, %v5067_v11, %v17763_v57  ;;  %v14805_v36 = vpop.permute.xlu2 %8113  ;;  %v17767_v5 = vld [vmem:[#allocation127_spill] sm:$0xff] }
 0x445   : > { %v5075_v30 = vsel %vm925_vm5, %v17760_v58, %v17758_v55  ;;  %v17764_v15 = vunpack.i.h.bf16 %v17649_v14  ;;  %v17766_v27 = vunpack.i.l.bf16 %v14347_v56  ;;  %v5739_v11 = vsel %vm925_vm5, %v5738_v47, %v17767_v5 }
 0x446   : > { %v6845_v58 = vsel %vm1469_vm6, %v6403_v9, %v8031_v21  ;;  %v6842_v55 = vsel %vm1469_vm6, %v6395_v13, %v8030_v26  ;;  %v17769_v57 = vunpack.i.h.bf16 %v14347_v56  ;;  %v17770_v47 = vunpack.i.l.bf16 %v14423_v54 }
 0x447   : > { %v5517_v28 = vsel %vm1469_vm6, %v5075_v30, %v17764_v15  ;;  %8283 = vrot.lane.b32.xlu2 %v8282_v23, %s8356_s20  ;;  %v6178_v51 = vsel %vm1469_vm6, %v5731_v12, %v17766_v27  ;;  %v6843_v14 = vsel %vm1471_vm7, %v6842_v55, %v8035_v61  ;;  %v6846_v30 = vsel %vm1471_vm7, %v6845_v58, %v8036_v29  ;;  %v17772_v12 = vld [vmem:[#allocation76_spill] sm:$0xff]  ;;  %v17775_v58 = vld [vmem:[#allocation195_spill] sm:$0xff]  ;;  %v17776_v55 = vld [vmem:[#allocation21_spill] sm:$0xff] }
 0x448   : > { %v6179_v23 = vsel %vm1471_vm7, %v6178_v51, %v17768_v2  ;;  %v6181_v9 = vsel %vm1469_vm6, %v5739_v11, %v17769_v57  ;;  %v6844_v13 = vsel %vm1473_vm8, %v6843_v14, %v8000_v1  ;;  %v6847_v21 = vsel %vm1473_vm8, %v6846_v30, %v8001_v20 }
 0x449   : > { %v6180_v61 = vsel %vm1473_vm8, %v6179_v23, %v17770_v47  ;;  %v17771_v29 = vunpack.i.h.bf16 %v14441_v48  ;;  %6884 = vmatpush.msra.mxu0 %v6844_v13  ;;  %6904 = vmatpush.msrb.mxu1 %v6847_v21  ;;  %v17773_v56 = vunpack.i.l.bf16 %v17772_v12  ;;  %v4394_v20 = vsel %vm925_vm5, %v4393_v34, %v17775_v58  ;;  %v17782_v23 = vld [vmem:[#allocation217_spill] sm:$0xff]  ;;  %v17783_v13 = vld [vmem:[#allocation222_spill] sm:$0xff]  ;;  %v17789_v58 = vld [vmem:[#allocation36_spill] sm:$0xff] }
 0x44a   : > { %8278 = vrot.lane.b32.xlu1 %v8277_v16, %s8358_s23  ;;  %v17774_v16 = vunpack.i.h.bf16 %v17772_v12  ;;  %v4401_v27 = vrot.slane %v17776_v55, 4  ;;  %v17777_v48 = vunpack.i.h.bf16 %v14423_v54  ;;  %v17778_v5 = vunpack.i.l.bf16 %v17654_v33 }
 0x44b   : > { %v6182_v26 = vsel %vm1471_vm7, %v6181_v9, %v17771_v29  ;;  %v5515_v15 = vsel %vm1471_vm7, %v5514_v32, %v17773_v56  ;;  %8233 = vrot.lane.b32.xlu0 %v8232_v18, %s8357_s22  ;;  %v17779_v32 = vunpack.i.h.bf16 %v17654_v33  ;;  %v8010_v30 = vunpack.i.l.bf16 %v14727_v42  ;;  %6885 = vmatpush.msra.mxu0 %v6180_v61  ;;  %s7059_s22 = sshll.u32 %s313_s12, 4  ;;  %s7060_s22 = int_to_ptr.vmem [resolvable:$true] %s7059_s22 }
 0x44c   : > { %v5518_v1 = vsel %vm1471_vm7, %v5517_v28, %v17774_v16  ;;  %v6183_v51 = vsel %vm1473_vm8, %v6182_v26, %v17777_v48  ;;  %v5516_v11 = vsel %vm1473_vm8, %v5515_v15, %v17778_v5  ;;  %v17780_v28 = vunpack.i.l.bf16 %v14596_v37 }
 0x44d   : > { %v5519_v14 = vsel %vm1473_vm8, %v5518_v1, %v17779_v32  ;;  %6905 = vmatpush.msrb.mxu1 %v6183_v51  ;;  %v17781_v54 = vunpack.i.l.bf16 %v14282_v45  ;;  %v6624_v2 = vrot.slane %v14448_v40, 4  ;;  %v3729_v57 = vrot.slane %v17782_v23, 4  ;;  %6886 = vmatpush.msra.mxu0 %v5516_v11  ;;  %v17792_v51 = vld [vmem:[#allocation224_spill] sm:$0xff]  ;;  %v14896_v32 = vpop.permute.xlu0 %8048 }
 0x44e   : > { %v4841_v34 = vsel %vm1469_vm6, %v4394_v20, %v17780_v28  ;;  %v7996_v33 = vunpack.i.h.bf16 %v14613_v44  ;;  %v8011_v9 = vunpack.i.h.bf16 %v14727_v42  ;;  %v4402_v21 = vsel %vm925_vm5, %v4401_v27, %v17783_v13  ;;  %v17786_v42 = vld [vmem:[#allocation173_spill] sm:$0xff]  ;;  %v14886_v27 = vpop.permute.xlu1 %8103  ;;  %17793 = vst [vmem:[#allocation105_spill] sm:$0xff] %v14896_v32 }
 0x44f   : > { %v4842_v18 = vsel %vm1471_vm7, %v4841_v34, %v17781_v54  ;;  %v6632_v47 = vrot.slane %v14455_v3, 4  ;;  %6906 = vmatpush.msrb.mxu1 %v5519_v14  ;;  %v17784_v61 = vunpack.i.l.bf16 %v14613_v44  ;;  %v17785_v26 = vunpack.i.h.bf16 %v14596_v37  ;;  %v17788_v44 = vld [vmem:[#allocation213_spill] sm:$0xff]  ;;  %v17790_v37 = vld [vmem:[#allocation179_spill] sm:$0xff]  ;;  %v17795_v54 = vld [vmem:[#allocation146_spill] sm:$0xff] }
 0x450   : > { %v14872_v12 = vsel %vm925_vm5, %v14074_v4, %v6624_v2  ;;  %v3737_v56 = vrot.slane %v17786_v42, 4  ;;  %v17787_v15 = vunpack.i.h.bf16 %v14282_v45  ;;  %v3730_v1 = vsel %vm925_vm5, %v3729_v57, %v17788_v44 }
 0x451   : > { %v4843_v29 = vsel %vm1473_vm8, %v4842_v18, %v17784_v61  ;;  %v4844_v40 = vsel %vm1469_vm6, %v4402_v21, %v17785_v26  ;;  %v6633_v16 = vsel %vm925_vm5, %v14215_v10, %v6632_v47  ;;  %v17791_v20 = vrot.slane %v17790_v37, 4  ;;  %v14894_v11 = vpop.permute.xlu2 %8128  ;;  %v17799_v21 = vld [vmem:[#allocation37_spill] sm:$0xff]  ;;  %v17800_v47 = vld [vmem:[#allocation178_spill] sm:$0xff]  ;;  %v17812_v37 = vld [vmem:[#allocation60_spill] sm:$0xff] }
 0x452   : > { %v4845_v3 = vsel %vm1471_vm7, %v4844_v40, %v17787_v15  ;;  %6887 = vmatpush.msra.mxu0 %v4843_v29  ;;  %v8262_v45 = vpack.i.bf16 %v6633_v16, %v14872_v12  ;;  %v4177_v48 = vsel %vm1469_vm6, %v3730_v1, %v8010_v30  ;;  %v3738_v10 = vsel %vm925_vm5, %v3737_v56, %v17792_v51  ;;  %v17809_v16 = vld [vmem:[#allocation86_spill] sm:$0xff] }
 0x453   : > { %v3066_v55 = vsel %vm925_vm5, %v17791_v20, %v17789_v58  ;;  %v4846_v4 = vsel %vm1473_vm8, %v4845_v3, %v7996_v33  ;;  %v7956_v5 = vunpack.i.h.bf16 %v14355_v35  ;;  %v17794_v14 = vunpack.i.l.bf16 %v14504_v6  ;;  %v17811_v58 = vld [vmem:[#allocation62_spill] sm:$0xff] }
 0x454   : > { %6907 = vmatpush.msrb.mxu1 %v4846_v4  ;;  %v4180_v34 = vsel %vm1469_vm6, %v3738_v10, %v8011_v9  ;;  %v17796_v18 = vunpack.i.l.bf16 %v17795_v54  ;;  %v7955_v2 = vunpack.i.l.bf16 %v14355_v35  ;;  %v17797_v23 = vunpack.i.l.bf16 %v14179_v46 }
 0x455   : > { %v4178_v28 = vsel %vm1471_vm7, %v4177_v48, %v17794_v14  ;;  %v17798_v33 = vunpack.i.h.bf16 %v14504_v6  ;;  %v17801_v61 = vrot.slane %v17800_v47, 4  ;;  %v7930_v9 = vunpack.i.l.bf16 %v14293_v49 }
 0x456   : > { %v3513_v30 = vsel %vm1469_vm6, %v3066_v55, %v17796_v18  ;;  %v4179_v57 = vsel %vm1473_vm8, %v4178_v28, %v17797_v23  ;;  %v17802_v26 = vpack.i.bf16 %v14777_v62, %v14773_v19  ;;  %v17803_v35 = vunpack.i.h.bf16 %v14179_v46  ;;  %v17808_v46 = vld [vmem:[#allocation28_spill] sm:$0xff]  ;;  %v17817_v28 = vld [vmem:[#allocation47_spill] sm:$0xff] }
 0x457   : > { %v4181_v13 = vsel %vm1471_vm7, %v4180_v34, %v17798_v33  ;;  %v3074_v29 = vsel %vm925_vm5, %v17801_v61, %v17799_v21  ;;  %6888 = vmatpush.msra.mxu0 %v4179_v57  ;;  %v17804_v6 = vunpack.i.l.bf16 %v17655_v38  ;;  %v17805_v42 = vunpack.i.h.bf16 %v17795_v54  ;;  %v17818_v34 = vld [vmem:[#allocation227_spill] sm:$0xff]  ;;  %v17821_v33 = vld [vmem:[#allocation226_spill] sm:$0xff] }
 0x458   : > { %8258 = vrot.lane.b32.xlu0 %v17802_v26, %s8358_s23  ;;  %v4182_v40 = vsel %vm1473_vm8, %v4181_v13, %v17803_v35  ;;  %v17806_v15 = vunpack.i.l.bf16 %v17637_v53  ;;  %v17807_v19 = vunpack.i.h.bf16 %v17655_v38  ;;  %v17810_v44 = vrot.slane %v17809_v16, 4  ;;  %v17822_v13 = vld [vmem:[#allocation228_spill] sm:$0xff] }
 0x459   : > { %v3514_v12 = vsel %vm1471_vm7, %v3513_v30, %v17804_v6  ;;  %v3516_v56 = vsel %vm1469_vm6, %v3074_v29, %v17805_v42  ;;  %6908 = vmatpush.msrb.mxu1 %v4182_v40  ;;  %v17813_v20 = vrot.slane %v17812_v37, 4  ;;  %v17814_v4 = vunpack.i.h.bf16 %v17637_v53  ;;  %v17828_v6 = vld [vmem:[#allocation24_spill] sm:$0xff] }
 0x45a   : > { %v3515_v3 = vsel %vm1473_vm8, %v3514_v12, %v17806_v15  ;;  %v3517_v62 = vsel %vm1471_vm7, %v3516_v56, %v17807_v19  ;;  %v2385_v1 = vsel %vm925_vm5, %v17810_v44, %v17808_v46  ;;  %v17815_v51 = vunpack.i.l.bf16 %v17682_v31  ;;  %v17830_v15 = vld [vmem:[#allocation29_spill] sm:$0xff]  ;;  %v14987_v46 = vpop.permute.xlu2 %8153  ;;  %v17834_v44 = vld [vmem:[#allocation14_spill] sm:$0xff] }
 0x45b   : > { %v2393_v55 = vsel %vm925_vm5, %v17813_v20, %v17811_v58  ;;  %6889 = vmatpush.msra.mxu0 %v3515_v3  ;;  %v3518_v48 = vsel %vm1473_vm8, %v3517_v62, %v17814_v4  ;;  %v17816_v10 = vunpack.i.h.bf16 %v17682_v31  ;;  %v17819_v54 = vrot.slane %v17818_v34, 4  ;;  %v17831_v3 = vld [vmem:[#allocation171_spill] sm:$0xff]  ;;  %v17837_v20 = vld [vmem:[#allocation30_spill] sm:$0xff] }
 0x45c   : > { %v2832_v38 = vsel %vm1469_vm6, %v2385_v1, %v17815_v51  ;;  %6909 = vmatpush.msrb.mxu1 %v3518_v48  ;;  %v17820_v23 = vunpack.i.l.bf16 %v14156_v59  ;;  %v17823_v21 = vrot.slane %v17822_v13, 4  ;;  %v17824_v47 = vunpack.i.l.bf16 %v14064_v24  ;;  %v17846_v13 = vld [vmem:[#allocation180_spill] sm:$0xff] }
 0x45d   : > { %v2835_v14 = vsel %vm1469_vm6, %v2393_v55, %v17816_v10  ;;  %v1721_v18 = vsel %vm925_vm5, %v17819_v54, %v17817_v28  ;;  %v2833_v30 = vsel %vm1471_vm7, %v2832_v38, %v7955_v2  ;;  %v17825_v29 = vunpack.i.h.bf16 %v14064_v24  ;;  %v17838_v55 = vld [vmem:[#allocation172_spill] sm:$0xff] }
 0x45e   : > { %v2836_v53 = vsel %vm1471_vm7, %v2835_v14, %v7956_v5  ;;  %v2168_v57 = vsel %vm1469_vm6, %v1721_v18, %v17820_v23  ;;  %v1729_v31 = vsel %vm925_vm5, %v17823_v21, %v17821_v33  ;;  %v2834_v61 = vsel %vm1473_vm8, %v2833_v30, %v17824_v47 }
 0x45f   : > { %v2837_v26 = vsel %vm1473_vm8, %v2836_v53, %v17825_v29  ;;  %v17826_v2 = vunpack.i.l.bf16 %v13827_v17  ;;  %v17827_v35 = vunpack.i.h.bf16 %v14156_v59  ;;  %v7681_v12 = vunpack.i.h.bf16 %v17828_v6  ;;  %6890 = vmatpush.msra.mxu0 %v2834_v61  ;;  %v17844_v53 = vld [vmem:[#allocation176_spill] sm:$0xff] }
 0x460   : > { %6910 = vmatpush.msrb.mxu1 %v2837_v26  ;;  %v17829_v56 = vunpack.i.h.bf16 %v13827_v17  ;;  %v17832_v19 = vrot.slane %v17831_v3, 4  ;;  %v17833_v59 = vunpack.i.h.bf16 %v14293_v49  ;;  %v17835_v1 = vunpack.i.l.bf16 %v17834_v44  ;;  %v14996_v17 = vpop.permute.xlu1 %8108  ;;  %8263 = vrot.lane.b32.xlu0 %v8262_v45, %s8356_s20  ;;  %v15004_v49 = vpop.permute.xlu0 %8073  ;;  %v17848_v61 = vld [vmem:[#allocation40_spill] sm:$0xff]  ;;  %v17849_v26 = vld [vmem:[#allocation31_spill] sm:$0xff]  ;;  %s7057_s20 = scalar_lea.hbm %s15946_s8, %s7218_s17 }
 0x461   : > { %v2169_v5 = vsel %vm1471_vm7, %v2168_v57, %v17826_v2  ;;  %v2171_v40 = vsel %vm1469_vm6, %v1729_v31, %v17827_v35  ;;  %v17839_v4 = vrot.slane %v17838_v55, 4  ;;  %17840 = vst [vmem:[#allocation7_spill] sm:$0xff] %v15004_v49  ;;  %v17841_v38 = vunpack.i.l.bf16 %v17828_v6  ;;  %v17845_v57 = vld [vmem:[#allocation175_spill] sm:$0xff]  ;;  %v17847_v31 = vld [vmem:[#allocation182_spill] sm:$0xff]  ;;  %v17857_v55 = vld [vmem:[#allocation201_spill] sm:$0xff]  ;;  %s7061_s23 = sshll.u32 %s7057_s20, 4  ;;  %s7062_s23 = int_to_ptr.hbm [resolvable:$true] %s7061_s23 }
 0x462   : > { %v2170_v42 = vsel %vm1473_vm8, %v2169_v5, %v7930_v9  ;;  %v2172_v24 = vsel %vm1471_vm7, %v2171_v40, %v17829_v56  ;;  %v1022_v62 = vsel %vm925_vm5, %v17832_v19, %v17830_v15  ;;  %v17836_v9 = vld [vmem:[#allocation219_spill] sm:$0xff]  ;;  %v17842_v14 = vunpack.i.h.bf16 %v17834_v44  ;;  %v15015_v30 = vpop.permute.xlu2 %8158  ;;  %v17850_v5 = vld [vmem:[#allocation209_spill] sm:$0xff]  ;;  %v17853_v19 = vld [vmem:[#allocation210_spill] sm:$0xff]  ;;  %s8302_s13 = sshra.s32 %s7062_s23, 4  ;;  %s8303_s13 = int_to_ptr.hbm [resolvable:$true] %s8302_s13 }
 0x463   : > { %v2173_v16 = vsel %vm1473_vm8, %v2172_v24, %v17833_v59  ;;  %v1470_v58 = vsel %vm1469_vm6, %v1022_v62, %v17835_v1  ;;  %v7670_v37 = vunpack.i.l.bf16 %v17836_v9  ;;  %6891 = vmatpush.msra.mxu0 %v2170_v42  ;;  %v1030_v48 = vsel %vm925_vm5, %v17839_v4, %v17837_v20  ;;  %17843 = vst [vmem:[#allocation133_spill] sm:$0xff] %v15015_v30  ;;  %v17852_v24 = vld [vmem:[#allocation44_spill] sm:$0xff]  ;;  %v17854_v59 = vld [vmem:[#allocation93_spill] sm:$0xff]  ;;  %s8304_s21 = scalar_lea.hbm %s8303_s13, 64  ;;  %p8309_p0 = scmp.lt.s32.totalorder %s8303_s13, %s15946_s8 }
 0x464   : > { %6911 = vmatpush.msrb.mxu1 %v2173_v16  ;;  %v7671_v51 = vunpack.i.h.bf16 %v17836_v9  ;;  %v1472_v10 = vsel %vm1471_vm7, %v1470_v58, %v17841_v38  ;;  %v1475_v28 = vsel %vm1469_vm6, %v1030_v48, %v17842_v14  ;;  %v3185_v21 = vrot.slane %v17846_v13, 4  ;;  %v17855_v1 = vld [vmem:[#allocation212_spill] sm:$0xff]  ;;  %v17856_v9 = vld [vmem:[#allocation59_spill] sm:$0xff]  ;;  %v17858_v48 = vld [vmem:[#allocation229_spill] sm:$0xff]  ;;  %p8305_p11 = scmp.ne.s32.totalorder %s8303_s13, %s8304_s21  ;;  %p8310_p1 = scmp.lt.s32.totalorder %s8308_s10, %s8304_s21 }
 0x465   : > { %v1474_v34 = vsel %vm1473_vm8, %v1472_v10, %v7670_v37  ;;  %v1476_v54 = vsel %vm1471_vm7, %v1475_v28, %v7681_v12  ;;  %v3177_v47 = vrot.slane %v17847_v31, 4  ;;  %v5186_v29 = vrot.slane %v17848_v61, 4  ;;  %v17851_v12 = vld [vmem:[#allocation216_spill] sm:$0xff]  ;;  %v17860_v28 = vld [vmem:[#allocation203_spill] sm:$0xff]  ;;  %v17865_v6 = vld [vmem:[#allocation33_spill] sm:$0xff] }
 0x466   : > { %6892 = vmatpush.msra.mxu0 %v1474_v34  ;;  %v1477_v18 = vsel %vm1473_vm8, %v1476_v54, %v7671_v51  ;;  %v5178_v2 = vrot.slane %v17849_v26, 4  ;;  %v7816_v62 = vunpack.i.h.bf16 %v17853_v19  ;;  %v7826_v16 = vunpack.i.h.bf16 %v17854_v59  ;;  %v17859_v38 = vld [vmem:[#allocation168_spill] sm:$0xff]  ;;  %v17866_v15 = vld [vmem:[#allocation197_spill] sm:$0xff]  ;;  %v17870_v51 = vld [vmem:[#allocation51_spill] sm:$0xff]  ;;  %p8306_p12 = pnand %p8305_p11, %p8443_p5  ;;  %p8311_p2 = por %p8310_p1, %p8309_p0 }
 0x467   : > { %6912 = vmatpush.msrb.mxu1 %v1477_v18  ;;  %v7825_v44 = vunpack.i.l.bf16 %v17854_v59  ;;  %v2504_v58 = vrot.slane %v17855_v1, 4  ;;  %v2496_v37 = vrot.slane %v17856_v9, 4  ;;  %v7815_v20 = vunpack.i.l.bf16 %v17853_v19  ;;  %v17862_v31 = vld [vmem:[#allocation48_spill] sm:$0xff]  ;;  %v17863_v59 = vld [vmem:[#allocation22_spill] sm:$0xff]  ;;  %v17864_v1 = vld [vmem:[#allocation9_spill] sm:$0xff] }
 0x468   : > { %v15017_v45 = vpop.permute.xlu1 %8123  ;;  %v15026_v40 = vpop.permute.xlu0 %8083  ;;  %v7831_v10 = vunpack.i.h.bf16 %v17859_v38  ;;  %v7830_v14 = vunpack.i.l.bf16 %v17859_v38  ;;  %v7806_v34 = vunpack.i.h.bf16 %v17860_v28  ;;  %v7805_v18 = vunpack.i.l.bf16 %v17860_v28  ;;  %v17874_v30 = vld [vmem:[#allocation61_spill] sm:$0xff]  ;;  %p8307_p13 = pneg %p8306_p12 }
 0x469   : > { %v7811_v61 = vunpack.i.h.bf16 %v17862_v31  ;;  %v5179_v19 = vsel %vm925_vm5, %v5178_v2, %v17863_v59  ;;  %v5187_v9 = vsel %vm925_vm5, %v5186_v29, %v17864_v1  ;;  %v7810_v35 = vunpack.i.l.bf16 %v17862_v31  ;;  %v17867_v59 = vld [vmem:[#allocation221_spill] sm:$0xff] }
 0x46a   : > { %v15044_v54 = vpop.permute.xlu2 %8168  ;;  %v7821_v38 = vunpack.i.h.bf16 %v17865_v6  ;;  %v5520_v42 = vsel %vm1469_vm6, %v5179_v19, %v7825_v44  ;;  %v5523_v56 = vsel %vm1469_vm6, %v5187_v9, %v7826_v16  ;;  %v7820_v28 = vunpack.i.l.bf16 %v17865_v6  ;;  %v17871_v19 = vld [vmem:[#allocation50_spill] sm:$0xff]  ;;  %p8312_p3 = pnand %p8311_p2, %p8307_p13 }
 0x46b   : > { %17861 = vst [vmem:[#allocation137_spill] sm:$0xff] %v15044_v54  ;;  %v7976_v3 = vunpack.i.h.bf16 %v17866_v15  ;;  %v5521_v23 = vsel %vm1471_vm7, %v5520_v42, %v7830_v14  ;;  %v5524_v33 = vsel %vm1471_vm7, %v5523_v56, %v7831_v10  ;;  %v7975_v2 = vunpack.i.l.bf16 %v17866_v15  ;;  %v17872_v54 = vld [vmem:[#allocation223_spill] sm:$0xff] }
 0x46c   : > { %v7981_v29 = vunpack.i.h.bf16 %v17867_v59  ;;  %v15067_v31 = vsel %vm1473_vm8, %v5521_v23, %v7810_v35  ;;  %v15070_v44 = vsel %vm1473_vm8, %v5524_v33, %v7811_v61  ;;  %v7980_v6 = vunpack.i.l.bf16 %v17867_v59 }
 0x46d   : > { %v7966_v16 = vunpack.i.h.bf16 %v14258_v50  ;;  %v7965_v42 = vunpack.i.l.bf16 %v14258_v50  ;;  %v7971_v56 = vunpack.i.h.bf16 %v14337_v63  ;;  %v7970_v15 = vunpack.i.l.bf16 %v14337_v63 }
 0x46e   : > { %v7961_v10 = vunpack.i.h.bf16 %v14450_v43  ;;  %v7960_v14 = vunpack.i.l.bf16 %v14450_v43  ;;  %v7986_v23 = vunpack.i.h.bf16 %v14525_v25  ;;  %v7985_v35 = vunpack.i.l.bf16 %v14525_v25 }
 0x46f   : > { %v8131_v50 = vunpack.i.h.bf16 %v14894_v11  ;;  %v8130_v9 = vunpack.i.l.bf16 %v14894_v11  ;;  %v6506_v25 = vrot.slane %v14291_v7, 4  ;;  %v6514_v33 = vrot.slane %v14298_v8, 4 }
 0x470   : > { %v15048_v26 = vpop.permute.xlu1 %8133  ;;  %v15064_v1 = vpop.permute.xlu0 %8088  ;;  %v3178_v61 = vsel %vm925_vm5, %v3177_v47, %v17870_v51  ;;  %v3186_v11 = vsel %vm925_vm5, %v3185_v21, %v17871_v19  ;;  %v5842_v63 = vrot.slane %v17872_v54, 4  ;;  %v5850_v59 = vrot.slane %v17873_v52, 4  ;;  %v17875_v51 = vld [vmem:[#allocation83_spill] sm:$0xff]  ;;  %v17876_v54 = vld [vmem:[#allocation138_spill] sm:$0xff] }
 0x471   : > { %v2497_v47 = vsel %vm925_vm5, %v2496_v37, %v17874_v30  ;;  %v2505_v13 = vsel %vm925_vm5, %v2504_v58, %v17875_v51  ;;  %v6515_v30 = vsel %vm925_vm5, %v6514_v33, %v17876_v54  ;;  %v8135_v19 = vunpack.i.l.bf16 %v15048_v26 }
 0x472   : > { %v15088_v4 = vpop.permute.xlu2 %8193 }
 0x473   : > { %17868 = vst [vmem:[#allocation69_spill] sm:$0xff] %v15088_v4  ;;  %v3519_v4 = vsel %vm1469_vm6, %v3178_v61, %v7815_v20  ;;  %v2841_v20 = vsel %vm1469_vm6, %v2505_v13, %v7981_v29  ;;  %v17881_v61 = vld [vmem:[#allocation192_spill] sm:$0xff]  ;;  %v17886_v13 = vrot.slane %v17844_v53, 4  ;;  %v17891_v53 = vunpack.i.l.bf16 %v17851_v12 }
 0x474   : > { %v3520_v7 = vsel %vm1471_vm7, %v3519_v4, %v7820_v28  ;;  %v6507_v4 = vsel %vm925_vm5, %v6506_v25, %v14280_v39  ;;  %v2842_v37 = vsel %vm1471_vm7, %v2841_v20, %v7986_v23  ;;  %v17878_v28 = vrot.slane %v17858_v48, 4  ;;  %v17882_v48 = vld [vmem:[#allocation126_spill] sm:$0xff] }
 0x475   : > { %v15113_v21 = vsel %vm1473_vm8, %v3520_v7, %v7805_v18  ;;  %v17880_v39 = vrot.slane %v17857_v55, 4  ;;  %v5843_v23 = vsel %vm925_vm5, %v5842_v63, %v17881_v61  ;;  %v5851_v25 = vsel %vm925_vm5, %v5850_v59, %v17882_v48  ;;  %v17883_v59 = vld [vmem:[#allocation35_spill] sm:$0xff]  ;;  %v17895_v48 = vld [vmem:[#allocation121_spill] sm:$0xff] }
 0x476   : > { %v8125_v7 = vunpack.i.l.bf16 %v15017_v45  ;;  %v6184_v63 = vsel %vm1469_vm6, %v5843_v23, %v8130_v9  ;;  %v17893_v61 = vunpack.i.l.bf16 %v17850_v5  ;;  %v17894_v23 = vunpack.i.h.bf16 %v17850_v5 }
 0x478   : > { %v15090_v43 = vpop.permute.xlu1 %8143  ;;  %v15110_v49 = vpop.permute.xlu0 %8098 }
 0x479   : > { %17869 = vst [vmem:[#allocation130_spill] sm:$0xff] %v15090_v43  ;;  %v3522_v43 = vsel %vm1469_vm6, %v3186_v11, %v7816_v62  ;;  %v2838_v62 = vsel %vm1469_vm6, %v2497_v47, %v7980_v6  ;;  %v17879_v6 = vld [vmem:[#allocation183_spill] sm:$0xff] }
 0x47a   : > { %v3523_v8 = vsel %vm1471_vm7, %v3522_v43, %v7821_v38  ;;  %v2839_v58 = vsel %vm1471_vm7, %v2838_v62, %v7985_v35  ;;  %v17877_v38 = vld [vmem:[#allocation26_spill] sm:$0xff]  ;;  %v1841_v33 = vsel %vm925_vm5, %v17880_v39, %v17879_v6  ;;  %v8126_v35 = vunpack.i.h.bf16 %v15017_v45  ;;  %v15146_v43 = vpop.permute.xlu2 %8208  ;;  %v17887_v62 = vld [vmem:[#allocation225_spill] sm:$0xff] }
 0x47b   : > { %v15116_v52 = vsel %vm1473_vm8, %v3523_v8, %v7806_v34  ;;  %v15127_v18 = vsel %vm1473_vm8, %v2839_v58, %v7965_v42  ;;  %v15130_v34 = vsel %vm1473_vm8, %v2842_v37, %v7966_v16  ;;  %v1833_v29 = vsel %vm925_vm5, %v17878_v28, %v17877_v38  ;;  %v17885_v45 = vld [vmem:[#allocation34_spill] sm:$0xff]  ;;  %v17890_v38 = vld [vmem:[#allocation97_spill] sm:$0xff] }
 0x47c   : > { %v2174_v42 = vsel %vm1469_vm6, %v1833_v29, %v7970_v15  ;;  %v2177_v16 = vsel %vm1469_vm6, %v1841_v33, %v7971_v56  ;;  %v8086_v8 = vunpack.i.h.bf16 %v15026_v40  ;;  %v6187_v15 = vsel %vm1469_vm6, %v5851_v25, %v8131_v50  ;;  %v17896_v25 = vld [vmem:[#allocation170_spill] sm:$0xff] }
 0x47d   : > { %v2175_v55 = vsel %vm1471_vm7, %v2174_v42, %v7975_v2  ;;  %v2178_v11 = vsel %vm1471_vm7, %v2177_v16, %v7976_v3  ;;  %v17884_v2 = vrot.slane %v17845_v57, 4  ;;  %v1142_v9 = vsel %vm925_vm5, %v17886_v13, %v17885_v45 }
 0x47e   : > { %v15159_v47 = vsel %vm1473_vm8, %v2175_v55, %v7960_v14  ;;  %v15162_v51 = vsel %vm1473_vm8, %v2178_v11, %v7961_v10  ;;  %v8136_v50 = vunpack.i.h.bf16 %v15048_v26  ;;  %v4505_v20 = vrot.slane %v17887_v62, 4 }
 0x47f   : > { %v1134_v3 = vsel %vm925_vm5, %v17884_v2, %v17883_v59  ;;  %v17888_v14 = vunpack.i.l.bf16 %v17852_v24  ;;  %v17889_v10 = vunpack.i.h.bf16 %v17852_v24  ;;  %v6185_v37 = vsel %vm1471_vm7, %v6184_v63, %v8135_v19 }
 0x480   : > { %v15156_v56 = vpop.permute.xlu1 %8148  ;;  %v8119_v57 = vpop.permute.xlu0 %8118  ;;  %v4513_v28 = vrot.slane %v17890_v38, 4  ;;  %v17892_v26 = vunpack.i.h.bf16 %v17851_v12  ;;  %v8091_v16 = vunpack.i.h.bf16 %v15064_v1  ;;  %v8090_v19 = vunpack.i.l.bf16 %v15064_v1 }
 0x481   : > { %v1478_v54 = vsel %vm1469_vm6, %v1134_v3, %v17888_v14  ;;  %v1481_v58 = vsel %vm1469_vm6, %v1142_v9, %v17889_v10  ;;  %v8121_v39 = vunpack.i.h.bf16 %v8119_v57  ;;  %v8120_v33 = vunpack.i.l.bf16 %v8119_v57  ;;  %v17898_v14 = vld [vmem:[#allocation80_spill] sm:$0xff]  ;;  %v17902_v57 = vld [vmem:[#allocation118_spill] sm:$0xff] }
 0x482   : > { %v1479_v29 = vsel %vm1471_vm7, %v1478_v54, %v17891_v53  ;;  %v1482_v6 = vsel %vm1471_vm7, %v1481_v58, %v17892_v26  ;;  %v3841_v12 = vrot.slane %v17895_v48, 4  ;;  %v3849_v55 = vrot.slane %v17896_v25, 4  ;;  %v15206_v5 = vpop.permute.xlu2 %8213 }
 0x483   : > { %v15191_v24 = vsel %vm1473_vm8, %v1479_v29, %v17893_v61  ;;  %v15196_v42 = vsel %vm1473_vm8, %v1482_v6, %v17894_v23  ;;  %v8101_v11 = vunpack.i.h.bf16 %v15110_v49  ;;  %v8100_v63 = vunpack.i.l.bf16 %v15110_v49 }
 0x484   : > { %v6851_v59 = vsel %vm1469_vm6, %v6515_v30, %v8121_v39  ;;  %v6848_v2 = vsel %vm1469_vm6, %v6507_v4, %v8120_v33  ;;  %v17897_v1 = vunpack.i.l.bf16 %v14739_v60  ;;  %v6188_v9 = vsel %vm1471_vm7, %v6187_v15, %v8136_v50  ;;  %v17899_v4 = vld [vmem:[#allocation17_spill] sm:$0xff]  ;;  %v17901_v50 = vld [vmem:[#allocation206_spill] sm:$0xff] }
 0x485   : > { %v6849_v3 = vsel %vm1471_vm7, %v6848_v2, %v8125_v7  ;;  %v6852_v45 = vsel %vm1471_vm7, %v6851_v59, %v8126_v35  ;;  %v4506_v30 = vsel %vm925_vm5, %v4505_v20, %v17898_v14  ;;  %v4514_v54 = vsel %vm925_vm5, %v4513_v28, %v17899_v4  ;;  %v17908_v59 = vld [vmem:[#allocation198_spill] sm:$0xff]  ;;  %v17913_v14 = vld [vmem:[#allocation16_spill] sm:$0xff]  ;;  %v17935_v4 = vld [vmem:[#allocation207_spill] sm:$0xff] }
 0x486   : > { %v6186_v13 = vsel %vm1473_vm8, %v6185_v37, %v17897_v1  ;;  %v6850_v62 = vsel %vm1473_vm8, %v6849_v3, %v8090_v19  ;;  %v6853_v49 = vsel %vm1473_vm8, %v6852_v45, %v8091_v16  ;;  %v8085_v7 = vunpack.i.l.bf16 %v15026_v40  ;;  %v17909_v3 = vld [vmem:[#allocation58_spill] sm:$0xff]  ;;  %v17910_v1 = vld [vmem:[#allocation185_spill] sm:$0xff]  ;;  %v17950_v2 = vld [vmem:[#allocation75_spill] sm:$0xff] }
 0x487   : > { %6924 = vmatpush.msra.mxu2 %v6850_v62  ;;  %6944 = vmatpush.msrb.mxu3 %v6853_v49  ;;  %v17900_v10 = vunpack.i.l.bf16 %v14996_v17  ;;  %v3842_v58 = vsel %vm925_vm5, %v3841_v12, %v17901_v50  ;;  %v3850_v37 = vsel %vm925_vm5, %v3849_v55, %v17902_v57  ;;  %v17903_v20 = vunpack.i.h.bf16 %v14739_v60  ;;  %v17912_v49 = vld [vmem:[#allocation63_spill] sm:$0xff]  ;;  %v17927_v57 = vld [vmem:[#allocation88_spill] sm:$0xff]  ;;  %v17939_v40 = vld [vmem:[#allocation133_spill] sm:$0xff] }
 0x488   : > { %v15221_v35 = vpop.permute.xlu1 %8183  ;;  %v17904_v28 = vunpack.i.h.bf16 %v14996_v17  ;;  %v4183_v29 = vsel %vm1469_vm6, %v3842_v58, %v8100_v63  ;;  %v4186_v26 = vsel %vm1469_vm6, %v3850_v37, %v8101_v11  ;;  %v8116_v6 = vunpack.i.h.bf16 %v14805_v36  ;;  %v15241_v61 = vpop.permute.xlu0 %8138  ;;  %v17940_v62 = vld [vmem:[#allocation69_spill] sm:$0xff]  ;;  %v17943_v50 = vld [vmem:[#allocation67_spill] sm:$0xff] }
 0x489   : > { %v4847_v15 = vsel %vm1469_vm6, %v4506_v30, %v17900_v10  ;;  %v6189_v38 = vsel %vm1473_vm8, %v6188_v9, %v17903_v20  ;;  %v8106_v39 = vunpack.i.h.bf16 %v14886_v27  ;;  %v8105_v33 = vunpack.i.l.bf16 %v14886_v27  ;;  %6925 = vmatpush.msra.mxu2 %v6186_v13  ;;  %v17911_v9 = vld [vmem:[#allocation39_spill] sm:$0xff]  ;;  %v17914_v30 = vld [vmem:[#allocation18_spill] sm:$0xff]  ;;  %v17942_v13 = vld [vmem:[#allocation53_spill] sm:$0xff] }
 0x48a   : > { %v4850_v53 = vsel %vm1469_vm6, %v4514_v54, %v17904_v28  ;;  %6945 = vmatpush.msrb.mxu3 %v6189_v38  ;;  %v17905_v60 = vunpack.i.l.bf16 %v14805_v36  ;;  %v8081_v27 = vunpack.i.h.bf16 %v14665_v22  ;;  %v8080_v48 = vunpack.i.l.bf16 %v14665_v22  ;;  %v15259_v25 = vpop.permute.xlu2 %8228  ;;  %v17906_v22 = vld [vmem:[#allocation56_spill] sm:$0xff]  ;;  %v17916_v54 = vld [vmem:[#allocation174_spill] sm:$0xff]  ;;  %v17917_v10 = vld [vmem:[#allocation27_spill] sm:$0xff] }
 0x48b   : > { %6926 = vmatpush.msra.mxu2 %v15067_v31  ;;  %v4851_v23 = vsel %vm1471_vm7, %v4850_v53, %v8116_v6  ;;  %v4184_v16 = vsel %vm1471_vm7, %v4183_v29, %v8105_v33  ;;  %v4187_v19 = vsel %vm1471_vm7, %v4186_v26, %v8106_v39  ;;  %v6618_v29 = vrot.slane %v17942_v13, 4  ;;  %v17944_v6 = vld [vmem:[#allocation196_spill] sm:$0xff] }
 0x48c   : > { %v4848_v17 = vsel %vm1471_vm7, %v4847_v15, %v17905_v60  ;;  %6946 = vmatpush.msrb.mxu3 %v15070_v44  ;;  %v4852_v36 = vsel %vm1473_vm8, %v4851_v23, %v8086_v8  ;;  %v4185_v31 = vsel %vm1473_vm8, %v4184_v16, %v8080_v48  ;;  %v4188_v44 = vsel %vm1473_vm8, %v4187_v19, %v8081_v27  ;;  %v17907_v8 = vld [vmem:[#allocation52_spill] sm:$0xff]  ;;  %v17923_v60 = vld [vmem:[#allocation177_spill] sm:$0xff] }
 0x48d   : > { %v4849_v12 = vsel %vm1473_vm8, %v4848_v17, %v8085_v7  ;;  %v17924_v16 = vld [vmem:[#allocation49_spill] sm:$0xff]  ;;  %v17929_v19 = vld [vmem:[#allocation112_spill] sm:$0xff]  ;;  %v6626_v26 = vrot.slane %v17943_v50, 4  ;;  %v17945_v38 = vrot.slane %v17910_v1, 4  ;;  %v17948_v28 = vrot.slane %v17907_v8, 4  ;;  %v17953_v50 = vld [vmem:[#allocation10_spill] sm:$0xff] }
 0x48e   : > { %6927 = vmatpush.msra.mxu2 %v4849_v12  ;;  %6947 = vmatpush.msrb.mxu3 %v4852_v36  ;;  %v17925_v48 = vld [vmem:[#allocation125_spill] sm:$0xff]  ;;  %v17931_v12 = vld [vmem:[#allocation20_spill] sm:$0xff]  ;;  %v6730_v53 = vrot.slane %v17950_v2, 4  ;;  %v17952_v20 = vrot.slane %v17912_v49, 4  ;;  %v17954_v1 = vrot.slane %v17911_v9, 4  ;;  %v17956_v8 = vrot.slane %v17906_v22, 4 }
 0x48f   : > { %v17934_v15 = vld [vmem:[#allocation156_spill] sm:$0xff]  ;;  %v15360_v17 = vsel %vm925_vm5, %v17945_v38, %v17944_v6  ;;  %v17947_v23 = vld [vmem:[#allocation57_spill] sm:$0xff]  ;;  %v17955_v6 = vld [vmem:[#allocation54_spill] sm:$0xff]  ;;  %v17960_v9 = vrot.slane %v17908_v59, 4  ;;  %v17973_v32 = vrot.slane %v17914_v30, 4 }
 0x490   : > { %6928 = vmatpush.msra.mxu2 %v4185_v31  ;;  %6948 = vmatpush.msrb.mxu3 %v4188_v44  ;;  %v15261_v55 = vpop.permute.xlu1 %8188  ;;  %v15263_v11 = vpop.permute.xlu0 %8163  ;;  %v17926_v31 = vld [vmem:[#allocation45_spill] sm:$0xff]  ;;  %17946 = vst [vmem:[#allocation131_spill] sm:$0xff] %v15360_v17  ;;  %v15366_v44 = vsel %vm925_vm5, %v17948_v28, %v17947_v23  ;;  %v15379_v38 = vsel %vm925_vm5, %v17954_v1, %v17953_v50  ;;  %v17972_v59 = vld [vmem:[#allocation167_spill] sm:$0xff] }
 0x491   : > { %17949 = vst [vmem:[#allocation184_spill] sm:$0xff] %v15366_v44  ;;  %v17951_v7 = vld [vmem:[#allocation181_spill] sm:$0xff]  ;;  %v15385_v28 = vsel %vm925_vm5, %v17956_v8, %v17955_v6  ;;  %v17962_v6 = vld [vmem:[#allocation15_spill] sm:$0xff]  ;;  %v17963_v8 = vrot.slane %v17913_v14, 4  ;;  %v17970_v14 = vrot.slane %v17916_v54, 4 }
 0x492   : > { %6929 = vmatpush.msra.mxu2 %v15113_v21  ;;  %6949 = vmatpush.msrb.mxu3 %v15116_v52  ;;  %v15300_v27 = vpop.permute.xlu2 %8248  ;;  %v17941_v21 = vld [vmem:[#allocation130_spill] sm:$0xff]  ;;  %v15373_v13 = vsel %vm925_vm5, %v17952_v20, %v17951_v7  ;;  %17957 = vst [vmem:[#allocation147_spill] sm:$0xff] %v15385_v28  ;;  %v17958_v7 = vld [vmem:[#allocation65_spill] sm:$0xff]  ;;  %v17965_v28 = vrot.slane %v17909_v3, 4 }
 0x493   : > { %v6738_v20 = vrot.slane %v17958_v7, 4  ;;  %v17959_v44 = vld [vmem:[#allocation77_spill] sm:$0xff]  ;;  %v15404_v2 = vsel %vm925_vm5, %v17963_v8, %v17962_v6  ;;  %v5411_v6 = vsel %vm925_vm5, %v17970_v14, %v17969_v0  ;;  %v17976_v0 = vrot.slane %v17917_v10, 4 }
 0x494   : > { %6930 = vmatpush.msra.mxu2 %v15127_v18  ;;  %6950 = vmatpush.msrb.mxu3 %v15130_v34  ;;  %v17915_v18 = vld [vmem:[#allocation11_spill] sm:$0xff]  ;;  %v17933_v34 = vld [vmem:[#allocation128_spill] sm:$0xff]  ;;  %v15396_v50 = vsel %vm925_vm5, %v17960_v9, %v17959_v44  ;;  %v17964_v23 = vld [vmem:[#allocation81_spill] sm:$0xff] }
 0x495   : > { %17961 = vst [vmem:[#allocation193_spill] sm:$0xff] %v15396_v50  ;;  %v15410_v7 = vsel %vm925_vm5, %v17965_v28, %v17964_v23  ;;  %v17967_v44 = vld [vmem:[#allocation95_spill] sm:$0xff]  ;;  %v17968_v1 = vld [vmem:[#allocation101_spill] sm:$0xff]  ;;  %v17978_v3 = vrot.slane %v17915_v18, 4  ;;  %v17982_v36 = vunpack.i.l.bf16 %v17933_v34 }
 0x496   : > { %6931 = vmatpush.msra.mxu2 %v15159_v47  ;;  %6951 = vmatpush.msrb.mxu3 %v15162_v51  ;;  %17966 = vst [vmem:[#allocation124_spill] sm:$0xff] %v15410_v7  ;;  %v6619_v9 = vsel %vm925_vm5, %v6618_v29, %v17967_v44  ;;  %v6627_v22 = vsel %vm925_vm5, %v6626_v26, %v17968_v1  ;;  %v17971_v28 = vld [vmem:[#allocation155_spill] sm:$0xff]  ;;  %v17975_v44 = vld [vmem:[#allocation6_spill] sm:$0xff]  ;;  %v17977_v8 = vld [vmem:[#allocation13_spill] sm:$0xff] }
 0x497   : > { %v6731_v23 = vsel %vm925_vm5, %v6730_v53, %v17971_v28  ;;  %v15429_v29 = vsel %vm925_vm5, %v17973_v32, %v17972_v59  ;;  %v17974_v1 = vld [vmem:[#allocation111_spill] sm:$0xff]  ;;  %v5403_v14 = vsel %vm925_vm5, %v17976_v0, %v17975_v44  ;;  %v15442_v53 = vsel %vm925_vm5, %v17978_v3, %v17977_v8  ;;  %v17979_v26 = vld [vmem:[#allocation149_spill] sm:$0xff]  ;;  %v17981_v51 = vld [vmem:[#allocation186_spill] sm:$0xff] }
 0x498   : > { %6932 = vmatpush.msra.mxu2 %v15191_v24  ;;  %6952 = vmatpush.msrb.mxu3 %v15196_v42  ;;  %v15290_v47 = vpop.permute.xlu1 %8203  ;;  %v15302_v42 = vpop.permute.xlu0 %8173  ;;  %v17930_v24 = vld [vmem:[#allocation100_spill] sm:$0xff]  ;;  %v6739_v54 = vsel %vm925_vm5, %v6738_v20, %v17974_v1  ;;  %v8251_v28 = vunpack.i.h.bf16 %v15300_v27  ;;  %v8250_v20 = vunpack.i.l.bf16 %v15300_v27  ;;  %v6066_v30 = vrot.slane %v17979_v26, 4  ;;  %v17980_v7 = vld [vmem:[#allocation143_spill] sm:$0xff] }
 0x499   : > { %v8206_v10 = vunpack.i.h.bf16 %v15290_v47  ;;  %v8205_v1 = vunpack.i.l.bf16 %v15290_v47  ;;  %v6074_v44 = vrot.slane %v17981_v51, 4  ;;  %v5532_v17 = vsel %vm1469_vm6, %v5403_v14, %v17982_v36 }
 0x49a   : > { %v15348_v63 = vpop.permute.xlu2 %8268  ;;  %v6067_v59 = vsel %vm925_vm5, %v6066_v30, %v17980_v7  ;;  %v17984_v7 = vld [vmem:[#allocation113_spill] sm:$0xff]  ;;  %v17989_v14 = vunpack.i.h.bf16 %v17934_v15 }
 0x49b   : > { %v8270_v8 = vunpack.i.l.bf16 %v15348_v63  ;;  %v8271_v32 = vunpack.i.h.bf16 %v15348_v63  ;;  %v4729_v30 = vrot.slane %v17984_v7, 4 }
 0x49d   : > { %v6196_v47 = vsel %vm1469_vm6, %v6067_v59, %v8270_v8  ;;  %v17987_v59 = vld [vmem:[#allocation90_spill] sm:$0xff] }
 0x49e   : > { %v4737_v8 = vrot.slane %v17987_v59, 4  ;;  %v17995_v59 = vld [vmem:[#allocation108_spill] sm:$0xff] }
 0x4a0   : > { %v15328_v45 = vpop.permute.xlu1 %8238  ;;  %v15338_v52 = vpop.permute.xlu0 %8178 }
 0x4a2   : > { %v15452_v18 = vpop.permute.xlu2 %8283 }
 0x4a8   : > { %v15389_v49 = vpop.permute.xlu1 %8243  ;;  %v8199_v41 = vpop.permute.xlu0 %8198 }
 0x4a9   : > { %v8201_v3 = vunpack.i.h.bf16 %v8199_v41  ;;  %v8200_v0 = vunpack.i.l.bf16 %v8199_v41  ;;  %v8246_v41 = vunpack.i.h.bf16 %v15389_v49  ;;  %v8245_v26 = vunpack.i.l.bf16 %v15389_v49 }
 0x4aa   : > { %v17983_v49 = vunpack.i.h.bf16 %v17933_v34  ;;  %v17988_v34 = vunpack.i.l.bf16 %v17934_v15 }
 0x4ab   : > { %v6857_v27 = vsel %vm1469_vm6, %v6627_v22, %v8201_v3  ;;  %v6854_v58 = vsel %vm1469_vm6, %v6619_v9, %v8200_v0  ;;  %v17985_v9 = vunpack.i.l.bf16 %v17927_v57 }
 0x4ac   : > { %v5535_v37 = vsel %vm1469_vm6, %v5411_v6, %v17983_v49  ;;  %v17993_v49 = vld [vmem:[#allocation91_spill] sm:$0xff] }
 0x4ad   : > { %v5533_v51 = vsel %vm1471_vm7, %v5532_v17, %v17985_v9  ;;  %v4065_v7 = vrot.slane %v17993_v49, 4 }
 0x4ae   : > { %v15494_v6 = vsel %vm1473_vm8, %v5533_v51, %v17988_v34  ;;  %v17996_v34 = vld [vmem:[#allocation214_spill] sm:$0xff] }
 0x4b0   : > { %v8254_v39 = vpop.permute.xlu1 %8253  ;;  %v8219_v63 = vpop.permute.xlu0 %8218 }
 0x4b1   : > { %v8256_v33 = vunpack.i.h.bf16 %v8254_v39  ;;  %v8255_v50 = vunpack.i.l.bf16 %v8254_v39  ;;  %v8220_v36 = vunpack.i.l.bf16 %v8219_v63  ;;  %v8221_v3 = vunpack.i.h.bf16 %v8219_v63 }
 0x4b3   : > { %v15472_v39 = vsel %vm1469_vm6, %v6739_v54, %v8256_v33  ;;  %v15482_v22 = vsel %vm1469_vm6, %v6731_v23, %v8255_v50  ;;  %v17986_v33 = vunpack.i.h.bf16 %v17927_v57  ;;  %v17991_v23 = vld [vmem:[#allocation109_spill] sm:$0xff] }
 0x4b4   : > { %v4730_v17 = vsel %vm925_vm5, %v4729_v30, %v17991_v23  ;;  %v15515_v30 = vsel %vm1471_vm7, %v6854_v58, %v8205_v1  ;;  %v17999_v1 = vld [vmem:[#allocation68_spill] sm:$0xff] }
 0x4b5   : > { %v5536_v54 = vsel %vm1471_vm7, %v5535_v37, %v17986_v33  ;;  %v4859_v57 = vsel %vm1469_vm6, %v4730_v17, %v8245_v26  ;;  %v17992_v37 = vld [vmem:[#allocation102_spill] sm:$0xff] }
 0x4b6   : > { %v15499_v50 = vsel %vm1473_vm8, %v5536_v54, %v17989_v14  ;;  %v4738_v0 = vsel %vm925_vm5, %v4737_v8, %v17992_v37  ;;  %v17994_v33 = vld [vmem:[#allocation82_spill] sm:$0xff]  ;;  %v4073_v54 = vrot.slane %v17995_v59, 4  ;;  %v5954_v14 = vrot.slane %v17996_v34, 4 }
 0x4b7   : > { %17990 = vst [vmem:[#allocation41_spill] sm:$0xff] %v15499_v50  ;;  %v6075_v51 = vsel %vm925_vm5, %v6074_v44, %v17994_v33  ;;  %v4862_v15 = vsel %vm1469_vm6, %v4738_v0, %v8246_v41  ;;  %v4860_v26 = vsel %vm1471_vm7, %v4859_v57, %v8250_v20  ;;  %v15524_v41 = vsel %vm1471_vm7, %v6857_v27, %v8206_v10  ;;  %v17998_v57 = vld [vmem:[#allocation194_spill] sm:$0xff]  ;;  %v18000_v10 = vld [vmem:[#allocation12_spill] sm:$0xff] }
 0x4b8   : > { %v8274_v9 = vpop.permute.xlu1 %8273  ;;  %v6199_v63 = vsel %vm1469_vm6, %v6075_v51, %v8271_v32  ;;  %v15517_v23 = vpop.permute.xlu0 %8223  ;;  %v15520_v17 = vsel %vm1473_vm8, %v4860_v26, %v8220_v36  ;;  %v4863_v44 = vsel %vm1471_vm7, %v4862_v15, %v8251_v28  ;;  %v17997_v32 = vld [vmem:[#allocation70_spill] sm:$0xff]  ;;  %v4074_v58 = vsel %vm925_vm5, %v4073_v54, %v17998_v57 }
 0x4b9   : > { %v8275_v50 = vunpack.i.l.bf16 %v8274_v9  ;;  %v8276_v8 = vunpack.i.h.bf16 %v8274_v9  ;;  %v15527_v37 = vsel %vm1473_vm8, %v4863_v44, %v8221_v3  ;;  %v4066_v20 = vsel %vm925_vm5, %v4065_v7, %v17997_v32 }
 0x4ba   : > { %v5955_v0 = vsel %vm925_vm5, %v5954_v14, %v17999_v1  ;;  %v8226_v36 = vunpack.i.h.bf16 %v15517_v23  ;;  %v8225_v49 = vunpack.i.l.bf16 %v15517_v23  ;;  %v5962_v27 = vrot.slane %v18000_v10, 4  ;;  %v18059_v23 = vld [vmem:[#allocation5_spill] sm:$0xff] }
 0x4bb   : > { %v6197_v28 = vsel %vm1471_vm7, %v6196_v47, %v8275_v50  ;;  %v18001_v3 = vunpack.i.l.bf16 %v17925_v48  ;;  %v18002_v7 = vunpack.i.h.bf16 %v17925_v48  ;;  %v18003_v51 = vunpack.i.l.bf16 %v17929_v19 }
 0x4bc   : > { %v18004_v59 = vunpack.i.h.bf16 %v17929_v19  ;;  %v6200_v50 = vsel %vm1471_vm7, %v6199_v63, %v8276_v8  ;;  %v18005_v54 = vunpack.i.l.bf16 %v17935_v4  ;;  %v18006_v48 = vunpack.i.h.bf16 %v17935_v4 }
 0x4bd   : > { %v3531_v9 = vsel %vm1469_vm6, %v15442_v53, %v18001_v3  ;;  %v3534_v33 = vsel %vm1469_vm6, %v15429_v29, %v18002_v7  ;;  %v5526_v15 = vsel %vm1469_vm6, %v15404_v2, %v18003_v51  ;;  %v18007_v34 = vunpack.i.l.bf16 %v17923_v60  ;;  %v18014_v3 = vld [vmem:[#allocation120_spill] sm:$0xff] }
 0x4be   : > { %v5529_v47 = vsel %vm1469_vm6, %v15373_v13, %v18004_v59  ;;  %v3532_v53 = vsel %vm1471_vm7, %v3531_v9, %v18005_v54  ;;  %v3535_v29 = vsel %vm1471_vm7, %v3534_v33, %v18006_v48  ;;  %v18008_v2 = vunpack.i.l.bf16 %v15259_v25 }
 0x4bf   : > { %v5527_v14 = vsel %vm1471_vm7, %v5526_v15, %v18007_v34  ;;  %v18009_v13 = vunpack.i.l.bf16 %v17931_v12  ;;  %v18010_v26 = vunpack.i.h.bf16 %v17931_v12  ;;  %v18011_v8 = vunpack.i.l.bf16 %v17930_v24  ;;  %v18015_v12 = vld [vmem:[#allocation202_spill] sm:$0xff]  ;;  %v18016_v15 = vld [vmem:[#allocation129_spill] sm:$0xff]  ;;  %v18020_v34 = vld [vmem:[#allocation71_spill] sm:$0xff] }
 0x4c0   : > { %v15568_v19 = vsel %vm1473_vm8, %v6197_v28, %v18008_v2  ;;  %v8279_v32 = vpop.permute.xlu1 %8278  ;;  %v18012_v57 = vunpack.i.l.bf16 %v15146_v43  ;;  %v18013_v28 = vunpack.i.h.bf16 %v17923_v60  ;;  %v2720_v9 = vrot.slane %v18014_v3, 4  ;;  %v8234_v48 = vpop.permute.xlu0 %8233  ;;  %v18021_v2 = vld [vmem:[#allocation123_spill] sm:$0xff] }
 0x4c1   : > { %v15573_v63 = vsel %vm1473_vm8, %v3532_v53, %v18009_v13  ;;  %v15578_v4 = vsel %vm1473_vm8, %v3535_v29, %v18010_v26  ;;  %v15583_v44 = vsel %vm1473_vm8, %v5527_v14, %v18011_v8  ;;  %v2728_v7 = vrot.slane %v18015_v12, 4 }
 0x4c2   : > { %v6190_v1 = vsel %vm1469_vm6, %v5955_v0, %v18012_v57  ;;  %v5530_v10 = vsel %vm1471_vm7, %v5529_v47, %v18013_v28  ;;  %v8281_v33 = vunpack.i.h.bf16 %v8279_v32  ;;  %v8280_v51 = vunpack.i.l.bf16 %v8279_v32  ;;  %v18019_v47 = vld [vmem:[#allocation162_spill] sm:$0xff]  ;;  %v18023_v32 = vld [vmem:[#allocation211_spill] sm:$0xff] }
 0x4c3   : > { %v5963_v59 = vsel %vm925_vm5, %v5962_v27, %v18016_v15  ;;  %v18017_v54 = vunpack.i.h.bf16 %v17930_v24  ;;  %v18018_v0 = vunpack.i.h.bf16 %v15146_v43  ;;  %v2721_v29 = vsel %vm925_vm5, %v2720_v9, %v18019_v47  ;;  %v18022_v27 = vld [vmem:[#allocation114_spill] sm:$0xff] }
 0x4c4   : > { %v4617_v14 = vrot.slane %v18020_v34, 4  ;;  %v4625_v13 = vrot.slane %v18021_v2, 4  ;;  %v8236_v26 = vunpack.i.h.bf16 %v8234_v48  ;;  %v8235_v8 = vunpack.i.l.bf16 %v8234_v48 }
 0x4c5   : > { %v15598_v53 = vsel %vm1473_vm8, %v5530_v10, %v18017_v54  ;;  %v6193_v60 = vsel %vm1469_vm6, %v5963_v59, %v18018_v0  ;;  %v2729_v24 = vsel %vm925_vm5, %v2728_v7, %v18022_v27  ;;  %v2056_v57 = vrot.slane %v18023_v32, 4  ;;  %v18038_v32 = vld [vmem:[#allocation23_spill] sm:$0xff] }
 0x4c6   : > { %v6191_v28 = vsel %vm1471_vm7, %v6190_v1, %v8280_v51  ;;  %v6194_v43 = vsel %vm1471_vm7, %v6193_v60, %v8281_v33  ;;  %v18024_v10 = vunpack.i.l.bf16 %v17939_v40  ;;  %v18025_v9 = vunpack.i.h.bf16 %v17939_v40 }
 0x4c7   : > { %v4195_v15 = vsel %vm1469_vm6, %v4066_v20, %v8235_v8  ;;  %v4198_v59 = vsel %vm1469_vm6, %v4074_v58, %v8236_v26  ;;  %v18026_v7 = vunpack.i.l.bf16 %v15263_v11  ;;  %v18027_v1 = vunpack.i.h.bf16 %v15263_v11  ;;  %v18035_v8 = vld [vmem:[#allocation42_spill] sm:$0xff] }
 0x4c8   : > { %v2850_v3 = vsel %vm1469_vm6, %v2721_v29, %v18024_v10  ;;  %v2853_v12 = vsel %vm1469_vm6, %v2729_v24, %v18025_v9  ;;  %v18028_v51 = vunpack.i.l.bf16 %v15328_v45  ;;  %v18029_v40 = vunpack.i.h.bf16 %v15328_v45 }
 0x4c9   : > { %v2851_v54 = vsel %vm1471_vm7, %v2850_v3, %v18026_v7  ;;  %v2854_v33 = vsel %vm1471_vm7, %v2853_v12, %v18027_v1  ;;  %v18030_v20 = vunpack.i.l.bf16 %v17941_v21  ;;  %v18031_v60 = vunpack.i.h.bf16 %v17941_v21 }
 0x4ca   : > { %v4196_v48 = vsel %vm1471_vm7, %v4195_v15, %v18028_v51  ;;  %v4199_v0 = vsel %vm1471_vm7, %v4198_v59, %v18029_v40  ;;  %v18032_v11 = vunpack.i.h.bf16 %v15259_v25  ;;  %v18033_v34 = vunpack.i.l.bf16 %v15452_v18  ;;  %v8259_v7 = vpop.permute.xlu0 %8258  ;;  %v18046_v51 = vld [vmem:[#allocation188_spill] sm:$0xff]  ;;  %v18047_v40 = vld [vmem:[#allocation151_spill] sm:$0xff] }
 0x4cb   : > { %v15635_v58 = vsel %vm1473_vm8, %v2851_v54, %v18030_v20  ;;  %v15640_v47 = vsel %vm1473_vm8, %v2854_v33, %v18031_v60  ;;  %v18034_v2 = vunpack.i.h.bf16 %v15452_v18  ;;  %v4618_v21 = vsel %vm925_vm5, %v4617_v14, %v18035_v8  ;;  %v18039_v18 = vld [vmem:[#allocation215_spill] sm:$0xff] }
 0x4cc   : > { %v6201_v29 = vsel %vm1473_vm8, %v6200_v50, %v18032_v11  ;;  %v15648_v45 = vsel %vm1473_vm8, %v6191_v28, %v18033_v34  ;;  %v18036_v27 = vunpack.i.l.bf16 %v15206_v5  ;;  %v18037_v25 = vunpack.i.h.bf16 %v15206_v5  ;;  %v18041_v14 = vld [vmem:[#allocation139_spill] sm:$0xff]  ;;  %v18043_v5 = vld [vmem:[#allocation150_spill] sm:$0xff] }
 0x4cd   : > { %v15653_v26 = vsel %vm1473_vm8, %v6194_v43, %v18034_v2  ;;  %v2057_v28 = vsel %vm925_vm5, %v2056_v57, %v18038_v32  ;;  %v2064_v10 = vrot.slane %v18039_v18, 4  ;;  %v18040_v43 = vunpack.i.l.bf16 %v15261_v55 }
 0x4ce   : > { %v15660_v24 = vsel %vm1473_vm8, %v4196_v48, %v18036_v27  ;;  %v15665_v50 = vsel %vm1473_vm8, %v4199_v0, %v18037_v25  ;;  %v4626_v9 = vsel %vm925_vm5, %v4625_v13, %v18041_v14  ;;  %v18042_v12 = vunpack.i.l.bf16 %v15156_v56  ;;  %v18052_v25 = vld [vmem:[#allocation87_spill] sm:$0xff] }
 0x4cf   : > { %v4853_v3 = vsel %vm1469_vm6, %v4618_v21, %v18040_v43  ;;  %v3953_v59 = vrot.slane %v18043_v5, 4  ;;  %v18044_v54 = vunpack.i.h.bf16 %v15261_v55  ;;  %v18045_v1 = vunpack.i.l.bf16 %v14987_v46 }
 0x4d0   : > { %v2186_v15 = vsel %vm1469_vm6, %v2057_v28, %v18042_v12  ;;  %v2065_v48 = vsel %vm925_vm5, %v2064_v10, %v18046_v51  ;;  %v3961_v13 = vrot.slane %v18047_v40, 4  ;;  %v8261_v0 = vunpack.i.h.bf16 %v8259_v7  ;;  %v18066_v40 = vld [vmem:[#allocation131_spill] sm:$0xff] }
 0x4d1   : > { %v4856_v57 = vsel %vm1469_vm6, %v4626_v9, %v18044_v54  ;;  %v2187_v33 = vsel %vm1471_vm7, %v2186_v15, %v18045_v1  ;;  %v8260_v20 = vunpack.i.l.bf16 %v8259_v7  ;;  %v18048_v60 = vunpack.i.l.bf16 %v15241_v61  ;;  %v18061_v7 = vld [vmem:[#allocation78_spill] sm:$0xff]  ;;  %v18063_v1 = vld [vmem:[#allocation89_spill] sm:$0xff] }
 0x4d2   : > { %v18049_v55 = vunpack.i.h.bf16 %v15156_v56  ;;  %v18050_v2 = vunpack.i.l.bf16 %v17940_v62  ;;  %v18051_v21 = vunpack.i.h.bf16 %v14987_v46  ;;  %v3954_v32 = vsel %vm925_vm5, %v3953_v59, %v18052_v25 }
 0x4d3   : > { %v15691_v11 = vsel %vm1473_vm8, %v2187_v33, %v18048_v60  ;;  %v18053_v28 = vunpack.i.l.bf16 %v17926_v31  ;;  %v6861_v56 = vsel %vm1471_vm7, %v15482_v22, %v8260_v20  ;;  %v6864_v10 = vsel %vm1471_vm7, %v15472_v39, %v8261_v0  ;;  %v18067_v0 = vld [vmem:[#allocation119_spill] sm:$0xff]  ;;  %v18069_v60 = vld [vmem:[#allocation124_spill] sm:$0xff] }
 0x4d4   : > { %v2189_v34 = vsel %vm1469_vm6, %v2065_v48, %v18049_v55  ;;  %v4854_v8 = vsel %vm1471_vm7, %v4853_v3, %v18050_v2  ;;  %v18054_v43 = vunpack.i.h.bf16 %v15241_v61  ;;  %v18055_v3 = vunpack.i.l.bf16 %v15338_v52  ;;  %v18071_v2 = vld [vmem:[#allocation199_spill] sm:$0xff] }
 0x4d5   : > { %v2190_v27 = vsel %vm1471_vm7, %v2189_v34, %v18051_v21  ;;  %v1490_v18 = vsel %vm1469_vm6, %v15379_v38, %v18053_v28  ;;  %v6862_v9 = vsel %vm1473_vm8, %v6861_v56, %v8225_v49  ;;  %v6865_v38 = vsel %vm1473_vm8, %v6864_v10, %v8226_v36 }
 0x4d6   : > { %v15715_v46 = vsel %vm1473_vm8, %v2190_v27, %v18054_v43  ;;  %v4189_v14 = vsel %vm1469_vm6, %v3954_v32, %v18055_v3  ;;  %v18056_v22 = vunpack.i.l.bf16 %v15302_v42  ;;  %v18057_v61 = vunpack.i.h.bf16 %v17940_v62  ;;  %7004 = vmatpush.msrb.mxu2 %v6862_v9  ;;  %7024 = vmatpush.msra.mxu3 %v6865_v38  ;;  %v18074_v27 = vld [vmem:[#allocation193_spill] sm:$0xff]  ;;  %v18075_v32 = vld [vmem:[#allocation74_spill] sm:$0xff] }
 0x4d7   : > { %v18058_v15 = vunpack.i.l.bf16 %v15221_v35  ;;  %v3962_v36 = vsel %vm925_vm5, %v3961_v13, %v18059_v23  ;;  %v18060_v5 = vunpack.i.l.bf16 %v17924_v16  ;;  %v2608_v54 = vrot.slane %v18061_v7, 4  ;;  %v18085_v7 = vld [vmem:[#allocation7_spill] sm:$0xff] }
 0x4d8   : > { %v15729_v39 = vsel %vm1473_vm8, %v4854_v8, %v18056_v22  ;;  %v15734_v12 = vsel %vm1471_vm7, %v4856_v57, %v18057_v61  ;;  %v18062_v62 = vunpack.i.h.bf16 %v15338_v52  ;;  %v18064_v33 = vunpack.i.l.bf16 %v18063_v1  ;;  %7005 = vmatpush.msrb.mxu2 %v15568_v19  ;;  %7025 = vmatpush.msra.mxu3 %v6201_v29  ;;  %v18081_v61 = vld [vmem:[#allocation41_spill] sm:$0xff] }
 0x4d9   : > { %v15739_v49 = vsel %vm1471_vm7, %v4189_v14, %v18058_v15  ;;  %v1491_v59 = vsel %vm1471_vm7, %v1490_v18, %v18060_v5  ;;  %v18065_v48 = vunpack.i.h.bf16 %v17926_v31  ;;  %v18068_v20 = vunpack.i.l.bf16 %v18067_v0  ;;  %v8264_v18 = vpop.permute.xlu0 %8263  ;;  %v18080_v14 = vld [vmem:[#allocation158_spill] sm:$0xff] }
 0x4da   : > { %v4192_v57 = vsel %vm1469_vm6, %v3962_v36, %v18062_v62  ;;  %v15753_v51 = vsel %vm1473_vm8, %v1491_v59, %v18064_v33  ;;  %v18070_v52 = vunpack.i.h.bf16 %v17924_v16  ;;  %v18072_v8 = vunpack.i.l.bf16 %v18071_v2  ;;  %v18077_v16 = vld [vmem:[#allocation159_spill] sm:$0xff]  ;;  %7006 = vmatpush.msrb.mxu2 %v15494_v6  ;;  %7026 = vmatpush.msra.mxu3 %v18081_v61  ;;  %v18083_v36 = vld [vmem:[#allocation204_spill] sm:$0xff]  ;;  %v18089_v6 = vld [vmem:[#allocation110_spill] sm:$0xff] }
 0x4db   : > { %v1493_v13 = vsel %vm1469_vm6, %v18066_v40, %v18065_v48  ;;  %v3525_v55 = vsel %vm1469_vm6, %v18069_v60, %v18068_v20  ;;  %v18073_v31 = vunpack.i.h.bf16 %v18067_v0  ;;  %v2616_v28 = vrot.slane %v18075_v32, 4  ;;  %v18087_v33 = vld [vmem:[#allocation115_spill] sm:$0xff]  ;;  %v18088_v48 = vld [vmem:[#allocation153_spill] sm:$0xff]  ;;  %v18105_v61 = vld [vmem:[#allocation72_spill] sm:$0xff] }
 0x4dc   : > { %v1494_v34 = vsel %vm1471_vm7, %v1493_v13, %v18070_v52  ;;  %v3526_v21 = vsel %vm1471_vm7, %v3525_v55, %v18072_v8  ;;  %v18076_v56 = vunpack.i.h.bf16 %v18063_v1  ;;  %v18078_v29 = vunpack.i.l.bf16 %v18077_v16  ;;  %v18090_v0 = vld [vmem:[#allocation105_spill] sm:$0xff]  ;;  %7007 = vmatpush.msrb.mxu2 %v15520_v17  ;;  %7027 = vmatpush.msra.mxu3 %v15527_v37  ;;  %v18091_v52 = vld [vmem:[#allocation190_spill] sm:$0xff] }
 0x4dd   : > { %v3528_v25 = vsel %vm1469_vm6, %v18074_v27, %v18073_v31  ;;  %v18079_v43 = vunpack.i.h.bf16 %v18071_v2  ;;  %v2609_v9 = vsel %vm925_vm5, %v2608_v54, %v18080_v14  ;;  %v8266_v38 = vunpack.i.h.bf16 %v8264_v18  ;;  %v18094_v31 = vld [vmem:[#allocation152_spill] sm:$0xff]  ;;  %v18095_v27 = vld [vmem:[#allocation218_spill] sm:$0xff] }
 0x4de   : > { %v15778_v19 = vsel %vm1473_vm8, %v1494_v34, %v18076_v56  ;;  %v15783_v10 = vsel %vm1473_vm8, %v3526_v21, %v18078_v29  ;;  %v8265_v22 = vunpack.i.l.bf16 %v8264_v18  ;;  %v18082_v15 = vunpack.i.h.bf16 %v18077_v16  ;;  %7008 = vmatpush.msrb.mxu2 %v15660_v24  ;;  %7028 = vmatpush.msra.mxu3 %v15665_v50  ;;  %v18100_v24 = vld [vmem:[#allocation25_spill] sm:$0xff] }
 0x4df   : > { %v3529_v3 = vsel %vm1471_vm7, %v3528_v25, %v18079_v43  ;;  %v18084_v5 = vunpack.i.l.bf16 %v18083_v36  ;;  %v18086_v62 = vunpack.i.l.bf16 %v18085_v7  ;;  %v2617_v54 = vsel %vm925_vm5, %v2616_v28, %v18087_v33  ;;  %v18097_v28 = vld [vmem:[#allocation187_spill] sm:$0xff] }
 0x4e0   : > { %v3530_v23 = vsel %vm1473_vm8, %v3529_v3, %v18082_v15  ;;  %v1944_v40 = vrot.slane %v18088_v48, 4  ;;  %v1952_v13 = vrot.slane %v18089_v6, 4  ;;  %v8050_v20 = vunpack.i.l.bf16 %v18090_v0  ;;  %7009 = vmatpush.msrb.mxu2 %v15573_v63  ;;  %7029 = vmatpush.msra.mxu3 %v15578_v4  ;;  %v18111_v33 = vld [vmem:[#allocation147_spill] sm:$0xff] }
 0x4e1   : > { %v2844_v59 = vsel %vm1469_vm6, %v2609_v9, %v18084_v5  ;;  %v6856_v60 = vsel %vm1473_vm8, %v15515_v30, %v8265_v22  ;;  %v6859_v55 = vsel %vm1473_vm8, %v15524_v41, %v8266_v38  ;;  %v18092_v34 = vunpack.i.l.bf16 %v18091_v52  ;;  %v18103_v38 = vld [vmem:[#allocation98_spill] sm:$0xff] }
 0x4e2   : > { %v2845_v1 = vsel %vm1471_vm7, %v2844_v59, %v18086_v62  ;;  %v8056_v8 = vunpack.i.h.bf16 %v18091_v52  ;;  %6964 = vmatpush.msrb.mxu0 %v6856_v60  ;;  %6984 = vmatpush.msra.mxu1 %v6859_v55  ;;  %v18093_v21 = vunpack.i.h.bf16 %v18083_v36  ;;  %v1945_v37 = vsel %vm925_vm5, %v1944_v40, %v18094_v31  ;;  %v18107_v36 = vld [vmem:[#allocation184_spill] sm:$0xff]  ;;  %v18108_v59 = vld [vmem:[#allocation137_spill] sm:$0xff] }
 0x4e3   : > { %v2846_v2 = vsel %vm1473_vm8, %v2845_v1, %v18092_v34  ;;  %v1953_v30 = vsel %vm925_vm5, %v1952_v13, %v18095_v27  ;;  %v8176_v41 = vunpack.i.h.bf16 %v15302_v42  ;;  %v18096_v25 = vunpack.i.h.bf16 %v18085_v7  ;;  %7010 = vmatpush.msrb.mxu2 %v15635_v58  ;;  %7030 = vmatpush.msra.mxu3 %v15640_v47 }
 0x4e4   : > { %v2847_v17 = vsel %vm1469_vm6, %v2617_v54, %v18093_v21  ;;  %v18098_v18 = vunpack.i.l.bf16 %v18097_v28  ;;  %v18099_v16 = vunpack.i.h.bf16 %v18097_v28  ;;  %v8186_v43 = vunpack.i.h.bf16 %v15221_v35  ;;  %6965 = vmatpush.msrb.mxu0 %v15648_v45  ;;  %6985 = vmatpush.msra.mxu1 %v15653_v26 }
 0x4e5   : > { %v2848_v32 = vsel %vm1471_vm7, %v2847_v17, %v18096_v25  ;;  %v18101_v50 = vunpack.i.l.bf16 %v18100_v24  ;;  %v18102_v14 = vunpack.i.h.bf16 %v18100_v24  ;;  %v7796_v22 = vunpack.i.h.bf16 %v18103_v38  ;;  %7011 = vmatpush.msrb.mxu2 %v15691_v11  ;;  %7031 = vmatpush.msra.mxu3 %v15715_v46  ;;  %v6867_v11 = vld [vmem:[%s15945_s7] sm:$0xff] }
 0x4e6   : > { %v2180_v56 = vsel %vm1469_vm6, %v1945_v37, %v18098_v18  ;;  %v2183_v29 = vsel %vm1469_vm6, %v1953_v30, %v18099_v16  ;;  %v2849_v42 = vsel %vm1473_vm8, %v2848_v32, %v8056_v8  ;;  %v18104_v45 = vunpack.i.h.bf16 %v18090_v0  ;;  %6966 = vmatpush.msrb.mxu0 %v15583_v44  ;;  %6986 = vmatpush.msra.mxu1 %v15598_v53  ;;  %v18112_v53 = vld [vmem:[#allocation64_spill] sm:$0xff] }
 0x4e7   : > { %v2181_v3 = vsel %vm1471_vm7, %v2180_v56, %v18101_v50  ;;  %v2184_v9 = vsel %vm1471_vm7, %v2183_v29, %v18102_v14  ;;  %v18106_v15 = vunpack.i.l.bf16 %v18105_v61  ;;  %v8171_v7 = vunpack.i.h.bf16 %v18108_v59  ;;  %7012 = vmatpush.msrb.mxu2 %v15753_v51  ;;  %7032 = vmatpush.msra.mxu3 %v15778_v19 }
 0x4e8   : > { %v2182_v35 = vsel %vm1473_vm8, %v2181_v3, %v8050_v20  ;;  %v2185_v26 = vsel %vm1473_vm8, %v2184_v9, %v18104_v45  ;;  %v4193_v63 = vsel %vm1471_vm7, %v4192_v57, %v8186_v43  ;;  %v18109_v4 = vunpack.i.l.bf16 %v18103_v38  ;;  %6967 = vmatpush.msrb.mxu0 %v15729_v39  ;;  %v6866_v39 = vld [vmem:[%s15944_s6] sm:$0xff] }
 0x4e9   : > { %v1484_v5 = vsel %vm1469_vm6, %v18107_v36, %v18106_v15  ;;  %v18110_v1 = vunpack.i.h.bf16 %v18105_v61  ;;  %v8170_v48 = vunpack.i.l.bf16 %v18108_v59  ;;  %v4858_v44 = vsel %vm1473_vm8, %v15734_v12, %v8176_v41  ;;  %7206 = vmatmul.msk.f32.vlgmr.msra.gmra.mxu2 %vm6873_vm9, %v6866_v39  ;;  %7207 = vmatmul.msk.f32.vlgmr.msrb.gmra.mxu3 %vm6873_vm9, %v6866_v39 }
 0x4ea   : > { %v1485_v62 = vsel %vm1471_vm7, %v1484_v5, %v18109_v4  ;;  %v18113_v57 = vunpack.i.l.bf16 %v18112_v53  ;;  %6987 = vmatpush.msra.mxu1 %v4858_v44  ;;  %v18114_v13 = vunpack.i.h.bf16 %v18112_v53  ;;  %v4194_v47 = vsel %vm1473_vm8, %v4193_v63, %v8171_v7  ;;  %7204 = vmatmul.msk.f32.vlgmr.msra.gmra.mxu0 %vm6873_vm9, %v6866_v39 }
 0x4eb   : > { %v1487_v54 = vsel %vm1469_vm6, %v18111_v33, %v18110_v1  ;;  %v4191_v58 = vsel %vm1473_vm8, %v15739_v49, %v8170_v48  ;;  %7205 = vmatmul.msk.f32.vlgmr.msrb.gmra.mxu1 %vm6873_vm9, %v6866_v39  ;;  %v8359_v46 = vmov 0  }
 0x4ec   : > { %v1486_v40 = vsel %vm1473_vm8, %v1485_v62, %v18113_v57  ;;  %v1488_v6 = vsel %vm1471_vm7, %v1487_v54, %v7796_v22  ;;  %6968 = vmatpush.msrb.mxu0 %v4191_v58  ;;  %6988 = vmatpush.msra.mxu1 %v4194_v47 }
 0x4ed   : > { %v1489_v0 = vsel %vm1473_vm8, %v1488_v6, %v18114_v13  ;;  %8287 = vset.pattern.permute.xlu0 %v8359_v46 }
 0x4ee   : > { %6969 = vmatpush.msrb.mxu0 %v15783_v10  ;;  %6989 = vmatpush.msra.mxu1 %v3530_v23 }
 0x4ef   : > { %6870 = vperm.xlu0 %8287, %v6867_v11  }
 0x4f0   : > { %6970 = vmatpush.msrb.mxu0 %v2846_v2  ;;  %6990 = vmatpush.msra.mxu1 %v2849_v42 }
 0x4f1   : > { %7210 = vmatmul.msk.f32.vlgmr.msrb.gmra.mxu2 %vm6873_vm9, %v6866_v39  ;;  %7211 = vmatmul.msk.f32.vlgmr.msra.gmra.mxu3 %vm6873_vm9, %v6866_v39 }
 0x4f2   : > { %6971 = vmatpush.msrb.mxu0 %v2182_v35  ;;  %6991 = vmatpush.msra.mxu1 %v2185_v26 }
 0x4f4   : > { %6972 = vmatpush.msrb.mxu0 %v1486_v40  ;;  %6992 = vmatpush.msra.mxu1 %v1489_v0 }
 0x4f5   : > { %7208 = vmatmul.msk.f32.vlgmr.msrb.gmra.mxu0 %vm6873_vm9, %v6866_v39  ;;  %7209 = vmatmul.msk.f32.vlgmr.msra.gmra.mxu1 %vm6873_vm9, %v6866_v39 }
 0x561   : > { %v6871_v12 = vpop.permute.xlu0 %6870 }
 0x567   : > { %v6894_v49 = vpop.f32.mrf.mxu0 }
 0x568   : > { %v6914_v51 = vpop.f32.mrf.mxu1  ;;  %v6895_v19 = vadd.f32 %v6894_v49, %v6871_v12 }
 0x569   : > { %v6915_v10 = vadd.f32 %v6914_v51, %v6871_v12 }
 0x56a   : > { %7037 = vst [vmem:[%s313_s12] sm:$0xff] %v6895_v19 }
 0x56b   : > { %7038 = vst [vmem:[%s313_s12 + $0x8] sm:$0xff] %v6915_v10 }
 0x56c   : > { %v6934_v23 = vpop.f32.mrf.mxu2  ;;  %v6954_v20 = vpop.f32.mrf.mxu3 }
 0x56d   : > { %v6935_v60 = vadd.f32 %v6934_v23, %v6871_v12  ;;  %v6955_v55 = vadd.f32 %v6954_v20, %v6871_v12 }
 0x56f   : > { %7039 = vst [vmem:[%s313_s12 + $0x10] sm:$0xff] %v6935_v60 }
 0x570   : > { %7040 = vst [vmem:[%s313_s12 + $0x18] sm:$0xff] %v6955_v55 }
 0x572   : > { %v6974_v52 = vpop.f32.mrf.mxu0  ;;  %v6994_v34 = vpop.f32.mrf.mxu1 }
 0x573   : > { %v6975_v2 = vadd.f32 %v6974_v52, %v6871_v12  ;;  %v6995_v8 = vadd.f32 %v6994_v34, %v6871_v12 }
 0x574   : > { %v7014_v21 = vpop.f32.mrf.mxu2  ;;  %v7034_v17 = vpop.f32.mrf.mxu3 }
 0x575   : > { %7041 = vst [vmem:[%s313_s12 + $0x20] sm:$0xff] %v6975_v2  ;;  %v7015_v31 = vadd.f32 %v7014_v21, %v6871_v12  ;;  %v7035_v37 = vadd.f32 %v7034_v17, %v6871_v12 }
 0x576   : > { %7042 = vst [vmem:[%s313_s12 + $0x28] sm:$0xff] %v6995_v8 }
 0x577   : > { %7043 = vst [vmem:[%s313_s12 + $0x30] sm:$0xff] %v7015_v31 }
 0x578   : > { %7044 = vst [vmem:[%s313_s12 + $0x38] sm:$0xff] %v7035_v37 }
 0x579   : > { %8315 = shalt.err (!%p8312_p3)
}
 0x57a   : > { %7220 = dma.vmem_to_hbm [thread:$0]  (%p8443_p5), %s7060_s22, 1024, %s7062_s23, %s7046_s9  }
 0x57b PF: > { %p7226_p4 = scmp.ge.s32.totalorder %s8350_s30, 2  ;;  %s7073_s26 = sand.u32 1, %s8338_s27  }
 0x57c   : > { %s7074_s12 = scalar_lea.sflag [#allocation3], %s7073_s26 }
 0x57d   : > { %p7223_p7 = pnand %p7226_p4, %p8447_p6 }
 0x57f   : > { %p7224_p8 = pneg %p7223_p7 }
 0x581   : > { %8333 = dma.done.wait (%p7224_p8), %s7074_s12, 1024  }
 0x582   : > { %8335 = vsyncadd (%p7224_p8), %s7074_s12, 4294966272  ;;  %p18_p9 = scmp.ge.s32.totalorder %s8430_s11, 4   ;;  %s18115_s27 = smov %s8342_s28 }
 0x583   : > { %s18116_s28 = smov %s8346_s29  ;;  %s18117_s29 = smov %s8441_s14 }
 0x584   : > { %s18118_s30 = smov %s8430_s11  ;;  %20 = sbr.rel (!%p18_p9) target bundleno = 3 (0x3), region = 113 }
 0x589   :  { %7080 = vsyncpa [#allocation3], 1 }
 0x58a   :  { %7082 = vsyncpa [#allocation3 + $0x1], 1 }

</bundles_post_ra>
